<compile_context>
chip_gen: v6e
topology: v6e:2x2x1
jax: 0.10.0
libtpu: 0.0.40
codegen_flags: <defaults>
</compile_context>

<pallas_src>
import functools

import jax
import jax.numpy as jnp
from jax.experimental import pallas as pl
from jax.experimental.pallas import tpu as pltpu  # noqa: F401  (TPU backend assumed)


# --------------------------------------------------------------------------- spec helpers
def _full_specs(arrays):
    # full-array blocks; index_map ignores the (trivial) grid index
    return [pl.BlockSpec(a.shape, lambda i, _nd=a.ndim: (0,) * _nd) for a in arrays]


def _out_spec(shape):
    return pl.BlockSpec(shape, lambda i, _nd=len(shape): (0,) * _nd)


def _relu(x):
    return jnp.maximum(x, 0.0)


# --------------------------------------------------------------------------- in-kernel fused encoder
def _conv_step(x, w, b):
    """One stride-2 / pad-1 / 3x3 conv layer on a VMEM-resident value.

    x: (hin, win, n, cin) value — spatial in leading dims, batch in sublanes, channels in
    lanes.  Per tap, the needed (n, cin) blocks are gathered with static leading-dim indexing
    and stacked along sublanes (full 8-row tiles), then multiplied by the tap's weight slice
    (sublane-aligned row slice of w) and accumulated.  Returns (ho*wo*n, cout) with rows
    ordered (oh, ow, n).
    """
    hin, win, n, cin = x.shape
    ho, wo = hin // 2, win // 2
    zero = jnp.zeros((n, cin), x.dtype)
    out = None
    tap = 0
    for i in range(3):
        for j in range(3):
            rows = []
            for oh in range(ho):
                a = 2 * oh + i - 1
                for ow in range(wo):
                    bb = 2 * ow + j - 1
                    inside = (0 <= a < hin) and (0 <= bb < win)
                    rows.append(x[a, bb] if inside else zero)
            tap_block = jnp.concatenate(rows, axis=0)                   # (ho*wo*n, cin)
            w_t = w[tap * cin:(tap + 1) * cin, :]                       # (cin, cout)
            part = jnp.dot(tap_block, w_t, preferred_element_type=jnp.float32)
            out = part if out is None else out + part
            tap += 1
    return _relu(out + b)


def _encode_images(cols1, n_img, ho1, wo1, w1, b1, w2, b2, w3, b3):
    """Fused 3-layer strided-conv encoder, fully VMEM resident.

    cols1: (ho1*wo1*n, 9*cin) pre-packed im2col of the raw images, rows ordered (oh, ow, n).
    Returns a3 of shape (npos*n, c3) with rows ordered (pos, n); the per-image flatten is
    fused into the consumer matmul (see _flat_feat_matmul).
    """
    a1 = _relu(jnp.dot(cols1, w1, preferred_element_type=jnp.float32) + b1)   # (ho1*wo1*n, c1)
    a1 = a1.reshape(ho1, wo1, n_img, w1.shape[1])
    a2 = _conv_step(a1, w2, b2)                                               # (ho2*wo2*n, c2)
    a2 = a2.reshape(ho1 // 2, wo1 // 2, n_img, w2.shape[1])
    a3 = _conv_step(a2, w3, b3)                                               # (npos*n, c3)
    return a3


def _flat_feat_matmul(a3, w, n_img):
    """Equivalent to (per-image flattened features) @ w, with the flatten fused away.

    a3: (npos*n, c) rows ordered (pos, n); w: (npos*c, out) rows ordered (pos, c).
    Uses only sublane-aligned static slices + MXU matmuls.
    """
    npos_n, c = a3.shape
    npos = npos_n // n_img
    out = None
    for p in range(npos):
        part = jnp.dot(a3[p * n_img:(p + 1) * n_img, :],
                       w[p * c:(p + 1) * c, :],
                       preferred_element_type=jnp.float32)
        out = part if out is None else out + part
    return out


# --------------------------------------------------------------------------- fused kernels
def _context_kernel(cols_ref, ew1_ref, eb1_ref, ew2_ref, eb2_ref, ew3_ref, eb3_ref,
                    lab_ref, wy_ref, by_ref,
                    t1a_ref, t1b_ref, t1bias_ref,
                    t2w_ref, t2b_ref, t3w_ref, t3b_ref,
                    muw_ref, mub_ref, d1b_ref, pool_ref,
                    dproj_ref, *, n_img, ho1, wo1):
    """ctx image encoder -> transform_y -> task encoder MLP -> per-task mean -> mu -> mu@d1b."""
    a3 = _encode_images(cols_ref[...], n_img, ho1, wo1,
                        ew1_ref[...], eb1_ref[...], ew2_ref[...], eb2_ref[...],
                        ew3_ref[...], eb3_ref[...])
    # transform_y
    yw = jnp.dot(lab_ref[...], wy_ref[...], preferred_element_type=jnp.float32) + by_ref[...]
    # concat([x_ctx, transform_y(label)], -1) @ W1  ==  x_ctx @ W1[:256] + yw @ W1[256:]
    h = (_flat_feat_matmul(a3, t1a_ref[...], n_img)
         + jnp.dot(yw, t1b_ref[...], preferred_element_type=jnp.float32) + t1bias_ref[...])
    h = _relu(h)
    h = _relu(jnp.dot(h, t2w_ref[...], preferred_element_type=jnp.float32) + t2b_ref[...])
    h = _relu(jnp.dot(h, t3w_ref[...], preferred_element_type=jnp.float32) + t3b_ref[...])
    # agg_mode == 'mean': per-task mean via a constant pooling matmul (MXU, scales w/ task_num)
    ctx_mean = jnp.dot(pool_ref[...], h, preferred_element_type=jnp.float32)        # (T, 256)
    mu = jnp.dot(ctx_mean, muw_ref[...], preferred_element_type=jnp.float32) + mub_ref[...]
    # hoisted decoder projection: sample_features @ d1b is the same for every test row of a task
    dproj_ref[...] = jnp.dot(mu, d1b_ref[...], preferred_element_type=jnp.float32)  # (T, 256)


def _decoder_kernel(cols_ref, dw1_ref, db1_ref, dw2_ref, db2_ref, dw3_ref, db3_ref,
                    dproj_ref, expand_ref,
                    d1a_ref, d1bias_ref, d2w_ref, d2b_ref, wav_ref, bav_ref,
                    out_ref, *, n_img, ho1, wo1, y_dim):
    """test image encoder -> decoder MLP -> merged (angles | 1e-5+softplus(var)) slab."""
    a3 = _encode_images(cols_ref[...], n_img, ho1, wo1,
                        dw1_ref[...], db1_ref[...], dw2_ref[...], db2_ref[...],
                        dw3_ref[...], db3_ref[...])
    # broadcast the per-task (mu @ d1b) projection to per test row via a constant expand matmul
    sfp = jnp.dot(expand_ref[...], dproj_ref[...], preferred_element_type=jnp.float32)
    h = _relu(_flat_feat_matmul(a3, d1a_ref[...], n_img) + sfp + d1bias_ref[...])
    h = _relu(jnp.dot(h, d2w_ref[...], preferred_element_type=jnp.float32) + d2b_ref[...])
    # merged heads: one matmul, columns [0:y_dim]=angles, [y_dim:2*y_dim]=var
    raw = jnp.dot(h, wav_ref[...], preferred_element_type=jnp.float32) + bav_ref[...]
    sp = jnp.maximum(raw, 0.0) + jnp.log1p(jnp.exp(-jnp.abs(raw)))   # stable softplus
    col = jax.lax.broadcasted_iota(jnp.int32, raw.shape, 1)
    out_ref[...] = jnp.where(col >= y_dim, 1e-5 + sp, raw)


# --------------------------------------------------------------------------- wrapper helpers
def _im2col_input(x, k=3, stride=2, pad=1):
    """One-time pre-pack of the raw images for the fused encoder kernel.

    x: (N, C, H, W) NCHW.  Returns (ho*wo*N, k*k*C) with rows ordered (oh, ow, n) and
    columns ordered (tap=(ki,kj), cin), plus (ho, wo).
    """
    n, c, h, w = x.shape
    xp = jnp.pad(x, ((0, 0), (0, 0), (pad, pad), (pad, pad)))
    ho = (h + 2 * pad - k) // stride + 1
    wo = (w + 2 * pad - k) // stride + 1
    taps = [xp[:, :, i:i + stride * ho:stride, j:j + stride * wo:stride]
            for i in range(k) for j in range(k)]          # each (N, C, ho, wo)
    t = jnp.stack(taps, axis=0)                           # (k*k, N, C, ho, wo)
    t = t.transpose(3, 4, 1, 0, 2)                        # (ho, wo, N, k*k, C)
    return t.reshape(ho * wo * n, k * k * c), ho, wo


# --------------------------------------------------------------------------- parameters
def init_params(key, img_channels, label_dim, dim_w, y_dim):
    keys = iter(jax.random.split(key, 32))

    def lin(kin, kout):
        w = jax.random.normal(next(keys), (kin, kout), jnp.float32) * (2.0 / kin) ** 0.5
        return w, jnp.zeros((1, kout), jnp.float32)        # bias pre-shaped (1, out)

    def conv(cin, cout, k=3):
        # conv weight stored pre-packed for the im2col matmul: rows ordered (ki, kj, cin)
        w = (jax.random.normal(next(keys), (k * k * cin, cout), jnp.float32)
             * (2.0 / (cin * k * k)) ** 0.5)
        return w, jnp.zeros((1, cout), jnp.float32)

    p = {}
    # context image encoder (representative: 3x strided conv -> 2*2*64 = 256 features)
    p["enc_c1"], p["enc_c2"], p["enc_c3"] = conv(img_channels, 32), conv(32, 48), conv(48, 64)
    # decoder's image encoder (test images)
    p["dec_c1"], p["dec_c2"], p["dec_c3"] = conv(img_channels, 32), conv(32, 48), conv(48, 64)
    # transform_y : Linear(label_dim, dim_w)
    p["wy"] = lin(label_dim, dim_w)
    # task_encoder : Linear(256+dim_w,256) x3 (+ReLU); split first layer for concat-free kernel
    w1, b1 = lin(256 + dim_w, 256)
    p["te1a"], p["te1b"], p["te1_b"] = w1[:256], w1[256:], b1
    p["te2"], p["te3"] = lin(256, 256), lin(256, 256)
    # mu : Linear(256,256)
    p["mu"] = lin(256, 256)
    # decoder MLP : concat(256 img, 256 sample) -> 256 -> 128 -> merged heads
    wd1, bd1 = lin(512, 256)
    p["d1a"], p["d1b"], p["d1_b"] = wd1[:256], wd1[256:], bd1
    p["d2"] = lin(256, 128)
    p["wav"] = lin(128, 2 * y_dim)   # merged (angles | var) head -> one lane-denser matmul
    return p


# --------------------------------------------------------------------------- forward
def cnp_distractor_forward(params, batch_train_images, label_train, batch_test_images, *,
                           task_num, ctx_num, test_num, img_channels, img_size, y_dim):
    H, W = img_size[0], img_size[1]
    f32 = jnp.float32

    # ---- context branch: one fused pallas_call ----
    n_ctx = task_num * ctx_num
    xtr = batch_train_images.reshape(-1, img_channels, H, W)
    cols_ctx, ho1, wo1 = _im2col_input(xtr)
    lab = label_train.reshape(n_ctx, -1)
    # constant per-task mean pooling matrix (task-major, ctx_num contiguous rows per task)
    pool = jnp.repeat(jnp.eye(task_num, dtype=f32), ctx_num, axis=1) / float(ctx_num)

    ew1, eb1 = params["enc_c1"]; ew2, eb2 = params["enc_c2"]; ew3, eb3 = params["enc_c3"]
    wy, by = params["wy"]
    t2w, t2b = params["te2"]; t3w, t3b = params["te3"]
    muw, mub = params["mu"]

    ctx_args = [cols_ctx, ew1, eb1, ew2, eb2, ew3, eb3,
                lab, wy, by,
                params["te1a"], params["te1b"], params["te1_b"],
                t2w, t2b, t3w, t3b, muw, mub, params["d1b"], pool]
    dproj = pl.pallas_call(
        functools.partial(_context_kernel, n_img=n_ctx, ho1=ho1, wo1=wo1),
        out_shape=jax.ShapeDtypeStruct((task_num, 256), f32),
        grid=(1,),
        in_specs=_full_specs(ctx_args),
        out_specs=_out_spec((task_num, 256)),
    )(*ctx_args)                                           # (T, 256) = mu @ d1b

    # ---- target / decoder branch: one fused pallas_call ----
    n_test = task_num * test_num
    xte = batch_test_images.reshape(-1, img_channels, H, W)
    cols_test, ho1t, wo1t = _im2col_input(xte)
    expand = jnp.repeat(jnp.eye(task_num, dtype=f32), test_num, axis=0)   # (T*test, T)

    dw1, db1 = params["dec_c1"]; dw2, db2 = params["dec_c2"]; dw3, db3 = params["dec_c3"]
    d2w, d2b = params["d2"]
    wav, bav = params["wav"]

    dec_args = [cols_test, dw1, db1, dw2, db2, dw3, db3,
                dproj, expand,
                params["d1a"], params["d1_b"], d2w, d2b, wav, bav]
    slab = pl.pallas_call(
        functools.partial(_decoder_kernel, n_img=n_test, ho1=ho1t, wo1=wo1t, y_dim=y_dim),
        out_shape=jax.ShapeDtypeStruct((n_test, 2 * y_dim), f32),
        grid=(1,),
        in_specs=_full_specs(dec_args),
        out_specs=_out_spec((n_test, 2 * y_dim)),
    )(*dec_args)

    generated_angles = slab[:, :y_dim].reshape(task_num, test_num, y_dim)
    generated_var = slab[:, y_dim:].reshape(task_num, test_num, y_dim)
    kl = 0
    # save_latent_z = False branch of the reference forward
    return generated_angles, generated_var, kl


# --------------------------------------------------------------------------- demo
if __name__ == "__main__":
    # config: img_size=(16,16,3), tasks_per_batch=2, input_dim=2, dim_w=32,
    #         output_dim=1, agg_mode='mean', save_latent_z=False
    task_num, ctx_num, test_num = 2, 4, 4
    img_size = (16, 16, 3)
    img_channels = img_size[2]
    label_dim, dim_w, y_dim = 2, 32, 1

    key = jax.random.PRNGKey(0)
    k_par, k_tr, k_lab, k_te = jax.random.split(key, 4)

    params = init_params(k_par, img_channels, label_dim, dim_w, y_dim)

    batch_train_images = jax.random.normal(
        k_tr, (task_num, ctx_num, img_channels, img_size[0], img_size[1]), jnp.float32)
    label_train = jax.random.normal(k_lab, (task_num, ctx_num, label_dim), jnp.float32)
    batch_test_images = jax.random.normal(
        k_te, (task_num, test_num, img_channels, img_size[0], img_size[1]), jnp.float32)

    fwd = jax.jit(functools.partial(
        cnp_distractor_forward,
        task_num=task_num, ctx_num=ctx_num, test_num=test_num,
        img_channels=img_channels, img_size=img_size, y_dim=y_dim))

    angles, var, kl = fwd(params, batch_train_images, label_train, batch_test_images)
    jax.block_until_ready((angles, var))

    assert angles.shape == (task_num, test_num, y_dim)
    assert var.shape == (task_num, test_num, y_dim)
    assert bool(jnp.all(var > 0.0))
    print("KERNEL_OK")
</pallas_src>

<mosaic_0001>
module attributes {stable_mosaic.version = 11 : i64} {
  func.func @_context_kernel(%arg0: i32, %arg1: memref<512x27xf32, #tpu.memory_space<vmem>>, %arg2: memref<27x32xf32, #tpu.memory_space<vmem>>, %arg3: memref<1x32xf32, #tpu.memory_space<vmem>>, %arg4: memref<288x48xf32, #tpu.memory_space<vmem>>, %arg5: memref<1x48xf32, #tpu.memory_space<vmem>>, %arg6: memref<432x64xf32, #tpu.memory_space<vmem>>, %arg7: memref<1x64xf32, #tpu.memory_space<vmem>>, %arg8: memref<8x2xf32, #tpu.memory_space<vmem>>, %arg9: memref<2x32xf32, #tpu.memory_space<vmem>>, %arg10: memref<1x32xf32, #tpu.memory_space<vmem>>, %arg11: memref<256x256xf32, #tpu.memory_space<vmem>>, %arg12: memref<32x256xf32, #tpu.memory_space<vmem>>, %arg13: memref<1x256xf32, #tpu.memory_space<vmem>>, %arg14: memref<256x256xf32, #tpu.memory_space<vmem>>, %arg15: memref<1x256xf32, #tpu.memory_space<vmem>>, %arg16: memref<256x256xf32, #tpu.memory_space<vmem>>, %arg17: memref<1x256xf32, #tpu.memory_space<vmem>>, %arg18: memref<256x256xf32, #tpu.memory_space<vmem>>, %arg19: memref<1x256xf32, #tpu.memory_space<vmem>>, %arg20: memref<256x256xf32, #tpu.memory_space<vmem>>, %arg21: memref<2x8xf32, #tpu.memory_space<vmem>>, %arg22: memref<2x256xf32, #tpu.memory_space<vmem>>) attributes {dimension_semantics = [#tpu.dimension_semantics<arbitrary>], iteration_bounds = array<i64: 1>, scalar_prefetch = 0 : i64, scratch_operands = 0 : i64, tpu.core_type = #tpu.core_type<tc>, window_params = [{pipeline_mode = #tpu.pipeline_mode<synchronous>, transform_indices = @transform_0, window_bounds = array<i64: 512, 27>}, {pipeline_mode = #tpu.pipeline_mode<synchronous>, transform_indices = @transform_1, window_bounds = array<i64: 27, 32>}, {pipeline_mode = #tpu.pipeline_mode<synchronous>, transform_indices = @transform_2, window_bounds = array<i64: 1, 32>}, {pipeline_mode = #tpu.pipeline_mode<synchronous>, transform_indices = @transform_3, window_bounds = array<i64: 288, 48>}, {pipeline_mode = #tpu.pipeline_mode<synchronous>, transform_indices = @transform_4, window_bounds = array<i64: 1, 48>}, {pipeline_mode = #tpu.pipeline_mode<synchronous>, transform_indices = @transform_5, window_bounds = array<i64: 432, 64>}, {pipeline_mode = #tpu.pipeline_mode<synchronous>, transform_indices = @transform_6, window_bounds = array<i64: 1, 64>}, {pipeline_mode = #tpu.pipeline_mode<synchronous>, transform_indices = @transform_7, window_bounds = array<i64: 8, 2>}, {pipeline_mode = #tpu.pipeline_mode<synchronous>, transform_indices = @transform_8, window_bounds = array<i64: 2, 32>}, {pipeline_mode = #tpu.pipeline_mode<synchronous>, transform_indices = @transform_9, window_bounds = array<i64: 1, 32>}, {pipeline_mode = #tpu.pipeline_mode<synchronous>, transform_indices = @transform_10, window_bounds = array<i64: 256, 256>}, {pipeline_mode = #tpu.pipeline_mode<synchronous>, transform_indices = @transform_11, window_bounds = array<i64: 32, 256>}, {pipeline_mode = #tpu.pipeline_mode<synchronous>, transform_indices = @transform_12, window_bounds = array<i64: 1, 256>}, {pipeline_mode = #tpu.pipeline_mode<synchronous>, transform_indices = @transform_13, window_bounds = array<i64: 256, 256>}, {pipeline_mode = #tpu.pipeline_mode<synchronous>, transform_indices = @transform_14, window_bounds = array<i64: 1, 256>}, {pipeline_mode = #tpu.pipeline_mode<synchronous>, transform_indices = @transform_15, window_bounds = array<i64: 256, 256>}, {pipeline_mode = #tpu.pipeline_mode<synchronous>, transform_indices = @transform_16, window_bounds = array<i64: 1, 256>}, {pipeline_mode = #tpu.pipeline_mode<synchronous>, transform_indices = @transform_17, window_bounds = array<i64: 256, 256>}, {pipeline_mode = #tpu.pipeline_mode<synchronous>, transform_indices = @transform_18, window_bounds = array<i64: 1, 256>}, {pipeline_mode = #tpu.pipeline_mode<synchronous>, transform_indices = @transform_19, window_bounds = array<i64: 256, 256>}, {pipeline_mode = #tpu.pipeline_mode<synchronous>, transform_indices = @transform_20, window_bounds = array<i64: 2, 8>}, {pipeline_mode = #tpu.pipeline_mode<synchronous>, transform_indices = @transform_21, window_bounds = array<i64: 2, 256>}]} {
    %c0 = arith.constant 0 : index
    %c0_0 = arith.constant 0 : index
    %0 = vector.load %arg1[%c0, %c0_0] : memref<512x27xf32, #tpu.memory_space<vmem>>, vector<512x27xf32>
    %c0_1 = arith.constant 0 : index
    %c0_2 = arith.constant 0 : index
    %1 = vector.load %arg2[%c0_1, %c0_2] : memref<27x32xf32, #tpu.memory_space<vmem>>, vector<27x32xf32>
    %c0_3 = arith.constant 0 : index
    %c0_4 = arith.constant 0 : index
    %2 = vector.load %arg3[%c0_3, %c0_4] : memref<1x32xf32, #tpu.memory_space<vmem>>, vector<1x32xf32>
    %c0_5 = arith.constant 0 : index
    %c0_6 = arith.constant 0 : index
    %3 = vector.load %arg4[%c0_5, %c0_6] : memref<288x48xf32, #tpu.memory_space<vmem>>, vector<288x48xf32>
    %c0_7 = arith.constant 0 : index
    %c0_8 = arith.constant 0 : index
    %4 = vector.load %arg5[%c0_7, %c0_8] : memref<1x48xf32, #tpu.memory_space<vmem>>, vector<1x48xf32>
    %c0_9 = arith.constant 0 : index
    %c0_10 = arith.constant 0 : index
    %5 = vector.load %arg6[%c0_9, %c0_10] : memref<432x64xf32, #tpu.memory_space<vmem>>, vector<432x64xf32>
    %c0_11 = arith.constant 0 : index
    %c0_12 = arith.constant 0 : index
    %6 = vector.load %arg7[%c0_11, %c0_12] : memref<1x64xf32, #tpu.memory_space<vmem>>, vector<1x64xf32>
    %cst = arith.constant dense<0.000000e+00> : vector<512x32xf32>
    %7 = tpu.matmul %0, %1, %cst {dimension_numbers = #tpu.dot_dimension_numbers<[1], [0], [0], [1], [0, 0, 1, 1], [], []>} : vector<512x27xf32>, vector<27x32xf32>, vector<512x32xf32> -> vector<512x32xf32>
    %8 = vector.broadcast %2 : vector<1x32xf32> to vector<512x32xf32>
    %9 = arith.addf %7, %8 : vector<512x32xf32>
    %cst_13 = arith.constant 0.000000e+00 : f32
    %10 = vector.broadcast %cst_13 : f32 to vector<512x32xf32>
    %11 = arith.maximumf %9, %10 : vector<512x32xf32>
    %12 = vector.shape_cast %11 : vector<512x32xf32> to vector<8x8x8x32xf32>
    %cst_14 = arith.constant 0.000000e+00 : f32
    %13 = vector.broadcast %cst_14 : f32 to vector<8x32xf32>
    %14 = vector.extract_strided_slice %12 {offsets = [1, 1, 0, 0], sizes = [1, 1, 8, 32], strides = [1, 1, 1, 1]} : vector<8x8x8x32xf32> to vector<1x1x8x32xf32>
    %15 = vector.shape_cast %14 : vector<1x1x8x32xf32> to vector<8x32xf32>
    %16 = vector.extract_strided_slice %12 {offsets = [1, 3, 0, 0], sizes = [1, 1, 8, 32], strides = [1, 1, 1, 1]} : vector<8x8x8x32xf32> to vector<1x1x8x32xf32>
    %17 = vector.shape_cast %16 : vector<1x1x8x32xf32> to vector<8x32xf32>
    %18 = vector.extract_strided_slice %12 {offsets = [1, 5, 0, 0], sizes = [1, 1, 8, 32], strides = [1, 1, 1, 1]} : vector<8x8x8x32xf32> to vector<1x1x8x32xf32>
    %19 = vector.shape_cast %18 : vector<1x1x8x32xf32> to vector<8x32xf32>
    %20 = vector.extract_strided_slice %12 {offsets = [3, 1, 0, 0], sizes = [1, 1, 8, 32], strides = [1, 1, 1, 1]} : vector<8x8x8x32xf32> to vector<1x1x8x32xf32>
    %21 = vector.shape_cast %20 : vector<1x1x8x32xf32> to vector<8x32xf32>
    %22 = vector.extract_strided_slice %12 {offsets = [3, 3, 0, 0], sizes = [1, 1, 8, 32], strides = [1, 1, 1, 1]} : vector<8x8x8x32xf32> to vector<1x1x8x32xf32>
    %23 = vector.shape_cast %22 : vector<1x1x8x32xf32> to vector<8x32xf32>
    %24 = vector.extract_strided_slice %12 {offsets = [3, 5, 0, 0], sizes = [1, 1, 8, 32], strides = [1, 1, 1, 1]} : vector<8x8x8x32xf32> to vector<1x1x8x32xf32>
    %25 = vector.shape_cast %24 : vector<1x1x8x32xf32> to vector<8x32xf32>
    %26 = vector.extract_strided_slice %12 {offsets = [5, 1, 0, 0], sizes = [1, 1, 8, 32], strides = [1, 1, 1, 1]} : vector<8x8x8x32xf32> to vector<1x1x8x32xf32>
    %27 = vector.shape_cast %26 : vector<1x1x8x32xf32> to vector<8x32xf32>
    %28 = vector.extract_strided_slice %12 {offsets = [5, 3, 0, 0], sizes = [1, 1, 8, 32], strides = [1, 1, 1, 1]} : vector<8x8x8x32xf32> to vector<1x1x8x32xf32>
    %29 = vector.shape_cast %28 : vector<1x1x8x32xf32> to vector<8x32xf32>
    %30 = vector.extract_strided_slice %12 {offsets = [5, 5, 0, 0], sizes = [1, 1, 8, 32], strides = [1, 1, 1, 1]} : vector<8x8x8x32xf32> to vector<1x1x8x32xf32>
    %31 = vector.shape_cast %30 : vector<1x1x8x32xf32> to vector<8x32xf32>
    %32 = tpu.concatenate %13, %13, %13, %13, %13, %15, %17, %19, %13, %21, %23, %25, %13, %27, %29, %31 in 0 : vector<8x32xf32>, vector<8x32xf32>, vector<8x32xf32>, vector<8x32xf32>, vector<8x32xf32>, vector<8x32xf32>, vector<8x32xf32>, vector<8x32xf32>, vector<8x32xf32>, vector<8x32xf32>, vector<8x32xf32>, vector<8x32xf32>, vector<8x32xf32>, vector<8x32xf32>, vector<8x32xf32>, vector<8x32xf32> -> vector<128x32xf32>
    %33 = vector.extract_strided_slice %3 {offsets = [0, 0], sizes = [32, 48], strides = [1, 1]} : vector<288x48xf32> to vector<32x48xf32>
    %cst_15 = arith.constant dense<0.000000e+00> : vector<128x48xf32>
    %34 = tpu.matmul %32, %33, %cst_15 {dimension_numbers = #tpu.dot_dimension_numbers<[1], [0], [0], [1], [0, 0, 1, 1], [], []>} : vector<128x32xf32>, vector<32x48xf32>, vector<128x48xf32> -> vector<128x48xf32>
    %35 = vector.extract_strided_slice %12 {offsets = [1, 0, 0, 0], sizes = [1, 1, 8, 32], strides = [1, 1, 1, 1]} : vector<8x8x8x32xf32> to vector<1x1x8x32xf32>
    %36 = vector.shape_cast %35 : vector<1x1x8x32xf32> to vector<8x32xf32>
    %37 = vector.extract_strided_slice %12 {offsets = [1, 2, 0, 0], sizes = [1, 1, 8, 32], strides = [1, 1, 1, 1]} : vector<8x8x8x32xf32> to vector<1x1x8x32xf32>
    %38 = vector.shape_cast %37 : vector<1x1x8x32xf32> to vector<8x32xf32>
    %39 = vector.extract_strided_slice %12 {offsets = [1, 4, 0, 0], sizes = [1, 1, 8, 32], strides = [1, 1, 1, 1]} : vector<8x8x8x32xf32> to vector<1x1x8x32xf32>
    %40 = vector.shape_cast %39 : vector<1x1x8x32xf32> to vector<8x32xf32>
    %41 = vector.extract_strided_slice %12 {offsets = [1, 6, 0, 0], sizes = [1, 1, 8, 32], strides = [1, 1, 1, 1]} : vector<8x8x8x32xf32> to vector<1x1x8x32xf32>
    %42 = vector.shape_cast %41 : vector<1x1x8x32xf32> to vector<8x32xf32>
    %43 = vector.extract_strided_slice %12 {offsets = [3, 0, 0, 0], sizes = [1, 1, 8, 32], strides = [1, 1, 1, 1]} : vector<8x8x8x32xf32> to vector<1x1x8x32xf32>
    %44 = vector.shape_cast %43 : vector<1x1x8x32xf32> to vector<8x32xf32>
    %45 = vector.extract_strided_slice %12 {offsets = [3, 2, 0, 0], sizes = [1, 1, 8, 32], strides = [1, 1, 1, 1]} : vector<8x8x8x32xf32> to vector<1x1x8x32xf32>
    %46 = vector.shape_cast %45 : vector<1x1x8x32xf32> to vector<8x32xf32>
    %47 = vector.extract_strided_slice %12 {offsets = [3, 4, 0, 0], sizes = [1, 1, 8, 32], strides = [1, 1, 1, 1]} : vector<8x8x8x32xf32> to vector<1x1x8x32xf32>
    %48 = vector.shape_cast %47 : vector<1x1x8x32xf32> to vector<8x32xf32>
    %49 = vector.extract_strided_slice %12 {offsets = [3, 6, 0, 0], sizes = [1, 1, 8, 32], strides = [1, 1, 1, 1]} : vector<8x8x8x32xf32> to vector<1x1x8x32xf32>
    %50 = vector.shape_cast %49 : vector<1x1x8x32xf32> to vector<8x32xf32>
    %51 = vector.extract_strided_slice %12 {offsets = [5, 0, 0, 0], sizes = [1, 1, 8, 32], strides = [1, 1, 1, 1]} : vector<8x8x8x32xf32> to vector<1x1x8x32xf32>
    %52 = vector.shape_cast %51 : vector<1x1x8x32xf32> to vector<8x32xf32>
    %53 = vector.extract_strided_slice %12 {offsets = [5, 2, 0, 0], sizes = [1, 1, 8, 32], strides = [1, 1, 1, 1]} : vector<8x8x8x32xf32> to vector<1x1x8x32xf32>
    %54 = vector.shape_cast %53 : vector<1x1x8x32xf32> to vector<8x32xf32>
    %55 = vector.extract_strided_slice %12 {offsets = [5, 4, 0, 0], sizes = [1, 1, 8, 32], strides = [1, 1, 1, 1]} : vector<8x8x8x32xf32> to vector<1x1x8x32xf32>
    %56 = vector.shape_cast %55 : vector<1x1x8x32xf32> to vector<8x32xf32>
    %57 = vector.extract_strided_slice %12 {offsets = [5, 6, 0, 0], sizes = [1, 1, 8, 32], strides = [1, 1, 1, 1]} : vector<8x8x8x32xf32> to vector<1x1x8x32xf32>
    %58 = vector.shape_cast %57 : vector<1x1x8x32xf32> to vector<8x32xf32>
    %59 = tpu.concatenate %13, %13, %13, %13, %36, %38, %40, %42, %44, %46, %48, %50, %52, %54, %56, %58 in 0 : vector<8x32xf32>, vector<8x32xf32>, vector<8x32xf32>, vector<8x32xf32>, vector<8x32xf32>, vector<8x32xf32>, vector<8x32xf32>, vector<8x32xf32>, vector<8x32xf32>, vector<8x32xf32>, vector<8x32xf32>, vector<8x32xf32>, vector<8x32xf32>, vector<8x32xf32>, vector<8x32xf32>, vector<8x32xf32> -> vector<128x32xf32>
    %60 = vector.extract_strided_slice %3 {offsets = [32, 0], sizes = [32, 48], strides = [1, 1]} : vector<288x48xf32> to vector<32x48xf32>
    %cst_16 = arith.constant dense<0.000000e+00> : vector<128x48xf32>
    %61 = tpu.matmul %59, %60, %cst_16 {dimension_numbers = #tpu.dot_dimension_numbers<[1], [0], [0], [1], [0, 0, 1, 1], [], []>} : vector<128x32xf32>, vector<32x48xf32>, vector<128x48xf32> -> vector<128x48xf32>
    %62 = arith.addf %34, %61 : vector<128x48xf32>
    %63 = vector.extract_strided_slice %12 {offsets = [1, 1, 0, 0], sizes = [1, 1, 8, 32], strides = [1, 1, 1, 1]} : vector<8x8x8x32xf32> to vector<1x1x8x32xf32>
    %64 = vector.shape_cast %63 : vector<1x1x8x32xf32> to vector<8x32xf32>
    %65 = vector.extract_strided_slice %12 {offsets = [1, 3, 0, 0], sizes = [1, 1, 8, 32], strides = [1, 1, 1, 1]} : vector<8x8x8x32xf32> to vector<1x1x8x32xf32>
    %66 = vector.shape_cast %65 : vector<1x1x8x32xf32> to vector<8x32xf32>
    %67 = vector.extract_strided_slice %12 {offsets = [1, 5, 0, 0], sizes = [1, 1, 8, 32], strides = [1, 1, 1, 1]} : vector<8x8x8x32xf32> to vector<1x1x8x32xf32>
    %68 = vector.shape_cast %67 : vector<1x1x8x32xf32> to vector<8x32xf32>
    %69 = vector.extract_strided_slice %12 {offsets = [1, 7, 0, 0], sizes = [1, 1, 8, 32], strides = [1, 1, 1, 1]} : vector<8x8x8x32xf32> to vector<1x1x8x32xf32>
    %70 = vector.shape_cast %69 : vector<1x1x8x32xf32> to vector<8x32xf32>
    %71 = vector.extract_strided_slice %12 {offsets = [3, 1, 0, 0], sizes = [1, 1, 8, 32], strides = [1, 1, 1, 1]} : vector<8x8x8x32xf32> to vector<1x1x8x32xf32>
    %72 = vector.shape_cast %71 : vector<1x1x8x32xf32> to vector<8x32xf32>
    %73 = vector.extract_strided_slice %12 {offsets = [3, 3, 0, 0], sizes = [1, 1, 8, 32], strides = [1, 1, 1, 1]} : vector<8x8x8x32xf32> to vector<1x1x8x32xf32>
    %74 = vector.shape_cast %73 : vector<1x1x8x32xf32> to vector<8x32xf32>
    %75 = vector.extract_strided_slice %12 {offsets = [3, 5, 0, 0], sizes = [1, 1, 8, 32], strides = [1, 1, 1, 1]} : vector<8x8x8x32xf32> to vector<1x1x8x32xf32>
    %76 = vector.shape_cast %75 : vector<1x1x8x32xf32> to vector<8x32xf32>
    %77 = vector.extract_strided_slice %12 {offsets = [3, 7, 0, 0], sizes = [1, 1, 8, 32], strides = [1, 1, 1, 1]} : vector<8x8x8x32xf32> to vector<1x1x8x32xf32>
    %78 = vector.shape_cast %77 : vector<1x1x8x32xf32> to vector<8x32xf32>
    %79 = vector.extract_strided_slice %12 {offsets = [5, 1, 0, 0], sizes = [1, 1, 8, 32], strides = [1, 1, 1, 1]} : vector<8x8x8x32xf32> to vector<1x1x8x32xf32>
    %80 = vector.shape_cast %79 : vector<1x1x8x32xf32> to vector<8x32xf32>
    %81 = vector.extract_strided_slice %12 {offsets = [5, 3, 0, 0], sizes = [1, 1, 8, 32], strides = [1, 1, 1, 1]} : vector<8x8x8x32xf32> to vector<1x1x8x32xf32>
    %82 = vector.shape_cast %81 : vector<1x1x8x32xf32> to vector<8x32xf32>
    %83 = vector.extract_strided_slice %12 {offsets = [5, 5, 0, 0], sizes = [1, 1, 8, 32], strides = [1, 1, 1, 1]} : vector<8x8x8x32xf32> to vector<1x1x8x32xf32>
    %84 = vector.shape_cast %83 : vector<1x1x8x32xf32> to vector<8x32xf32>
    %85 = vector.extract_strided_slice %12 {offsets = [5, 7, 0, 0], sizes = [1, 1, 8, 32], strides = [1, 1, 1, 1]} : vector<8x8x8x32xf32> to vector<1x1x8x32xf32>
    %86 = vector.shape_cast %85 : vector<1x1x8x32xf32> to vector<8x32xf32>
    %87 = tpu.concatenate %13, %13, %13, %13, %64, %66, %68, %70, %72, %74, %76, %78, %80, %82, %84, %86 in 0 : vector<8x32xf32>, vector<8x32xf32>, vector<8x32xf32>, vector<8x32xf32>, vector<8x32xf32>, vector<8x32xf32>, vector<8x32xf32>, vector<8x32xf32>, vector<8x32xf32>, vector<8x32xf32>, vector<8x32xf32>, vector<8x32xf32>, vector<8x32xf32>, vector<8x32xf32>, vector<8x32xf32>, vector<8x32xf32> -> vector<128x32xf32>
    %88 = vector.extract_strided_slice %3 {offsets = [64, 0], sizes = [32, 48], strides = [1, 1]} : vector<288x48xf32> to vector<32x48xf32>
    %cst_17 = arith.constant dense<0.000000e+00> : vector<128x48xf32>
    %89 = tpu.matmul %87, %88, %cst_17 {dimension_numbers = #tpu.dot_dimension_numbers<[1], [0], [0], [1], [0, 0, 1, 1], [], []>} : vector<128x32xf32>, vector<32x48xf32>, vector<128x48xf32> -> vector<128x48xf32>
    %90 = arith.addf %62, %89 : vector<128x48xf32>
    %91 = vector.extract_strided_slice %12 {offsets = [0, 1, 0, 0], sizes = [1, 1, 8, 32], strides = [1, 1, 1, 1]} : vector<8x8x8x32xf32> to vector<1x1x8x32xf32>
    %92 = vector.shape_cast %91 : vector<1x1x8x32xf32> to vector<8x32xf32>
    %93 = vector.extract_strided_slice %12 {offsets = [0, 3, 0, 0], sizes = [1, 1, 8, 32], strides = [1, 1, 1, 1]} : vector<8x8x8x32xf32> to vector<1x1x8x32xf32>
    %94 = vector.shape_cast %93 : vector<1x1x8x32xf32> to vector<8x32xf32>
    %95 = vector.extract_strided_slice %12 {offsets = [0, 5, 0, 0], sizes = [1, 1, 8, 32], strides = [1, 1, 1, 1]} : vector<8x8x8x32xf32> to vector<1x1x8x32xf32>
    %96 = vector.shape_cast %95 : vector<1x1x8x32xf32> to vector<8x32xf32>
    %97 = vector.extract_strided_slice %12 {offsets = [2, 1, 0, 0], sizes = [1, 1, 8, 32], strides = [1, 1, 1, 1]} : vector<8x8x8x32xf32> to vector<1x1x8x32xf32>
    %98 = vector.shape_cast %97 : vector<1x1x8x32xf32> to vector<8x32xf32>
    %99 = vector.extract_strided_slice %12 {offsets = [2, 3, 0, 0], sizes = [1, 1, 8, 32], strides = [1, 1, 1, 1]} : vector<8x8x8x32xf32> to vector<1x1x8x32xf32>
    %100 = vector.shape_cast %99 : vector<1x1x8x32xf32> to vector<8x32xf32>
    %101 = vector.extract_strided_slice %12 {offsets = [2, 5, 0, 0], sizes = [1, 1, 8, 32], strides = [1, 1, 1, 1]} : vector<8x8x8x32xf32> to vector<1x1x8x32xf32>
    %102 = vector.shape_cast %101 : vector<1x1x8x32xf32> to vector<8x32xf32>
    %103 = vector.extract_strided_slice %12 {offsets = [4, 1, 0, 0], sizes = [1, 1, 8, 32], strides = [1, 1, 1, 1]} : vector<8x8x8x32xf32> to vector<1x1x8x32xf32>
    %104 = vector.shape_cast %103 : vector<1x1x8x32xf32> to vector<8x32xf32>
    %105 = vector.extract_strided_slice %12 {offsets = [4, 3, 0, 0], sizes = [1, 1, 8, 32], strides = [1, 1, 1, 1]} : vector<8x8x8x32xf32> to vector<1x1x8x32xf32>
    %106 = vector.shape_cast %105 : vector<1x1x8x32xf32> to vector<8x32xf32>
    %107 = vector.extract_strided_slice %12 {offsets = [4, 5, 0, 0], sizes = [1, 1, 8, 32], strides = [1, 1, 1, 1]} : vector<8x8x8x32xf32> to vector<1x1x8x32xf32>
    %108 = vector.shape_cast %107 : vector<1x1x8x32xf32> to vector<8x32xf32>
    %109 = vector.extract_strided_slice %12 {offsets = [6, 1, 0, 0], sizes = [1, 1, 8, 32], strides = [1, 1, 1, 1]} : vector<8x8x8x32xf32> to vector<1x1x8x32xf32>
    %110 = vector.shape_cast %109 : vector<1x1x8x32xf32> to vector<8x32xf32>
    %111 = vector.extract_strided_slice %12 {offsets = [6, 3, 0, 0], sizes = [1, 1, 8, 32], strides = [1, 1, 1, 1]} : vector<8x8x8x32xf32> to vector<1x1x8x32xf32>
    %112 = vector.shape_cast %111 : vector<1x1x8x32xf32> to vector<8x32xf32>
    %113 = vector.extract_strided_slice %12 {offsets = [6, 5, 0, 0], sizes = [1, 1, 8, 32], strides = [1, 1, 1, 1]} : vector<8x8x8x32xf32> to vector<1x1x8x32xf32>
    %114 = vector.shape_cast %113 : vector<1x1x8x32xf32> to vector<8x32xf32>
    %115 = tpu.concatenate %13, %92, %94, %96, %13, %98, %100, %102, %13, %104, %106, %108, %13, %110, %112, %114 in 0 : vector<8x32xf32>, vector<8x32xf32>, vector<8x32xf32>, vector<8x32xf32>, vector<8x32xf32>, vector<8x32xf32>, vector<8x32xf32>, vector<8x32xf32>, vector<8x32xf32>, vector<8x32xf32>, vector<8x32xf32>, vector<8x32xf32>, vector<8x32xf32>, vector<8x32xf32>, vector<8x32xf32>, vector<8x32xf32> -> vector<128x32xf32>
    %116 = vector.extract_strided_slice %3 {offsets = [96, 0], sizes = [32, 48], strides = [1, 1]} : vector<288x48xf32> to vector<32x48xf32>
    %cst_18 = arith.constant dense<0.000000e+00> : vector<128x48xf32>
    %117 = tpu.matmul %115, %116, %cst_18 {dimension_numbers = #tpu.dot_dimension_numbers<[1], [0], [0], [1], [0, 0, 1, 1], [], []>} : vector<128x32xf32>, vector<32x48xf32>, vector<128x48xf32> -> vector<128x48xf32>
    %118 = arith.addf %90, %117 : vector<128x48xf32>
    %119 = vector.extract_strided_slice %12 {offsets = [0, 0, 0, 0], sizes = [1, 1, 8, 32], strides = [1, 1, 1, 1]} : vector<8x8x8x32xf32> to vector<1x1x8x32xf32>
    %120 = vector.shape_cast %119 : vector<1x1x8x32xf32> to vector<8x32xf32>
    %121 = vector.extract_strided_slice %12 {offsets = [0, 2, 0, 0], sizes = [1, 1, 8, 32], strides = [1, 1, 1, 1]} : vector<8x8x8x32xf32> to vector<1x1x8x32xf32>
    %122 = vector.shape_cast %121 : vector<1x1x8x32xf32> to vector<8x32xf32>
    %123 = vector.extract_strided_slice %12 {offsets = [0, 4, 0, 0], sizes = [1, 1, 8, 32], strides = [1, 1, 1, 1]} : vector<8x8x8x32xf32> to vector<1x1x8x32xf32>
    %124 = vector.shape_cast %123 : vector<1x1x8x32xf32> to vector<8x32xf32>
    %125 = vector.extract_strided_slice %12 {offsets = [0, 6, 0, 0], sizes = [1, 1, 8, 32], strides = [1, 1, 1, 1]} : vector<8x8x8x32xf32> to vector<1x1x8x32xf32>
    %126 = vector.shape_cast %125 : vector<1x1x8x32xf32> to vector<8x32xf32>
    %127 = vector.extract_strided_slice %12 {offsets = [2, 0, 0, 0], sizes = [1, 1, 8, 32], strides = [1, 1, 1, 1]} : vector<8x8x8x32xf32> to vector<1x1x8x32xf32>
    %128 = vector.shape_cast %127 : vector<1x1x8x32xf32> to vector<8x32xf32>
    %129 = vector.extract_strided_slice %12 {offsets = [2, 2, 0, 0], sizes = [1, 1, 8, 32], strides = [1, 1, 1, 1]} : vector<8x8x8x32xf32> to vector<1x1x8x32xf32>
    %130 = vector.shape_cast %129 : vector<1x1x8x32xf32> to vector<8x32xf32>
    %131 = vector.extract_strided_slice %12 {offsets = [2, 4, 0, 0], sizes = [1, 1, 8, 32], strides = [1, 1, 1, 1]} : vector<8x8x8x32xf32> to vector<1x1x8x32xf32>
    %132 = vector.shape_cast %131 : vector<1x1x8x32xf32> to vector<8x32xf32>
    %133 = vector.extract_strided_slice %12 {offsets = [2, 6, 0, 0], sizes = [1, 1, 8, 32], strides = [1, 1, 1, 1]} : vector<8x8x8x32xf32> to vector<1x1x8x32xf32>
    %134 = vector.shape_cast %133 : vector<1x1x8x32xf32> to vector<8x32xf32>
    %135 = vector.extract_strided_slice %12 {offsets = [4, 0, 0, 0], sizes = [1, 1, 8, 32], strides = [1, 1, 1, 1]} : vector<8x8x8x32xf32> to vector<1x1x8x32xf32>
    %136 = vector.shape_cast %135 : vector<1x1x8x32xf32> to vector<8x32xf32>
    %137 = vector.extract_strided_slice %12 {offsets = [4, 2, 0, 0], sizes = [1, 1, 8, 32], strides = [1, 1, 1, 1]} : vector<8x8x8x32xf32> to vector<1x1x8x32xf32>
    %138 = vector.shape_cast %137 : vector<1x1x8x32xf32> to vector<8x32xf32>
    %139 = vector.extract_strided_slice %12 {offsets = [4, 4, 0, 0], sizes = [1, 1, 8, 32], strides = [1, 1, 1, 1]} : vector<8x8x8x32xf32> to vector<1x1x8x32xf32>
    %140 = vector.shape_cast %139 : vector<1x1x8x32xf32> to vector<8x32xf32>
    %141 = vector.extract_strided_slice %12 {offsets = [4, 6, 0, 0], sizes = [1, 1, 8, 32], strides = [1, 1, 1, 1]} : vector<8x8x8x32xf32> to vector<1x1x8x32xf32>
    %142 = vector.shape_cast %141 : vector<1x1x8x32xf32> to vector<8x32xf32>
    %143 = vector.extract_strided_slice %12 {offsets = [6, 0, 0, 0], sizes = [1, 1, 8, 32], strides = [1, 1, 1, 1]} : vector<8x8x8x32xf32> to vector<1x1x8x32xf32>
    %144 = vector.shape_cast %143 : vector<1x1x8x32xf32> to vector<8x32xf32>
    %145 = vector.extract_strided_slice %12 {offsets = [6, 2, 0, 0], sizes = [1, 1, 8, 32], strides = [1, 1, 1, 1]} : vector<8x8x8x32xf32> to vector<1x1x8x32xf32>
    %146 = vector.shape_cast %145 : vector<1x1x8x32xf32> to vector<8x32xf32>
    %147 = vector.extract_strided_slice %12 {offsets = [6, 4, 0, 0], sizes = [1, 1, 8, 32], strides = [1, 1, 1, 1]} : vector<8x8x8x32xf32> to vector<1x1x8x32xf32>
    %148 = vector.shape_cast %147 : vector<1x1x8x32xf32> to vector<8x32xf32>
    %149 = vector.extract_strided_slice %12 {offsets = [6, 6, 0, 0], sizes = [1, 1, 8, 32], strides = [1, 1, 1, 1]} : vector<8x8x8x32xf32> to vector<1x1x8x32xf32>
    %150 = vector.shape_cast %149 : vector<1x1x8x32xf32> to vector<8x32xf32>
    %151 = tpu.concatenate %120, %122, %124, %126, %128, %130, %132, %134, %136, %138, %140, %142, %144, %146, %148, %150 in 0 : vector<8x32xf32>, vector<8x32xf32>, vector<8x32xf32>, vector<8x32xf32>, vector<8x32xf32>, vector<8x32xf32>, vector<8x32xf32>, vector<8x32xf32>, vector<8x32xf32>, vector<8x32xf32>, vector<8x32xf32>, vector<8x32xf32>, vector<8x32xf32>, vector<8x32xf32>, vector<8x32xf32>, vector<8x32xf32> -> vector<128x32xf32>
    %152 = vector.extract_strided_slice %3 {offsets = [128, 0], sizes = [32, 48], strides = [1, 1]} : vector<288x48xf32> to vector<32x48xf32>
    %cst_19 = arith.constant dense<0.000000e+00> : vector<128x48xf32>
    %153 = tpu.matmul %151, %152, %cst_19 {dimension_numbers = #tpu.dot_dimension_numbers<[1], [0], [0], [1], [0, 0, 1, 1], [], []>} : vector<128x32xf32>, vector<32x48xf32>, vector<128x48xf32> -> vector<128x48xf32>
    %154 = arith.addf %118, %153 : vector<128x48xf32>
    %155 = vector.extract_strided_slice %12 {offsets = [0, 1, 0, 0], sizes = [1, 1, 8, 32], strides = [1, 1, 1, 1]} : vector<8x8x8x32xf32> to vector<1x1x8x32xf32>
    %156 = vector.shape_cast %155 : vector<1x1x8x32xf32> to vector<8x32xf32>
    %157 = vector.extract_strided_slice %12 {offsets = [0, 3, 0, 0], sizes = [1, 1, 8, 32], strides = [1, 1, 1, 1]} : vector<8x8x8x32xf32> to vector<1x1x8x32xf32>
    %158 = vector.shape_cast %157 : vector<1x1x8x32xf32> to vector<8x32xf32>
    %159 = vector.extract_strided_slice %12 {offsets = [0, 5, 0, 0], sizes = [1, 1, 8, 32], strides = [1, 1, 1, 1]} : vector<8x8x8x32xf32> to vector<1x1x8x32xf32>
    %160 = vector.shape_cast %159 : vector<1x1x8x32xf32> to vector<8x32xf32>
    %161 = vector.extract_strided_slice %12 {offsets = [0, 7, 0, 0], sizes = [1, 1, 8, 32], strides = [1, 1, 1, 1]} : vector<8x8x8x32xf32> to vector<1x1x8x32xf32>
    %162 = vector.shape_cast %161 : vector<1x1x8x32xf32> to vector<8x32xf32>
    %163 = vector.extract_strided_slice %12 {offsets = [2, 1, 0, 0], sizes = [1, 1, 8, 32], strides = [1, 1, 1, 1]} : vector<8x8x8x32xf32> to vector<1x1x8x32xf32>
    %164 = vector.shape_cast %163 : vector<1x1x8x32xf32> to vector<8x32xf32>
    %165 = vector.extract_strided_slice %12 {offsets = [2, 3, 0, 0], sizes = [1, 1, 8, 32], strides = [1, 1, 1, 1]} : vector<8x8x8x32xf32> to vector<1x1x8x32xf32>
    %166 = vector.shape_cast %165 : vector<1x1x8x32xf32> to vector<8x32xf32>
    %167 = vector.extract_strided_slice %12 {offsets = [2, 5, 0, 0], sizes = [1, 1, 8, 32], strides = [1, 1, 1, 1]} : vector<8x8x8x32xf32> to vector<1x1x8x32xf32>
    %168 = vector.shape_cast %167 : vector<1x1x8x32xf32> to vector<8x32xf32>
    %169 = vector.extract_strided_slice %12 {offsets = [2, 7, 0, 0], sizes = [1, 1, 8, 32], strides = [1, 1, 1, 1]} : vector<8x8x8x32xf32> to vector<1x1x8x32xf32>
    %170 = vector.shape_cast %169 : vector<1x1x8x32xf32> to vector<8x32xf32>
    %171 = vector.extract_strided_slice %12 {offsets = [4, 1, 0, 0], sizes = [1, 1, 8, 32], strides = [1, 1, 1, 1]} : vector<8x8x8x32xf32> to vector<1x1x8x32xf32>
    %172 = vector.shape_cast %171 : vector<1x1x8x32xf32> to vector<8x32xf32>
    %173 = vector.extract_strided_slice %12 {offsets = [4, 3, 0, 0], sizes = [1, 1, 8, 32], strides = [1, 1, 1, 1]} : vector<8x8x8x32xf32> to vector<1x1x8x32xf32>
    %174 = vector.shape_cast %173 : vector<1x1x8x32xf32> to vector<8x32xf32>
    %175 = vector.extract_strided_slice %12 {offsets = [4, 5, 0, 0], sizes = [1, 1, 8, 32], strides = [1, 1, 1, 1]} : vector<8x8x8x32xf32> to vector<1x1x8x32xf32>
    %176 = vector.shape_cast %175 : vector<1x1x8x32xf32> to vector<8x32xf32>
    %177 = vector.extract_strided_slice %12 {offsets = [4, 7, 0, 0], sizes = [1, 1, 8, 32], strides = [1, 1, 1, 1]} : vector<8x8x8x32xf32> to vector<1x1x8x32xf32>
    %178 = vector.shape_cast %177 : vector<1x1x8x32xf32> to vector<8x32xf32>
    %179 = vector.extract_strided_slice %12 {offsets = [6, 1, 0, 0], sizes = [1, 1, 8, 32], strides = [1, 1, 1, 1]} : vector<8x8x8x32xf32> to vector<1x1x8x32xf32>
    %180 = vector.shape_cast %179 : vector<1x1x8x32xf32> to vector<8x32xf32>
    %181 = vector.extract_strided_slice %12 {offsets = [6, 3, 0, 0], sizes = [1, 1, 8, 32], strides = [1, 1, 1, 1]} : vector<8x8x8x32xf32> to vector<1x1x8x32xf32>
    %182 = vector.shape_cast %181 : vector<1x1x8x32xf32> to vector<8x32xf32>
    %183 = vector.extract_strided_slice %12 {offsets = [6, 5, 0, 0], sizes = [1, 1, 8, 32], strides = [1, 1, 1, 1]} : vector<8x8x8x32xf32> to vector<1x1x8x32xf32>
    %184 = vector.shape_cast %183 : vector<1x1x8x32xf32> to vector<8x32xf32>
    %185 = vector.extract_strided_slice %12 {offsets = [6, 7, 0, 0], sizes = [1, 1, 8, 32], strides = [1, 1, 1, 1]} : vector<8x8x8x32xf32> to vector<1x1x8x32xf32>
    %186 = vector.shape_cast %185 : vector<1x1x8x32xf32> to vector<8x32xf32>
    %187 = tpu.concatenate %156, %158, %160, %162, %164, %166, %168, %170, %172, %174, %176, %178, %180, %182, %184, %186 in 0 : vector<8x32xf32>, vector<8x32xf32>, vector<8x32xf32>, vector<8x32xf32>, vector<8x32xf32>, vector<8x32xf32>, vector<8x32xf32>, vector<8x32xf32>, vector<8x32xf32>, vector<8x32xf32>, vector<8x32xf32>, vector<8x32xf32>, vector<8x32xf32>, vector<8x32xf32>, vector<8x32xf32>, vector<8x32xf32> -> vector<128x32xf32>
    %188 = vector.extract_strided_slice %3 {offsets = [160, 0], sizes = [32, 48], strides = [1, 1]} : vector<288x48xf32> to vector<32x48xf32>
    %cst_20 = arith.constant dense<0.000000e+00> : vector<128x48xf32>
    %189 = tpu.matmul %187, %188, %cst_20 {dimension_numbers = #tpu.dot_dimension_numbers<[1], [0], [0], [1], [0, 0, 1, 1], [], []>} : vector<128x32xf32>, vector<32x48xf32>, vector<128x48xf32> -> vector<128x48xf32>
    %190 = arith.addf %154, %189 : vector<128x48xf32>
    %191 = vector.extract_strided_slice %12 {offsets = [1, 1, 0, 0], sizes = [1, 1, 8, 32], strides = [1, 1, 1, 1]} : vector<8x8x8x32xf32> to vector<1x1x8x32xf32>
    %192 = vector.shape_cast %191 : vector<1x1x8x32xf32> to vector<8x32xf32>
    %193 = vector.extract_strided_slice %12 {offsets = [1, 3, 0, 0], sizes = [1, 1, 8, 32], strides = [1, 1, 1, 1]} : vector<8x8x8x32xf32> to vector<1x1x8x32xf32>
    %194 = vector.shape_cast %193 : vector<1x1x8x32xf32> to vector<8x32xf32>
    %195 = vector.extract_strided_slice %12 {offsets = [1, 5, 0, 0], sizes = [1, 1, 8, 32], strides = [1, 1, 1, 1]} : vector<8x8x8x32xf32> to vector<1x1x8x32xf32>
    %196 = vector.shape_cast %195 : vector<1x1x8x32xf32> to vector<8x32xf32>
    %197 = vector.extract_strided_slice %12 {offsets = [3, 1, 0, 0], sizes = [1, 1, 8, 32], strides = [1, 1, 1, 1]} : vector<8x8x8x32xf32> to vector<1x1x8x32xf32>
    %198 = vector.shape_cast %197 : vector<1x1x8x32xf32> to vector<8x32xf32>
    %199 = vector.extract_strided_slice %12 {offsets = [3, 3, 0, 0], sizes = [1, 1, 8, 32], strides = [1, 1, 1, 1]} : vector<8x8x8x32xf32> to vector<1x1x8x32xf32>
    %200 = vector.shape_cast %199 : vector<1x1x8x32xf32> to vector<8x32xf32>
    %201 = vector.extract_strided_slice %12 {offsets = [3, 5, 0, 0], sizes = [1, 1, 8, 32], strides = [1, 1, 1, 1]} : vector<8x8x8x32xf32> to vector<1x1x8x32xf32>
    %202 = vector.shape_cast %201 : vector<1x1x8x32xf32> to vector<8x32xf32>
    %203 = vector.extract_strided_slice %12 {offsets = [5, 1, 0, 0], sizes = [1, 1, 8, 32], strides = [1, 1, 1, 1]} : vector<8x8x8x32xf32> to vector<1x1x8x32xf32>
    %204 = vector.shape_cast %203 : vector<1x1x8x32xf32> to vector<8x32xf32>
    %205 = vector.extract_strided_slice %12 {offsets = [5, 3, 0, 0], sizes = [1, 1, 8, 32], strides = [1, 1, 1, 1]} : vector<8x8x8x32xf32> to vector<1x1x8x32xf32>
    %206 = vector.shape_cast %205 : vector<1x1x8x32xf32> to vector<8x32xf32>
    %207 = vector.extract_strided_slice %12 {offsets = [5, 5, 0, 0], sizes = [1, 1, 8, 32], strides = [1, 1, 1, 1]} : vector<8x8x8x32xf32> to vector<1x1x8x32xf32>
    %208 = vector.shape_cast %207 : vector<1x1x8x32xf32> to vector<8x32xf32>
    %209 = vector.extract_strided_slice %12 {offsets = [7, 1, 0, 0], sizes = [1, 1, 8, 32], strides = [1, 1, 1, 1]} : vector<8x8x8x32xf32> to vector<1x1x8x32xf32>
    %210 = vector.shape_cast %209 : vector<1x1x8x32xf32> to vector<8x32xf32>
    %211 = vector.extract_strided_slice %12 {offsets = [7, 3, 0, 0], sizes = [1, 1, 8, 32], strides = [1, 1, 1, 1]} : vector<8x8x8x32xf32> to vector<1x1x8x32xf32>
    %212 = vector.shape_cast %211 : vector<1x1x8x32xf32> to vector<8x32xf32>
    %213 = vector.extract_strided_slice %12 {offsets = [7, 5, 0, 0], sizes = [1, 1, 8, 32], strides = [1, 1, 1, 1]} : vector<8x8x8x32xf32> to vector<1x1x8x32xf32>
    %214 = vector.shape_cast %213 : vector<1x1x8x32xf32> to vector<8x32xf32>
    %215 = tpu.concatenate %13, %192, %194, %196, %13, %198, %200, %202, %13, %204, %206, %208, %13, %210, %212, %214 in 0 : vector<8x32xf32>, vector<8x32xf32>, vector<8x32xf32>, vector<8x32xf32>, vector<8x32xf32>, vector<8x32xf32>, vector<8x32xf32>, vector<8x32xf32>, vector<8x32xf32>, vector<8x32xf32>, vector<8x32xf32>, vector<8x32xf32>, vector<8x32xf32>, vector<8x32xf32>, vector<8x32xf32>, vector<8x32xf32> -> vector<128x32xf32>
    %216 = vector.extract_strided_slice %3 {offsets = [192, 0], sizes = [32, 48], strides = [1, 1]} : vector<288x48xf32> to vector<32x48xf32>
    %cst_21 = arith.constant dense<0.000000e+00> : vector<128x48xf32>
    %217 = tpu.matmul %215, %216, %cst_21 {dimension_numbers = #tpu.dot_dimension_numbers<[1], [0], [0], [1], [0, 0, 1, 1], [], []>} : vector<128x32xf32>, vector<32x48xf32>, vector<128x48xf32> -> vector<128x48xf32>
    %218 = arith.addf %190, %217 : vector<128x48xf32>
    %219 = vector.extract_strided_slice %12 {offsets = [1, 0, 0, 0], sizes = [1, 1, 8, 32], strides = [1, 1, 1, 1]} : vector<8x8x8x32xf32> to vector<1x1x8x32xf32>
    %220 = vector.shape_cast %219 : vector<1x1x8x32xf32> to vector<8x32xf32>
    %221 = vector.extract_strided_slice %12 {offsets = [1, 2, 0, 0], sizes = [1, 1, 8, 32], strides = [1, 1, 1, 1]} : vector<8x8x8x32xf32> to vector<1x1x8x32xf32>
    %222 = vector.shape_cast %221 : vector<1x1x8x32xf32> to vector<8x32xf32>
    %223 = vector.extract_strided_slice %12 {offsets = [1, 4, 0, 0], sizes = [1, 1, 8, 32], strides = [1, 1, 1, 1]} : vector<8x8x8x32xf32> to vector<1x1x8x32xf32>
    %224 = vector.shape_cast %223 : vector<1x1x8x32xf32> to vector<8x32xf32>
    %225 = vector.extract_strided_slice %12 {offsets = [1, 6, 0, 0], sizes = [1, 1, 8, 32], strides = [1, 1, 1, 1]} : vector<8x8x8x32xf32> to vector<1x1x8x32xf32>
    %226 = vector.shape_cast %225 : vector<1x1x8x32xf32> to vector<8x32xf32>
    %227 = vector.extract_strided_slice %12 {offsets = [3, 0, 0, 0], sizes = [1, 1, 8, 32], strides = [1, 1, 1, 1]} : vector<8x8x8x32xf32> to vector<1x1x8x32xf32>
    %228 = vector.shape_cast %227 : vector<1x1x8x32xf32> to vector<8x32xf32>
    %229 = vector.extract_strided_slice %12 {offsets = [3, 2, 0, 0], sizes = [1, 1, 8, 32], strides = [1, 1, 1, 1]} : vector<8x8x8x32xf32> to vector<1x1x8x32xf32>
    %230 = vector.shape_cast %229 : vector<1x1x8x32xf32> to vector<8x32xf32>
    %231 = vector.extract_strided_slice %12 {offsets = [3, 4, 0, 0], sizes = [1, 1, 8, 32], strides = [1, 1, 1, 1]} : vector<8x8x8x32xf32> to vector<1x1x8x32xf32>
    %232 = vector.shape_cast %231 : vector<1x1x8x32xf32> to vector<8x32xf32>
    %233 = vector.extract_strided_slice %12 {offsets = [3, 6, 0, 0], sizes = [1, 1, 8, 32], strides = [1, 1, 1, 1]} : vector<8x8x8x32xf32> to vector<1x1x8x32xf32>
    %234 = vector.shape_cast %233 : vector<1x1x8x32xf32> to vector<8x32xf32>
    %235 = vector.extract_strided_slice %12 {offsets = [5, 0, 0, 0], sizes = [1, 1, 8, 32], strides = [1, 1, 1, 1]} : vector<8x8x8x32xf32> to vector<1x1x8x32xf32>
    %236 = vector.shape_cast %235 : vector<1x1x8x32xf32> to vector<8x32xf32>
    %237 = vector.extract_strided_slice %12 {offsets = [5, 2, 0, 0], sizes = [1, 1, 8, 32], strides = [1, 1, 1, 1]} : vector<8x8x8x32xf32> to vector<1x1x8x32xf32>
    %238 = vector.shape_cast %237 : vector<1x1x8x32xf32> to vector<8x32xf32>
    %239 = vector.extract_strided_slice %12 {offsets = [5, 4, 0, 0], sizes = [1, 1, 8, 32], strides = [1, 1, 1, 1]} : vector<8x8x8x32xf32> to vector<1x1x8x32xf32>
    %240 = vector.shape_cast %239 : vector<1x1x8x32xf32> to vector<8x32xf32>
    %241 = vector.extract_strided_slice %12 {offsets = [5, 6, 0, 0], sizes = [1, 1, 8, 32], strides = [1, 1, 1, 1]} : vector<8x8x8x32xf32> to vector<1x1x8x32xf32>
    %242 = vector.shape_cast %241 : vector<1x1x8x32xf32> to vector<8x32xf32>
    %243 = vector.extract_strided_slice %12 {offsets = [7, 0, 0, 0], sizes = [1, 1, 8, 32], strides = [1, 1, 1, 1]} : vector<8x8x8x32xf32> to vector<1x1x8x32xf32>
    %244 = vector.shape_cast %243 : vector<1x1x8x32xf32> to vector<8x32xf32>
    %245 = vector.extract_strided_slice %12 {offsets = [7, 2, 0, 0], sizes = [1, 1, 8, 32], strides = [1, 1, 1, 1]} : vector<8x8x8x32xf32> to vector<1x1x8x32xf32>
    %246 = vector.shape_cast %245 : vector<1x1x8x32xf32> to vector<8x32xf32>
    %247 = vector.extract_strided_slice %12 {offsets = [7, 4, 0, 0], sizes = [1, 1, 8, 32], strides = [1, 1, 1, 1]} : vector<8x8x8x32xf32> to vector<1x1x8x32xf32>
    %248 = vector.shape_cast %247 : vector<1x1x8x32xf32> to vector<8x32xf32>
    %249 = vector.extract_strided_slice %12 {offsets = [7, 6, 0, 0], sizes = [1, 1, 8, 32], strides = [1, 1, 1, 1]} : vector<8x8x8x32xf32> to vector<1x1x8x32xf32>
    %250 = vector.shape_cast %249 : vector<1x1x8x32xf32> to vector<8x32xf32>
    %251 = tpu.concatenate %220, %222, %224, %226, %228, %230, %232, %234, %236, %238, %240, %242, %244, %246, %248, %250 in 0 : vector<8x32xf32>, vector<8x32xf32>, vector<8x32xf32>, vector<8x32xf32>, vector<8x32xf32>, vector<8x32xf32>, vector<8x32xf32>, vector<8x32xf32>, vector<8x32xf32>, vector<8x32xf32>, vector<8x32xf32>, vector<8x32xf32>, vector<8x32xf32>, vector<8x32xf32>, vector<8x32xf32>, vector<8x32xf32> -> vector<128x32xf32>
    %252 = vector.extract_strided_slice %3 {offsets = [224, 0], sizes = [32, 48], strides = [1, 1]} : vector<288x48xf32> to vector<32x48xf32>
    %cst_22 = arith.constant dense<0.000000e+00> : vector<128x48xf32>
    %253 = tpu.matmul %251, %252, %cst_22 {dimension_numbers = #tpu.dot_dimension_numbers<[1], [0], [0], [1], [0, 0, 1, 1], [], []>} : vector<128x32xf32>, vector<32x48xf32>, vector<128x48xf32> -> vector<128x48xf32>
    %254 = arith.addf %218, %253 : vector<128x48xf32>
    %255 = vector.extract_strided_slice %12 {offsets = [1, 1, 0, 0], sizes = [1, 1, 8, 32], strides = [1, 1, 1, 1]} : vector<8x8x8x32xf32> to vector<1x1x8x32xf32>
    %256 = vector.shape_cast %255 : vector<1x1x8x32xf32> to vector<8x32xf32>
    %257 = vector.extract_strided_slice %12 {offsets = [1, 3, 0, 0], sizes = [1, 1, 8, 32], strides = [1, 1, 1, 1]} : vector<8x8x8x32xf32> to vector<1x1x8x32xf32>
    %258 = vector.shape_cast %257 : vector<1x1x8x32xf32> to vector<8x32xf32>
    %259 = vector.extract_strided_slice %12 {offsets = [1, 5, 0, 0], sizes = [1, 1, 8, 32], strides = [1, 1, 1, 1]} : vector<8x8x8x32xf32> to vector<1x1x8x32xf32>
    %260 = vector.shape_cast %259 : vector<1x1x8x32xf32> to vector<8x32xf32>
    %261 = vector.extract_strided_slice %12 {offsets = [1, 7, 0, 0], sizes = [1, 1, 8, 32], strides = [1, 1, 1, 1]} : vector<8x8x8x32xf32> to vector<1x1x8x32xf32>
    %262 = vector.shape_cast %261 : vector<1x1x8x32xf32> to vector<8x32xf32>
    %263 = vector.extract_strided_slice %12 {offsets = [3, 1, 0, 0], sizes = [1, 1, 8, 32], strides = [1, 1, 1, 1]} : vector<8x8x8x32xf32> to vector<1x1x8x32xf32>
    %264 = vector.shape_cast %263 : vector<1x1x8x32xf32> to vector<8x32xf32>
    %265 = vector.extract_strided_slice %12 {offsets = [3, 3, 0, 0], sizes = [1, 1, 8, 32], strides = [1, 1, 1, 1]} : vector<8x8x8x32xf32> to vector<1x1x8x32xf32>
    %266 = vector.shape_cast %265 : vector<1x1x8x32xf32> to vector<8x32xf32>
    %267 = vector.extract_strided_slice %12 {offsets = [3, 5, 0, 0], sizes = [1, 1, 8, 32], strides = [1, 1, 1, 1]} : vector<8x8x8x32xf32> to vector<1x1x8x32xf32>
    %268 = vector.shape_cast %267 : vector<1x1x8x32xf32> to vector<8x32xf32>
    %269 = vector.extract_strided_slice %12 {offsets = [3, 7, 0, 0], sizes = [1, 1, 8, 32], strides = [1, 1, 1, 1]} : vector<8x8x8x32xf32> to vector<1x1x8x32xf32>
    %270 = vector.shape_cast %269 : vector<1x1x8x32xf32> to vector<8x32xf32>
    %271 = vector.extract_strided_slice %12 {offsets = [5, 1, 0, 0], sizes = [1, 1, 8, 32], strides = [1, 1, 1, 1]} : vector<8x8x8x32xf32> to vector<1x1x8x32xf32>
    %272 = vector.shape_cast %271 : vector<1x1x8x32xf32> to vector<8x32xf32>
    %273 = vector.extract_strided_slice %12 {offsets = [5, 3, 0, 0], sizes = [1, 1, 8, 32], strides = [1, 1, 1, 1]} : vector<8x8x8x32xf32> to vector<1x1x8x32xf32>
    %274 = vector.shape_cast %273 : vector<1x1x8x32xf32> to vector<8x32xf32>
    %275 = vector.extract_strided_slice %12 {offsets = [5, 5, 0, 0], sizes = [1, 1, 8, 32], strides = [1, 1, 1, 1]} : vector<8x8x8x32xf32> to vector<1x1x8x32xf32>
    %276 = vector.shape_cast %275 : vector<1x1x8x32xf32> to vector<8x32xf32>
    %277 = vector.extract_strided_slice %12 {offsets = [5, 7, 0, 0], sizes = [1, 1, 8, 32], strides = [1, 1, 1, 1]} : vector<8x8x8x32xf32> to vector<1x1x8x32xf32>
    %278 = vector.shape_cast %277 : vector<1x1x8x32xf32> to vector<8x32xf32>
    %279 = vector.extract_strided_slice %12 {offsets = [7, 1, 0, 0], sizes = [1, 1, 8, 32], strides = [1, 1, 1, 1]} : vector<8x8x8x32xf32> to vector<1x1x8x32xf32>
    %280 = vector.shape_cast %279 : vector<1x1x8x32xf32> to vector<8x32xf32>
    %281 = vector.extract_strided_slice %12 {offsets = [7, 3, 0, 0], sizes = [1, 1, 8, 32], strides = [1, 1, 1, 1]} : vector<8x8x8x32xf32> to vector<1x1x8x32xf32>
    %282 = vector.shape_cast %281 : vector<1x1x8x32xf32> to vector<8x32xf32>
    %283 = vector.extract_strided_slice %12 {offsets = [7, 5, 0, 0], sizes = [1, 1, 8, 32], strides = [1, 1, 1, 1]} : vector<8x8x8x32xf32> to vector<1x1x8x32xf32>
    %284 = vector.shape_cast %283 : vector<1x1x8x32xf32> to vector<8x32xf32>
    %285 = vector.extract_strided_slice %12 {offsets = [7, 7, 0, 0], sizes = [1, 1, 8, 32], strides = [1, 1, 1, 1]} : vector<8x8x8x32xf32> to vector<1x1x8x32xf32>
    %286 = vector.shape_cast %285 : vector<1x1x8x32xf32> to vector<8x32xf32>
    %287 = tpu.concatenate %256, %258, %260, %262, %264, %266, %268, %270, %272, %274, %276, %278, %280, %282, %284, %286 in 0 : vector<8x32xf32>, vector<8x32xf32>, vector<8x32xf32>, vector<8x32xf32>, vector<8x32xf32>, vector<8x32xf32>, vector<8x32xf32>, vector<8x32xf32>, vector<8x32xf32>, vector<8x32xf32>, vector<8x32xf32>, vector<8x32xf32>, vector<8x32xf32>, vector<8x32xf32>, vector<8x32xf32>, vector<8x32xf32> -> vector<128x32xf32>
    %288 = vector.extract_strided_slice %3 {offsets = [256, 0], sizes = [32, 48], strides = [1, 1]} : vector<288x48xf32> to vector<32x48xf32>
    %cst_23 = arith.constant dense<0.000000e+00> : vector<128x48xf32>
    %289 = tpu.matmul %287, %288, %cst_23 {dimension_numbers = #tpu.dot_dimension_numbers<[1], [0], [0], [1], [0, 0, 1, 1], [], []>} : vector<128x32xf32>, vector<32x48xf32>, vector<128x48xf32> -> vector<128x48xf32>
    %290 = arith.addf %254, %289 : vector<128x48xf32>
    %291 = vector.broadcast %4 : vector<1x48xf32> to vector<128x48xf32>
    %292 = arith.addf %290, %291 : vector<128x48xf32>
    %cst_24 = arith.constant 0.000000e+00 : f32
    %293 = vector.broadcast %cst_24 : f32 to vector<128x48xf32>
    %294 = arith.maximumf %292, %293 : vector<128x48xf32>
    %295 = vector.shape_cast %294 : vector<128x48xf32> to vector<4x4x8x48xf32>
    %cst_25 = arith.constant 0.000000e+00 : f32
    %296 = vector.broadcast %cst_25 : f32 to vector<8x48xf32>
    %297 = vector.extract_strided_slice %295 {offsets = [1, 1, 0, 0], sizes = [1, 1, 8, 48], strides = [1, 1, 1, 1]} : vector<4x4x8x48xf32> to vector<1x1x8x48xf32>
    %298 = vector.shape_cast %297 : vector<1x1x8x48xf32> to vector<8x48xf32>
    %299 = tpu.concatenate %296, %296, %296, %298 in 0 : vector<8x48xf32>, vector<8x48xf32>, vector<8x48xf32>, vector<8x48xf32> -> vector<32x48xf32>
    %300 = vector.extract_strided_slice %5 {offsets = [0, 0], sizes = [48, 64], strides = [1, 1]} : vector<432x64xf32> to vector<48x64xf32>
    %cst_26 = arith.constant dense<0.000000e+00> : vector<32x64xf32>
    %301 = tpu.matmul %299, %300, %cst_26 {dimension_numbers = #tpu.dot_dimension_numbers<[1], [0], [0], [1], [0, 0, 1, 1], [], []>} : vector<32x48xf32>, vector<48x64xf32>, vector<32x64xf32> -> vector<32x64xf32>
    %302 = vector.extract_strided_slice %295 {offsets = [1, 0, 0, 0], sizes = [1, 1, 8, 48], strides = [1, 1, 1, 1]} : vector<4x4x8x48xf32> to vector<1x1x8x48xf32>
    %303 = vector.shape_cast %302 : vector<1x1x8x48xf32> to vector<8x48xf32>
    %304 = vector.extract_strided_slice %295 {offsets = [1, 2, 0, 0], sizes = [1, 1, 8, 48], strides = [1, 1, 1, 1]} : vector<4x4x8x48xf32> to vector<1x1x8x48xf32>
    %305 = vector.shape_cast %304 : vector<1x1x8x48xf32> to vector<8x48xf32>
    %306 = tpu.concatenate %296, %296, %303, %305 in 0 : vector<8x48xf32>, vector<8x48xf32>, vector<8x48xf32>, vector<8x48xf32> -> vector<32x48xf32>
    %307 = vector.extract_strided_slice %5 {offsets = [48, 0], sizes = [48, 64], strides = [1, 1]} : vector<432x64xf32> to vector<48x64xf32>
    %cst_27 = arith.constant dense<0.000000e+00> : vector<32x64xf32>
    %308 = tpu.matmul %306, %307, %cst_27 {dimension_numbers = #tpu.dot_dimension_numbers<[1], [0], [0], [1], [0, 0, 1, 1], [], []>} : vector<32x48xf32>, vector<48x64xf32>, vector<32x64xf32> -> vector<32x64xf32>
    %309 = arith.addf %301, %308 : vector<32x64xf32>
    %310 = vector.extract_strided_slice %295 {offsets = [1, 1, 0, 0], sizes = [1, 1, 8, 48], strides = [1, 1, 1, 1]} : vector<4x4x8x48xf32> to vector<1x1x8x48xf32>
    %311 = vector.shape_cast %310 : vector<1x1x8x48xf32> to vector<8x48xf32>
    %312 = vector.extract_strided_slice %295 {offsets = [1, 3, 0, 0], sizes = [1, 1, 8, 48], strides = [1, 1, 1, 1]} : vector<4x4x8x48xf32> to vector<1x1x8x48xf32>
    %313 = vector.shape_cast %312 : vector<1x1x8x48xf32> to vector<8x48xf32>
    %314 = tpu.concatenate %296, %296, %311, %313 in 0 : vector<8x48xf32>, vector<8x48xf32>, vector<8x48xf32>, vector<8x48xf32> -> vector<32x48xf32>
    %315 = vector.extract_strided_slice %5 {offsets = [96, 0], sizes = [48, 64], strides = [1, 1]} : vector<432x64xf32> to vector<48x64xf32>
    %cst_28 = arith.constant dense<0.000000e+00> : vector<32x64xf32>
    %316 = tpu.matmul %314, %315, %cst_28 {dimension_numbers = #tpu.dot_dimension_numbers<[1], [0], [0], [1], [0, 0, 1, 1], [], []>} : vector<32x48xf32>, vector<48x64xf32>, vector<32x64xf32> -> vector<32x64xf32>
    %317 = arith.addf %309, %316 : vector<32x64xf32>
    %318 = vector.extract_strided_slice %295 {offsets = [0, 1, 0, 0], sizes = [1, 1, 8, 48], strides = [1, 1, 1, 1]} : vector<4x4x8x48xf32> to vector<1x1x8x48xf32>
    %319 = vector.shape_cast %318 : vector<1x1x8x48xf32> to vector<8x48xf32>
    %320 = vector.extract_strided_slice %295 {offsets = [2, 1, 0, 0], sizes = [1, 1, 8, 48], strides = [1, 1, 1, 1]} : vector<4x4x8x48xf32> to vector<1x1x8x48xf32>
    %321 = vector.shape_cast %320 : vector<1x1x8x48xf32> to vector<8x48xf32>
    %322 = tpu.concatenate %296, %319, %296, %321 in 0 : vector<8x48xf32>, vector<8x48xf32>, vector<8x48xf32>, vector<8x48xf32> -> vector<32x48xf32>
    %323 = vector.extract_strided_slice %5 {offsets = [144, 0], sizes = [48, 64], strides = [1, 1]} : vector<432x64xf32> to vector<48x64xf32>
    %cst_29 = arith.constant dense<0.000000e+00> : vector<32x64xf32>
    %324 = tpu.matmul %322, %323, %cst_29 {dimension_numbers = #tpu.dot_dimension_numbers<[1], [0], [0], [1], [0, 0, 1, 1], [], []>} : vector<32x48xf32>, vector<48x64xf32>, vector<32x64xf32> -> vector<32x64xf32>
    %325 = arith.addf %317, %324 : vector<32x64xf32>
    %326 = vector.extract_strided_slice %295 {offsets = [0, 0, 0, 0], sizes = [1, 1, 8, 48], strides = [1, 1, 1, 1]} : vector<4x4x8x48xf32> to vector<1x1x8x48xf32>
    %327 = vector.shape_cast %326 : vector<1x1x8x48xf32> to vector<8x48xf32>
    %328 = vector.extract_strided_slice %295 {offsets = [0, 2, 0, 0], sizes = [1, 1, 8, 48], strides = [1, 1, 1, 1]} : vector<4x4x8x48xf32> to vector<1x1x8x48xf32>
    %329 = vector.shape_cast %328 : vector<1x1x8x48xf32> to vector<8x48xf32>
    %330 = vector.extract_strided_slice %295 {offsets = [2, 0, 0, 0], sizes = [1, 1, 8, 48], strides = [1, 1, 1, 1]} : vector<4x4x8x48xf32> to vector<1x1x8x48xf32>
    %331 = vector.shape_cast %330 : vector<1x1x8x48xf32> to vector<8x48xf32>
    %332 = vector.extract_strided_slice %295 {offsets = [2, 2, 0, 0], sizes = [1, 1, 8, 48], strides = [1, 1, 1, 1]} : vector<4x4x8x48xf32> to vector<1x1x8x48xf32>
    %333 = vector.shape_cast %332 : vector<1x1x8x48xf32> to vector<8x48xf32>
    %334 = tpu.concatenate %327, %329, %331, %333 in 0 : vector<8x48xf32>, vector<8x48xf32>, vector<8x48xf32>, vector<8x48xf32> -> vector<32x48xf32>
    %335 = vector.extract_strided_slice %5 {offsets = [192, 0], sizes = [48, 64], strides = [1, 1]} : vector<432x64xf32> to vector<48x64xf32>
    %cst_30 = arith.constant dense<0.000000e+00> : vector<32x64xf32>
    %336 = tpu.matmul %334, %335, %cst_30 {dimension_numbers = #tpu.dot_dimension_numbers<[1], [0], [0], [1], [0, 0, 1, 1], [], []>} : vector<32x48xf32>, vector<48x64xf32>, vector<32x64xf32> -> vector<32x64xf32>
    %337 = arith.addf %325, %336 : vector<32x64xf32>
    %338 = vector.extract_strided_slice %295 {offsets = [0, 1, 0, 0], sizes = [1, 1, 8, 48], strides = [1, 1, 1, 1]} : vector<4x4x8x48xf32> to vector<1x1x8x48xf32>
    %339 = vector.shape_cast %338 : vector<1x1x8x48xf32> to vector<8x48xf32>
    %340 = vector.extract_strided_slice %295 {offsets = [0, 3, 0, 0], sizes = [1, 1, 8, 48], strides = [1, 1, 1, 1]} : vector<4x4x8x48xf32> to vector<1x1x8x48xf32>
    %341 = vector.shape_cast %340 : vector<1x1x8x48xf32> to vector<8x48xf32>
    %342 = vector.extract_strided_slice %295 {offsets = [2, 1, 0, 0], sizes = [1, 1, 8, 48], strides = [1, 1, 1, 1]} : vector<4x4x8x48xf32> to vector<1x1x8x48xf32>
    %343 = vector.shape_cast %342 : vector<1x1x8x48xf32> to vector<8x48xf32>
    %344 = vector.extract_strided_slice %295 {offsets = [2, 3, 0, 0], sizes = [1, 1, 8, 48], strides = [1, 1, 1, 1]} : vector<4x4x8x48xf32> to vector<1x1x8x48xf32>
    %345 = vector.shape_cast %344 : vector<1x1x8x48xf32> to vector<8x48xf32>
    %346 = tpu.concatenate %339, %341, %343, %345 in 0 : vector<8x48xf32>, vector<8x48xf32>, vector<8x48xf32>, vector<8x48xf32> -> vector<32x48xf32>
    %347 = vector.extract_strided_slice %5 {offsets = [240, 0], sizes = [48, 64], strides = [1, 1]} : vector<432x64xf32> to vector<48x64xf32>
    %cst_31 = arith.constant dense<0.000000e+00> : vector<32x64xf32>
    %348 = tpu.matmul %346, %347, %cst_31 {dimension_numbers = #tpu.dot_dimension_numbers<[1], [0], [0], [1], [0, 0, 1, 1], [], []>} : vector<32x48xf32>, vector<48x64xf32>, vector<32x64xf32> -> vector<32x64xf32>
    %349 = arith.addf %337, %348 : vector<32x64xf32>
    %350 = vector.extract_strided_slice %295 {offsets = [1, 1, 0, 0], sizes = [1, 1, 8, 48], strides = [1, 1, 1, 1]} : vector<4x4x8x48xf32> to vector<1x1x8x48xf32>
    %351 = vector.shape_cast %350 : vector<1x1x8x48xf32> to vector<8x48xf32>
    %352 = vector.extract_strided_slice %295 {offsets = [3, 1, 0, 0], sizes = [1, 1, 8, 48], strides = [1, 1, 1, 1]} : vector<4x4x8x48xf32> to vector<1x1x8x48xf32>
    %353 = vector.shape_cast %352 : vector<1x1x8x48xf32> to vector<8x48xf32>
    %354 = tpu.concatenate %296, %351, %296, %353 in 0 : vector<8x48xf32>, vector<8x48xf32>, vector<8x48xf32>, vector<8x48xf32> -> vector<32x48xf32>
    %355 = vector.extract_strided_slice %5 {offsets = [288, 0], sizes = [48, 64], strides = [1, 1]} : vector<432x64xf32> to vector<48x64xf32>
    %cst_32 = arith.constant dense<0.000000e+00> : vector<32x64xf32>
    %356 = tpu.matmul %354, %355, %cst_32 {dimension_numbers = #tpu.dot_dimension_numbers<[1], [0], [0], [1], [0, 0, 1, 1], [], []>} : vector<32x48xf32>, vector<48x64xf32>, vector<32x64xf32> -> vector<32x64xf32>
    %357 = arith.addf %349, %356 : vector<32x64xf32>
    %358 = vector.extract_strided_slice %295 {offsets = [1, 0, 0, 0], sizes = [1, 1, 8, 48], strides = [1, 1, 1, 1]} : vector<4x4x8x48xf32> to vector<1x1x8x48xf32>
    %359 = vector.shape_cast %358 : vector<1x1x8x48xf32> to vector<8x48xf32>
    %360 = vector.extract_strided_slice %295 {offsets = [1, 2, 0, 0], sizes = [1, 1, 8, 48], strides = [1, 1, 1, 1]} : vector<4x4x8x48xf32> to vector<1x1x8x48xf32>
    %361 = vector.shape_cast %360 : vector<1x1x8x48xf32> to vector<8x48xf32>
    %362 = vector.extract_strided_slice %295 {offsets = [3, 0, 0, 0], sizes = [1, 1, 8, 48], strides = [1, 1, 1, 1]} : vector<4x4x8x48xf32> to vector<1x1x8x48xf32>
    %363 = vector.shape_cast %362 : vector<1x1x8x48xf32> to vector<8x48xf32>
    %364 = vector.extract_strided_slice %295 {offsets = [3, 2, 0, 0], sizes = [1, 1, 8, 48], strides = [1, 1, 1, 1]} : vector<4x4x8x48xf32> to vector<1x1x8x48xf32>
    %365 = vector.shape_cast %364 : vector<1x1x8x48xf32> to vector<8x48xf32>
    %366 = tpu.concatenate %359, %361, %363, %365 in 0 : vector<8x48xf32>, vector<8x48xf32>, vector<8x48xf32>, vector<8x48xf32> -> vector<32x48xf32>
    %367 = vector.extract_strided_slice %5 {offsets = [336, 0], sizes = [48, 64], strides = [1, 1]} : vector<432x64xf32> to vector<48x64xf32>
    %cst_33 = arith.constant dense<0.000000e+00> : vector<32x64xf32>
    %368 = tpu.matmul %366, %367, %cst_33 {dimension_numbers = #tpu.dot_dimension_numbers<[1], [0], [0], [1], [0, 0, 1, 1], [], []>} : vector<32x48xf32>, vector<48x64xf32>, vector<32x64xf32> -> vector<32x64xf32>
    %369 = arith.addf %357, %368 : vector<32x64xf32>
    %370 = vector.extract_strided_slice %295 {offsets = [1, 1, 0, 0], sizes = [1, 1, 8, 48], strides = [1, 1, 1, 1]} : vector<4x4x8x48xf32> to vector<1x1x8x48xf32>
    %371 = vector.shape_cast %370 : vector<1x1x8x48xf32> to vector<8x48xf32>
    %372 = vector.extract_strided_slice %295 {offsets = [1, 3, 0, 0], sizes = [1, 1, 8, 48], strides = [1, 1, 1, 1]} : vector<4x4x8x48xf32> to vector<1x1x8x48xf32>
    %373 = vector.shape_cast %372 : vector<1x1x8x48xf32> to vector<8x48xf32>
    %374 = vector.extract_strided_slice %295 {offsets = [3, 1, 0, 0], sizes = [1, 1, 8, 48], strides = [1, 1, 1, 1]} : vector<4x4x8x48xf32> to vector<1x1x8x48xf32>
    %375 = vector.shape_cast %374 : vector<1x1x8x48xf32> to vector<8x48xf32>
    %376 = vector.extract_strided_slice %295 {offsets = [3, 3, 0, 0], sizes = [1, 1, 8, 48], strides = [1, 1, 1, 1]} : vector<4x4x8x48xf32> to vector<1x1x8x48xf32>
    %377 = vector.shape_cast %376 : vector<1x1x8x48xf32> to vector<8x48xf32>
    %378 = tpu.concatenate %371, %373, %375, %377 in 0 : vector<8x48xf32>, vector<8x48xf32>, vector<8x48xf32>, vector<8x48xf32> -> vector<32x48xf32>
    %379 = vector.extract_strided_slice %5 {offsets = [384, 0], sizes = [48, 64], strides = [1, 1]} : vector<432x64xf32> to vector<48x64xf32>
    %cst_34 = arith.constant dense<0.000000e+00> : vector<32x64xf32>
    %380 = tpu.matmul %378, %379, %cst_34 {dimension_numbers = #tpu.dot_dimension_numbers<[1], [0], [0], [1], [0, 0, 1, 1], [], []>} : vector<32x48xf32>, vector<48x64xf32>, vector<32x64xf32> -> vector<32x64xf32>
    %381 = arith.addf %369, %380 : vector<32x64xf32>
    %382 = vector.broadcast %6 : vector<1x64xf32> to vector<32x64xf32>
    %383 = arith.addf %381, %382 : vector<32x64xf32>
    %cst_35 = arith.constant 0.000000e+00 : f32
    %384 = vector.broadcast %cst_35 : f32 to vector<32x64xf32>
    %385 = arith.maximumf %383, %384 : vector<32x64xf32>
    %c0_36 = arith.constant 0 : index
    %c0_37 = arith.constant 0 : index
    %386 = vector.load %arg8[%c0_36, %c0_37] : memref<8x2xf32, #tpu.memory_space<vmem>>, vector<8x2xf32>
    %c0_38 = arith.constant 0 : index
    %c0_39 = arith.constant 0 : index
    %387 = vector.load %arg9[%c0_38, %c0_39] : memref<2x32xf32, #tpu.memory_space<vmem>>, vector<2x32xf32>
    %cst_40 = arith.constant dense<0.000000e+00> : vector<8x32xf32>
    %388 = tpu.matmul %386, %387, %cst_40 {dimension_numbers = #tpu.dot_dimension_numbers<[1], [0], [0], [1], [0, 0, 1, 1], [], []>} : vector<8x2xf32>, vector<2x32xf32>, vector<8x32xf32> -> vector<8x32xf32>
    %c0_41 = arith.constant 0 : index
    %c0_42 = arith.constant 0 : index
    %389 = vector.load %arg10[%c0_41, %c0_42] : memref<1x32xf32, #tpu.memory_space<vmem>>, vector<1x32xf32>
    %390 = vector.broadcast %389 : vector<1x32xf32> to vector<8x32xf32>
    %391 = arith.addf %388, %390 : vector<8x32xf32>
    %c0_43 = arith.constant 0 : index
    %c0_44 = arith.constant 0 : index
    %392 = vector.load %arg11[%c0_43, %c0_44] : memref<256x256xf32, #tpu.memory_space<vmem>>, vector<256x256xf32>
    %393 = vector.extract_strided_slice %385 {offsets = [0, 0], sizes = [8, 64], strides = [1, 1]} : vector<32x64xf32> to vector<8x64xf32>
    %394 = vector.extract_strided_slice %392 {offsets = [0, 0], sizes = [64, 256], strides = [1, 1]} : vector<256x256xf32> to vector<64x256xf32>
    %cst_45 = arith.constant dense<0.000000e+00> : vector<8x256xf32>
    %395 = tpu.matmul %393, %394, %cst_45 {dimension_numbers = #tpu.dot_dimension_numbers<[1], [0], [0], [1], [0, 0, 1, 1], [], []>} : vector<8x64xf32>, vector<64x256xf32>, vector<8x256xf32> -> vector<8x256xf32>
    %396 = vector.extract_strided_slice %385 {offsets = [8, 0], sizes = [8, 64], strides = [1, 1]} : vector<32x64xf32> to vector<8x64xf32>
    %397 = vector.extract_strided_slice %392 {offsets = [64, 0], sizes = [64, 256], strides = [1, 1]} : vector<256x256xf32> to vector<64x256xf32>
    %cst_46 = arith.constant dense<0.000000e+00> : vector<8x256xf32>
    %398 = tpu.matmul %396, %397, %cst_46 {dimension_numbers = #tpu.dot_dimension_numbers<[1], [0], [0], [1], [0, 0, 1, 1], [], []>} : vector<8x64xf32>, vector<64x256xf32>, vector<8x256xf32> -> vector<8x256xf32>
    %399 = arith.addf %395, %398 : vector<8x256xf32>
    %400 = vector.extract_strided_slice %385 {offsets = [16, 0], sizes = [8, 64], strides = [1, 1]} : vector<32x64xf32> to vector<8x64xf32>
    %401 = vector.extract_strided_slice %392 {offsets = [128, 0], sizes = [64, 256], strides = [1, 1]} : vector<256x256xf32> to vector<64x256xf32>
    %cst_47 = arith.constant dense<0.000000e+00> : vector<8x256xf32>
    %402 = tpu.matmul %400, %401, %cst_47 {dimension_numbers = #tpu.dot_dimension_numbers<[1], [0], [0], [1], [0, 0, 1, 1], [], []>} : vector<8x64xf32>, vector<64x256xf32>, vector<8x256xf32> -> vector<8x256xf32>
    %403 = arith.addf %399, %402 : vector<8x256xf32>
    %404 = vector.extract_strided_slice %385 {offsets = [24, 0], sizes = [8, 64], strides = [1, 1]} : vector<32x64xf32> to vector<8x64xf32>
    %405 = vector.extract_strided_slice %392 {offsets = [192, 0], sizes = [64, 256], strides = [1, 1]} : vector<256x256xf32> to vector<64x256xf32>
    %cst_48 = arith.constant dense<0.000000e+00> : vector<8x256xf32>
    %406 = tpu.matmul %404, %405, %cst_48 {dimension_numbers = #tpu.dot_dimension_numbers<[1], [0], [0], [1], [0, 0, 1, 1], [], []>} : vector<8x64xf32>, vector<64x256xf32>, vector<8x256xf32> -> vector<8x256xf32>
    %407 = arith.addf %403, %406 : vector<8x256xf32>
    %c0_49 = arith.constant 0 : index
    %c0_50 = arith.constant 0 : index
    %408 = vector.load %arg12[%c0_49, %c0_50] : memref<32x256xf32, #tpu.memory_space<vmem>>, vector<32x256xf32>
    %cst_51 = arith.constant dense<0.000000e+00> : vector<8x256xf32>
    %409 = tpu.matmul %391, %408, %cst_51 {dimension_numbers = #tpu.dot_dimension_numbers<[1], [0], [0], [1], [0, 0, 1, 1], [], []>} : vector<8x32xf32>, vector<32x256xf32>, vector<8x256xf32> -> vector<8x256xf32>
    %410 = arith.addf %407, %409 : vector<8x256xf32>
    %c0_52 = arith.constant 0 : index
    %c0_53 = arith.constant 0 : index
    %411 = vector.load %arg13[%c0_52, %c0_53] : memref<1x256xf32, #tpu.memory_space<vmem>>, vector<1x256xf32>
    %412 = vector.broadcast %411 : vector<1x256xf32> to vector<8x256xf32>
    %413 = arith.addf %410, %412 : vector<8x256xf32>
    %cst_54 = arith.constant 0.000000e+00 : f32
    %414 = vector.broadcast %cst_54 : f32 to vector<8x256xf32>
    %415 = arith.maximumf %413, %414 : vector<8x256xf32>
    %c0_55 = arith.constant 0 : index
    %c0_56 = arith.constant 0 : index
    %416 = vector.load %arg14[%c0_55, %c0_56] : memref<256x256xf32, #tpu.memory_space<vmem>>, vector<256x256xf32>
    %cst_57 = arith.constant dense<0.000000e+00> : vector<8x256xf32>
    %417 = tpu.matmul %415, %416, %cst_57 {dimension_numbers = #tpu.dot_dimension_numbers<[1], [0], [0], [1], [0, 0, 1, 1], [], []>} : vector<8x256xf32>, vector<256x256xf32>, vector<8x256xf32> -> vector<8x256xf32>
    %c0_58 = arith.constant 0 : index
    %c0_59 = arith.constant 0 : index
    %418 = vector.load %arg15[%c0_58, %c0_59] : memref<1x256xf32, #tpu.memory_space<vmem>>, vector<1x256xf32>
    %419 = vector.broadcast %418 : vector<1x256xf32> to vector<8x256xf32>
    %420 = arith.addf %417, %419 : vector<8x256xf32>
    %cst_60 = arith.constant 0.000000e+00 : f32
    %421 = vector.broadcast %cst_60 : f32 to vector<8x256xf32>
    %422 = arith.maximumf %420, %421 : vector<8x256xf32>
    %c0_61 = arith.constant 0 : index
    %c0_62 = arith.constant 0 : index
    %423 = vector.load %arg16[%c0_61, %c0_62] : memref<256x256xf32, #tpu.memory_space<vmem>>, vector<256x256xf32>
    %cst_63 = arith.constant dense<0.000000e+00> : vector<8x256xf32>
    %424 = tpu.matmul %422, %423, %cst_63 {dimension_numbers = #tpu.dot_dimension_numbers<[1], [0], [0], [1], [0, 0, 1, 1], [], []>} : vector<8x256xf32>, vector<256x256xf32>, vector<8x256xf32> -> vector<8x256xf32>
    %c0_64 = arith.constant 0 : index
    %c0_65 = arith.constant 0 : index
    %425 = vector.load %arg17[%c0_64, %c0_65] : memref<1x256xf32, #tpu.memory_space<vmem>>, vector<1x256xf32>
    %426 = vector.broadcast %425 : vector<1x256xf32> to vector<8x256xf32>
    %427 = arith.addf %424, %426 : vector<8x256xf32>
    %cst_66 = arith.constant 0.000000e+00 : f32
    %428 = vector.broadcast %cst_66 : f32 to vector<8x256xf32>
    %429 = arith.maximumf %427, %428 : vector<8x256xf32>
    %c0_67 = arith.constant 0 : index
    %c0_68 = arith.constant 0 : index
    %430 = vector.load %arg21[%c0_67, %c0_68] : memref<2x8xf32, #tpu.memory_space<vmem>>, vector<2x8xf32>
    %cst_69 = arith.constant dense<0.000000e+00> : vector<2x256xf32>
    %431 = tpu.matmul %430, %429, %cst_69 {dimension_numbers = #tpu.dot_dimension_numbers<[1], [0], [0], [1], [0, 0, 1, 1], [], []>} : vector<2x8xf32>, vector<8x256xf32>, vector<2x256xf32> -> vector<2x256xf32>
    %c0_70 = arith.constant 0 : index
    %c0_71 = arith.constant 0 : index
    %432 = vector.load %arg18[%c0_70, %c0_71] : memref<256x256xf32, #tpu.memory_space<vmem>>, vector<256x256xf32>
    %cst_72 = arith.constant dense<0.000000e+00> : vector<2x256xf32>
    %433 = tpu.matmul %431, %432, %cst_72 {dimension_numbers = #tpu.dot_dimension_numbers<[1], [0], [0], [1], [0, 0, 1, 1], [], []>} : vector<2x256xf32>, vector<256x256xf32>, vector<2x256xf32> -> vector<2x256xf32>
    %c0_73 = arith.constant 0 : index
    %c0_74 = arith.constant 0 : index
    %434 = vector.load %arg19[%c0_73, %c0_74] : memref<1x256xf32, #tpu.memory_space<vmem>>, vector<1x256xf32>
    %435 = vector.broadcast %434 : vector<1x256xf32> to vector<2x256xf32>
    %436 = arith.addf %433, %435 : vector<2x256xf32>
    %c0_75 = arith.constant 0 : index
    %c0_76 = arith.constant 0 : index
    %437 = vector.load %arg20[%c0_75, %c0_76] : memref<256x256xf32, #tpu.memory_space<vmem>>, vector<256x256xf32>
    %cst_77 = arith.constant dense<0.000000e+00> : vector<2x256xf32>
    %438 = tpu.matmul %436, %437, %cst_77 {dimension_numbers = #tpu.dot_dimension_numbers<[1], [0], [0], [1], [0, 0, 1, 1], [], []>} : vector<2x256xf32>, vector<256x256xf32>, vector<2x256xf32> -> vector<2x256xf32>
    %c0_78 = arith.constant 0 : index
    %c0_79 = arith.constant 0 : index
    %439 = vector.load %arg22[%c0_78, %c0_79] : memref<2x256xf32, #tpu.memory_space<vmem>>, vector<2x256xf32>
    tpu.vector_store %arg22[%c0_78, %c0_79], %438 {strides = array<i32>} : memref<2x256xf32, #tpu.memory_space<vmem>>, vector<2x256xf32>,
    return
  }
  func.func @transform_0(%arg0: i32) -> (i32, i32) {
    %c0_i32 = arith.constant 0 : i32
    %c0_i32_0 = arith.constant 0 : i32
    %c0_i32_1 = arith.constant 0 : i32
    return %c0_i32, %c0_i32_0 : i32, i32
  }
  func.func @transform_1(%arg0: i32) -> (i32, i32) {
    %c0_i32 = arith.constant 0 : i32
    %c0_i32_0 = arith.constant 0 : i32
    %c0_i32_1 = arith.constant 0 : i32
    return %c0_i32, %c0_i32_0 : i32, i32
  }
  func.func @transform_2(%arg0: i32) -> (i32, i32) {
    %c0_i32 = arith.constant 0 : i32
    %c0_i32_0 = arith.constant 0 : i32
    %c0_i32_1 = arith.constant 0 : i32
    return %c0_i32, %c0_i32_0 : i32, i32
  }
  func.func @transform_3(%arg0: i32) -> (i32, i32) {
    %c0_i32 = arith.constant 0 : i32
    %c0_i32_0 = arith.constant 0 : i32
    %c0_i32_1 = arith.constant 0 : i32
    return %c0_i32, %c0_i32_0 : i32, i32
  }
  func.func @transform_4(%arg0: i32) -> (i32, i32) {
    %c0_i32 = arith.constant 0 : i32
    %c0_i32_0 = arith.constant 0 : i32
    %c0_i32_1 = arith.constant 0 : i32
    return %c0_i32, %c0_i32_0 : i32, i32
  }
  func.func @transform_5(%arg0: i32) -> (i32, i32) {
    %c0_i32 = arith.constant 0 : i32
    %c0_i32_0 = arith.constant 0 : i32
    %c0_i32_1 = arith.constant 0 : i32
    return %c0_i32, %c0_i32_0 : i32, i32
  }
  func.func @transform_6(%arg0: i32) -> (i32, i32) {
    %c0_i32 = arith.constant 0 : i32
    %c0_i32_0 = arith.constant 0 : i32
    %c0_i32_1 = arith.constant 0 : i32
    return %c0_i32, %c0_i32_0 : i32, i32
  }
  func.func @transform_7(%arg0: i32) -> (i32, i32) {
    %c0_i32 = arith.constant 0 : i32
    %c0_i32_0 = arith.constant 0 : i32
    %c0_i32_1 = arith.constant 0 : i32
    return %c0_i32, %c0_i32_0 : i32, i32
  }
  func.func @transform_8(%arg0: i32) -> (i32, i32) {
    %c0_i32 = arith.constant 0 : i32
    %c0_i32_0 = arith.constant 0 : i32
    %c0_i32_1 = arith.constant 0 : i32
    return %c0_i32, %c0_i32_0 : i32, i32
  }
  func.func @transform_9(%arg0: i32) -> (i32, i32) {
    %c0_i32 = arith.constant 0 : i32
    %c0_i32_0 = arith.constant 0 : i32
    %c0_i32_1 = arith.constant 0 : i32
    return %c0_i32, %c0_i32_0 : i32, i32
  }
  func.func @transform_10(%arg0: i32) -> (i32, i32) {
    %c0_i32 = arith.constant 0 : i32
    %c0_i32_0 = arith.constant 0 : i32
    %c0_i32_1 = arith.constant 0 : i32
    return %c0_i32, %c0_i32_0 : i32, i32
  }
  func.func @transform_11(%arg0: i32) -> (i32, i32) {
    %c0_i32 = arith.constant 0 : i32
    %c0_i32_0 = arith.constant 0 : i32
    %c0_i32_1 = arith.constant 0 : i32
    return %c0_i32, %c0_i32_0 : i32, i32
  }
  func.func @transform_12(%arg0: i32) -> (i32, i32) {
    %c0_i32 = arith.constant 0 : i32
    %c0_i32_0 = arith.constant 0 : i32
    %c0_i32_1 = arith.constant 0 : i32
    return %c0_i32, %c0_i32_0 : i32, i32
  }
  func.func @transform_13(%arg0: i32) -> (i32, i32) {
    %c0_i32 = arith.constant 0 : i32
    %c0_i32_0 = arith.constant 0 : i32
    %c0_i32_1 = arith.constant 0 : i32
    return %c0_i32, %c0_i32_0 : i32, i32
  }
  func.func @transform_14(%arg0: i32) -> (i32, i32) {
    %c0_i32 = arith.constant 0 : i32
    %c0_i32_0 = arith.constant 0 : i32
    %c0_i32_1 = arith.constant 0 : i32
    return %c0_i32, %c0_i32_0 : i32, i32
  }
  func.func @transform_15(%arg0: i32) -> (i32, i32) {
    %c0_i32 = arith.constant 0 : i32
    %c0_i32_0 = arith.constant 0 : i32
    %c0_i32_1 = arith.constant 0 : i32
    return %c0_i32, %c0_i32_0 : i32, i32
  }
  func.func @transform_16(%arg0: i32) -> (i32, i32) {
    %c0_i32 = arith.constant 0 : i32
    %c0_i32_0 = arith.constant 0 : i32
    %c0_i32_1 = arith.constant 0 : i32
    return %c0_i32, %c0_i32_0 : i32, i32
  }
  func.func @transform_17(%arg0: i32) -> (i32, i32) {
    %c0_i32 = arith.constant 0 : i32
    %c0_i32_0 = arith.constant 0 : i32
    %c0_i32_1 = arith.constant 0 : i32
    return %c0_i32, %c0_i32_0 : i32, i32
  }
  func.func @transform_18(%arg0: i32) -> (i32, i32) {
    %c0_i32 = arith.constant 0 : i32
    %c0_i32_0 = arith.constant 0 : i32
    %c0_i32_1 = arith.constant 0 : i32
    return %c0_i32, %c0_i32_0 : i32, i32
  }
  func.func @transform_19(%arg0: i32) -> (i32, i32) {
    %c0_i32 = arith.constant 0 : i32
    %c0_i32_0 = arith.constant 0 : i32
    %c0_i32_1 = arith.constant 0 : i32
    return %c0_i32, %c0_i32_0 : i32, i32
  }
  func.func @transform_20(%arg0: i32) -> (i32, i32) {
    %c0_i32 = arith.constant 0 : i32
    %c0_i32_0 = arith.constant 0 : i32
    %c0_i32_1 = arith.constant 0 : i32
    return %c0_i32, %c0_i32_0 : i32, i32
  }
  func.func @transform_21(%arg0: i32) -> (i32, i32) {
    %c0_i32 = arith.constant 0 : i32
    %c0_i32_0 = arith.constant 0 : i32
    %c0_i32_1 = arith.constant 0 : i32
    return %c0_i32, %c0_i32_0 : i32, i32
  }
}

module attributes {stable_mosaic.version = 11 : i64} {
  func.func @_decoder_kernel(%arg0: i32, %arg1: memref<512x27xf32, #tpu.memory_space<vmem>>, %arg2: memref<27x32xf32, #tpu.memory_space<vmem>>, %arg3: memref<1x32xf32, #tpu.memory_space<vmem>>, %arg4: memref<288x48xf32, #tpu.memory_space<vmem>>, %arg5: memref<1x48xf32, #tpu.memory_space<vmem>>, %arg6: memref<432x64xf32, #tpu.memory_space<vmem>>, %arg7: memref<1x64xf32, #tpu.memory_space<vmem>>, %arg8: memref<2x256xf32, #tpu.memory_space<vmem>>, %arg9: memref<8x2xf32, #tpu.memory_space<vmem>>, %arg10: memref<256x256xf32, #tpu.memory_space<vmem>>, %arg11: memref<1x256xf32, #tpu.memory_space<vmem>>, %arg12: memref<256x128xf32, #tpu.memory_space<vmem>>, %arg13: memref<1x128xf32, #tpu.memory_space<vmem>>, %arg14: memref<128x2xf32, #tpu.memory_space<vmem>>, %arg15: memref<1x2xf32, #tpu.memory_space<vmem>>, %arg16: memref<8x2xf32, #tpu.memory_space<vmem>>) attributes {dimension_semantics = [#tpu.dimension_semantics<arbitrary>], iteration_bounds = array<i64: 1>, scalar_prefetch = 0 : i64, scratch_operands = 0 : i64, tpu.core_type = #tpu.core_type<tc>, window_params = [{pipeline_mode = #tpu.pipeline_mode<synchronous>, transform_indices = @transform_0, window_bounds = array<i64: 512, 27>}, {pipeline_mode = #tpu.pipeline_mode<synchronous>, transform_indices = @transform_1, window_bounds = array<i64: 27, 32>}, {pipeline_mode = #tpu.pipeline_mode<synchronous>, transform_indices = @transform_2, window_bounds = array<i64: 1, 32>}, {pipeline_mode = #tpu.pipeline_mode<synchronous>, transform_indices = @transform_3, window_bounds = array<i64: 288, 48>}, {pipeline_mode = #tpu.pipeline_mode<synchronous>, transform_indices = @transform_4, window_bounds = array<i64: 1, 48>}, {pipeline_mode = #tpu.pipeline_mode<synchronous>, transform_indices = @transform_5, window_bounds = array<i64: 432, 64>}, {pipeline_mode = #tpu.pipeline_mode<synchronous>, transform_indices = @transform_6, window_bounds = array<i64: 1, 64>}, {pipeline_mode = #tpu.pipeline_mode<synchronous>, transform_indices = @transform_7, window_bounds = array<i64: 2, 256>}, {pipeline_mode = #tpu.pipeline_mode<synchronous>, transform_indices = @transform_8, window_bounds = array<i64: 8, 2>}, {pipeline_mode = #tpu.pipeline_mode<synchronous>, transform_indices = @transform_9, window_bounds = array<i64: 256, 256>}, {pipeline_mode = #tpu.pipeline_mode<synchronous>, transform_indices = @transform_10, window_bounds = array<i64: 1, 256>}, {pipeline_mode = #tpu.pipeline_mode<synchronous>, transform_indices = @transform_11, window_bounds = array<i64: 256, 128>}, {pipeline_mode = #tpu.pipeline_mode<synchronous>, transform_indices = @transform_12, window_bounds = array<i64: 1, 128>}, {pipeline_mode = #tpu.pipeline_mode<synchronous>, transform_indices = @transform_13, window_bounds = array<i64: 128, 2>}, {pipeline_mode = #tpu.pipeline_mode<synchronous>, transform_indices = @transform_14, window_bounds = array<i64: 1, 2>}, {pipeline_mode = #tpu.pipeline_mode<synchronous>, transform_indices = @transform_15, window_bounds = array<i64: 8, 2>}]} {
    %c0 = arith.constant 0 : index
    %c0_0 = arith.constant 0 : index
    %0 = vector.load %arg1[%c0, %c0_0] : memref<512x27xf32, #tpu.memory_space<vmem>>, vector<512x27xf32>
    %c0_1 = arith.constant 0 : index
    %c0_2 = arith.constant 0 : index
    %1 = vector.load %arg2[%c0_1, %c0_2] : memref<27x32xf32, #tpu.memory_space<vmem>>, vector<27x32xf32>
    %c0_3 = arith.constant 0 : index
    %c0_4 = arith.constant 0 : index
    %2 = vector.load %arg3[%c0_3, %c0_4] : memref<1x32xf32, #tpu.memory_space<vmem>>, vector<1x32xf32>
    %c0_5 = arith.constant 0 : index
    %c0_6 = arith.constant 0 : index
    %3 = vector.load %arg4[%c0_5, %c0_6] : memref<288x48xf32, #tpu.memory_space<vmem>>, vector<288x48xf32>
    %c0_7 = arith.constant 0 : index
    %c0_8 = arith.constant 0 : index
    %4 = vector.load %arg5[%c0_7, %c0_8] : memref<1x48xf32, #tpu.memory_space<vmem>>, vector<1x48xf32>
    %c0_9 = arith.constant 0 : index
    %c0_10 = arith.constant 0 : index
    %5 = vector.load %arg6[%c0_9, %c0_10] : memref<432x64xf32, #tpu.memory_space<vmem>>, vector<432x64xf32>
    %c0_11 = arith.constant 0 : index
    %c0_12 = arith.constant 0 : index
    %6 = vector.load %arg7[%c0_11, %c0_12] : memref<1x64xf32, #tpu.memory_space<vmem>>, vector<1x64xf32>
    %cst = arith.constant dense<0.000000e+00> : vector<512x32xf32>
    %7 = tpu.matmul %0, %1, %cst {dimension_numbers = #tpu.dot_dimension_numbers<[1], [0], [0], [1], [0, 0, 1, 1], [], []>} : vector<512x27xf32>, vector<27x32xf32>, vector<512x32xf32> -> vector<512x32xf32>
    %8 = vector.broadcast %2 : vector<1x32xf32> to vector<512x32xf32>
    %9 = arith.addf %7, %8 : vector<512x32xf32>
    %cst_13 = arith.constant 0.000000e+00 : f32
    %10 = vector.broadcast %cst_13 : f32 to vector<512x32xf32>
    %11 = arith.maximumf %9, %10 : vector<512x32xf32>
    %12 = vector.shape_cast %11 : vector<512x32xf32> to vector<8x8x8x32xf32>
    %cst_14 = arith.constant 0.000000e+00 : f32
    %13 = vector.broadcast %cst_14 : f32 to vector<8x32xf32>
    %14 = vector.extract_strided_slice %12 {offsets = [1, 1, 0, 0], sizes = [1, 1, 8, 32], strides = [1, 1, 1, 1]} : vector<8x8x8x32xf32> to vector<1x1x8x32xf32>
    %15 = vector.shape_cast %14 : vector<1x1x8x32xf32> to vector<8x32xf32>
    %16 = vector.extract_strided_slice %12 {offsets = [1, 3, 0, 0], sizes = [1, 1, 8, 32], strides = [1, 1, 1, 1]} : vector<8x8x8x32xf32> to vector<1x1x8x32xf32>
    %17 = vector.shape_cast %16 : vector<1x1x8x32xf32> to vector<8x32xf32>
    %18 = vector.extract_strided_slice %12 {offsets = [1, 5, 0, 0], sizes = [1, 1, 8, 32], strides = [1, 1, 1, 1]} : vector<8x8x8x32xf32> to vector<1x1x8x32xf32>
    %19 = vector.shape_cast %18 : vector<1x1x8x32xf32> to vector<8x32xf32>
    %20 = vector.extract_strided_slice %12 {offsets = [3, 1, 0, 0], sizes = [1, 1, 8, 32], strides = [1, 1, 1, 1]} : vector<8x8x8x32xf32> to vector<1x1x8x32xf32>
    %21 = vector.shape_cast %20 : vector<1x1x8x32xf32> to vector<8x32xf32>
    %22 = vector.extract_strided_slice %12 {offsets = [3, 3, 0, 0], sizes = [1, 1, 8, 32], strides = [1, 1, 1, 1]} : vector<8x8x8x32xf32> to vector<1x1x8x32xf32>
    %23 = vector.shape_cast %22 : vector<1x1x8x32xf32> to vector<8x32xf32>
    %24 = vector.extract_strided_slice %12 {offsets = [3, 5, 0, 0], sizes = [1, 1, 8, 32], strides = [1, 1, 1, 1]} : vector<8x8x8x32xf32> to vector<1x1x8x32xf32>
    %25 = vector.shape_cast %24 : vector<1x1x8x32xf32> to vector<8x32xf32>
    %26 = vector.extract_strided_slice %12 {offsets = [5, 1, 0, 0], sizes = [1, 1, 8, 32], strides = [1, 1, 1, 1]} : vector<8x8x8x32xf32> to vector<1x1x8x32xf32>
    %27 = vector.shape_cast %26 : vector<1x1x8x32xf32> to vector<8x32xf32>
    %28 = vector.extract_strided_slice %12 {offsets = [5, 3, 0, 0], sizes = [1, 1, 8, 32], strides = [1, 1, 1, 1]} : vector<8x8x8x32xf32> to vector<1x1x8x32xf32>
    %29 = vector.shape_cast %28 : vector<1x1x8x32xf32> to vector<8x32xf32>
    %30 = vector.extract_strided_slice %12 {offsets = [5, 5, 0, 0], sizes = [1, 1, 8, 32], strides = [1, 1, 1, 1]} : vector<8x8x8x32xf32> to vector<1x1x8x32xf32>
    %31 = vector.shape_cast %30 : vector<1x1x8x32xf32> to vector<8x32xf32>
    %32 = tpu.concatenate %13, %13, %13, %13, %13, %15, %17, %19, %13, %21, %23, %25, %13, %27, %29, %31 in 0 : vector<8x32xf32>, vector<8x32xf32>, vector<8x32xf32>, vector<8x32xf32>, vector<8x32xf32>, vector<8x32xf32>, vector<8x32xf32>, vector<8x32xf32>, vector<8x32xf32>, vector<8x32xf32>, vector<8x32xf32>, vector<8x32xf32>, vector<8x32xf32>, vector<8x32xf32>, vector<8x32xf32>, vector<8x32xf32> -> vector<128x32xf32>
    %33 = vector.extract_strided_slice %3 {offsets = [0, 0], sizes = [32, 48], strides = [1, 1]} : vector<288x48xf32> to vector<32x48xf32>
    %cst_15 = arith.constant dense<0.000000e+00> : vector<128x48xf32>
    %34 = tpu.matmul %32, %33, %cst_15 {dimension_numbers = #tpu.dot_dimension_numbers<[1], [0], [0], [1], [0, 0, 1, 1], [], []>} : vector<128x32xf32>, vector<32x48xf32>, vector<128x48xf32> -> vector<128x48xf32>
    %35 = vector.extract_strided_slice %12 {offsets = [1, 0, 0, 0], sizes = [1, 1, 8, 32], strides = [1, 1, 1, 1]} : vector<8x8x8x32xf32> to vector<1x1x8x32xf32>
    %36 = vector.shape_cast %35 : vector<1x1x8x32xf32> to vector<8x32xf32>
    %37 = vector.extract_strided_slice %12 {offsets = [1, 2, 0, 0], sizes = [1, 1, 8, 32], strides = [1, 1, 1, 1]} : vector<8x8x8x32xf32> to vector<1x1x8x32xf32>
    %38 = vector.shape_cast %37 : vector<1x1x8x32xf32> to vector<8x32xf32>
    %39 = vector.extract_strided_slice %12 {offsets = [1, 4, 0, 0], sizes = [1, 1, 8, 32], strides = [1, 1, 1, 1]} : vector<8x8x8x32xf32> to vector<1x1x8x32xf32>
    %40 = vector.shape_cast %39 : vector<1x1x8x32xf32> to vector<8x32xf32>
    %41 = vector.extract_strided_slice %12 {offsets = [1, 6, 0, 0], sizes = [1, 1, 8, 32], strides = [1, 1, 1, 1]} : vector<8x8x8x32xf32> to vector<1x1x8x32xf32>
    %42 = vector.shape_cast %41 : vector<1x1x8x32xf32> to vector<8x32xf32>
    %43 = vector.extract_strided_slice %12 {offsets = [3, 0, 0, 0], sizes = [1, 1, 8, 32], strides = [1, 1, 1, 1]} : vector<8x8x8x32xf32> to vector<1x1x8x32xf32>
    %44 = vector.shape_cast %43 : vector<1x1x8x32xf32> to vector<8x32xf32>
    %45 = vector.extract_strided_slice %12 {offsets = [3, 2, 0, 0], sizes = [1, 1, 8, 32], strides = [1, 1, 1, 1]} : vector<8x8x8x32xf32> to vector<1x1x8x32xf32>
    %46 = vector.shape_cast %45 : vector<1x1x8x32xf32> to vector<8x32xf32>
    %47 = vector.extract_strided_slice %12 {offsets = [3, 4, 0, 0], sizes = [1, 1, 8, 32], strides = [1, 1, 1, 1]} : vector<8x8x8x32xf32> to vector<1x1x8x32xf32>
    %48 = vector.shape_cast %47 : vector<1x1x8x32xf32> to vector<8x32xf32>
    %49 = vector.extract_strided_slice %12 {offsets = [3, 6, 0, 0], sizes = [1, 1, 8, 32], strides = [1, 1, 1, 1]} : vector<8x8x8x32xf32> to vector<1x1x8x32xf32>
    %50 = vector.shape_cast %49 : vector<1x1x8x32xf32> to vector<8x32xf32>
    %51 = vector.extract_strided_slice %12 {offsets = [5, 0, 0, 0], sizes = [1, 1, 8, 32], strides = [1, 1, 1, 1]} : vector<8x8x8x32xf32> to vector<1x1x8x32xf32>
    %52 = vector.shape_cast %51 : vector<1x1x8x32xf32> to vector<8x32xf32>
    %53 = vector.extract_strided_slice %12 {offsets = [5, 2, 0, 0], sizes = [1, 1, 8, 32], strides = [1, 1, 1, 1]} : vector<8x8x8x32xf32> to vector<1x1x8x32xf32>
    %54 = vector.shape_cast %53 : vector<1x1x8x32xf32> to vector<8x32xf32>
    %55 = vector.extract_strided_slice %12 {offsets = [5, 4, 0, 0], sizes = [1, 1, 8, 32], strides = [1, 1, 1, 1]} : vector<8x8x8x32xf32> to vector<1x1x8x32xf32>
    %56 = vector.shape_cast %55 : vector<1x1x8x32xf32> to vector<8x32xf32>
    %57 = vector.extract_strided_slice %12 {offsets = [5, 6, 0, 0], sizes = [1, 1, 8, 32], strides = [1, 1, 1, 1]} : vector<8x8x8x32xf32> to vector<1x1x8x32xf32>
    %58 = vector.shape_cast %57 : vector<1x1x8x32xf32> to vector<8x32xf32>
    %59 = tpu.concatenate %13, %13, %13, %13, %36, %38, %40, %42, %44, %46, %48, %50, %52, %54, %56, %58 in 0 : vector<8x32xf32>, vector<8x32xf32>, vector<8x32xf32>, vector<8x32xf32>, vector<8x32xf32>, vector<8x32xf32>, vector<8x32xf32>, vector<8x32xf32>, vector<8x32xf32>, vector<8x32xf32>, vector<8x32xf32>, vector<8x32xf32>, vector<8x32xf32>, vector<8x32xf32>, vector<8x32xf32>, vector<8x32xf32> -> vector<128x32xf32>
    %60 = vector.extract_strided_slice %3 {offsets = [32, 0], sizes = [32, 48], strides = [1, 1]} : vector<288x48xf32> to vector<32x48xf32>
    %cst_16 = arith.constant dense<0.000000e+00> : vector<128x48xf32>
    %61 = tpu.matmul %59, %60, %cst_16 {dimension_numbers = #tpu.dot_dimension_numbers<[1], [0], [0], [1], [0, 0, 1, 1], [], []>} : vector<128x32xf32>, vector<32x48xf32>, vector<128x48xf32> -> vector<128x48xf32>
    %62 = arith.addf %34, %61 : vector<128x48xf32>
    %63 = vector.extract_strided_slice %12 {offsets = [1, 1, 0, 0], sizes = [1, 1, 8, 32], strides = [1, 1, 1, 1]} : vector<8x8x8x32xf32> to vector<1x1x8x32xf32>
    %64 = vector.shape_cast %63 : vector<1x1x8x32xf32> to vector<8x32xf32>
    %65 = vector.extract_strided_slice %12 {offsets = [1, 3, 0, 0], sizes = [1, 1, 8, 32], strides = [1, 1, 1, 1]} : vector<8x8x8x32xf32> to vector<1x1x8x32xf32>
    %66 = vector.shape_cast %65 : vector<1x1x8x32xf32> to vector<8x32xf32>
    %67 = vector.extract_strided_slice %12 {offsets = [1, 5, 0, 0], sizes = [1, 1, 8, 32], strides = [1, 1, 1, 1]} : vector<8x8x8x32xf32> to vector<1x1x8x32xf32>
    %68 = vector.shape_cast %67 : vector<1x1x8x32xf32> to vector<8x32xf32>
    %69 = vector.extract_strided_slice %12 {offsets = [1, 7, 0, 0], sizes = [1, 1, 8, 32], strides = [1, 1, 1, 1]} : vector<8x8x8x32xf32> to vector<1x1x8x32xf32>
    %70 = vector.shape_cast %69 : vector<1x1x8x32xf32> to vector<8x32xf32>
    %71 = vector.extract_strided_slice %12 {offsets = [3, 1, 0, 0], sizes = [1, 1, 8, 32], strides = [1, 1, 1, 1]} : vector<8x8x8x32xf32> to vector<1x1x8x32xf32>
    %72 = vector.shape_cast %71 : vector<1x1x8x32xf32> to vector<8x32xf32>
    %73 = vector.extract_strided_slice %12 {offsets = [3, 3, 0, 0], sizes = [1, 1, 8, 32], strides = [1, 1, 1, 1]} : vector<8x8x8x32xf32> to vector<1x1x8x32xf32>
    %74 = vector.shape_cast %73 : vector<1x1x8x32xf32> to vector<8x32xf32>
    %75 = vector.extract_strided_slice %12 {offsets = [3, 5, 0, 0], sizes = [1, 1, 8, 32], strides = [1, 1, 1, 1]} : vector<8x8x8x32xf32> to vector<1x1x8x32xf32>
    %76 = vector.shape_cast %75 : vector<1x1x8x32xf32> to vector<8x32xf32>
    %77 = vector.extract_strided_slice %12 {offsets = [3, 7, 0, 0], sizes = [1, 1, 8, 32], strides = [1, 1, 1, 1]} : vector<8x8x8x32xf32> to vector<1x1x8x32xf32>
    %78 = vector.shape_cast %77 : vector<1x1x8x32xf32> to vector<8x32xf32>
    %79 = vector.extract_strided_slice %12 {offsets = [5, 1, 0, 0], sizes = [1, 1, 8, 32], strides = [1, 1, 1, 1]} : vector<8x8x8x32xf32> to vector<1x1x8x32xf32>
    %80 = vector.shape_cast %79 : vector<1x1x8x32xf32> to vector<8x32xf32>
    %81 = vector.extract_strided_slice %12 {offsets = [5, 3, 0, 0], sizes = [1, 1, 8, 32], strides = [1, 1, 1, 1]} : vector<8x8x8x32xf32> to vector<1x1x8x32xf32>
    %82 = vector.shape_cast %81 : vector<1x1x8x32xf32> to vector<8x32xf32>
    %83 = vector.extract_strided_slice %12 {offsets = [5, 5, 0, 0], sizes = [1, 1, 8, 32], strides = [1, 1, 1, 1]} : vector<8x8x8x32xf32> to vector<1x1x8x32xf32>
    %84 = vector.shape_cast %83 : vector<1x1x8x32xf32> to vector<8x32xf32>
    %85 = vector.extract_strided_slice %12 {offsets = [5, 7, 0, 0], sizes = [1, 1, 8, 32], strides = [1, 1, 1, 1]} : vector<8x8x8x32xf32> to vector<1x1x8x32xf32>
    %86 = vector.shape_cast %85 : vector<1x1x8x32xf32> to vector<8x32xf32>
    %87 = tpu.concatenate %13, %13, %13, %13, %64, %66, %68, %70, %72, %74, %76, %78, %80, %82, %84, %86 in 0 : vector<8x32xf32>, vector<8x32xf32>, vector<8x32xf32>, vector<8x32xf32>, vector<8x32xf32>, vector<8x32xf32>, vector<8x32xf32>, vector<8x32xf32>, vector<8x32xf32>, vector<8x32xf32>, vector<8x32xf32>, vector<8x32xf32>, vector<8x32xf32>, vector<8x32xf32>, vector<8x32xf32>, vector<8x32xf32> -> vector<128x32xf32>
    %88 = vector.extract_strided_slice %3 {offsets = [64, 0], sizes = [32, 48], strides = [1, 1]} : vector<288x48xf32> to vector<32x48xf32>
    %cst_17 = arith.constant dense<0.000000e+00> : vector<128x48xf32>
    %89 = tpu.matmul %87, %88, %cst_17 {dimension_numbers = #tpu.dot_dimension_numbers<[1], [0], [0], [1], [0, 0, 1, 1], [], []>} : vector<128x32xf32>, vector<32x48xf32>, vector<128x48xf32> -> vector<128x48xf32>
    %90 = arith.addf %62, %89 : vector<128x48xf32>
    %91 = vector.extract_strided_slice %12 {offsets = [0, 1, 0, 0], sizes = [1, 1, 8, 32], strides = [1, 1, 1, 1]} : vector<8x8x8x32xf32> to vector<1x1x8x32xf32>
    %92 = vector.shape_cast %91 : vector<1x1x8x32xf32> to vector<8x32xf32>
    %93 = vector.extract_strided_slice %12 {offsets = [0, 3, 0, 0], sizes = [1, 1, 8, 32], strides = [1, 1, 1, 1]} : vector<8x8x8x32xf32> to vector<1x1x8x32xf32>
    %94 = vector.shape_cast %93 : vector<1x1x8x32xf32> to vector<8x32xf32>
    %95 = vector.extract_strided_slice %12 {offsets = [0, 5, 0, 0], sizes = [1, 1, 8, 32], strides = [1, 1, 1, 1]} : vector<8x8x8x32xf32> to vector<1x1x8x32xf32>
    %96 = vector.shape_cast %95 : vector<1x1x8x32xf32> to vector<8x32xf32>
    %97 = vector.extract_strided_slice %12 {offsets = [2, 1, 0, 0], sizes = [1, 1, 8, 32], strides = [1, 1, 1, 1]} : vector<8x8x8x32xf32> to vector<1x1x8x32xf32>
    %98 = vector.shape_cast %97 : vector<1x1x8x32xf32> to vector<8x32xf32>
    %99 = vector.extract_strided_slice %12 {offsets = [2, 3, 0, 0], sizes = [1, 1, 8, 32], strides = [1, 1, 1, 1]} : vector<8x8x8x32xf32> to vector<1x1x8x32xf32>
    %100 = vector.shape_cast %99 : vector<1x1x8x32xf32> to vector<8x32xf32>
    %101 = vector.extract_strided_slice %12 {offsets = [2, 5, 0, 0], sizes = [1, 1, 8, 32], strides = [1, 1, 1, 1]} : vector<8x8x8x32xf32> to vector<1x1x8x32xf32>
    %102 = vector.shape_cast %101 : vector<1x1x8x32xf32> to vector<8x32xf32>
    %103 = vector.extract_strided_slice %12 {offsets = [4, 1, 0, 0], sizes = [1, 1, 8, 32], strides = [1, 1, 1, 1]} : vector<8x8x8x32xf32> to vector<1x1x8x32xf32>
    %104 = vector.shape_cast %103 : vector<1x1x8x32xf32> to vector<8x32xf32>
    %105 = vector.extract_strided_slice %12 {offsets = [4, 3, 0, 0], sizes = [1, 1, 8, 32], strides = [1, 1, 1, 1]} : vector<8x8x8x32xf32> to vector<1x1x8x32xf32>
    %106 = vector.shape_cast %105 : vector<1x1x8x32xf32> to vector<8x32xf32>
    %107 = vector.extract_strided_slice %12 {offsets = [4, 5, 0, 0], sizes = [1, 1, 8, 32], strides = [1, 1, 1, 1]} : vector<8x8x8x32xf32> to vector<1x1x8x32xf32>
    %108 = vector.shape_cast %107 : vector<1x1x8x32xf32> to vector<8x32xf32>
    %109 = vector.extract_strided_slice %12 {offsets = [6, 1, 0, 0], sizes = [1, 1, 8, 32], strides = [1, 1, 1, 1]} : vector<8x8x8x32xf32> to vector<1x1x8x32xf32>
    %110 = vector.shape_cast %109 : vector<1x1x8x32xf32> to vector<8x32xf32>
    %111 = vector.extract_strided_slice %12 {offsets = [6, 3, 0, 0], sizes = [1, 1, 8, 32], strides = [1, 1, 1, 1]} : vector<8x8x8x32xf32> to vector<1x1x8x32xf32>
    %112 = vector.shape_cast %111 : vector<1x1x8x32xf32> to vector<8x32xf32>
    %113 = vector.extract_strided_slice %12 {offsets = [6, 5, 0, 0], sizes = [1, 1, 8, 32], strides = [1, 1, 1, 1]} : vector<8x8x8x32xf32> to vector<1x1x8x32xf32>
    %114 = vector.shape_cast %113 : vector<1x1x8x32xf32> to vector<8x32xf32>
    %115 = tpu.concatenate %13, %92, %94, %96, %13, %98, %100, %102, %13, %104, %106, %108, %13, %110, %112, %114 in 0 : vector<8x32xf32>, vector<8x32xf32>, vector<8x32xf32>, vector<8x32xf32>, vector<8x32xf32>, vector<8x32xf32>, vector<8x32xf32>, vector<8x32xf32>, vector<8x32xf32>, vector<8x32xf32>, vector<8x32xf32>, vector<8x32xf32>, vector<8x32xf32>, vector<8x32xf32>, vector<8x32xf32>, vector<8x32xf32> -> vector<128x32xf32>
    %116 = vector.extract_strided_slice %3 {offsets = [96, 0], sizes = [32, 48], strides = [1, 1]} : vector<288x48xf32> to vector<32x48xf32>
    %cst_18 = arith.constant dense<0.000000e+00> : vector<128x48xf32>
    %117 = tpu.matmul %115, %116, %cst_18 {dimension_numbers = #tpu.dot_dimension_numbers<[1], [0], [0], [1], [0, 0, 1, 1], [], []>} : vector<128x32xf32>, vector<32x48xf32>, vector<128x48xf32> -> vector<128x48xf32>
    %118 = arith.addf %90, %117 : vector<128x48xf32>
    %119 = vector.extract_strided_slice %12 {offsets = [0, 0, 0, 0], sizes = [1, 1, 8, 32], strides = [1, 1, 1, 1]} : vector<8x8x8x32xf32> to vector<1x1x8x32xf32>
    %120 = vector.shape_cast %119 : vector<1x1x8x32xf32> to vector<8x32xf32>
    %121 = vector.extract_strided_slice %12 {offsets = [0, 2, 0, 0], sizes = [1, 1, 8, 32], strides = [1, 1, 1, 1]} : vector<8x8x8x32xf32> to vector<1x1x8x32xf32>
    %122 = vector.shape_cast %121 : vector<1x1x8x32xf32> to vector<8x32xf32>
    %123 = vector.extract_strided_slice %12 {offsets = [0, 4, 0, 0], sizes = [1, 1, 8, 32], strides = [1, 1, 1, 1]} : vector<8x8x8x32xf32> to vector<1x1x8x32xf32>
    %124 = vector.shape_cast %123 : vector<1x1x8x32xf32> to vector<8x32xf32>
    %125 = vector.extract_strided_slice %12 {offsets = [0, 6, 0, 0], sizes = [1, 1, 8, 32], strides = [1, 1, 1, 1]} : vector<8x8x8x32xf32> to vector<1x1x8x32xf32>
    %126 = vector.shape_cast %125 : vector<1x1x8x32xf32> to vector<8x32xf32>
    %127 = vector.extract_strided_slice %12 {offsets = [2, 0, 0, 0], sizes = [1, 1, 8, 32], strides = [1, 1, 1, 1]} : vector<8x8x8x32xf32> to vector<1x1x8x32xf32>
    %128 = vector.shape_cast %127 : vector<1x1x8x32xf32> to vector<8x32xf32>
    %129 = vector.extract_strided_slice %12 {offsets = [2, 2, 0, 0], sizes = [1, 1, 8, 32], strides = [1, 1, 1, 1]} : vector<8x8x8x32xf32> to vector<1x1x8x32xf32>
    %130 = vector.shape_cast %129 : vector<1x1x8x32xf32> to vector<8x32xf32>
    %131 = vector.extract_strided_slice %12 {offsets = [2, 4, 0, 0], sizes = [1, 1, 8, 32], strides = [1, 1, 1, 1]} : vector<8x8x8x32xf32> to vector<1x1x8x32xf32>
    %132 = vector.shape_cast %131 : vector<1x1x8x32xf32> to vector<8x32xf32>
    %133 = vector.extract_strided_slice %12 {offsets = [2, 6, 0, 0], sizes = [1, 1, 8, 32], strides = [1, 1, 1, 1]} : vector<8x8x8x32xf32> to vector<1x1x8x32xf32>
    %134 = vector.shape_cast %133 : vector<1x1x8x32xf32> to vector<8x32xf32>
    %135 = vector.extract_strided_slice %12 {offsets = [4, 0, 0, 0], sizes = [1, 1, 8, 32], strides = [1, 1, 1, 1]} : vector<8x8x8x32xf32> to vector<1x1x8x32xf32>
    %136 = vector.shape_cast %135 : vector<1x1x8x32xf32> to vector<8x32xf32>
    %137 = vector.extract_strided_slice %12 {offsets = [4, 2, 0, 0], sizes = [1, 1, 8, 32], strides = [1, 1, 1, 1]} : vector<8x8x8x32xf32> to vector<1x1x8x32xf32>
    %138 = vector.shape_cast %137 : vector<1x1x8x32xf32> to vector<8x32xf32>
    %139 = vector.extract_strided_slice %12 {offsets = [4, 4, 0, 0], sizes = [1, 1, 8, 32], strides = [1, 1, 1, 1]} : vector<8x8x8x32xf32> to vector<1x1x8x32xf32>
    %140 = vector.shape_cast %139 : vector<1x1x8x32xf32> to vector<8x32xf32>
    %141 = vector.extract_strided_slice %12 {offsets = [4, 6, 0, 0], sizes = [1, 1, 8, 32], strides = [1, 1, 1, 1]} : vector<8x8x8x32xf32> to vector<1x1x8x32xf32>
    %142 = vector.shape_cast %141 : vector<1x1x8x32xf32> to vector<8x32xf32>
    %143 = vector.extract_strided_slice %12 {offsets = [6, 0, 0, 0], sizes = [1, 1, 8, 32], strides = [1, 1, 1, 1]} : vector<8x8x8x32xf32> to vector<1x1x8x32xf32>
    %144 = vector.shape_cast %143 : vector<1x1x8x32xf32> to vector<8x32xf32>
    %145 = vector.extract_strided_slice %12 {offsets = [6, 2, 0, 0], sizes = [1, 1, 8, 32], strides = [1, 1, 1, 1]} : vector<8x8x8x32xf32> to vector<1x1x8x32xf32>
    %146 = vector.shape_cast %145 : vector<1x1x8x32xf32> to vector<8x32xf32>
    %147 = vector.extract_strided_slice %12 {offsets = [6, 4, 0, 0], sizes = [1, 1, 8, 32], strides = [1, 1, 1, 1]} : vector<8x8x8x32xf32> to vector<1x1x8x32xf32>
    %148 = vector.shape_cast %147 : vector<1x1x8x32xf32> to vector<8x32xf32>
    %149 = vector.extract_strided_slice %12 {offsets = [6, 6, 0, 0], sizes = [1, 1, 8, 32], strides = [1, 1, 1, 1]} : vector<8x8x8x32xf32> to vector<1x1x8x32xf32>
    %150 = vector.shape_cast %149 : vector<1x1x8x32xf32> to vector<8x32xf32>
    %151 = tpu.concatenate %120, %122, %124, %126, %128, %130, %132, %134, %136, %138, %140, %142, %144, %146, %148, %150 in 0 : vector<8x32xf32>, vector<8x32xf32>, vector<8x32xf32>, vector<8x32xf32>, vector<8x32xf32>, vector<8x32xf32>, vector<8x32xf32>, vector<8x32xf32>, vector<8x32xf32>, vector<8x32xf32>, vector<8x32xf32>, vector<8x32xf32>, vector<8x32xf32>, vector<8x32xf32>, vector<8x32xf32>, vector<8x32xf32> -> vector<128x32xf32>
    %152 = vector.extract_strided_slice %3 {offsets = [128, 0], sizes = [32, 48], strides = [1, 1]} : vector<288x48xf32> to vector<32x48xf32>
    %cst_19 = arith.constant dense<0.000000e+00> : vector<128x48xf32>
    %153 = tpu.matmul %151, %152, %cst_19 {dimension_numbers = #tpu.dot_dimension_numbers<[1], [0], [0], [1], [0, 0, 1, 1], [], []>} : vector<128x32xf32>, vector<32x48xf32>, vector<128x48xf32> -> vector<128x48xf32>
    %154 = arith.addf %118, %153 : vector<128x48xf32>
    %155 = vector.extract_strided_slice %12 {offsets = [0, 1, 0, 0], sizes = [1, 1, 8, 32], strides = [1, 1, 1, 1]} : vector<8x8x8x32xf32> to vector<1x1x8x32xf32>
    %156 = vector.shape_cast %155 : vector<1x1x8x32xf32> to vector<8x32xf32>
    %157 = vector.extract_strided_slice %12 {offsets = [0, 3, 0, 0], sizes = [1, 1, 8, 32], strides = [1, 1, 1, 1]} : vector<8x8x8x32xf32> to vector<1x1x8x32xf32>
    %158 = vector.shape_cast %157 : vector<1x1x8x32xf32> to vector<8x32xf32>
    %159 = vector.extract_strided_slice %12 {offsets = [0, 5, 0, 0], sizes = [1, 1, 8, 32], strides = [1, 1, 1, 1]} : vector<8x8x8x32xf32> to vector<1x1x8x32xf32>
    %160 = vector.shape_cast %159 : vector<1x1x8x32xf32> to vector<8x32xf32>
    %161 = vector.extract_strided_slice %12 {offsets = [0, 7, 0, 0], sizes = [1, 1, 8, 32], strides = [1, 1, 1, 1]} : vector<8x8x8x32xf32> to vector<1x1x8x32xf32>
    %162 = vector.shape_cast %161 : vector<1x1x8x32xf32> to vector<8x32xf32>
    %163 = vector.extract_strided_slice %12 {offsets = [2, 1, 0, 0], sizes = [1, 1, 8, 32], strides = [1, 1, 1, 1]} : vector<8x8x8x32xf32> to vector<1x1x8x32xf32>
    %164 = vector.shape_cast %163 : vector<1x1x8x32xf32> to vector<8x32xf32>
    %165 = vector.extract_strided_slice %12 {offsets = [2, 3, 0, 0], sizes = [1, 1, 8, 32], strides = [1, 1, 1, 1]} : vector<8x8x8x32xf32> to vector<1x1x8x32xf32>
    %166 = vector.shape_cast %165 : vector<1x1x8x32xf32> to vector<8x32xf32>
    %167 = vector.extract_strided_slice %12 {offsets = [2, 5, 0, 0], sizes = [1, 1, 8, 32], strides = [1, 1, 1, 1]} : vector<8x8x8x32xf32> to vector<1x1x8x32xf32>
    %168 = vector.shape_cast %167 : vector<1x1x8x32xf32> to vector<8x32xf32>
    %169 = vector.extract_strided_slice %12 {offsets = [2, 7, 0, 0], sizes = [1, 1, 8, 32], strides = [1, 1, 1, 1]} : vector<8x8x8x32xf32> to vector<1x1x8x32xf32>
    %170 = vector.shape_cast %169 : vector<1x1x8x32xf32> to vector<8x32xf32>
    %171 = vector.extract_strided_slice %12 {offsets = [4, 1, 0, 0], sizes = [1, 1, 8, 32], strides = [1, 1, 1, 1]} : vector<8x8x8x32xf32> to vector<1x1x8x32xf32>
    %172 = vector.shape_cast %171 : vector<1x1x8x32xf32> to vector<8x32xf32>
    %173 = vector.extract_strided_slice %12 {offsets = [4, 3, 0, 0], sizes = [1, 1, 8, 32], strides = [1, 1, 1, 1]} : vector<8x8x8x32xf32> to vector<1x1x8x32xf32>
    %174 = vector.shape_cast %173 : vector<1x1x8x32xf32> to vector<8x32xf32>
    %175 = vector.extract_strided_slice %12 {offsets = [4, 5, 0, 0], sizes = [1, 1, 8, 32], strides = [1, 1, 1, 1]} : vector<8x8x8x32xf32> to vector<1x1x8x32xf32>
    %176 = vector.shape_cast %175 : vector<1x1x8x32xf32> to vector<8x32xf32>
    %177 = vector.extract_strided_slice %12 {offsets = [4, 7, 0, 0], sizes = [1, 1, 8, 32], strides = [1, 1, 1, 1]} : vector<8x8x8x32xf32> to vector<1x1x8x32xf32>
    %178 = vector.shape_cast %177 : vector<1x1x8x32xf32> to vector<8x32xf32>
    %179 = vector.extract_strided_slice %12 {offsets = [6, 1, 0, 0], sizes = [1, 1, 8, 32], strides = [1, 1, 1, 1]} : vector<8x8x8x32xf32> to vector<1x1x8x32xf32>
    %180 = vector.shape_cast %179 : vector<1x1x8x32xf32> to vector<8x32xf32>
    %181 = vector.extract_strided_slice %12 {offsets = [6, 3, 0, 0], sizes = [1, 1, 8, 32], strides = [1, 1, 1, 1]} : vector<8x8x8x32xf32> to vector<1x1x8x32xf32>
    %182 = vector.shape_cast %181 : vector<1x1x8x32xf32> to vector<8x32xf32>
    %183 = vector.extract_strided_slice %12 {offsets = [6, 5, 0, 0], sizes = [1, 1, 8, 32], strides = [1, 1, 1, 1]} : vector<8x8x8x32xf32> to vector<1x1x8x32xf32>
    %184 = vector.shape_cast %183 : vector<1x1x8x32xf32> to vector<8x32xf32>
    %185 = vector.extract_strided_slice %12 {offsets = [6, 7, 0, 0], sizes = [1, 1, 8, 32], strides = [1, 1, 1, 1]} : vector<8x8x8x32xf32> to vector<1x1x8x32xf32>
    %186 = vector.shape_cast %185 : vector<1x1x8x32xf32> to vector<8x32xf32>
    %187 = tpu.concatenate %156, %158, %160, %162, %164, %166, %168, %170, %172, %174, %176, %178, %180, %182, %184, %186 in 0 : vector<8x32xf32>, vector<8x32xf32>, vector<8x32xf32>, vector<8x32xf32>, vector<8x32xf32>, vector<8x32xf32>, vector<8x32xf32>, vector<8x32xf32>, vector<8x32xf32>, vector<8x32xf32>, vector<8x32xf32>, vector<8x32xf32>, vector<8x32xf32>, vector<8x32xf32>, vector<8x32xf32>, vector<8x32xf32> -> vector<128x32xf32>
    %188 = vector.extract_strided_slice %3 {offsets = [160, 0], sizes = [32, 48], strides = [1, 1]} : vector<288x48xf32> to vector<32x48xf32>
    %cst_20 = arith.constant dense<0.000000e+00> : vector<128x48xf32>
    %189 = tpu.matmul %187, %188, %cst_20 {dimension_numbers = #tpu.dot_dimension_numbers<[1], [0], [0], [1], [0, 0, 1, 1], [], []>} : vector<128x32xf32>, vector<32x48xf32>, vector<128x48xf32> -> vector<128x48xf32>
    %190 = arith.addf %154, %189 : vector<128x48xf32>
    %191 = vector.extract_strided_slice %12 {offsets = [1, 1, 0, 0], sizes = [1, 1, 8, 32], strides = [1, 1, 1, 1]} : vector<8x8x8x32xf32> to vector<1x1x8x32xf32>
    %192 = vector.shape_cast %191 : vector<1x1x8x32xf32> to vector<8x32xf32>
    %193 = vector.extract_strided_slice %12 {offsets = [1, 3, 0, 0], sizes = [1, 1, 8, 32], strides = [1, 1, 1, 1]} : vector<8x8x8x32xf32> to vector<1x1x8x32xf32>
    %194 = vector.shape_cast %193 : vector<1x1x8x32xf32> to vector<8x32xf32>
    %195 = vector.extract_strided_slice %12 {offsets = [1, 5, 0, 0], sizes = [1, 1, 8, 32], strides = [1, 1, 1, 1]} : vector<8x8x8x32xf32> to vector<1x1x8x32xf32>
    %196 = vector.shape_cast %195 : vector<1x1x8x32xf32> to vector<8x32xf32>
    %197 = vector.extract_strided_slice %12 {offsets = [3, 1, 0, 0], sizes = [1, 1, 8, 32], strides = [1, 1, 1, 1]} : vector<8x8x8x32xf32> to vector<1x1x8x32xf32>
    %198 = vector.shape_cast %197 : vector<1x1x8x32xf32> to vector<8x32xf32>
    %199 = vector.extract_strided_slice %12 {offsets = [3, 3, 0, 0], sizes = [1, 1, 8, 32], strides = [1, 1, 1, 1]} : vector<8x8x8x32xf32> to vector<1x1x8x32xf32>
    %200 = vector.shape_cast %199 : vector<1x1x8x32xf32> to vector<8x32xf32>
    %201 = vector.extract_strided_slice %12 {offsets = [3, 5, 0, 0], sizes = [1, 1, 8, 32], strides = [1, 1, 1, 1]} : vector<8x8x8x32xf32> to vector<1x1x8x32xf32>
    %202 = vector.shape_cast %201 : vector<1x1x8x32xf32> to vector<8x32xf32>
    %203 = vector.extract_strided_slice %12 {offsets = [5, 1, 0, 0], sizes = [1, 1, 8, 32], strides = [1, 1, 1, 1]} : vector<8x8x8x32xf32> to vector<1x1x8x32xf32>
    %204 = vector.shape_cast %203 : vector<1x1x8x32xf32> to vector<8x32xf32>
    %205 = vector.extract_strided_slice %12 {offsets = [5, 3, 0, 0], sizes = [1, 1, 8, 32], strides = [1, 1, 1, 1]} : vector<8x8x8x32xf32> to vector<1x1x8x32xf32>
    %206 = vector.shape_cast %205 : vector<1x1x8x32xf32> to vector<8x32xf32>
    %207 = vector.extract_strided_slice %12 {offsets = [5, 5, 0, 0], sizes = [1, 1, 8, 32], strides = [1, 1, 1, 1]} : vector<8x8x8x32xf32> to vector<1x1x8x32xf32>
    %208 = vector.shape_cast %207 : vector<1x1x8x32xf32> to vector<8x32xf32>
    %209 = vector.extract_strided_slice %12 {offsets = [7, 1, 0, 0], sizes = [1, 1, 8, 32], strides = [1, 1, 1, 1]} : vector<8x8x8x32xf32> to vector<1x1x8x32xf32>
    %210 = vector.shape_cast %209 : vector<1x1x8x32xf32> to vector<8x32xf32>
    %211 = vector.extract_strided_slice %12 {offsets = [7, 3, 0, 0], sizes = [1, 1, 8, 32], strides = [1, 1, 1, 1]} : vector<8x8x8x32xf32> to vector<1x1x8x32xf32>
    %212 = vector.shape_cast %211 : vector<1x1x8x32xf32> to vector<8x32xf32>
    %213 = vector.extract_strided_slice %12 {offsets = [7, 5, 0, 0], sizes = [1, 1, 8, 32], strides = [1, 1, 1, 1]} : vector<8x8x8x32xf32> to vector<1x1x8x32xf32>
    %214 = vector.shape_cast %213 : vector<1x1x8x32xf32> to vector<8x32xf32>
    %215 = tpu.concatenate %13, %192, %194, %196, %13, %198, %200, %202, %13, %204, %206, %208, %13, %210, %212, %214 in 0 : vector<8x32xf32>, vector<8x32xf32>, vector<8x32xf32>, vector<8x32xf32>, vector<8x32xf32>, vector<8x32xf32>, vector<8x32xf32>, vector<8x32xf32>, vector<8x32xf32>, vector<8x32xf32>, vector<8x32xf32>, vector<8x32xf32>, vector<8x32xf32>, vector<8x32xf32>, vector<8x32xf32>, vector<8x32xf32> -> vector<128x32xf32>
    %216 = vector.extract_strided_slice %3 {offsets = [192, 0], sizes = [32, 48], strides = [1, 1]} : vector<288x48xf32> to vector<32x48xf32>
    %cst_21 = arith.constant dense<0.000000e+00> : vector<128x48xf32>
    %217 = tpu.matmul %215, %216, %cst_21 {dimension_numbers = #tpu.dot_dimension_numbers<[1], [0], [0], [1], [0, 0, 1, 1], [], []>} : vector<128x32xf32>, vector<32x48xf32>, vector<128x48xf32> -> vector<128x48xf32>
    %218 = arith.addf %190, %217 : vector<128x48xf32>
    %219 = vector.extract_strided_slice %12 {offsets = [1, 0, 0, 0], sizes = [1, 1, 8, 32], strides = [1, 1, 1, 1]} : vector<8x8x8x32xf32> to vector<1x1x8x32xf32>
    %220 = vector.shape_cast %219 : vector<1x1x8x32xf32> to vector<8x32xf32>
    %221 = vector.extract_strided_slice %12 {offsets = [1, 2, 0, 0], sizes = [1, 1, 8, 32], strides = [1, 1, 1, 1]} : vector<8x8x8x32xf32> to vector<1x1x8x32xf32>
    %222 = vector.shape_cast %221 : vector<1x1x8x32xf32> to vector<8x32xf32>
    %223 = vector.extract_strided_slice %12 {offsets = [1, 4, 0, 0], sizes = [1, 1, 8, 32], strides = [1, 1, 1, 1]} : vector<8x8x8x32xf32> to vector<1x1x8x32xf32>
    %224 = vector.shape_cast %223 : vector<1x1x8x32xf32> to vector<8x32xf32>
    %225 = vector.extract_strided_slice %12 {offsets = [1, 6, 0, 0], sizes = [1, 1, 8, 32], strides = [1, 1, 1, 1]} : vector<8x8x8x32xf32> to vector<1x1x8x32xf32>
    %226 = vector.shape_cast %225 : vector<1x1x8x32xf32> to vector<8x32xf32>
    %227 = vector.extract_strided_slice %12 {offsets = [3, 0, 0, 0], sizes = [1, 1, 8, 32], strides = [1, 1, 1, 1]} : vector<8x8x8x32xf32> to vector<1x1x8x32xf32>
    %228 = vector.shape_cast %227 : vector<1x1x8x32xf32> to vector<8x32xf32>
    %229 = vector.extract_strided_slice %12 {offsets = [3, 2, 0, 0], sizes = [1, 1, 8, 32], strides = [1, 1, 1, 1]} : vector<8x8x8x32xf32> to vector<1x1x8x32xf32>
    %230 = vector.shape_cast %229 : vector<1x1x8x32xf32> to vector<8x32xf32>
    %231 = vector.extract_strided_slice %12 {offsets = [3, 4, 0, 0], sizes = [1, 1, 8, 32], strides = [1, 1, 1, 1]} : vector<8x8x8x32xf32> to vector<1x1x8x32xf32>
    %232 = vector.shape_cast %231 : vector<1x1x8x32xf32> to vector<8x32xf32>
    %233 = vector.extract_strided_slice %12 {offsets = [3, 6, 0, 0], sizes = [1, 1, 8, 32], strides = [1, 1, 1, 1]} : vector<8x8x8x32xf32> to vector<1x1x8x32xf32>
    %234 = vector.shape_cast %233 : vector<1x1x8x32xf32> to vector<8x32xf32>
    %235 = vector.extract_strided_slice %12 {offsets = [5, 0, 0, 0], sizes = [1, 1, 8, 32], strides = [1, 1, 1, 1]} : vector<8x8x8x32xf32> to vector<1x1x8x32xf32>
    %236 = vector.shape_cast %235 : vector<1x1x8x32xf32> to vector<8x32xf32>
    %237 = vector.extract_strided_slice %12 {offsets = [5, 2, 0, 0], sizes = [1, 1, 8, 32], strides = [1, 1, 1, 1]} : vector<8x8x8x32xf32> to vector<1x1x8x32xf32>
    %238 = vector.shape_cast %237 : vector<1x1x8x32xf32> to vector<8x32xf32>
    %239 = vector.extract_strided_slice %12 {offsets = [5, 4, 0, 0], sizes = [1, 1, 8, 32], strides = [1, 1, 1, 1]} : vector<8x8x8x32xf32> to vector<1x1x8x32xf32>
    %240 = vector.shape_cast %239 : vector<1x1x8x32xf32> to vector<8x32xf32>
    %241 = vector.extract_strided_slice %12 {offsets = [5, 6, 0, 0], sizes = [1, 1, 8, 32], strides = [1, 1, 1, 1]} : vector<8x8x8x32xf32> to vector<1x1x8x32xf32>
    %242 = vector.shape_cast %241 : vector<1x1x8x32xf32> to vector<8x32xf32>
    %243 = vector.extract_strided_slice %12 {offsets = [7, 0, 0, 0], sizes = [1, 1, 8, 32], strides = [1, 1, 1, 1]} : vector<8x8x8x32xf32> to vector<1x1x8x32xf32>
    %244 = vector.shape_cast %243 : vector<1x1x8x32xf32> to vector<8x32xf32>
    %245 = vector.extract_strided_slice %12 {offsets = [7, 2, 0, 0], sizes = [1, 1, 8, 32], strides = [1, 1, 1, 1]} : vector<8x8x8x32xf32> to vector<1x1x8x32xf32>
    %246 = vector.shape_cast %245 : vector<1x1x8x32xf32> to vector<8x32xf32>
    %247 = vector.extract_strided_slice %12 {offsets = [7, 4, 0, 0], sizes = [1, 1, 8, 32], strides = [1, 1, 1, 1]} : vector<8x8x8x32xf32> to vector<1x1x8x32xf32>
    %248 = vector.shape_cast %247 : vector<1x1x8x32xf32> to vector<8x32xf32>
    %249 = vector.extract_strided_slice %12 {offsets = [7, 6, 0, 0], sizes = [1, 1, 8, 32], strides = [1, 1, 1, 1]} : vector<8x8x8x32xf32> to vector<1x1x8x32xf32>
    %250 = vector.shape_cast %249 : vector<1x1x8x32xf32> to vector<8x32xf32>
    %251 = tpu.concatenate %220, %222, %224, %226, %228, %230, %232, %234, %236, %238, %240, %242, %244, %246, %248, %250 in 0 : vector<8x32xf32>, vector<8x32xf32>, vector<8x32xf32>, vector<8x32xf32>, vector<8x32xf32>, vector<8x32xf32>, vector<8x32xf32>, vector<8x32xf32>, vector<8x32xf32>, vector<8x32xf32>, vector<8x32xf32>, vector<8x32xf32>, vector<8x32xf32>, vector<8x32xf32>, vector<8x32xf32>, vector<8x32xf32> -> vector<128x32xf32>
    %252 = vector.extract_strided_slice %3 {offsets = [224, 0], sizes = [32, 48], strides = [1, 1]} : vector<288x48xf32> to vector<32x48xf32>
    %cst_22 = arith.constant dense<0.000000e+00> : vector<128x48xf32>
    %253 = tpu.matmul %251, %252, %cst_22 {dimension_numbers = #tpu.dot_dimension_numbers<[1], [0], [0], [1], [0, 0, 1, 1], [], []>} : vector<128x32xf32>, vector<32x48xf32>, vector<128x48xf32> -> vector<128x48xf32>
    %254 = arith.addf %218, %253 : vector<128x48xf32>
    %255 = vector.extract_strided_slice %12 {offsets = [1, 1, 0, 0], sizes = [1, 1, 8, 32], strides = [1, 1, 1, 1]} : vector<8x8x8x32xf32> to vector<1x1x8x32xf32>
    %256 = vector.shape_cast %255 : vector<1x1x8x32xf32> to vector<8x32xf32>
    %257 = vector.extract_strided_slice %12 {offsets = [1, 3, 0, 0], sizes = [1, 1, 8, 32], strides = [1, 1, 1, 1]} : vector<8x8x8x32xf32> to vector<1x1x8x32xf32>
    %258 = vector.shape_cast %257 : vector<1x1x8x32xf32> to vector<8x32xf32>
    %259 = vector.extract_strided_slice %12 {offsets = [1, 5, 0, 0], sizes = [1, 1, 8, 32], strides = [1, 1, 1, 1]} : vector<8x8x8x32xf32> to vector<1x1x8x32xf32>
    %260 = vector.shape_cast %259 : vector<1x1x8x32xf32> to vector<8x32xf32>
    %261 = vector.extract_strided_slice %12 {offsets = [1, 7, 0, 0], sizes = [1, 1, 8, 32], strides = [1, 1, 1, 1]} : vector<8x8x8x32xf32> to vector<1x1x8x32xf32>
    %262 = vector.shape_cast %261 : vector<1x1x8x32xf32> to vector<8x32xf32>
    %263 = vector.extract_strided_slice %12 {offsets = [3, 1, 0, 0], sizes = [1, 1, 8, 32], strides = [1, 1, 1, 1]} : vector<8x8x8x32xf32> to vector<1x1x8x32xf32>
    %264 = vector.shape_cast %263 : vector<1x1x8x32xf32> to vector<8x32xf32>
    %265 = vector.extract_strided_slice %12 {offsets = [3, 3, 0, 0], sizes = [1, 1, 8, 32], strides = [1, 1, 1, 1]} : vector<8x8x8x32xf32> to vector<1x1x8x32xf32>
    %266 = vector.shape_cast %265 : vector<1x1x8x32xf32> to vector<8x32xf32>
    %267 = vector.extract_strided_slice %12 {offsets = [3, 5, 0, 0], sizes = [1, 1, 8, 32], strides = [1, 1, 1, 1]} : vector<8x8x8x32xf32> to vector<1x1x8x32xf32>
    %268 = vector.shape_cast %267 : vector<1x1x8x32xf32> to vector<8x32xf32>
    %269 = vector.extract_strided_slice %12 {offsets = [3, 7, 0, 0], sizes = [1, 1, 8, 32], strides = [1, 1, 1, 1]} : vector<8x8x8x32xf32> to vector<1x1x8x32xf32>
    %270 = vector.shape_cast %269 : vector<1x1x8x32xf32> to vector<8x32xf32>
    %271 = vector.extract_strided_slice %12 {offsets = [5, 1, 0, 0], sizes = [1, 1, 8, 32], strides = [1, 1, 1, 1]} : vector<8x8x8x32xf32> to vector<1x1x8x32xf32>
    %272 = vector.shape_cast %271 : vector<1x1x8x32xf32> to vector<8x32xf32>
    %273 = vector.extract_strided_slice %12 {offsets = [5, 3, 0, 0], sizes = [1, 1, 8, 32], strides = [1, 1, 1, 1]} : vector<8x8x8x32xf32> to vector<1x1x8x32xf32>
    %274 = vector.shape_cast %273 : vector<1x1x8x32xf32> to vector<8x32xf32>
    %275 = vector.extract_strided_slice %12 {offsets = [5, 5, 0, 0], sizes = [1, 1, 8, 32], strides = [1, 1, 1, 1]} : vector<8x8x8x32xf32> to vector<1x1x8x32xf32>
    %276 = vector.shape_cast %275 : vector<1x1x8x32xf32> to vector<8x32xf32>
    %277 = vector.extract_strided_slice %12 {offsets = [5, 7, 0, 0], sizes = [1, 1, 8, 32], strides = [1, 1, 1, 1]} : vector<8x8x8x32xf32> to vector<1x1x8x32xf32>
    %278 = vector.shape_cast %277 : vector<1x1x8x32xf32> to vector<8x32xf32>
    %279 = vector.extract_strided_slice %12 {offsets = [7, 1, 0, 0], sizes = [1, 1, 8, 32], strides = [1, 1, 1, 1]} : vector<8x8x8x32xf32> to vector<1x1x8x32xf32>
    %280 = vector.shape_cast %279 : vector<1x1x8x32xf32> to vector<8x32xf32>
    %281 = vector.extract_strided_slice %12 {offsets = [7, 3, 0, 0], sizes = [1, 1, 8, 32], strides = [1, 1, 1, 1]} : vector<8x8x8x32xf32> to vector<1x1x8x32xf32>
    %282 = vector.shape_cast %281 : vector<1x1x8x32xf32> to vector<8x32xf32>
    %283 = vector.extract_strided_slice %12 {offsets = [7, 5, 0, 0], sizes = [1, 1, 8, 32], strides = [1, 1, 1, 1]} : vector<8x8x8x32xf32> to vector<1x1x8x32xf32>
    %284 = vector.shape_cast %283 : vector<1x1x8x32xf32> to vector<8x32xf32>
    %285 = vector.extract_strided_slice %12 {offsets = [7, 7, 0, 0], sizes = [1, 1, 8, 32], strides = [1, 1, 1, 1]} : vector<8x8x8x32xf32> to vector<1x1x8x32xf32>
    %286 = vector.shape_cast %285 : vector<1x1x8x32xf32> to vector<8x32xf32>
    %287 = tpu.concatenate %256, %258, %260, %262, %264, %266, %268, %270, %272, %274, %276, %278, %280, %282, %284, %286 in 0 : vector<8x32xf32>, vector<8x32xf32>, vector<8x32xf32>, vector<8x32xf32>, vector<8x32xf32>, vector<8x32xf32>, vector<8x32xf32>, vector<8x32xf32>, vector<8x32xf32>, vector<8x32xf32>, vector<8x32xf32>, vector<8x32xf32>, vector<8x32xf32>, vector<8x32xf32>, vector<8x32xf32>, vector<8x32xf32> -> vector<128x32xf32>
    %288 = vector.extract_strided_slice %3 {offsets = [256, 0], sizes = [32, 48], strides = [1, 1]} : vector<288x48xf32> to vector<32x48xf32>
    %cst_23 = arith.constant dense<0.000000e+00> : vector<128x48xf32>
    %289 = tpu.matmul %287, %288, %cst_23 {dimension_numbers = #tpu.dot_dimension_numbers<[1], [0], [0], [1], [0, 0, 1, 1], [], []>} : vector<128x32xf32>, vector<32x48xf32>, vector<128x48xf32> -> vector<128x48xf32>
    %290 = arith.addf %254, %289 : vector<128x48xf32>
    %291 = vector.broadcast %4 : vector<1x48xf32> to vector<128x48xf32>
    %292 = arith.addf %290, %291 : vector<128x48xf32>
    %cst_24 = arith.constant 0.000000e+00 : f32
    %293 = vector.broadcast %cst_24 : f32 to vector<128x48xf32>
    %294 = arith.maximumf %292, %293 : vector<128x48xf32>
    %295 = vector.shape_cast %294 : vector<128x48xf32> to vector<4x4x8x48xf32>
    %cst_25 = arith.constant 0.000000e+00 : f32
    %296 = vector.broadcast %cst_25 : f32 to vector<8x48xf32>
    %297 = vector.extract_strided_slice %295 {offsets = [1, 1, 0, 0], sizes = [1, 1, 8, 48], strides = [1, 1, 1, 1]} : vector<4x4x8x48xf32> to vector<1x1x8x48xf32>
    %298 = vector.shape_cast %297 : vector<1x1x8x48xf32> to vector<8x48xf32>
    %299 = tpu.concatenate %296, %296, %296, %298 in 0 : vector<8x48xf32>, vector<8x48xf32>, vector<8x48xf32>, vector<8x48xf32> -> vector<32x48xf32>
    %300 = vector.extract_strided_slice %5 {offsets = [0, 0], sizes = [48, 64], strides = [1, 1]} : vector<432x64xf32> to vector<48x64xf32>
    %cst_26 = arith.constant dense<0.000000e+00> : vector<32x64xf32>
    %301 = tpu.matmul %299, %300, %cst_26 {dimension_numbers = #tpu.dot_dimension_numbers<[1], [0], [0], [1], [0, 0, 1, 1], [], []>} : vector<32x48xf32>, vector<48x64xf32>, vector<32x64xf32> -> vector<32x64xf32>
    %302 = vector.extract_strided_slice %295 {offsets = [1, 0, 0, 0], sizes = [1, 1, 8, 48], strides = [1, 1, 1, 1]} : vector<4x4x8x48xf32> to vector<1x1x8x48xf32>
    %303 = vector.shape_cast %302 : vector<1x1x8x48xf32> to vector<8x48xf32>
    %304 = vector.extract_strided_slice %295 {offsets = [1, 2, 0, 0], sizes = [1, 1, 8, 48], strides = [1, 1, 1, 1]} : vector<4x4x8x48xf32> to vector<1x1x8x48xf32>
    %305 = vector.shape_cast %304 : vector<1x1x8x48xf32> to vector<8x48xf32>
    %306 = tpu.concatenate %296, %296, %303, %305 in 0 : vector<8x48xf32>, vector<8x48xf32>, vector<8x48xf32>, vector<8x48xf32> -> vector<32x48xf32>
    %307 = vector.extract_strided_slice %5 {offsets = [48, 0], sizes = [48, 64], strides = [1, 1]} : vector<432x64xf32> to vector<48x64xf32>
    %cst_27 = arith.constant dense<0.000000e+00> : vector<32x64xf32>
    %308 = tpu.matmul %306, %307, %cst_27 {dimension_numbers = #tpu.dot_dimension_numbers<[1], [0], [0], [1], [0, 0, 1, 1], [], []>} : vector<32x48xf32>, vector<48x64xf32>, vector<32x64xf32> -> vector<32x64xf32>
    %309 = arith.addf %301, %308 : vector<32x64xf32>
    %310 = vector.extract_strided_slice %295 {offsets = [1, 1, 0, 0], sizes = [1, 1, 8, 48], strides = [1, 1, 1, 1]} : vector<4x4x8x48xf32> to vector<1x1x8x48xf32>
    %311 = vector.shape_cast %310 : vector<1x1x8x48xf32> to vector<8x48xf32>
    %312 = vector.extract_strided_slice %295 {offsets = [1, 3, 0, 0], sizes = [1, 1, 8, 48], strides = [1, 1, 1, 1]} : vector<4x4x8x48xf32> to vector<1x1x8x48xf32>
    %313 = vector.shape_cast %312 : vector<1x1x8x48xf32> to vector<8x48xf32>
    %314 = tpu.concatenate %296, %296, %311, %313 in 0 : vector<8x48xf32>, vector<8x48xf32>, vector<8x48xf32>, vector<8x48xf32> -> vector<32x48xf32>
    %315 = vector.extract_strided_slice %5 {offsets = [96, 0], sizes = [48, 64], strides = [1, 1]} : vector<432x64xf32> to vector<48x64xf32>
    %cst_28 = arith.constant dense<0.000000e+00> : vector<32x64xf32>
    %316 = tpu.matmul %314, %315, %cst_28 {dimension_numbers = #tpu.dot_dimension_numbers<[1], [0], [0], [1], [0, 0, 1, 1], [], []>} : vector<32x48xf32>, vector<48x64xf32>, vector<32x64xf32> -> vector<32x64xf32>
    %317 = arith.addf %309, %316 : vector<32x64xf32>
    %318 = vector.extract_strided_slice %295 {offsets = [0, 1, 0, 0], sizes = [1, 1, 8, 48], strides = [1, 1, 1, 1]} : vector<4x4x8x48xf32> to vector<1x1x8x48xf32>
    %319 = vector.shape_cast %318 : vector<1x1x8x48xf32> to vector<8x48xf32>
    %320 = vector.extract_strided_slice %295 {offsets = [2, 1, 0, 0], sizes = [1, 1, 8, 48], strides = [1, 1, 1, 1]} : vector<4x4x8x48xf32> to vector<1x1x8x48xf32>
    %321 = vector.shape_cast %320 : vector<1x1x8x48xf32> to vector<8x48xf32>
    %322 = tpu.concatenate %296, %319, %296, %321 in 0 : vector<8x48xf32>, vector<8x48xf32>, vector<8x48xf32>, vector<8x48xf32> -> vector<32x48xf32>
    %323 = vector.extract_strided_slice %5 {offsets = [144, 0], sizes = [48, 64], strides = [1, 1]} : vector<432x64xf32> to vector<48x64xf32>
    %cst_29 = arith.constant dense<0.000000e+00> : vector<32x64xf32>
    %324 = tpu.matmul %322, %323, %cst_29 {dimension_numbers = #tpu.dot_dimension_numbers<[1], [0], [0], [1], [0, 0, 1, 1], [], []>} : vector<32x48xf32>, vector<48x64xf32>, vector<32x64xf32> -> vector<32x64xf32>
    %325 = arith.addf %317, %324 : vector<32x64xf32>
    %326 = vector.extract_strided_slice %295 {offsets = [0, 0, 0, 0], sizes = [1, 1, 8, 48], strides = [1, 1, 1, 1]} : vector<4x4x8x48xf32> to vector<1x1x8x48xf32>
    %327 = vector.shape_cast %326 : vector<1x1x8x48xf32> to vector<8x48xf32>
    %328 = vector.extract_strided_slice %295 {offsets = [0, 2, 0, 0], sizes = [1, 1, 8, 48], strides = [1, 1, 1, 1]} : vector<4x4x8x48xf32> to vector<1x1x8x48xf32>
    %329 = vector.shape_cast %328 : vector<1x1x8x48xf32> to vector<8x48xf32>
    %330 = vector.extract_strided_slice %295 {offsets = [2, 0, 0, 0], sizes = [1, 1, 8, 48], strides = [1, 1, 1, 1]} : vector<4x4x8x48xf32> to vector<1x1x8x48xf32>
    %331 = vector.shape_cast %330 : vector<1x1x8x48xf32> to vector<8x48xf32>
    %332 = vector.extract_strided_slice %295 {offsets = [2, 2, 0, 0], sizes = [1, 1, 8, 48], strides = [1, 1, 1, 1]} : vector<4x4x8x48xf32> to vector<1x1x8x48xf32>
    %333 = vector.shape_cast %332 : vector<1x1x8x48xf32> to vector<8x48xf32>
    %334 = tpu.concatenate %327, %329, %331, %333 in 0 : vector<8x48xf32>, vector<8x48xf32>, vector<8x48xf32>, vector<8x48xf32> -> vector<32x48xf32>
    %335 = vector.extract_strided_slice %5 {offsets = [192, 0], sizes = [48, 64], strides = [1, 1]} : vector<432x64xf32> to vector<48x64xf32>
    %cst_30 = arith.constant dense<0.000000e+00> : vector<32x64xf32>
    %336 = tpu.matmul %334, %335, %cst_30 {dimension_numbers = #tpu.dot_dimension_numbers<[1], [0], [0], [1], [0, 0, 1, 1], [], []>} : vector<32x48xf32>, vector<48x64xf32>, vector<32x64xf32> -> vector<32x64xf32>
    %337 = arith.addf %325, %336 : vector<32x64xf32>
    %338 = vector.extract_strided_slice %295 {offsets = [0, 1, 0, 0], sizes = [1, 1, 8, 48], strides = [1, 1, 1, 1]} : vector<4x4x8x48xf32> to vector<1x1x8x48xf32>
    %339 = vector.shape_cast %338 : vector<1x1x8x48xf32> to vector<8x48xf32>
    %340 = vector.extract_strided_slice %295 {offsets = [0, 3, 0, 0], sizes = [1, 1, 8, 48], strides = [1, 1, 1, 1]} : vector<4x4x8x48xf32> to vector<1x1x8x48xf32>
    %341 = vector.shape_cast %340 : vector<1x1x8x48xf32> to vector<8x48xf32>
    %342 = vector.extract_strided_slice %295 {offsets = [2, 1, 0, 0], sizes = [1, 1, 8, 48], strides = [1, 1, 1, 1]} : vector<4x4x8x48xf32> to vector<1x1x8x48xf32>
    %343 = vector.shape_cast %342 : vector<1x1x8x48xf32> to vector<8x48xf32>
    %344 = vector.extract_strided_slice %295 {offsets = [2, 3, 0, 0], sizes = [1, 1, 8, 48], strides = [1, 1, 1, 1]} : vector<4x4x8x48xf32> to vector<1x1x8x48xf32>
    %345 = vector.shape_cast %344 : vector<1x1x8x48xf32> to vector<8x48xf32>
    %346 = tpu.concatenate %339, %341, %343, %345 in 0 : vector<8x48xf32>, vector<8x48xf32>, vector<8x48xf32>, vector<8x48xf32> -> vector<32x48xf32>
    %347 = vector.extract_strided_slice %5 {offsets = [240, 0], sizes = [48, 64], strides = [1, 1]} : vector<432x64xf32> to vector<48x64xf32>
    %cst_31 = arith.constant dense<0.000000e+00> : vector<32x64xf32>
    %348 = tpu.matmul %346, %347, %cst_31 {dimension_numbers = #tpu.dot_dimension_numbers<[1], [0], [0], [1], [0, 0, 1, 1], [], []>} : vector<32x48xf32>, vector<48x64xf32>, vector<32x64xf32> -> vector<32x64xf32>
    %349 = arith.addf %337, %348 : vector<32x64xf32>
    %350 = vector.extract_strided_slice %295 {offsets = [1, 1, 0, 0], sizes = [1, 1, 8, 48], strides = [1, 1, 1, 1]} : vector<4x4x8x48xf32> to vector<1x1x8x48xf32>
    %351 = vector.shape_cast %350 : vector<1x1x8x48xf32> to vector<8x48xf32>
    %352 = vector.extract_strided_slice %295 {offsets = [3, 1, 0, 0], sizes = [1, 1, 8, 48], strides = [1, 1, 1, 1]} : vector<4x4x8x48xf32> to vector<1x1x8x48xf32>
    %353 = vector.shape_cast %352 : vector<1x1x8x48xf32> to vector<8x48xf32>
    %354 = tpu.concatenate %296, %351, %296, %353 in 0 : vector<8x48xf32>, vector<8x48xf32>, vector<8x48xf32>, vector<8x48xf32> -> vector<32x48xf32>
    %355 = vector.extract_strided_slice %5 {offsets = [288, 0], sizes = [48, 64], strides = [1, 1]} : vector<432x64xf32> to vector<48x64xf32>
    %cst_32 = arith.constant dense<0.000000e+00> : vector<32x64xf32>
    %356 = tpu.matmul %354, %355, %cst_32 {dimension_numbers = #tpu.dot_dimension_numbers<[1], [0], [0], [1], [0, 0, 1, 1], [], []>} : vector<32x48xf32>, vector<48x64xf32>, vector<32x64xf32> -> vector<32x64xf32>
    %357 = arith.addf %349, %356 : vector<32x64xf32>
    %358 = vector.extract_strided_slice %295 {offsets = [1, 0, 0, 0], sizes = [1, 1, 8, 48], strides = [1, 1, 1, 1]} : vector<4x4x8x48xf32> to vector<1x1x8x48xf32>
    %359 = vector.shape_cast %358 : vector<1x1x8x48xf32> to vector<8x48xf32>
    %360 = vector.extract_strided_slice %295 {offsets = [1, 2, 0, 0], sizes = [1, 1, 8, 48], strides = [1, 1, 1, 1]} : vector<4x4x8x48xf32> to vector<1x1x8x48xf32>
    %361 = vector.shape_cast %360 : vector<1x1x8x48xf32> to vector<8x48xf32>
    %362 = vector.extract_strided_slice %295 {offsets = [3, 0, 0, 0], sizes = [1, 1, 8, 48], strides = [1, 1, 1, 1]} : vector<4x4x8x48xf32> to vector<1x1x8x48xf32>
    %363 = vector.shape_cast %362 : vector<1x1x8x48xf32> to vector<8x48xf32>
    %364 = vector.extract_strided_slice %295 {offsets = [3, 2, 0, 0], sizes = [1, 1, 8, 48], strides = [1, 1, 1, 1]} : vector<4x4x8x48xf32> to vector<1x1x8x48xf32>
    %365 = vector.shape_cast %364 : vector<1x1x8x48xf32> to vector<8x48xf32>
    %366 = tpu.concatenate %359, %361, %363, %365 in 0 : vector<8x48xf32>, vector<8x48xf32>, vector<8x48xf32>, vector<8x48xf32> -> vector<32x48xf32>
    %367 = vector.extract_strided_slice %5 {offsets = [336, 0], sizes = [48, 64], strides = [1, 1]} : vector<432x64xf32> to vector<48x64xf32>
    %cst_33 = arith.constant dense<0.000000e+00> : vector<32x64xf32>
    %368 = tpu.matmul %366, %367, %cst_33 {dimension_numbers = #tpu.dot_dimension_numbers<[1], [0], [0], [1], [0, 0, 1, 1], [], []>} : vector<32x48xf32>, vector<48x64xf32>, vector<32x64xf32> -> vector<32x64xf32>
    %369 = arith.addf %357, %368 : vector<32x64xf32>
    %370 = vector.extract_strided_slice %295 {offsets = [1, 1, 0, 0], sizes = [1, 1, 8, 48], strides = [1, 1, 1, 1]} : vector<4x4x8x48xf32> to vector<1x1x8x48xf32>
    %371 = vector.shape_cast %370 : vector<1x1x8x48xf32> to vector<8x48xf32>
    %372 = vector.extract_strided_slice %295 {offsets = [1, 3, 0, 0], sizes = [1, 1, 8, 48], strides = [1, 1, 1, 1]} : vector<4x4x8x48xf32> to vector<1x1x8x48xf32>
    %373 = vector.shape_cast %372 : vector<1x1x8x48xf32> to vector<8x48xf32>
    %374 = vector.extract_strided_slice %295 {offsets = [3, 1, 0, 0], sizes = [1, 1, 8, 48], strides = [1, 1, 1, 1]} : vector<4x4x8x48xf32> to vector<1x1x8x48xf32>
    %375 = vector.shape_cast %374 : vector<1x1x8x48xf32> to vector<8x48xf32>
    %376 = vector.extract_strided_slice %295 {offsets = [3, 3, 0, 0], sizes = [1, 1, 8, 48], strides = [1, 1, 1, 1]} : vector<4x4x8x48xf32> to vector<1x1x8x48xf32>
    %377 = vector.shape_cast %376 : vector<1x1x8x48xf32> to vector<8x48xf32>
    %378 = tpu.concatenate %371, %373, %375, %377 in 0 : vector<8x48xf32>, vector<8x48xf32>, vector<8x48xf32>, vector<8x48xf32> -> vector<32x48xf32>
    %379 = vector.extract_strided_slice %5 {offsets = [384, 0], sizes = [48, 64], strides = [1, 1]} : vector<432x64xf32> to vector<48x64xf32>
    %cst_34 = arith.constant dense<0.000000e+00> : vector<32x64xf32>
    %380 = tpu.matmul %378, %379, %cst_34 {dimension_numbers = #tpu.dot_dimension_numbers<[1], [0], [0], [1], [0, 0, 1, 1], [], []>} : vector<32x48xf32>, vector<48x64xf32>, vector<32x64xf32> -> vector<32x64xf32>
    %381 = arith.addf %369, %380 : vector<32x64xf32>
    %382 = vector.broadcast %6 : vector<1x64xf32> to vector<32x64xf32>
    %383 = arith.addf %381, %382 : vector<32x64xf32>
    %cst_35 = arith.constant 0.000000e+00 : f32
    %384 = vector.broadcast %cst_35 : f32 to vector<32x64xf32>
    %385 = arith.maximumf %383, %384 : vector<32x64xf32>
    %c0_36 = arith.constant 0 : index
    %c0_37 = arith.constant 0 : index
    %386 = vector.load %arg9[%c0_36, %c0_37] : memref<8x2xf32, #tpu.memory_space<vmem>>, vector<8x2xf32>
    %c0_38 = arith.constant 0 : index
    %c0_39 = arith.constant 0 : index
    %387 = vector.load %arg8[%c0_38, %c0_39] : memref<2x256xf32, #tpu.memory_space<vmem>>, vector<2x256xf32>
    %cst_40 = arith.constant dense<0.000000e+00> : vector<8x256xf32>
    %388 = tpu.matmul %386, %387, %cst_40 {dimension_numbers = #tpu.dot_dimension_numbers<[1], [0], [0], [1], [0, 0, 1, 1], [], []>} : vector<8x2xf32>, vector<2x256xf32>, vector<8x256xf32> -> vector<8x256xf32>
    %c0_41 = arith.constant 0 : index
    %c0_42 = arith.constant 0 : index
    %389 = vector.load %arg10[%c0_41, %c0_42] : memref<256x256xf32, #tpu.memory_space<vmem>>, vector<256x256xf32>
    %390 = vector.extract_strided_slice %385 {offsets = [0, 0], sizes = [8, 64], strides = [1, 1]} : vector<32x64xf32> to vector<8x64xf32>
    %391 = vector.extract_strided_slice %389 {offsets = [0, 0], sizes = [64, 256], strides = [1, 1]} : vector<256x256xf32> to vector<64x256xf32>
    %cst_43 = arith.constant dense<0.000000e+00> : vector<8x256xf32>
    %392 = tpu.matmul %390, %391, %cst_43 {dimension_numbers = #tpu.dot_dimension_numbers<[1], [0], [0], [1], [0, 0, 1, 1], [], []>} : vector<8x64xf32>, vector<64x256xf32>, vector<8x256xf32> -> vector<8x256xf32>
    %393 = vector.extract_strided_slice %385 {offsets = [8, 0], sizes = [8, 64], strides = [1, 1]} : vector<32x64xf32> to vector<8x64xf32>
    %394 = vector.extract_strided_slice %389 {offsets = [64, 0], sizes = [64, 256], strides = [1, 1]} : vector<256x256xf32> to vector<64x256xf32>
    %cst_44 = arith.constant dense<0.000000e+00> : vector<8x256xf32>
    %395 = tpu.matmul %393, %394, %cst_44 {dimension_numbers = #tpu.dot_dimension_numbers<[1], [0], [0], [1], [0, 0, 1, 1], [], []>} : vector<8x64xf32>, vector<64x256xf32>, vector<8x256xf32> -> vector<8x256xf32>
    %396 = arith.addf %392, %395 : vector<8x256xf32>
    %397 = vector.extract_strided_slice %385 {offsets = [16, 0], sizes = [8, 64], strides = [1, 1]} : vector<32x64xf32> to vector<8x64xf32>
    %398 = vector.extract_strided_slice %389 {offsets = [128, 0], sizes = [64, 256], strides = [1, 1]} : vector<256x256xf32> to vector<64x256xf32>
    %cst_45 = arith.constant dense<0.000000e+00> : vector<8x256xf32>
    %399 = tpu.matmul %397, %398, %cst_45 {dimension_numbers = #tpu.dot_dimension_numbers<[1], [0], [0], [1], [0, 0, 1, 1], [], []>} : vector<8x64xf32>, vector<64x256xf32>, vector<8x256xf32> -> vector<8x256xf32>
    %400 = arith.addf %396, %399 : vector<8x256xf32>
    %401 = vector.extract_strided_slice %385 {offsets = [24, 0], sizes = [8, 64], strides = [1, 1]} : vector<32x64xf32> to vector<8x64xf32>
    %402 = vector.extract_strided_slice %389 {offsets = [192, 0], sizes = [64, 256], strides = [1, 1]} : vector<256x256xf32> to vector<64x256xf32>
    %cst_46 = arith.constant dense<0.000000e+00> : vector<8x256xf32>
    %403 = tpu.matmul %401, %402, %cst_46 {dimension_numbers = #tpu.dot_dimension_numbers<[1], [0], [0], [1], [0, 0, 1, 1], [], []>} : vector<8x64xf32>, vector<64x256xf32>, vector<8x256xf32> -> vector<8x256xf32>
    %404 = arith.addf %400, %403 : vector<8x256xf32>
    %405 = arith.addf %404, %388 : vector<8x256xf32>
    %c0_47 = arith.constant 0 : index
    %c0_48 = arith.constant 0 : index
    %406 = vector.load %arg11[%c0_47, %c0_48] : memref<1x256xf32, #tpu.memory_space<vmem>>, vector<1x256xf32>
    %407 = vector.broadcast %406 : vector<1x256xf32> to vector<8x256xf32>
    %408 = arith.addf %405, %407 : vector<8x256xf32>
    %cst_49 = arith.constant 0.000000e+00 : f32
    %409 = vector.broadcast %cst_49 : f32 to vector<8x256xf32>
    %410 = arith.maximumf %408, %409 : vector<8x256xf32>
    %c0_50 = arith.constant 0 : index
    %c0_51 = arith.constant 0 : index
    %411 = vector.load %arg12[%c0_50, %c0_51] : memref<256x128xf32, #tpu.memory_space<vmem>>, vector<256x128xf32>
    %cst_52 = arith.constant dense<0.000000e+00> : vector<8x128xf32>
    %412 = tpu.matmul %410, %411, %cst_52 {dimension_numbers = #tpu.dot_dimension_numbers<[1], [0], [0], [1], [0, 0, 1, 1], [], []>} : vector<8x256xf32>, vector<256x128xf32>, vector<8x128xf32> -> vector<8x128xf32>
    %c0_53 = arith.constant 0 : index
    %c0_54 = arith.constant 0 : index
    %413 = vector.load %arg13[%c0_53, %c0_54] : memref<1x128xf32, #tpu.memory_space<vmem>>, vector<1x128xf32>
    %414 = vector.broadcast %413 : vector<1x128xf32> to vector<8x128xf32>
    %415 = arith.addf %412, %414 : vector<8x128xf32>
    %cst_55 = arith.constant 0.000000e+00 : f32
    %416 = vector.broadcast %cst_55 : f32 to vector<8x128xf32>
    %417 = arith.maximumf %415, %416 : vector<8x128xf32>
    %c0_56 = arith.constant 0 : index
    %c0_57 = arith.constant 0 : index
    %418 = vector.load %arg14[%c0_56, %c0_57] : memref<128x2xf32, #tpu.memory_space<vmem>>, vector<128x2xf32>
    %cst_58 = arith.constant dense<0.000000e+00> : vector<8x2xf32>
    %419 = tpu.matmul %417, %418, %cst_58 {dimension_numbers = #tpu.dot_dimension_numbers<[1], [0], [0], [1], [0, 0, 1, 1], [], []>} : vector<8x128xf32>, vector<128x2xf32>, vector<8x2xf32> -> vector<8x2xf32>
    %c0_59 = arith.constant 0 : index
    %c0_60 = arith.constant 0 : index
    %420 = vector.load %arg15[%c0_59, %c0_60] : memref<1x2xf32, #tpu.memory_space<vmem>>, vector<1x2xf32>
    %421 = vector.broadcast %420 : vector<1x2xf32> to vector<8x2xf32>
    %422 = arith.addf %419, %421 : vector<8x2xf32>
    %cst_61 = arith.constant 0.000000e+00 : f32
    %423 = vector.broadcast %cst_61 : f32 to vector<8x2xf32>
    %424 = arith.maximumf %422, %423 : vector<8x2xf32>
    %425 = math.absf %422 : vector<8x2xf32>
    %cst_62 = arith.constant 0.000000e+00 : f32
    %426 = vector.broadcast %cst_62 : f32 to vector<8x2xf32>
    %427 = arith.subf %426, %425 : vector<8x2xf32>
    %428 = math.exp %427 : vector<8x2xf32>
    %429 = math.log1p %428 : vector<8x2xf32>
    %430 = arith.addf %424, %429 : vector<8x2xf32>
    %431 = tpu.iota {dimensions = array<i32: 1>} : vector<8x2xi32>
    %c1_i32 = arith.constant 1 : i32
    %432 = vector.broadcast %c1_i32 : i32 to vector<8x2xi32>
    %433 = arith.cmpi sge, %431, %432 : vector<8x2xi32>
    %cst_63 = arith.constant 9.99999974E-6 : f32
    %434 = vector.broadcast %cst_63 : f32 to vector<8x2xf32>
    %435 = arith.addf %434, %430 : vector<8x2xf32>
    %436 = arith.select %433, %435, %422 : vector<8x2xi1>, vector<8x2xf32>
    %c0_64 = arith.constant 0 : index
    %c0_65 = arith.constant 0 : index
    %437 = vector.load %arg16[%c0_64, %c0_65] : memref<8x2xf32, #tpu.memory_space<vmem>>, vector<8x2xf32>
    tpu.vector_store %arg16[%c0_64, %c0_65], %436 {strides = array<i32>} : memref<8x2xf32, #tpu.memory_space<vmem>>, vector<8x2xf32>,
    return
  }
  func.func @transform_0(%arg0: i32) -> (i32, i32) {
    %c0_i32 = arith.constant 0 : i32
    %c0_i32_0 = arith.constant 0 : i32
    %c0_i32_1 = arith.constant 0 : i32
    return %c0_i32, %c0_i32_0 : i32, i32
  }
  func.func @transform_1(%arg0: i32) -> (i32, i32) {
    %c0_i32 = arith.constant 0 : i32
    %c0_i32_0 = arith.constant 0 : i32
    %c0_i32_1 = arith.constant 0 : i32
    return %c0_i32, %c0_i32_0 : i32, i32
  }
  func.func @transform_2(%arg0: i32) -> (i32, i32) {
    %c0_i32 = arith.constant 0 : i32
    %c0_i32_0 = arith.constant 0 : i32
    %c0_i32_1 = arith.constant 0 : i32
    return %c0_i32, %c0_i32_0 : i32, i32
  }
  func.func @transform_3(%arg0: i32) -> (i32, i32) {
    %c0_i32 = arith.constant 0 : i32
    %c0_i32_0 = arith.constant 0 : i32
    %c0_i32_1 = arith.constant 0 : i32
    return %c0_i32, %c0_i32_0 : i32, i32
  }
  func.func @transform_4(%arg0: i32) -> (i32, i32) {
    %c0_i32 = arith.constant 0 : i32
    %c0_i32_0 = arith.constant 0 : i32
    %c0_i32_1 = arith.constant 0 : i32
    return %c0_i32, %c0_i32_0 : i32, i32
  }
  func.func @transform_5(%arg0: i32) -> (i32, i32) {
    %c0_i32 = arith.constant 0 : i32
    %c0_i32_0 = arith.constant 0 : i32
    %c0_i32_1 = arith.constant 0 : i32
    return %c0_i32, %c0_i32_0 : i32, i32
  }
  func.func @transform_6(%arg0: i32) -> (i32, i32) {
    %c0_i32 = arith.constant 0 : i32
    %c0_i32_0 = arith.constant 0 : i32
    %c0_i32_1 = arith.constant 0 : i32
    return %c0_i32, %c0_i32_0 : i32, i32
  }
  func.func @transform_7(%arg0: i32) -> (i32, i32) {
    %c0_i32 = arith.constant 0 : i32
    %c0_i32_0 = arith.constant 0 : i32
    %c0_i32_1 = arith.constant 0 : i32
    return %c0_i32, %c0_i32_0 : i32, i32
  }
  func.func @transform_8(%arg0: i32) -> (i32, i32) {
    %c0_i32 = arith.constant 0 : i32
    %c0_i32_0 = arith.constant 0 : i32
    %c0_i32_1 = arith.constant 0 : i32
    return %c0_i32, %c0_i32_0 : i32, i32
  }
  func.func @transform_9(%arg0: i32) -> (i32, i32) {
    %c0_i32 = arith.constant 0 : i32
    %c0_i32_0 = arith.constant 0 : i32
    %c0_i32_1 = arith.constant 0 : i32
    return %c0_i32, %c0_i32_0 : i32, i32
  }
  func.func @transform_10(%arg0: i32) -> (i32, i32) {
    %c0_i32 = arith.constant 0 : i32
    %c0_i32_0 = arith.constant 0 : i32
    %c0_i32_1 = arith.constant 0 : i32
    return %c0_i32, %c0_i32_0 : i32, i32
  }
  func.func @transform_11(%arg0: i32) -> (i32, i32) {
    %c0_i32 = arith.constant 0 : i32
    %c0_i32_0 = arith.constant 0 : i32
    %c0_i32_1 = arith.constant 0 : i32
    return %c0_i32, %c0_i32_0 : i32, i32
  }
  func.func @transform_12(%arg0: i32) -> (i32, i32) {
    %c0_i32 = arith.constant 0 : i32
    %c0_i32_0 = arith.constant 0 : i32
    %c0_i32_1 = arith.constant 0 : i32
    return %c0_i32, %c0_i32_0 : i32, i32
  }
  func.func @transform_13(%arg0: i32) -> (i32, i32) {
    %c0_i32 = arith.constant 0 : i32
    %c0_i32_0 = arith.constant 0 : i32
    %c0_i32_1 = arith.constant 0 : i32
    return %c0_i32, %c0_i32_0 : i32, i32
  }
  func.func @transform_14(%arg0: i32) -> (i32, i32) {
    %c0_i32 = arith.constant 0 : i32
    %c0_i32_0 = arith.constant 0 : i32
    %c0_i32_1 = arith.constant 0 : i32
    return %c0_i32, %c0_i32_0 : i32, i32
  }
  func.func @transform_15(%arg0: i32) -> (i32, i32) {
    %c0_i32 = arith.constant 0 : i32
    %c0_i32_0 = arith.constant 0 : i32
    %c0_i32_1 = arith.constant 0 : i32
    return %c0_i32, %c0_i32_0 : i32, i32
  }
}

</mosaic_0001>

<bundles_post_ra>
// kernel: cnp_distractor_forward.3
= control target key start
LH: loop header
LB: loop body
LE: loop exit
PB: predicated region body
PF: predicated region fallthrough
CT: control target
= control target key end

     0   :  { %vm410_vm0 = vcmask 1042432   ;;  %vm217_vm1 = vcmask 220160   ;;  %v7195_v57 = vmov 0.0   ;;  %vm863_vm2 = vcmask 261120   ;;  %s7177_s1 = inlined_call_operand.vmem [shape: f32[27,32], index: 1, kind: input, shape index: {}]   ;;  %s7178_s0 = inlined_call_operand.vmem [shape: f32[512,27], index: 0, kind: input, shape index: {}]   ;;  %s7179_s3 = inlined_call_operand.vmem [shape: f32[288,48], index: 3, kind: input, shape index: {}]   ;;  %s7180_s2 = inlined_call_operand.vmem [shape: f32[1,32], index: 2, kind: input, shape index: {}]   ;;  %s7181_s5 = inlined_call_operand.vmem [shape: f32[432,64], index: 5, kind: input, shape index: {}]   ;;  %s7182_s4 = inlined_call_operand.vmem [shape: f32[1,48], index: 4, kind: input, shape index: {}]   ;;  %s7183_s7 = inlined_call_operand.vmem [shape: f32[2,256], index: 7, kind: input, shape index: {}]   ;;  %s7184_s9 = inlined_call_operand.vmem [shape: f32[256,256], index: 9, kind: input, shape index: {}]   ;;  %s7185_s8 = inlined_call_operand.vmem [shape: f32[8,2], index: 8, kind: input, shape index: {}]   ;;  %s7186_s6 = inlined_call_operand.vmem [shape: f32[1,64], index: 6, kind: input, shape index: {}]   ;;  %s7187_s11 = inlined_call_operand.vmem [shape: f32[256,128], index: 11, kind: input, shape index: {}]   ;;  %s7188_s13 = inlined_call_operand.vmem [shape: f32[128,2], index: 13, kind: input, shape index: {}]   ;;  %s7189_s10 = inlined_call_operand.vmem [shape: f32[1,256], index: 10, kind: input, shape index: {}]   ;;  %s7190_s12 = inlined_call_operand.vmem [shape: f32[1,128], index: 12, kind: input, shape index: {}]   ;;  %s7191_s14 = inlined_call_operand.vmem [shape: f32[1,2], index: 14, kind: input, shape index: {}]   ;;  %s7192_s15 = inlined_call_operand.vmem [shape: f32[8,2], index: 15, kind: output, shape index: {}]  }
   0x1   :  { %v117_v0 = vld [vmem:[%s7177_s1 + $0x18] sm:$0x7]  ;;  %v116_v1 = vld [vmem:[%s7177_s1 + $0x10] sm:$0xff]  ;;  %v50_v2 = vld [vmem:[%s7178_s0] sm:$0xff]  ;;  %4800 = vmatprep.mubr.f32.mxu1 %v7195_v57  ;;  %vm2514_vm3 = vcmask 392192   ;;  %vm3387_vm4 = vcmask 1041408  }
   0x2   :  { %4688 = vmatprep.subr.msk.mxu0 %vm410_vm0, %v117_v0  ;;  %v115_v3 = vld [vmem:[%s7177_s1 + $0x8] sm:$0xff]  ;;  %4696 = vmatprep.mubr.msk.f32.mxu0 %vm217_vm1, %v50_v2  ;;  %v114_v4 = vld [vmem:[%s7177_s1] sm:$0xff]  ;;  %v52_v6 = vld [vmem:[%s7178_s0 + $0x10] sm:$0xff]  ;;  %vm3383_vm5 = vcmask 15360   ;;  %vm3527_vm6 = vcmask 523264   ;;  %vm5284_vm7 = vmmov 0  }
   0x3   :  { %4689 = vmatpush3.msk.msra.mxu0 %vm410_vm0, %v117_v0  ;;  %v51_v5 = vld [vmem:[%s7178_s0 + $0x8] sm:$0xff]  ;;  %v53_v7 = vld [vmem:[%s7178_s0 + $0x18] sm:$0xff]  ;;  %v54_v8 = vld [vmem:[%s7178_s0 + $0x20] sm:$0xff] }
   0x4   :  { %4690 = vmatprep.subr.mxu0 %v116_v1  ;;  %v55_v9 = vld [vmem:[%s7178_s0 + $0x28] sm:$0xff]  ;;  %v56_v10 = vld [vmem:[%s7178_s0 + $0x30] sm:$0xff]  ;;  %v57_v11 = vld [vmem:[%s7178_s0 + $0x38] sm:$0xff] }
   0x5   :  { %4691 = vmatpush3.msra.mxu0 %v116_v1  ;;  %v58_v12 = vld [vmem:[%s7178_s0 + $0x40] sm:$0xff]  ;;  %v59_v13 = vld [vmem:[%s7178_s0 + $0x48] sm:$0xff]  ;;  %v60_v14 = vld [vmem:[%s7178_s0 + $0x50] sm:$0xff] }
   0x6   :  { %4692 = vmatprep.subr.mxu0 %v115_v3  ;;  %v61_v15 = vld [vmem:[%s7178_s0 + $0x58] sm:$0xff]  ;;  %v62_v16 = vld [vmem:[%s7178_s0 + $0x60] sm:$0xff]  ;;  %v63_v17 = vld [vmem:[%s7178_s0 + $0x68] sm:$0xff] }
   0x7   :  { %4693 = vmatpush3.msra.mxu0 %v115_v3  ;;  %v64_v18 = vld [vmem:[%s7178_s0 + $0x70] sm:$0xff]  ;;  %v65_v19 = vld [vmem:[%s7178_s0 + $0x78] sm:$0xff]  ;;  %v66_v20 = vld [vmem:[%s7178_s0 + $0x80] sm:$0xff] }
   0x8   :  { %4694 = vmatprep.subr.mxu0 %v114_v4  ;;  %v67_v21 = vld [vmem:[%s7178_s0 + $0x88] sm:$0xff]  ;;  %v68_v22 = vld [vmem:[%s7178_s0 + $0x90] sm:$0xff]  ;;  %v69_v23 = vld [vmem:[%s7178_s0 + $0x98] sm:$0xff] }
   0x9   :  { %4695 = vmatpush3.msra.mxu0 %v114_v4  ;;  %v70_v24 = vld [vmem:[%s7178_s0 + $0xa0] sm:$0xff]  ;;  %v71_v25 = vld [vmem:[%s7178_s0 + $0xa8] sm:$0xff]  ;;  %v72_v26 = vld [vmem:[%s7178_s0 + $0xb0] sm:$0xff] }
   0xa   :  { %4697 = vmatmul.mubr.msk.f32.vlgmr.msra.gmra.mxu0 %vm217_vm1, %v51_v5  ;;  %v73_v27 = vld [vmem:[%s7178_s0 + $0xb8] sm:$0xff]  ;;  %v74_v28 = vld [vmem:[%s7178_s0 + $0xc0] sm:$0xff]  ;;  %v75_v29 = vld [vmem:[%s7178_s0 + $0xc8] sm:$0xff] }
   0xb   :  { %4699 = vmatprep.mubr.msk.f32.mxu0 %vm217_vm1, %v52_v6  ;;  %v76_v30 = vld [vmem:[%s7178_s0 + $0xd0] sm:$0xff]  ;;  %v77_v31 = vld [vmem:[%s7178_s0 + $0xd8] sm:$0xff]  ;;  %v78_v32 = vld [vmem:[%s7178_s0 + $0xe0] sm:$0xff] }
   0xc   :  { %v79_v33 = vld [vmem:[%s7178_s0 + $0xe8] sm:$0xff]  ;;  %v80_v34 = vld [vmem:[%s7178_s0 + $0xf0] sm:$0xff]  ;;  %v81_v35 = vld [vmem:[%s7178_s0 + $0xf8] sm:$0xff] }
   0xd   :  { %v82_v36 = vld [vmem:[%s7178_s0 + $0x100] sm:$0xff]  ;;  %v83_v37 = vld [vmem:[%s7178_s0 + $0x108] sm:$0xff]  ;;  %v84_v38 = vld [vmem:[%s7178_s0 + $0x110] sm:$0xff] }
   0xe   :  { %4700 = vmatmul.mubr.msk.f32.gmra.mxu0 %vm217_vm1, %v53_v7  ;;  %v85_v39 = vld [vmem:[%s7178_s0 + $0x118] sm:$0xff]  ;;  %v86_v40 = vld [vmem:[%s7178_s0 + $0x120] sm:$0xff]  ;;  %v137_v42 = vld [vmem:[%s7179_s3 + $0x90] sm:$0xff] }
   0xf   :  { %4702 = vmatprep.mubr.msk.f32.mxu0 %vm217_vm1, %v54_v8  ;;  %v138_v41 = vld [vmem:[%s7179_s3 + $0x98] sm:$0xff]  ;;  %v87_v43 = vld [vmem:[%s7178_s0 + $0x128] sm:$0xff]  ;;  %v88_v44 = vld [vmem:[%s7178_s0 + $0x130] sm:$0xff] }
  0x10   :  { %4920 = vmatprep.subr.mxu0 %v138_v41  ;;  %v136_v45 = vld [vmem:[%s7179_s3 + $0x88] sm:$0xff]  ;;  %v135_v46 = vld [vmem:[%s7179_s3 + $0x80] sm:$0xff]  ;;  %v89_v47 = vld [vmem:[%s7178_s0 + $0x138] sm:$0xff] }
  0x11   :  { %4921 = vmatpush3.msra.mxu0 %v138_v41  ;;  %v126_v48 = vld [vmem:[%s7179_s3 + $0x38] sm:$0xff]  ;;  %v90_v49 = vld [vmem:[%s7178_s0 + $0x140] sm:$0xff]  ;;  %v125_v50 = vld [vmem:[%s7179_s3 + $0x30] sm:$0xff] }
  0x12   :  { %4703 = vmatmul.mubr.msk.f32.gmra.mxu0 %vm217_vm1, %v55_v9  ;;  %4922 = vmatprep.subr.mxu0 %v137_v42  ;;  %v91_v51 = vld [vmem:[%s7178_s0 + $0x148] sm:$0xff]  ;;  %v92_v53 = vld [vmem:[%s7178_s0 + $0x150] sm:$0xff]  ;;  %v123_v54 = vld [vmem:[%s7179_s3 + $0x20] sm:$0xff] }
  0x13   :  { %4705 = vmatprep.mubr.msk.f32.mxu0 %vm217_vm1, %v56_v10  ;;  %4923 = vmatpush3.msra.mxu0 %v137_v42  ;;  %v124_v52 = vld [vmem:[%s7179_s3 + $0x28] sm:$0xff]  ;;  %v93_v55 = vld [vmem:[%s7178_s0 + $0x158] sm:$0xff]  ;;  %v94_v56 = vld [vmem:[%s7178_s0 + $0x160] sm:$0xff] }
  0x14   :  { %4924 = vmatprep.subr.mxu0 %v136_v45  ;;  %4792 = vmatprep.subr.mxu1 %v126_v48  ;;  %v95_v58 = vld [vmem:[%s7178_s0 + $0x168] sm:$0xff]  ;;  %v96_v59 = vld [vmem:[%s7178_s0 + $0x170] sm:$0xff]  ;;  %v97_v60 = vld [vmem:[%s7178_s0 + $0x178] sm:$0xff] }
  0x15   :  { %4925 = vmatpush3.msra.mxu0 %v136_v45  ;;  %4793 = vmatpush3.msra.mxu1 %v126_v48  ;;  %v98_v61 = vld [vmem:[%s7178_s0 + $0x180] sm:$0xff]  ;;  %v99_v62 = vld [vmem:[%s7178_s0 + $0x188] sm:$0xff]  ;;  %v100_v63 = vld [vmem:[%s7178_s0 + $0x190] sm:$0xff] }
  0x16   :  { %4706 = vmatmul.mubr.msk.f32.gmra.mxu0 %vm217_vm1, %v57_v11  ;;  %4926 = vmatprep.subr.mxu0 %v135_v46  ;;  %v101_v0 = vld [vmem:[%s7178_s0 + $0x198] sm:$0xff]  ;;  %v102_v1 = vld [vmem:[%s7178_s0 + $0x1a0] sm:$0xff]  ;;  %v103_v2 = vld [vmem:[%s7178_s0 + $0x1a8] sm:$0xff] }
  0x17   :  { %4708 = vmatprep.mubr.msk.f32.mxu0 %vm217_vm1, %v58_v12  ;;  %4927 = vmatpush3.msra.mxu0 %v135_v46  ;;  %v104_v3 = vld [vmem:[%s7178_s0 + $0x1b0] sm:$0xff]  ;;  %v105_v4 = vld [vmem:[%s7178_s0 + $0x1b8] sm:$0xff]  ;;  %v106_v5 = vld [vmem:[%s7178_s0 + $0x1c0] sm:$0xff] }
  0x18   :  { %4794 = vmatprep.subr.mxu1 %v125_v50  ;;  %v107_v6 = vld [vmem:[%s7178_s0 + $0x1c8] sm:$0xff]  ;;  %v108_v7 = vld [vmem:[%s7178_s0 + $0x1d0] sm:$0xff]  ;;  %v109_v8 = vld [vmem:[%s7178_s0 + $0x1d8] sm:$0xff] }
  0x19   :  { %4795 = vmatpush3.msra.mxu1 %v125_v50  ;;  %v110_v9 = vld [vmem:[%s7178_s0 + $0x1e0] sm:$0xff]  ;;  %v111_v10 = vld [vmem:[%s7178_s0 + $0x1e8] sm:$0xff]  ;;  %v112_v11 = vld [vmem:[%s7178_s0 + $0x1f0] sm:$0xff] }
  0x1a   :  { %4709 = vmatmul.mubr.msk.f32.gmra.mxu0 %vm217_vm1, %v59_v13  ;;  %4796 = vmatprep.subr.mxu1 %v124_v52  ;;  %v113_v12 = vld [vmem:[%s7178_s0 + $0x1f8] sm:$0xff] }
  0x1b   :  { %4711 = vmatprep.mubr.msk.f32.mxu0 %vm217_vm1, %v60_v14  ;;  %4797 = vmatpush3.msra.mxu1 %v124_v52  ;;  %v122_v13 = vld [vmem:[%s7179_s3 + $0x18] sm:$0xff]  ;;  %v121_v14 = vld [vmem:[%s7179_s3 + $0x10] sm:$0xff] }
  0x1c   :  { %4798 = vmatprep.subr.mxu1 %v123_v54 }
  0x1d   :  { %4799 = vmatpush3.msra.mxu1 %v123_v54 }
  0x1e   :  { %4712 = vmatmul.mubr.msk.f32.gmra.mxu0 %vm217_vm1, %v61_v15  ;;  %4801 = vmatmul.mubr.f32.vlgmr.msra.gmra.mxu1 %v7195_v57  ;;  %v120_v15 = vld [vmem:[%s7179_s3 + $0x8] sm:$0xff] }
  0x1f   :  { %4714 = vmatprep.mubr.msk.f32.mxu0 %vm217_vm1, %v62_v16  ;;  %4803 = vmatprep.mubr.f32.mxu1 %v7195_v57  ;;  %v119_v16 = vld [vmem:[%s7179_s3] sm:$0xff] }
  0x20   :  { %4824 = vmatprep.subr.mxu1 %v122_v13 }
  0x21   :  { %4825 = vmatpush3.msra.mxu1 %v122_v13 }
  0x22   :  { %4715 = vmatmul.mubr.msk.f32.gmra.mxu0 %vm217_vm1, %v63_v17  ;;  %4804 = vmatmul.mubr.f32.gmra.mxu1 %v7195_v57  ;;  %v5676_v17 = vld [vmem:[%s7179_s3 + $0x58] sm:$0xff] }
  0x23   :  { %4717 = vmatprep.mubr.msk.f32.mxu0 %vm217_vm1, %v64_v18  ;;  %4826 = vmatprep.subr.mxu1 %v121_v14  ;;  %v146_v18 = vld [vmem:[%s7179_s3 + $0xd8] sm:$0xff] }
  0x24   :  { %4827 = vmatpush3.msra.mxu1 %v121_v14  ;;  %4984 = vmatprep.subr.mxu0 %v146_v18 }
  0x25   :  { %4828 = vmatprep.subr.mxu1 %v120_v15 }
  0x26   :  { %4718 = vmatmul.mubr.msk.f32.gmra.mxu0 %vm217_vm1, %v65_v19  ;;  %4829 = vmatpush3.msra.mxu1 %v120_v15 }
  0x27   :  { %4720 = vmatprep.mubr.msk.f32.mxu0 %vm217_vm1, %v66_v20  ;;  %4830 = vmatprep.subr.mxu1 %v119_v16  ;;  %v5687_v20 = vld [vmem:[%s7180_s2] ss:$0 sm:$0xff] }
  0x28   :  { %4831 = vmatpush3.msra.mxu1 %v119_v16 }
  0x29   :  { %4856 = vmatprep.subr.mxu1 %v5676_v17 }
  0x2a   :  { %4721 = vmatmul.mubr.msk.f32.gmra.mxu0 %vm217_vm1, %v67_v21 }
  0x2b   :  { %4723 = vmatprep.mubr.msk.f32.mxu0 %vm217_vm1, %v68_v22 }
  0x2e   :  { %4724 = vmatmul.mubr.msk.f32.gmra.mxu0 %vm217_vm1, %v69_v23 }
  0x2f   :  { %4726 = vmatprep.mubr.msk.f32.mxu0 %vm217_vm1, %v70_v24 }
  0x32   :  { %4727 = vmatmul.mubr.msk.f32.gmra.mxu0 %vm217_vm1, %v71_v25 }
  0x33   :  { %4729 = vmatprep.mubr.msk.f32.mxu0 %vm217_vm1, %v72_v26 }
  0x36   :  { %4730 = vmatmul.mubr.msk.f32.gmra.mxu0 %vm217_vm1, %v73_v27 }
  0x37   :  { %4732 = vmatprep.mubr.msk.f32.mxu0 %vm217_vm1, %v74_v28 }
  0x3a   :  { %4733 = vmatmul.mubr.msk.f32.gmra.mxu0 %vm217_vm1, %v75_v29 }
  0x3b   :  { %4735 = vmatprep.mubr.msk.f32.mxu0 %vm217_vm1, %v76_v30  ;;  %v145_v30 = vld [vmem:[%s7179_s3 + $0xd0] sm:$0xff] }
  0x3e   :  { %4736 = vmatmul.mubr.msk.f32.gmra.mxu0 %vm217_vm1, %v77_v31 }
  0x3f   :  { %4738 = vmatprep.mubr.msk.f32.mxu0 %vm217_vm1, %v78_v32 }
  0x42   :  { %4739 = vmatmul.mubr.msk.f32.gmra.mxu0 %vm217_vm1, %v79_v33  ;;  %v144_v33 = vld [vmem:[%s7179_s3 + $0xc8] sm:$0xff] }
  0x43   :  { %4741 = vmatprep.mubr.msk.f32.mxu0 %vm217_vm1, %v80_v34 }
  0x46   :  { %4742 = vmatmul.mubr.msk.f32.gmra.mxu0 %vm217_vm1, %v81_v35 }
  0x47   :  { %4744 = vmatprep.mubr.msk.f32.mxu0 %vm217_vm1, %v82_v36  ;;  %v143_v36 = vld [vmem:[%s7179_s3 + $0xc0] sm:$0xff] }
  0x4a   :  { %4745 = vmatmul.mubr.msk.f32.gmra.mxu0 %vm217_vm1, %v83_v37 }
  0x4b   :  { %4747 = vmatprep.mubr.msk.f32.mxu0 %vm217_vm1, %v84_v38 }
  0x4e   :  { %4748 = vmatmul.mubr.msk.f32.gmra.mxu0 %vm217_vm1, %v85_v39  ;;  %v5716_v39 = vld [vmem:[%s7179_s3 + $0x118] sm:$0xff] }
  0x4f   :  { %4750 = vmatprep.mubr.msk.f32.mxu0 %vm217_vm1, %v86_v40 }
  0x52   :  { %4751 = vmatmul.mubr.msk.f32.gmra.mxu0 %vm217_vm1, %v87_v43 }
  0x53   :  { %4753 = vmatprep.mubr.msk.f32.mxu0 %vm217_vm1, %v88_v44 }
  0x56   :  { %4754 = vmatmul.mubr.msk.f32.gmra.mxu0 %vm217_vm1, %v89_v47 }
  0x57   :  { %4756 = vmatprep.mubr.msk.f32.mxu0 %vm217_vm1, %v90_v49 }
  0x5a   :  { %4757 = vmatmul.mubr.msk.f32.gmra.mxu0 %vm217_vm1, %v91_v51 }
  0x5b   :  { %4759 = vmatprep.mubr.msk.f32.mxu0 %vm217_vm1, %v92_v53 }
  0x5e   :  { %4760 = vmatmul.mubr.msk.f32.gmra.mxu0 %vm217_vm1, %v93_v55 }
  0x5f   :  { %4762 = vmatprep.mubr.msk.f32.mxu0 %vm217_vm1, %v94_v56 }
  0x62   :  { %4763 = vmatmul.mubr.msk.f32.gmra.mxu0 %vm217_vm1, %v95_v58 }
  0x63   :  { %4765 = vmatprep.mubr.msk.f32.mxu0 %vm217_vm1, %v96_v59 }
  0x66   :  { %4766 = vmatmul.mubr.msk.f32.gmra.mxu0 %vm217_vm1, %v97_v60 }
  0x67   :  { %4768 = vmatprep.mubr.msk.f32.mxu0 %vm217_vm1, %v98_v61 }
  0x6a   :  { %4769 = vmatmul.mubr.msk.f32.gmra.mxu0 %vm217_vm1, %v99_v62 }
  0x6b   :  { %4771 = vmatprep.mubr.msk.f32.mxu0 %vm217_vm1, %v100_v63 }
  0x6e   :  { %4772 = vmatmul.mubr.msk.f32.gmra.mxu0 %vm217_vm1, %v101_v0 }
  0x6f   :  { %4774 = vmatprep.mubr.msk.f32.mxu0 %vm217_vm1, %v102_v1 }
  0x72   :  { %4775 = vmatmul.mubr.msk.f32.gmra.mxu0 %vm217_vm1, %v103_v2 }
  0x73   :  { %4777 = vmatprep.mubr.msk.f32.mxu0 %vm217_vm1, %v104_v3 }
  0x76   :  { %4778 = vmatmul.mubr.msk.f32.gmra.mxu0 %vm217_vm1, %v105_v4 }
  0x77   :  { %4780 = vmatprep.mubr.msk.f32.mxu0 %vm217_vm1, %v106_v5 }
  0x7a   :  { %4781 = vmatmul.mubr.msk.f32.gmra.mxu0 %vm217_vm1, %v107_v6 }
  0x7b   :  { %4783 = vmatprep.mubr.msk.f32.mxu0 %vm217_vm1, %v108_v7 }
  0x7e   :  { %4784 = vmatmul.mubr.msk.f32.gmra.mxu0 %vm217_vm1, %v109_v8 }
  0x7f   :  { %4786 = vmatprep.mubr.msk.f32.mxu0 %vm217_vm1, %v110_v9 }
  0x82   :  { %4787 = vmatmul.mubr.msk.f32.gmra.mxu0 %vm217_vm1, %v111_v10 }
  0x83   :  { %4789 = vmatprep.mubr.msk.f32.mxu0 %vm217_vm1, %v112_v11 }
  0x86   :  { %4790 = vmatmul.mubr.msk.f32.gmra.mxu0 %vm217_vm1, %v113_v12 }
  0xca   :  { %v5682_v19 = vpop.f32.mrf.mxu0 }
  0xcc   :  { %v480_v21 = vpop.f32.mrf.mxu0 }
  0xcd   :  { %v481_v22 = vadd.f32 %v5687_v20, %v480_v21 }
  0xce   :  { %v5690_v23 = vpop.f32.mrf.mxu0 }
  0xcf   :  { %v799_v24 = vmax.f32 %v481_v22, 0.0 }
  0xd0   :  { %v490_v25 = vpop.f32.mrf.mxu0 }
  0xd1   :  { %v491_v26 = vadd.f32 %v5687_v20, %v490_v25  ;;  %4928 = vmatprep.mubr.msk.f32.mxu0 %vm863_vm2, %v799_v24 }
  0xd2   :  { %v5694_v27 = vpop.f32.mrf.mxu0 }
  0xd3   :  { %v801_v28 = vmax.f32 %v491_v26, 0.0 }
  0xd4   :  { %v500_v29 = vpop.f32.mrf.mxu0 }
  0xd5   :  { %v501_v31 = vadd.f32 %v5687_v20, %v500_v29  ;;  %4929 = vmatmul.mubr.msk.f32.vlgmr.msra.gmra.mxu0 %vm863_vm2, %v801_v28 }
  0xd6   :  { %v5701_v32 = vpop.f32.mrf.mxu0  ;;  %4985 = vmatpush3.msra.mxu0 %v146_v18 }
  0xd7   :  { %v803_v34 = vmax.f32 %v501_v31, 0.0  ;;  %4986 = vmatprep.subr.mxu0 %v145_v30 }
  0xd8   :  { %v510_v35 = vpop.f32.mrf.mxu0  ;;  %4987 = vmatpush3.msra.mxu0 %v145_v30 }
  0xd9   :  { %v511_v37 = vadd.f32 %v5687_v20, %v510_v35  ;;  %4931 = vmatprep.mubr.msk.f32.mxu0 %vm863_vm2, %v803_v34  ;;  %4988 = vmatprep.subr.mxu0 %v144_v33 }
  0xda   :  { %v5711_v38 = vpop.f32.mrf.mxu0  ;;  %4989 = vmatpush3.msra.mxu0 %v144_v33 }
  0xdb   :  { %v805_v40 = vmax.f32 %v511_v37, 0.0  ;;  %4990 = vmatprep.subr.mxu0 %v143_v36 }
  0xdc   :  { %v520_v41 = vpop.f32.mrf.mxu0  ;;  %4991 = vmatpush3.msra.mxu0 %v143_v36 }
  0xdd   :  { %v5719_v42 = vadd.f32 %v5687_v20, %v520_v41  ;;  %4932 = vmatmul.mubr.msk.f32.gmra.mxu0 %vm863_vm2, %v805_v40  ;;  %5048 = vmatprep.subr.mxu0 %v5716_v39 }
  0xde   :  { %v5723_v43 = vpop.f32.mrf.mxu0 }
  0xdf   :  { %v807_v44 = vmax.f32 %v5719_v42, 0.0  ;;  %v6210_v42 = vpop.f32.mrf.mxu1 }
  0xe0   :  { %v530_v45 = vpop.f32.mrf.mxu0 }
  0xe1   :  { %v5727_v46 = vadd.f32 %v5687_v20, %v530_v45  ;;  %4806 = vmatprep.mubr.msk.f32.mxu1 %vm863_vm2, %v807_v44 }
  0xe2   :  { %v5732_v47 = vpop.f32.mrf.mxu0 }
  0xe3   :  { %v809_v48 = vmax.f32 %v5727_v46, 0.0 }
  0xe4   :  { %v540_v49 = vpop.f32.mrf.mxu0 }
  0xe5   :  { %v5736_v50 = vadd.f32 %v5687_v20, %v540_v49  ;;  %4807 = vmatmul.mubr.msk.f32.gmra.mxu1 %vm863_vm2, %v809_v48 }
  0xe6   :  { %v5741_v51 = vpop.f32.mrf.mxu0 }
  0xe7   :  { %v811_v52 = vmax.f32 %v5736_v50, 0.0  ;;  %v6222_v50 = vpop.f32.mrf.mxu1 }
  0xe8   :  { %v550_v53 = vpop.f32.mrf.mxu0 }
  0xe9   :  { %v5745_v54 = vadd.f32 %v5687_v20, %v550_v53  ;;  %4809 = vmatprep.mubr.msk.f32.mxu1 %vm863_vm2, %v811_v52 }
  0xea   :  { %v5750_v55 = vpop.f32.mrf.mxu0 }
  0xeb   :  { %v813_v56 = vmax.f32 %v5745_v54, 0.0 }
  0xec   :  { %v560_v58 = vpop.f32.mrf.mxu0 }
  0xed   :  { %v561_v59 = vadd.f32 %v5687_v20, %v560_v58  ;;  %4810 = vmatmul.mubr.msk.f32.gmra.mxu1 %vm863_vm2, %v813_v56 }
  0xee   :  { %v5757_v60 = vpop.f32.mrf.mxu0 }
  0xef   :  { %v815_v61 = vmax.f32 %v561_v59, 0.0 }
  0xf0   :  { %v570_v62 = vpop.f32.mrf.mxu0 }
  0xf1   :  { %v571_v63 = vadd.f32 %v5687_v20, %v570_v62  ;;  %4934 = vmatprep.mubr.msk.f32.mxu0 %vm863_vm2, %v815_v61 }
  0xf2   :  { %v5761_v0 = vpop.f32.mrf.mxu0 }
  0xf3   :  { %v817_v1 = vmax.f32 %v571_v63, 0.0 }
  0xf4   :  { %v580_v2 = vpop.f32.mrf.mxu0 }
  0xf5   :  { %v581_v3 = vadd.f32 %v5687_v20, %v580_v2  ;;  %4935 = vmatmul.mubr.msk.f32.gmra.mxu0 %vm863_vm2, %v817_v1 }
  0xf6   :  { %v5765_v4 = vpop.f32.mrf.mxu0 }
  0xf7   :  { %v819_v5 = vmax.f32 %v581_v3, 0.0 }
  0xf8   :  { %v590_v6 = vpop.f32.mrf.mxu0 }
  0xf9   :  { %v591_v7 = vadd.f32 %v5687_v20, %v590_v6  ;;  %4937 = vmatprep.mubr.msk.f32.mxu0 %vm863_vm2, %v819_v5 }
  0xfa   :  { %v5769_v8 = vpop.f32.mrf.mxu0 }
  0xfb   :  { %v821_v9 = vmax.f32 %v591_v7, 0.0 }
  0xfc   :  { %v600_v10 = vpop.f32.mrf.mxu0 }
  0xfd   :  { %v5772_v11 = vadd.f32 %v5687_v20, %v600_v10  ;;  %4938 = vmatmul.mubr.msk.f32.gmra.mxu0 %vm863_vm2, %v821_v9 }
  0xfe   :  { %v5775_v12 = vpop.f32.mrf.mxu0 }
  0xff   :  { %v823_v13 = vmax.f32 %v5772_v11, 0.0 }
 0x100   :  { %v610_v14 = vpop.f32.mrf.mxu0 }
 0x101   :  { %v5779_v15 = vadd.f32 %v5687_v20, %v610_v14  ;;  %4812 = vmatprep.mubr.msk.f32.mxu1 %vm863_vm2, %v823_v13 }
 0x102   :  { %v5784_v16 = vpop.f32.mrf.mxu0 }
 0x103   :  { %v825_v18 = vmax.f32 %v5779_v15, 0.0 }
 0x104   :  { %v620_v21 = vpop.f32.mrf.mxu0 }
 0x105   :  { %v5788_v22 = vadd.f32 %v5687_v20, %v620_v21  ;;  %4813 = vmatmul.mubr.msk.f32.gmra.mxu1 %vm863_vm2, %v825_v18 }
 0x106   :  { %v5793_v24 = vpop.f32.mrf.mxu0 }
 0x107   :  { %v827_v25 = vmax.f32 %v5788_v22, 0.0 }
 0x108   :  { %v630_v26 = vpop.f32.mrf.mxu0 }
 0x109   :  { %v5797_v28 = vadd.f32 %v5687_v20, %v630_v26  ;;  %4815 = vmatprep.mubr.msk.f32.mxu1 %vm863_vm2, %v827_v25 }
 0x10a   :  { %v5802_v29 = vpop.f32.mrf.mxu0 }
 0x10b   :  { %v829_v30 = vmax.f32 %v5797_v28, 0.0 }
 0x10c   :  { %v640_v31 = vpop.f32.mrf.mxu0 }
 0x10d   :  { %v641_v33 = vadd.f32 %v5687_v20, %v640_v31  ;;  %4816 = vmatmul.mubr.msk.f32.gmra.mxu1 %vm863_vm2, %v829_v30 }
 0x10e   :  { %v5809_v34 = vpop.f32.mrf.mxu0 }
 0x10f   :  { %v831_v35 = vmax.f32 %v641_v33, 0.0 }
 0x110   :  { %v650_v36 = vpop.f32.mrf.mxu0 }
 0x111   :  { %v651_v37 = vadd.f32 %v5687_v20, %v650_v36  ;;  %4940 = vmatprep.mubr.msk.f32.mxu0 %vm863_vm2, %v831_v35 }
 0x112   :  { %v5813_v40 = vpop.f32.mrf.mxu0 }
 0x113   :  { %v833_v41 = vmax.f32 %v651_v37, 0.0 }
 0x114   :  { %v660_v45 = vpop.f32.mrf.mxu0 }
 0x115   :  { %v661_v49 = vadd.f32 %v5687_v20, %v660_v45  ;;  %4941 = vmatmul.mubr.msk.f32.gmra.mxu0 %vm863_vm2, %v833_v41 }
 0x116   :  { %v5817_v53 = vpop.f32.mrf.mxu0 }
 0x117   :  { %v835_v58 = vmax.f32 %v661_v49, 0.0 }
 0x118   :  { %v670_v59 = vpop.f32.mrf.mxu0 }
 0x119   :  { %v671_v61 = vadd.f32 %v5687_v20, %v670_v59  ;;  %4943 = vmatprep.mubr.msk.f32.mxu0 %vm863_vm2, %v835_v58 }
 0x11a   :  { %v5821_v62 = vpop.f32.mrf.mxu0 }
 0x11b   :  { %v837_v63 = vmax.f32 %v671_v61, 0.0  ;;  %v129_v61 = vld [vmem:[%s7179_s3 + $0x50] sm:$0xff] }
 0x11c   :  { %v680_v1 = vpop.f32.mrf.mxu0 }
 0x11d   :  { %v5824_v2 = vadd.f32 %v5687_v20, %v680_v1  ;;  %4944 = vmatmul.mubr.msk.f32.gmra.mxu0 %vm863_vm2, %v837_v63 }
 0x11e   :  { %v5827_v3 = vpop.f32.mrf.mxu0 }
 0x11f   :  { %v839_v5 = vmax.f32 %v5824_v2, 0.0 }
 0x120   :  { %v690_v6 = vpop.f32.mrf.mxu0 }
 0x121   :  { %v5831_v7 = vadd.f32 %v5687_v20, %v690_v6  ;;  %4818 = vmatprep.mubr.msk.f32.mxu1 %vm863_vm2, %v839_v5  ;;  %v526_v6 = vadd.f32 %v5711_v38, %v5687_v20  ;;  %v127_v38 = vld [vmem:[%s7179_s3 + $0x40] sm:$0xff] }
 0x122   :  { %v5836_v9 = vpop.f32.mrf.mxu0 }
 0x123   :  { %v841_v10 = vmax.f32 %v5831_v7, 0.0 }
 0x124   :  { %v700_v14 = vpop.f32.mrf.mxu0 }
 0x125   :  { %v5840_v21 = vadd.f32 %v5687_v20, %v700_v14  ;;  %4819 = vmatmul.mubr.msk.f32.gmra.mxu1 %vm863_vm2, %v841_v10 }
 0x126   :  { %v5845_v26 = vpop.f32.mrf.mxu0 }
 0x127   :  { %v7194_v31 = vmax.f32 %v5840_v21, 0.0  ;;  %v7197_v46 = vmax.f32 %v5840_v21, 0.0  ;;  %v167_v21 = vld [vmem:[%s7181_s5 + $0x58] sm:$0xff] }
 0x128   :  { %v710_v33 = vpop.f32.mrf.mxu0 }
 0x129   :  { %v5849_v35 = vadd.f32 %v5687_v20, %v710_v33  ;;  %4821 = vmatprep.mubr.msk.f32.mxu1 %vm863_vm2, %v7194_v31  ;;  %v128_v33 = vld [vmem:[%s7179_s3 + $0x48] sm:$0xff] }
 0x12a   :  { %v5854_v36 = vpop.f32.mrf.mxu0 }
 0x12b   :  { %v7193_v37 = vmax.f32 %v5849_v35, 0.0 }
 0x12c   :  { %v720_v41 = vpop.f32.mrf.mxu0 }
 0x12d   :  { %v721_v45 = vadd.f32 %v5687_v20, %v720_v41  ;;  %4822 = vmatmul.mubr.msk.f32.gmra.mxu1 %vm863_vm2, %v7193_v37  ;;  %v536_v41 = vadd.f32 %v5723_v43, %v5687_v20  ;;  %v546_v43 = vadd.f32 %v5732_v47, %v5687_v20 }
 0x12e   :  { %v5861_v49 = vpop.f32.mrf.mxu0  ;;  %4832 = vmatprep.mubr.f32.mxu1 %v7195_v57 }
 0x12f   :  { %v847_v58 = vmax.f32 %v721_v45, 0.0  ;;  %v5905_v47 = vmax.f32 %v546_v43, 0.0  ;;  %v686_v43 = vadd.f32 %v5821_v62, %v5687_v20 }
 0x130   :  { %v730_v59 = vpop.f32.mrf.mxu0 }
 0x131   :  { %v731_v63 = vadd.f32 %v5687_v20, %v730_v59  ;;  %4833 = vmatmul.mubr.f32.vlgmr.msra.gmra.mxu1 %v7195_v57  ;;  %4946 = vmatprep.mubr.msk.f32.mxu0 %vm863_vm2, %v847_v58  ;;  %v5890_v59 = vmax.f32 %v526_v6, 0.0  ;;  %v606_v6 = vadd.f32 %v5769_v8, %v5687_v20 }
 0x132   :  { %4857 = vmatpush3.msra.mxu1 %v5676_v17  ;;  %v5871_v1 = vpop.f32.mrf.mxu0  ;;  %4835 = vmatprep.mubr.f32.mxu1 %v7195_v57 }
 0x133   :  { %v849_v14 = vmax.f32 %v731_v63, 0.0  ;;  %4858 = vmatprep.subr.mxu1 %v129_v61  ;;  %v5894_v63 = vmax.f32 %v536_v41, 0.0  ;;  %v616_v41 = vadd.f32 %v5775_v12, %v5687_v20  ;;  %v153_v12 = vld [vmem:[%s7179_s3 + $0x110] sm:$0xff] }
 0x134   :  { %v740_v45 = vpop.f32.mrf.mxu0  ;;  %4859 = vmatpush3.msra.mxu1 %v129_v61 }
 0x135   :  { %v741_v17 = vadd.f32 %v5687_v20, %v740_v45  ;;  %4836 = vmatmul.mubr.f32.gmra.mxu1 %v7195_v57  ;;  %4947 = vmatmul.mubr.msk.f32.gmra.mxu0 %vm863_vm2, %v849_v14  ;;  %v134_v14 = vld [vmem:[%s7179_s3 + $0x78] sm:$0xff]  ;;  %v5920_v8 = vmax.f32 %v616_v41, 0.0 }
 0x136   :  { %v5887_v58 = vpop.f32.mrf.mxu0  ;;  %4838 = vmatprep.mubr.f32.mxu1 %v7195_v57  ;;  %4860 = vmatprep.subr.mxu1 %v128_v33 }
 0x137   :  { %v851_v61 = vmax.f32 %v741_v17, 0.0  ;;  %4861 = vmatpush3.msra.mxu1 %v128_v33  ;;  %v5916_v17 = vmax.f32 %v606_v6, 0.0 }
 0x138   :  { %v750_v45 = vpop.f32.mrf.mxu0  ;;  %4862 = vmatprep.subr.mxu1 %v127_v38 }
 0x139   :  { %v751_v37 = vadd.f32 %v5687_v20, %v750_v45  ;;  %4839 = vmatmul.mubr.msk.f32.gmra.mxu1 %vm863_vm2, %v5890_v59  ;;  %4949 = vmatprep.mubr.msk.f32.mxu0 %vm863_vm2, %v851_v61  ;;  %v696_v61 = vadd.f32 %v5827_v3, %v5687_v20  ;;  %v152_v45 = vld [vmem:[%s7179_s3 + $0x108] sm:$0xff]  ;;  %v706_v3 = vadd.f32 %v5836_v9, %v5687_v20 }
 0x13a   :  { %4841 = vmatprep.mubr.msk.f32.mxu1 %vm863_vm2, %v5894_v63  ;;  %4863 = vmatpush3.msra.mxu1 %v127_v38  ;;  %v626_v38 = vadd.f32 %v5784_v16, %v5687_v20 }
 0x13b   :  { %v853_v33 = vmax.f32 %v751_v37, 0.0  ;;  %4888 = vmatprep.subr.mxu1 %v134_v14  ;;  %v4782_v37 = vpop.f32.mrf.mxu0  ;;  %v5955_v6 = vmax.f32 %v696_v61, 0.0  ;;  %v5968_v41 = vmax.f32 %v706_v3, 0.0 }
 0x13c   :  { %v5933_v16 = vmax.f32 %v626_v38, 0.0 }
 0x13d   :  { %4842 = vmatmul.mubr.msk.f32.gmra.mxu1 %vm863_vm2, %v5905_v47  ;;  %4950 = vmatmul.mubr.msk.f32.gmra.mxu0 %vm863_vm2, %v853_v33  ;;  %v5949_v62 = vpop.f32.mrf.mxu0  ;;  %v151_v33 = vld [vmem:[%s7179_s3 + $0x100] sm:$0xff] }
 0x13e   :  { %4844 = vmatprep.mubr.f32.mxu1 %v7195_v57  ;;  %4992 = vmatprep.mubr.f32.mxu0 %v7195_v57 }
 0x13f   :  { %v4785_v9 = vpop.f32.mrf.mxu0 }
 0x140   :  { %v5990_v61 = vadd.f32 %v4785_v9, %v5687_v20  ;;  %v556_v9 = vadd.f32 %v5741_v51, %v5687_v20 }
 0x141   :  { %4845 = vmatmul.mubr.msk.f32.gmra.mxu1 %vm863_vm2, %v5916_v17  ;;  %4993 = vmatmul.mubr.msk.f32.vlgmr.msra.gmra.mxu0 %vm863_vm2, %v5890_v59  ;;  %v5976_v38 = vpop.f32.mrf.mxu0 }
 0x142   :  { %4847 = vmatprep.mubr.msk.f32.mxu1 %vm863_vm2, %v5920_v8  ;;  %4995 = vmatprep.mubr.msk.f32.mxu0 %vm863_vm2, %v5894_v63  ;;  %v814_v51 = vmax.f32 %v556_v9, 0.0 }
 0x143   :  { %5049 = vmatpush3.msra.mxu0 %v5716_v39  ;;  %v5951_v39 = vmax.f32 %v686_v43, 0.0  ;;  %v5982_v43 = vadd.f32 %v4782_v37, %v5687_v20  ;;  %v132_v37 = vld [vmem:[%s7179_s3 + $0x68] sm:$0xff] }
 0x144   :  { %5050 = vmatprep.subr.mxu0 %v153_v12 }
 0x145   :  { %4848 = vmatmul.mubr.msk.f32.gmra.mxu1 %vm863_vm2, %v5933_v16  ;;  %4996 = vmatmul.mubr.msk.f32.gmra.mxu0 %vm863_vm2, %v5905_v47  ;;  %v856_v3 = vmax.f32 %v5982_v43, 0.0  ;;  %v646_v43 = vadd.f32 %v5802_v29, %v5687_v20  ;;  %v666_v29 = vadd.f32 %v5813_v40, %v5687_v20  ;;  %v746_v40 = vadd.f32 %v5871_v1, %v5687_v20  ;;  %v148_v1 = vld [vmem:[%s7179_s3 + $0xe8] sm:$0xff] }
 0x146   :  { %4850 = vmatprep.mubr.f32.mxu1 %v7195_v57  ;;  %4998 = vmatprep.mubr.f32.mxu0 %v7195_v57 }
 0x147   :  { %5051 = vmatpush3.msra.mxu0 %v153_v12  ;;  %v133_v12 = vld [vmem:[%s7179_s3 + $0x70] sm:$0xff] }
 0x148   :  { %5052 = vmatprep.subr.mxu0 %v152_v45 }
 0x149   :  { %4851 = vmatmul.mubr.msk.f32.gmra.mxu1 %vm863_vm2, %v5951_v39  ;;  %4999 = vmatmul.mubr.msk.f32.gmra.mxu0 %vm863_vm2, %v5916_v17 }
 0x14a   :  { %4853 = vmatprep.mubr.msk.f32.mxu1 %vm863_vm2, %v5955_v6  ;;  %5001 = vmatprep.mubr.msk.f32.mxu0 %vm863_vm2, %v5920_v8 }
 0x14b   :  { %5053 = vmatpush3.msra.mxu0 %v152_v45  ;;  %v4788_v45 = vpop.f32.mrf.mxu0 }
 0x14c   :  { %5054 = vmatprep.subr.mxu0 %v151_v33 }
 0x14d   :  { %4854 = vmatmul.mubr.msk.f32.gmra.mxu1 %vm863_vm2, %v5968_v41  ;;  %5002 = vmatmul.mubr.msk.f32.gmra.mxu0 %vm863_vm2, %v5933_v16 }
 0x14e   :  { %4864 = vmatprep.mubr.f32.mxu1 %v7195_v57  ;;  %5004 = vmatprep.mubr.f32.mxu0 %v7195_v57 }
 0x14f   :  { %5055 = vmatpush3.msra.mxu0 %v151_v33  ;;  %v858_v33 = vmax.f32 %v5990_v61, 0.0  ;;  %v832_v61 = vmax.f32 %v646_v43, 0.0 }
 0x151   :  { %4865 = vmatmul.mubr.f32.vlgmr.msra.gmra.mxu1 %v7195_v57  ;;  %5005 = vmatmul.mubr.msk.f32.gmra.mxu0 %vm863_vm2, %v5951_v39 }
 0x152   :  { %4889 = vmatpush3.msra.mxu1 %v134_v14  ;;  %5007 = vmatprep.mubr.msk.f32.mxu0 %vm863_vm2, %v5955_v6  ;;  %v6001_v14 = vadd.f32 %v4788_v45, %v5687_v20  ;;  %v142_v45 = vld [vmem:[%s7179_s3 + $0xb8] sm:$0xff] }
 0x153   :  { %4867 = vmatprep.mubr.f32.mxu1 %v7195_v57  ;;  %4890 = vmatprep.subr.mxu1 %v133_v12 }
 0x154   :  { %4891 = vmatpush3.msra.mxu1 %v133_v12  ;;  %v131_v12 = vld [vmem:[%s7179_s3 + $0x60] sm:$0xff]  ;;  %v860_v31 = vmax.f32 %v6001_v14, 0.0  ;;  %v736_v14 = vadd.f32 %v5861_v49, %v5687_v20  ;;  %v149_v49 = vld [vmem:[%s7179_s3 + $0xf0] sm:$0xff] }
 0x155   :  { %4868 = vmatmul.mubr.f32.gmra.mxu1 %v7195_v57  ;;  %5008 = vmatmul.mubr.msk.f32.gmra.mxu0 %vm863_vm2, %v5968_v41 }
 0x156   :  { %4870 = vmatprep.mubr.msk.f32.mxu1 %vm863_vm2, %v5890_v59  ;;  %5010 = vmatprep.mubr.f32.mxu0 %v7195_v57 }
 0x157   :  { %4892 = vmatprep.subr.mxu1 %v132_v37 }
 0x158   :  { %4893 = vmatpush3.msra.mxu1 %v132_v37  ;;  %v636_v37 = vadd.f32 %v5793_v24, %v5687_v20  ;;  %v716_v24 = vadd.f32 %v5845_v26, %v5687_v20  ;;  %v6066_v26 = vadd.f32 %v5690_v23, %v5687_v20  ;;  %v141_v23 = vld [vmem:[%s7179_s3 + $0xb0] sm:$0xff] }
 0x159   :  { %4871 = vmatmul.mubr.msk.f32.gmra.mxu1 %vm863_vm2, %v5894_v63  ;;  %5011 = vmatmul.mubr.msk.f32.gmra.mxu0 %vm863_vm2, %v856_v3 }
 0x15a   :  { %4873 = vmatprep.mubr.msk.f32.mxu1 %vm863_vm2, %v5905_v47  ;;  %5013 = vmatprep.mubr.msk.f32.mxu0 %vm863_vm2, %v858_v33  ;;  %v830_v9 = vmax.f32 %v636_v37, 0.0  ;;  %v150_v37 = vld [vmem:[%s7179_s3 + $0xf8] sm:$0xff] }
 0x15b   :  { %4894 = vmatprep.subr.mxu1 %v131_v12 }
 0x15c   :  { %4895 = vmatpush3.msra.mxu1 %v131_v12 }
 0x15d   :  { %4874 = vmatmul.mubr.msk.f32.gmra.mxu1 %vm863_vm2, %v814_v51  ;;  %5014 = vmatmul.mubr.msk.f32.gmra.mxu0 %vm863_vm2, %v860_v31 }
 0x15e   :  { %4876 = vmatprep.mubr.msk.f32.mxu1 %vm863_vm2, %v5916_v17  ;;  %5056 = vmatprep.mubr.msk.f32.mxu0 %vm863_vm2, %v5890_v59  ;;  %v6062_v59 = vadd.f32 %v5682_v19, %v5687_v20  ;;  %v6076_v19 = vadd.f32 %v5694_v27, %v5687_v20  ;;  %v6091_v27 = vadd.f32 %v5750_v55, %v5687_v20  ;;  %v139_v55 = vld [vmem:[%s7179_s3 + $0xa0] sm:$0xff] }
 0x15f   :  { %4952 = vmatprep.subr.mxu1 %v142_v45 }
 0x161   :  { %4877 = vmatmul.mubr.msk.f32.gmra.mxu1 %vm863_vm2, %v5920_v8  ;;  %5057 = vmatmul.mubr.msk.f32.vlgmr.msra.gmra.mxu0 %vm863_vm2, %v5894_v63  ;;  %v846_v63 = vmax.f32 %v716_v24, 0.0 }
 0x162   :  { %4879 = vmatprep.mubr.msk.f32.mxu1 %vm863_vm2, %v5933_v16  ;;  %5059 = vmatprep.mubr.msk.f32.mxu0 %vm863_vm2, %v5905_v47  ;;  %v800_v47 = vmax.f32 %v6062_v59, 0.0  ;;  %v850_v59 = vmax.f32 %v736_v14, 0.0  ;;  %v174_v14 = vld [vmem:[%s7181_s5 + $0x90] sm:$0xff] }
 0x165   :  { %4880 = vmatmul.mubr.msk.f32.gmra.mxu1 %vm863_vm2, %v830_v9  ;;  %5060 = vmatmul.mubr.msk.f32.gmra.mxu0 %vm863_vm2, %v814_v51  ;;  %v816_v51 = vmax.f32 %v6091_v27, 0.0  ;;  %v165_v27 = vld [vmem:[%s7181_s5 + $0x48] sm:$0xff] }
 0x166   :  { %4882 = vmatprep.mubr.msk.f32.mxu1 %vm863_vm2, %v5951_v39  ;;  %5062 = vmatprep.mubr.msk.f32.mxu0 %vm863_vm2, %v5916_v17  ;;  %v802_v17 = vmax.f32 %v6066_v26, 0.0 }
 0x169   :  { %4883 = vmatmul.mubr.msk.f32.gmra.mxu1 %vm863_vm2, %v5955_v6  ;;  %5063 = vmatmul.mubr.msk.f32.gmra.mxu0 %vm863_vm2, %v5920_v8  ;;  %v6082_v8 = vpop.f32.mrf.mxu0 }
 0x16a   :  { %4885 = vmatprep.mubr.msk.f32.mxu1 %vm863_vm2, %v5968_v41  ;;  %5065 = vmatprep.mubr.msk.f32.mxu0 %vm863_vm2, %v5933_v16  ;;  %v804_v16 = vmax.f32 %v6076_v19, 0.0  ;;  %v781_v54 = vadd.f32 %v5687_v20, %v6082_v8 }
 0x16b   :  { %v4791_v12 = vpop.f32.mrf.mxu0 }
 0x16c   :  { %v859_v22 = vmax.f32 %v781_v54, 0.0 }
 0x16d   :  { %4886 = vmatmul.mubr.msk.f32.gmra.mxu1 %vm863_vm2, %v846_v63  ;;  %5066 = vmatmul.mubr.msk.f32.gmra.mxu0 %vm863_vm2, %v830_v9 }
 0x16e   :  { %5068 = vmatprep.mubr.msk.f32.mxu0 %vm863_vm2, %v5951_v39  ;;  %4896 = vmatprep.mubr.f32.mxu1 %v7195_v57  ;;  %v140_v39 = vld [vmem:[%s7179_s3 + $0xa8] sm:$0xff] }
 0x171   :  { %4897 = vmatmul.mubr.msk.f32.vlgmr.msra.gmra.mxu1 %vm863_vm2, %v800_v47  ;;  %5069 = vmatmul.mubr.msk.f32.gmra.mxu0 %vm863_vm2, %v5955_v6  ;;  %v6100_v6 = vadd.f32 %v5757_v60, %v5687_v20  ;;  %v586_v60 = vadd.f32 %v5761_v0, %v5687_v20 }
 0x172   :  { %4953 = vmatpush3.msra.mxu1 %v142_v45  ;;  %4899 = vmatprep.mubr.msk.f32.mxu1 %vm863_vm2, %v802_v17 }
 0x173   :  { %5071 = vmatprep.mubr.msk.f32.mxu0 %vm863_vm2, %v5968_v41  ;;  %4954 = vmatprep.subr.mxu1 %v141_v23  ;;  %v796_v41 = vadd.f32 %v4791_v12, %v5687_v20  ;;  %v818_v45 = vmax.f32 %v6100_v6, 0.0  ;;  %v820_v0 = vmax.f32 %v586_v60, 0.0  ;;  %v164_v60 = vld [vmem:[%s7181_s5 + $0x40] sm:$0xff] }
 0x174   :  { %4955 = vmatpush3.msra.mxu1 %v141_v23 }
 0x175   :  { %4900 = vmatmul.mubr.msk.f32.gmra.mxu1 %vm863_vm2, %v804_v16  ;;  %5072 = vmatmul.mubr.msk.f32.gmra.mxu0 %vm863_vm2, %v846_v63  ;;  %v862_v9 = vmax.f32 %v796_v41, 0.0  ;;  %v852_v63 = vmax.f32 %v746_v40, 0.0  ;;  %v163_v40 = vld [vmem:[%s7181_s5 + $0x38] sm:$0xff] }
 0x176   :  { %4902 = vmatprep.mubr.f32.mxu1 %v7195_v57  ;;  %4956 = vmatprep.subr.mxu1 %v140_v39 }
 0x177   :  { %4957 = vmatpush3.msra.mxu1 %v140_v39  ;;  %5074 = vmatprep.mubr.msk.f32.mxu0 %vm863_vm2, %v856_v3  ;;  %v656_v3 = vadd.f32 %v5809_v34, %v5687_v20  ;;  %v726_v34 = vadd.f32 %v5854_v36, %v5687_v20  ;;  %v516_v36 = vadd.f32 %v5701_v32, %v5687_v20  ;;  %v147_v32 = vld [vmem:[%s7179_s3 + $0xe0] sm:$0xff] }
 0x178   :  { %4958 = vmatprep.subr.mxu1 %v139_v55 }
 0x179   :  { %4903 = vmatmul.mubr.msk.f32.gmra.mxu1 %vm863_vm2, %v816_v51  ;;  %5075 = vmatmul.mubr.msk.f32.gmra.mxu0 %vm863_vm2, %v858_v33  ;;  %v834_v33 = vmax.f32 %v656_v3, 0.0  ;;  %v848_v24 = vmax.f32 %v726_v34, 0.0  ;;  %v806_v26 = vmax.f32 %v516_v36, 0.0  ;;  %v176_v3 = vld [vmem:[%s7181_s5 + $0xa0] sm:$0xff]  ;;  %v162_v36 = vld [vmem:[%s7181_s5 + $0x30] sm:$0xff] }
 0x17a   :  { %4905 = vmatprep.mubr.msk.f32.mxu1 %vm863_vm2, %v818_v45  ;;  %4959 = vmatpush3.msra.mxu1 %v139_v55  ;;  %v179_v55 = vld [vmem:[%s7181_s5 + $0xb8] sm:$0xff] }
 0x17b   :  { %5016 = vmatprep.subr.mxu1 %v150_v37  ;;  %5077 = vmatprep.mubr.msk.f32.mxu0 %vm863_vm2, %v860_v31  ;;  %v836_v31 = vmax.f32 %v666_v29, 0.0 }
 0x17c   :  { %5134 = vmatprep.subr.mxu0 %v179_v55 }
 0x17d   :  { %4906 = vmatmul.mubr.msk.f32.gmra.mxu1 %vm863_vm2, %v820_v0  ;;  %5078 = vmatmul.mubr.msk.f32.gmra.mxu0 %vm863_vm2, %v862_v9 }
 0x17e   :  { %4908 = vmatprep.mubr.f32.mxu1 %v7195_v57  ;;  %5146 = vmatprep.mubr.f32.mxu0 %v7195_v57 }
 0x17f   :  { %5135 = vmatpush3.msra.mxu0 %v179_v55 }
 0x181   :  { %4909 = vmatmul.mubr.msk.f32.gmra.mxu1 %vm863_vm2, %v832_v61 }
 0x182   :  { %4911 = vmatprep.mubr.msk.f32.mxu1 %vm863_vm2, %v834_v33 }
 0x185   :  { %4912 = vmatmul.mubr.msk.f32.gmra.mxu1 %vm863_vm2, %v836_v31 }
 0x186   :  { %4914 = vmatprep.mubr.f32.mxu1 %v7195_v57 }
 0x189   :  { %4915 = vmatmul.mubr.msk.f32.gmra.mxu1 %vm863_vm2, %v848_v24 }
 0x18a   :  { %4917 = vmatprep.mubr.msk.f32.mxu1 %vm863_vm2, %v850_v59 }
 0x18d   :  { %4918 = vmatmul.mubr.msk.f32.gmra.mxu1 %vm863_vm2, %v852_v63 }
 0x18e   :  { %4960 = vmatprep.mubr.msk.f32.mxu1 %vm863_vm2, %v800_v47  ;;  %v596_v47 = vadd.f32 %v5765_v4, %v5687_v20  ;;  %v756_v4 = vadd.f32 %v5887_v58, %v5687_v20 }
 0x190   :  { %v822_v19 = vmax.f32 %v596_v47, 0.0 }
 0x191   :  { %4961 = vmatmul.mubr.msk.f32.vlgmr.msra.gmra.mxu1 %vm863_vm2, %v802_v17  ;;  %v676_v17 = vadd.f32 %v5817_v53, %v5687_v20 }
 0x192   :  { %5017 = vmatpush3.msra.mxu1 %v150_v37  ;;  %4963 = vmatprep.mubr.msk.f32.mxu1 %vm863_vm2, %v804_v16  ;;  %v854_v16 = vmax.f32 %v756_v4, 0.0 }
 0x193   :  { %5018 = vmatprep.subr.mxu1 %v149_v49  ;;  %v838_v23 = vmax.f32 %v676_v17, 0.0  ;;  %v160_v17 = vld [vmem:[%s7181_s5 + $0x20] sm:$0xff] }
 0x194   :  { %5019 = vmatpush3.msra.mxu1 %v149_v49 }
 0x195   :  { %4964 = vmatmul.mubr.msk.f32.gmra.mxu1 %vm863_vm2, %v806_v26  ;;  %5020 = vmatprep.subr.mxu1 %v148_v1 }
 0x196   :  { %4966 = vmatprep.mubr.msk.f32.mxu1 %vm863_vm2, %v816_v51  ;;  %5021 = vmatpush3.msra.mxu1 %v148_v1 }
 0x197   :  { %5022 = vmatprep.subr.mxu1 %v147_v32 }
 0x198   :  { %5023 = vmatpush3.msra.mxu1 %v147_v32  ;;  %v161_v32 = vld [vmem:[%s7181_s5 + $0x28] sm:$0xff] }
 0x199   :  { %4967 = vmatmul.mubr.msk.f32.gmra.mxu1 %vm863_vm2, %v818_v45  ;;  %5080 = vmatprep.subr.mxu1 %v167_v21  ;;  %v178_v45 = vld [vmem:[%s7181_s5 + $0xb0] sm:$0xff] }
 0x19a   :  { %4969 = vmatprep.mubr.msk.f32.mxu1 %vm863_vm2, %v820_v0  ;;  %5136 = vmatprep.subr.mxu0 %v178_v45  ;;  %v177_v0 = vld [vmem:[%s7181_s5 + $0xa8] sm:$0xff] }
 0x19b   :  { %5137 = vmatpush3.msra.mxu0 %v178_v45 }
 0x19c   :  { %5138 = vmatprep.subr.mxu0 %v177_v0 }
 0x19d   :  { %4970 = vmatmul.mubr.msk.f32.gmra.mxu1 %vm863_vm2, %v822_v19  ;;  %5139 = vmatpush3.msra.mxu0 %v177_v0 }
 0x19e   :  { %4972 = vmatprep.mubr.msk.f32.mxu1 %vm863_vm2, %v832_v61  ;;  %5140 = vmatprep.subr.mxu0 %v176_v3 }
 0x19f   :  { %5141 = vmatpush3.msra.mxu0 %v176_v3 }
 0x1a1   :  { %4973 = vmatmul.mubr.msk.f32.gmra.mxu1 %vm863_vm2, %v834_v33  ;;  %v175_v33 = vld [vmem:[%s7181_s5 + $0x98] sm:$0xff] }
 0x1a2   :  { %4975 = vmatprep.mubr.msk.f32.mxu1 %vm863_vm2, %v836_v31  ;;  %5142 = vmatprep.subr.mxu0 %v175_v33 }
 0x1a3   :  { %5143 = vmatpush3.msra.mxu0 %v175_v33 }
 0x1a4   :  { %5144 = vmatprep.subr.mxu0 %v174_v14 }
 0x1a5   :  { %4976 = vmatmul.mubr.msk.f32.gmra.mxu1 %vm863_vm2, %v838_v23  ;;  %5145 = vmatpush3.msra.mxu0 %v174_v14  ;;  %v6345_v23 = vld [vmem:[%s7181_s5 + $0x118] sm:$0xff] }
 0x1a6   :  { %4978 = vmatprep.mubr.msk.f32.mxu1 %vm863_vm2, %v848_v24  ;;  %5170 = vmatprep.subr.mxu0 %v6345_v23 }
 0x1a9   :  { %4979 = vmatmul.mubr.msk.f32.gmra.mxu1 %vm863_vm2, %v850_v59 }
 0x1aa   :  { %4981 = vmatprep.mubr.msk.f32.mxu1 %vm863_vm2, %v852_v63 }
 0x1ad   :  { %4982 = vmatmul.mubr.msk.f32.gmra.mxu1 %vm863_vm2, %v854_v16 }
 0x1ae   :  { %5024 = vmatprep.mubr.msk.f32.mxu1 %vm863_vm2, %v807_v44  ;;  %v761_v44 = vadd.f32 %v5687_v20, %v5949_v62  ;;  %v166_v62 = vld [vmem:[%s7181_s5 + $0x50] sm:$0xff] }
 0x1b1   :  { %5025 = vmatmul.mubr.msk.f32.vlgmr.msra.gmra.mxu1 %vm863_vm2, %v809_v48  ;;  %v771_v48 = vadd.f32 %v5687_v20, %v5976_v38 }
 0x1b2   :  { %5027 = vmatprep.mubr.msk.f32.mxu1 %vm863_vm2, %v811_v52  ;;  %v855_v52 = vmax.f32 %v761_v44, 0.0  ;;  %5081 = vmatpush3.msra.mxu1 %v167_v21  ;;  %v6374_v21 = vld [vmem:[%s7181_s5 + $0x88] sm:$0xff] }
 0x1b3   :  { %v857_v15 = vmax.f32 %v771_v48, 0.0  ;;  %5082 = vmatprep.subr.mxu1 %v166_v62 }
 0x1b4   :  { %5083 = vmatpush3.msra.mxu1 %v166_v62 }
 0x1b5   :  { %5028 = vmatmul.mubr.msk.f32.gmra.mxu1 %vm863_vm2, %v813_v56  ;;  %v790_v56 = vpop.f32.mrf.mxu0  ;;  %5084 = vmatprep.subr.mxu1 %v165_v27 }
 0x1b6   :  { %5030 = vmatprep.mubr.msk.f32.mxu1 %vm863_vm2, %v823_v13  ;;  %v791_v11 = vadd.f32 %v5687_v20, %v790_v56  ;;  %v7198_v13 = vmax.f32 %v5849_v35, 0.0  ;;  %5085 = vmatpush3.msra.mxu1 %v165_v27 }
 0x1b7   :  { %v6256_v35 = vpop.f32.mrf.mxu0  ;;  %5086 = vmatprep.subr.mxu1 %v164_v60 }
 0x1b8   :  { %5087 = vmatpush3.msra.mxu1 %v164_v60 }
 0x1b9   :  { %5031 = vmatmul.mubr.msk.f32.gmra.mxu1 %vm863_vm2, %v825_v18  ;;  %v6231_v18 = vpop.f32.mrf.mxu1  ;;  %v6265_v8 = vpop.f32.mrf.mxu0  ;;  %5088 = vmatprep.subr.mxu1 %v163_v40 }
 0x1ba   :  { %5033 = vmatprep.mubr.msk.f32.mxu1 %vm863_vm2, %v827_v25  ;;  %v861_v25 = vmax.f32 %v791_v11, 0.0  ;;  %5089 = vmatpush3.msra.mxu1 %v163_v40 }
 0x1bb   :  { %v6235_v28 = vpop.f32.mrf.mxu1  ;;  %v6270_v39 = vpop.f32.mrf.mxu0  ;;  %5090 = vmatprep.subr.mxu1 %v162_v36 }
 0x1bc   :  { %5091 = vmatpush3.msra.mxu1 %v162_v36 }
 0x1bd   :  { %5034 = vmatmul.mubr.msk.f32.gmra.mxu1 %vm863_vm2, %v829_v30  ;;  %v6239_v20 = vpop.f32.mrf.mxu1  ;;  %v6279_v41 = vpop.f32.mrf.mxu0  ;;  %5098 = vmatprep.subr.mxu1 %v161_v32 }
 0x1be   :  { %5036 = vmatprep.mubr.msk.f32.mxu1 %vm863_vm2, %v839_v5 }
 0x1bf   :  { %v6241_v30 = vpop.f32.mrf.mxu1  ;;  %v6289_v37 = vpop.f32.mrf.mxu0 }
 0x1c1   :  { %5037 = vmatmul.mubr.msk.f32.gmra.mxu1 %vm863_vm2, %v841_v10  ;;  %v6243_v53 = vpop.f32.mrf.mxu1  ;;  %v6301_v61 = vpop.f32.mrf.mxu0 }
 0x1c2   :  { %5039 = vmatprep.mubr.msk.f32.mxu1 %vm863_vm2, %v7197_v46  ;;  %v159_v46 = vld [vmem:[%s7181_s5 + $0x18] sm:$0xff] }
 0x1c3   :  { %v6245_v2 = vpop.f32.mrf.mxu1  ;;  %v6308_v31 = vpop.f32.mrf.mxu0 }
 0x1c5   :  { %5040 = vmatmul.mubr.msk.f32.gmra.mxu1 %vm863_vm2, %v7198_v13  ;;  %v6247_v5 = vpop.f32.mrf.mxu1  ;;  %v6320_v59 = vpop.f32.mrf.mxu0  ;;  %v157_v13 = vld [vmem:[%s7181_s5 + $0x8] sm:$0xff] }
 0x1c6   :  { %5042 = vmatprep.mubr.msk.f32.mxu1 %vm863_vm2, %v855_v52  ;;  %v158_v52 = vld [vmem:[%s7181_s5 + $0x10] sm:$0xff] }
 0x1c7   :  { %v6249_v7 = vpop.f32.mrf.mxu1 }
 0x1c9   :  { %5043 = vmatmul.mubr.msk.f32.gmra.mxu1 %vm863_vm2, %v857_v15 }
 0x1ca   :  { %5045 = vmatprep.mubr.msk.f32.mxu1 %vm863_vm2, %v859_v22 }
 0x1cd   :  { %5046 = vmatmul.mubr.msk.f32.gmra.mxu1 %vm863_vm2, %v861_v25  ;;  %v6251_v10 = vpop.f32.mrf.mxu1  ;;  %v156_v25 = vld [vmem:[%s7181_s5] sm:$0xff] }
 0x1ce   :  { %5092 = vmatprep.mubr.f32.mxu1 %v7195_v57 }
 0x1cf   :  { %v6258_v58 = vpop.f32.mrf.mxu1 }
 0x1d1   :  { %5093 = vmatmul.mubr.f32.vlgmr.msra.gmra.mxu1 %v7195_v57 }
 0x1d2   :  { %5099 = vmatpush3.msra.mxu1 %v161_v32 }
 0x1d3   :  { %5100 = vmatprep.subr.mxu1 %v160_v17 }
 0x1d4   :  { %5101 = vmatpush3.msra.mxu1 %v160_v17 }
 0x1d5   :  { %v6327_v49 = vpop.f32.mrf.mxu0  ;;  %5102 = vmatprep.subr.mxu1 %v159_v46 }
 0x1d6   :  { %5103 = vmatpush3.msra.mxu1 %v159_v46 }
 0x1d7   :  { %v6337_v47 = vpop.f32.mrf.mxu0  ;;  %5104 = vmatprep.subr.mxu1 %v158_v52 }
 0x1d8   :  { %7199 = vst [vmem:[#allocation2_spill] sm:$0xff] %v6337_v47  ;;  %5105 = vmatpush3.msra.mxu1 %v158_v52 }
 0x1d9   :  { %5106 = vmatprep.subr.mxu1 %v157_v13 }
 0x1da   :  { %5107 = vmatpush3.msra.mxu1 %v157_v13 }
 0x1db   :  { %5108 = vmatprep.subr.mxu1 %v156_v25 }
 0x1dc   :  { %5109 = vmatpush3.msra.mxu1 %v156_v25 }
 0x1dd   :  { %v6351_v16 = vpop.f32.mrf.mxu0  ;;  %5116 = vmatprep.subr.mxu1 %v6374_v21 }
 0x1df   :  { %v6360_v56 = vpop.f32.mrf.mxu0 }
 0x1e0   :  { %7200 = vst [vmem:[#allocation3_spill] sm:$0xff] %v6360_v56 }
 0x1e5   :  { %v6263_v38 = vpop.f32.mrf.mxu1 }
 0x1e7   :  { %v6272_v6 = vpop.f32.mrf.mxu1 }
 0x1ed   :  { %v6274_v12 = vpop.f32.mrf.mxu1 }
 0x1ef   :  { %v6281_v51 = vpop.f32.mrf.mxu1 }
 0x1f1   :  { %v6291_v9 = vpop.f32.mrf.mxu1 }
 0x1f2   :  { %v1147_v45 = vadd.f32 %v6291_v9, %v6210_v42 }
 0x1f3   :  { %v6296_v43 = vpop.f32.mrf.mxu1 }
 0x1f4   :  { %v1142_v33 = vadd.f32 %v6296_v43, %v6222_v50 }
 0x1f5   :  { %v6303_v29 = vpop.f32.mrf.mxu1  ;;  %v6365_v15 = vpop.f32.mrf.mxu0 }
 0x1f6   :  { %v1157_v36 = vadd.f32 %v6303_v29, %v6231_v18 }
 0x1f7   :  { %v6310_v34 = vpop.f32.mrf.mxu1  ;;  %v6377_v62 = vpop.f32.mrf.mxu0 }
 0x1f8   :  { %v1152_v42 = vadd.f32 %v6310_v34, %v6235_v28 }
 0x1f9   :  { %v6315_v24 = vpop.f32.mrf.mxu1 }
 0x1fa   :  { %v1167_v17 = vadd.f32 %v6315_v24, %v6239_v20 }
 0x1fb   :  { %v6322_v63 = vpop.f32.mrf.mxu1 }
 0x1fd   :  { %v6329_v1 = vpop.f32.mrf.mxu1  ;;  %v6383_v0 = vpop.f32.mrf.mxu0 }
 0x1fe   :  { %v1177_v52 = vadd.f32 %v6329_v1, %v6243_v53 }
 0x1ff   :  { %v6331_v26 = vpop.f32.mrf.mxu1 }
 0x200   :  { %v1172_v20 = vadd.f32 %v6331_v26, %v6245_v2 }
 0x201   :  { %v4846_v19 = vpop.f32.mrf.mxu1 }
 0x202   :  { %v6348_v4 = vadd.f32 %v4846_v19, %v6247_v5 }
 0x203   :  { %v1181_v44 = vpop.f32.mrf.mxu1 }
 0x205   :  { %v4849_v48 = vpop.f32.mrf.mxu1 }
 0x206   :  { %v1197_v54 = vadd.f32 %v4849_v48, %v6251_v10  ;;  %v1162_v48 = vadd.f32 %v6322_v63, %v6241_v30  ;;  %v1182_v63 = vadd.f32 %v1181_v44, %v6249_v7 }
 0x207   :  { %v1191_v11 = vpop.f32.mrf.mxu1 }
 0x209   :  { %v4852_v22 = vpop.f32.mrf.mxu1 }
 0x20a   :  { %v1207_v5 = vadd.f32 %v4852_v22, %v6263_v38 }
 0x20b   :  { %v1201_v10 = vpop.f32.mrf.mxu1 }
 0x20d   :  { %v4855_v27 = vpop.f32.mrf.mxu1 }
 0x20e   :  { %v1217_v55 = vadd.f32 %v4855_v27, %v6274_v12  ;;  %v6391_v12 = vpop.f32.mrf.mxu0 }
 0x20f   :  { %v1211_v60 = vpop.f32.mrf.mxu1 }
 0x210   :  { %v1212_v38 = vadd.f32 %v1211_v60, %v6281_v51  ;;  %v6397_v50 = vpop.f32.mrf.mxu0 }
 0x211   :  { %v4866_v3 = vpop.f32.mrf.mxu1 }
 0x212   :  { %v6387_v14 = vadd.f32 %v4866_v3, %v1147_v45  ;;  %v6405_v28 = vpop.f32.mrf.mxu0 }
 0x213   :  { %v1295_v40 = vpop.f32.mrf.mxu1 }
 0x214   :  { %v1374_v32 = vadd.f32 %v1295_v40, %v1142_v33  ;;  %v6411_v27 = vpop.f32.mrf.mxu0  ;;  %v1192_v33 = vadd.f32 %v1191_v11, %v6258_v58 }
 0x215   :  { %v4869_v19 = vpop.f32.mrf.mxu1 }
 0x216   :  { %v1377_v51 = vadd.f32 %v4869_v19, %v1157_v36  ;;  %v6417_v45 = vpop.f32.mrf.mxu0 }
 0x217   :  { %v1305_v9 = vpop.f32.mrf.mxu1  ;;  %7201 = vst [vmem:[#allocation4_spill] sm:$0xff] %v6417_v45 }
 0x218   :  { %v1376_v46 = vadd.f32 %v1305_v9, %v1152_v42  ;;  %v6422_v36 = vpop.f32.mrf.mxu0  ;;  %v1202_v42 = vadd.f32 %v1201_v10, %v6272_v6 }
 0x219   :  { %v4872_v43 = vpop.f32.mrf.mxu1 }
 0x21a   :  { %v1379_v18 = vadd.f32 %v4872_v43, %v1167_v17  ;;  %v6425_v9 = vpop.f32.mrf.mxu0 }
 0x21b   :  { %v1315_v29 = vpop.f32.mrf.mxu1 }
 0x21c   :  { %v6403_v13 = vadd.f32 %v1315_v29, %v1162_v48 }
 0x21d   :  { %v4875_v34 = vpop.f32.mrf.mxu1 }
 0x21e   :  { %v1381_v24 = vadd.f32 %v4875_v34, %v1177_v52  ;;  %v6427_v52 = vpop.f32.mrf.mxu0 }
 0x21f   :  { %v1325_v22 = vpop.f32.mrf.mxu1 }
 0x220   :  { %v6409_v25 = vadd.f32 %v1325_v22, %v1172_v20  ;;  %v6429_v34 = vpop.f32.mrf.mxu0 }
 0x221   :  { %v4878_v30 = vpop.f32.mrf.mxu1 }
 0x222   :  { %v6415_v60 = vadd.f32 %v4878_v30, %v6348_v4  ;;  %v6433_v10 = vpop.f32.mrf.mxu0 }
 0x223   :  { %v1335_v53 = vpop.f32.mrf.mxu1 }
 0x224   :  { %v1382_v1 = vadd.f32 %v1335_v53, %v1182_v63  ;;  %v6437_v53 = vpop.f32.mrf.mxu0 }
 0x225   :  { %v4881_v3 = vpop.f32.mrf.mxu1  ;;  %7202 = vst [vmem:[#allocation5_spill] sm:$0xff] %v6437_v53 }
 0x226   :  { %v6420_v2 = vadd.f32 %v4881_v3, %v1197_v54 }
 0x227   :  { %v1345_v26 = vpop.f32.mrf.mxu1 }
 0x228   :  { %v1384_v40 = vadd.f32 %v1345_v26, %v1192_v33 }
 0x229   :  { %v4884_v19 = vpop.f32.mrf.mxu1 }
 0x22a   :  { %v1387_v7 = vadd.f32 %v4884_v19, %v1207_v5 }
 0x22b   :  { %v1355_v44 = vpop.f32.mrf.mxu1 }
 0x22c   :  { %v1386_v4 = vadd.f32 %v1355_v44, %v1202_v42 }
 0x22d   :  { %v4887_v17 = vpop.f32.mrf.mxu1 }
 0x22e   :  { %v1389_v43 = vadd.f32 %v4887_v17, %v1217_v55 }
 0x22f   :  { %v1365_v48 = vpop.f32.mrf.mxu1 }
 0x230   :  { %v1388_v29 = vadd.f32 %v1365_v48, %v1212_v38 }
 0x231   :  { %v4898_v58 = vpop.f32.mrf.mxu1 }
 0x233   :  { %v1492_v54 = vpop.f32.mrf.mxu1 }
 0x234   :  { %v1571_v11 = vadd.f32 %v1492_v54, %v1374_v32  ;;  %v6443_v32 = vpop.f32.mrf.mxu0 }
 0x235   :  { %v4901_v20 = vpop.f32.mrf.mxu1 }
 0x236   :  { %v6431_v22 = vadd.f32 %v4901_v20, %v1377_v51 }
 0x237   :  { %v1502_v6 = vpop.f32.mrf.mxu1 }
 0x238   :  { %v1573_v5 = vadd.f32 %v1502_v6, %v1376_v46  ;;  %v6449_v46 = vpop.f32.mrf.mxu0 }
 0x239   :  { %v4904_v30 = vpop.f32.mrf.mxu1  ;;  %7204 = vst [vmem:[#allocation7_spill] sm:$0xff] %v6449_v46 }
 0x23a   :  { %v6435_v63 = vadd.f32 %v4904_v30, %v1379_v18  ;;  %v6455_v17 = vpop.f32.mrf.mxu0 }
 0x23b   :  { %v1512_v55 = vpop.f32.mrf.mxu1  ;;  %7206 = vst [vmem:[#allocation9_spill] sm:$0xff] %v6455_v17 }
 0x23c   :  { %v6459_v6 = vpop.f32.mrf.mxu0 }
 0x23d   :  { %v4907_v38 = vpop.f32.mrf.mxu1 }
 0x23e   :  { %v6439_v3 = vadd.f32 %v4907_v38, %v1381_v24  ;;  %v6463_v57 = vpop.f32.mrf.mxu0 }
 0x23f   :  { %v6441_v33 = vpop.f32.mrf.mxu1 }
 0x240   :  { %v6466_v17 = vpop.f32.mrf.mxu0 }
 0x241   :  { %v6445_v26 = vpop.f32.mrf.mxu1  ;;  %7207 = vst [vmem:[#allocation10_spill] sm:$0xff] %v6466_v17 }
 0x243   :  { %v1532_v51 = vpop.f32.mrf.mxu1 }
 0x244   :  { %v6447_v19 = vadd.f32 %v1532_v51, %v1382_v1 }
 0x245   :  { %v6451_v42 = vpop.f32.mrf.mxu1 }
 0x246   :  { %7203 = vst [vmem:[#allocation6_spill] sm:$0xff] %v6447_v19 }
 0x247   :  { %v1542_v18 = vpop.f32.mrf.mxu1 }
 0x248   :  { %v6453_v44 = vadd.f32 %v1542_v18, %v1384_v40  ;;  %v1780_v40 = vadd.f32 %v6265_v8, %v1571_v11 }
 0x249   :  { %v4916_v24 = vpop.f32.mrf.mxu1 }
 0x24a   :  { %7205 = vst [vmem:[#allocation8_spill] sm:$0xff] %v6453_v44  ;;  %v1584_v48 = vadd.f32 %v4916_v24, %v1387_v7 }
 0x24b   :  { %v1552_v54 = vpop.f32.mrf.mxu1 }
 0x24c   :  { %v6457_v20 = vadd.f32 %v1552_v54, %v1386_v4  ;;  %v1782_v4 = vadd.f32 %v6279_v41, %v1573_v5  ;;  %v1572_v5 = vadd.f32 %v4898_v58, %v6387_v14 }
 0x24d   :  { %v4919_v30 = vpop.f32.mrf.mxu1 }
 0x24e   :  { %v1586_v38 = vadd.f32 %v4919_v30, %v1389_v43 }
 0x24f   :  { %v1562_v1 = vpop.f32.mrf.mxu1 }
 0x250   :  { %v6461_v51 = vadd.f32 %v1562_v1, %v1388_v29  ;;  %v5058_v29 = vpop.f32.mrf.mxu0 }
 0x251   :  { %v4962_v46 = vpop.f32.mrf.mxu1 }
 0x252   :  { %v6476_v45 = vpop.f32.mrf.mxu0 }
 0x253   :  { %v1874_v18 = vpop.f32.mrf.mxu1  ;;  %7210 = vst [vmem:[#allocation13_spill] sm:$0xff] %v6476_v45  ;;  %v1781_v45 = vadd.f32 %v6256_v35, %v1572_v5 }
 0x254   :  { %v1953_v53 = vadd.f32 %v1874_v18, %v1780_v40  ;;  %v6480_v40 = vpop.f32.mrf.mxu0 }
 0x255   :  { %v4965_v7 = vpop.f32.mrf.mxu1 }
 0x256   :  { %v6470_v24 = vadd.f32 %v6405_v28, %v1953_v53  ;;  %v6484_v41 = vpop.f32.mrf.mxu0 }
 0x257   :  { %v1884_v54 = vpop.f32.mrf.mxu1  ;;  %7212 = vst [vmem:[#allocation15_spill] sm:$0xff] %v6484_v41  ;;  %v1795_v41 = vadd.f32 %v6383_v0, %v1586_v38 }
 0x258   :  { %7208 = vst [vmem:[#allocation11_spill] sm:$0xff] %v6470_v24  ;;  %v6472_v43 = vadd.f32 %v1884_v54, %v1782_v4  ;;  %v1793_v4 = vadd.f32 %v6365_v15, %v1584_v48  ;;  %v6492_v54 = vpop.f32.mrf.mxu0  ;;  %v1575_v15 = vadd.f32 %v1512_v55, %v6403_v13 }
 0x259   :  { %v6474_v30 = vpop.f32.mrf.mxu1 }
 0x25a   :  { %7209 = vst [vmem:[#allocation12_spill] sm:$0xff] %v6472_v43  ;;  %v2401_v19 = vpop.f32.mrf.mxu0 }
 0x25b   :  { %v1894_v1 = vpop.f32.mrf.mxu1 }
 0x25c   :  { %v6506_v48 = vpop.f32.mrf.mxu0 }
 0x25d   :  { %v6478_v8 = vpop.f32.mrf.mxu1 }
 0x25e   :  { %v2411_v13 = vpop.f32.mrf.mxu0 }
 0x25f   :  { %v1904_v11 = vpop.f32.mrf.mxu1 }
 0x261   :  { %v4974_v18 = vpop.f32.mrf.mxu1 }
 0x263   :  { %v6482_v56 = vpop.f32.mrf.mxu1 }
 0x264   :  { %7211 = vst [vmem:[#allocation14_spill] sm:$0xff] %v6482_v56  ;;  %v1954_v56 = vadd.f32 %v4962_v46, %v1781_v45  ;;  %v6511_v45 = vld [vmem:[%s7182_s4] ss:$0 sm:$0xff]  ;;  %v1577_v46 = vadd.f32 %v6441_v33, %v6409_v25  ;;  %v5070_v33 = vpop.f32.mrf.mxu0 }
 0x265   :  { %v6486_v28 = vpop.f32.mrf.mxu1 }
 0x266   :  { %v2124_v58 = vadd.f32 %v6397_v50, %v1954_v56  ;;  %v1580_v56 = vadd.f32 %v6445_v26, %v6415_v60  ;;  %v1786_v25 = vadd.f32 %v6320_v59, %v1577_v46  ;;  %v190_v60 = vld [vmem:[%s7181_s5 + $0x110] sm:$0xff]  ;;  %v1785_v59 = vadd.f32 %v6289_v37, %v6435_v63  ;;  %v188_v37 = vld [vmem:[%s7181_s5 + $0x100] sm:$0xff] }
 0x267   :  { %v6489_v53 = vpop.f32.mrf.mxu1 }
 0x269   :  { %v4980_v43 = vpop.f32.mrf.mxu1 }
 0x26a   :  { %v6495_v44 = vadd.f32 %v4980_v43, %v1793_v4  ;;  %v1783_v4 = vadd.f32 %v6270_v39, %v6431_v22 }
 0x26b   :  { %v6497_v47 = vpop.f32.mrf.mxu1 }
 0x26c   :  { %v1956_v26 = vadd.f32 %v4965_v7, %v1783_v4 }
 0x26d   :  { %v4983_v17 = vpop.f32.mrf.mxu1 }
 0x26e   :  { %v6500_v24 = vadd.f32 %v4983_v17, %v1795_v41  ;;  %v1784_v17 = vadd.f32 %v6301_v61, %v1575_v15 }
 0x26f   :  { %v6502_v14 = vpop.f32.mrf.mxu1 }
 0x270   :  { %v1957_v50 = vadd.f32 %v1894_v1, %v1784_v17  ;;  %v1959_v1 = vadd.f32 %v1904_v11, %v1786_v25  ;;  %v6546_v11 = vpop.f32.mrf.mxu0 }
 0x271   :  { %v5026_v35 = vpop.f32.mrf.mxu1 }
 0x272   :  { %v2297_v43 = vadd.f32 %v5026_v35, %v2124_v58  ;;  %v1789_v58 = vadd.f32 %v6327_v49, %v1580_v56  ;;  %v2127_v39 = vadd.f32 %v6425_v9, %v1957_v50  ;;  %v1958_v35 = vadd.f32 %v6474_v30, %v1785_v59 }
 0x273   :  { %v6513_v0 = vpop.f32.mrf.mxu1 }
 0x274   :  { %v2461_v38 = vadd.f32 %v5058_v29, %v2297_v43  ;;  %v1582_v29 = vadd.f32 %v6451_v42, %v6420_v2  ;;  %v189_v2 = vld [vmem:[%s7181_s5 + $0x108] sm:$0xff]  ;;  %v7213_v42 = vmov 0.0   ;;  %v1962_v7 = vadd.f32 %v4974_v18, %v1789_v58 }
 0x275   :  { %v5029_v55 = vpop.f32.mrf.mxu1  ;;  %v2129_v18 = vadd.f32 %v6429_v34, %v1959_v1  ;;  %v2128_v34 = vadd.f32 %v6422_v36, %v1958_v35  ;;  %v203_v36 = vld [vmem:[%s7181_s5 + $0x178] sm:$0xff]  ;;  %v1792_v35 = vadd.f32 %v6377_v62, %v6457_v20  ;;  %v1794_v62 = vadd.f32 %v6391_v12, %v6461_v51 }
 0x276   :  { %v6521_v41 = vadd.f32 %v6511_v45, %v2461_v38  ;;  %v1791_v9 = vadd.f32 %v6351_v16, %v1582_v29  ;;  %v187_v16 = vld [vmem:[%s7181_s5 + $0xf8] sm:$0xff]  ;;  %v2132_v50 = vadd.f32 %v6433_v10, %v1962_v7 }
 0x277   :  { %v6523_v5 = vpop.f32.mrf.mxu1 }
 0x278   :  { %v2499_v61 = vmax.f32 %v6521_v41, 0.0  ;;  %v1964_v46 = vadd.f32 %v6486_v28, %v1791_v9  ;;  %v186_v28 = vld [vmem:[%s7181_s5 + $0xf0] sm:$0xff]  ;;  %v171_v41 = vld [vmem:[%s7181_s5 + $0x78] sm:$0xff] }
 0x279   :  { %v5032_v15 = vpop.f32.mrf.mxu1 }
 0x27a   :  { %5147 = vmatmul.mubr.msk.f32.vlgmr.msra.gmra.mxu0 %vm2514_vm3, %v2499_v61  ;;  %v2301_v29 = vadd.f32 %v5032_v15, %v2128_v34  ;;  %v2134_v10 = vadd.f32 %v6443_v32, %v1964_v46 }
 0x27b   :  { %v2237_v22 = vpop.f32.mrf.mxu1  ;;  %5171 = vmatpush3.msra.mxu0 %v6345_v23  ;;  %5149 = vmatprep.mubr.f32.mxu0 %v7213_v42  ;;  %v2126_v23 = vadd.f32 %v6411_v27, %v1956_v26  ;;  %v5073_v27 = vpop.f32.mrf.mxu0 }
 0x27c   :  { %v2300_v49 = vadd.f32 %v2237_v22, %v2127_v39  ;;  %5172 = vmatprep.subr.mxu0 %v190_v60  ;;  %v2465_v22 = vadd.f32 %v6492_v54, %v2301_v29  ;;  %v7217_v29 = vld [vmem:[#allocation2_spill] sm:$0xff] }
 0x27d   :  { %v6550_v43 = vpop.f32.mrf.mxu1  ;;  %5173 = vmatpush3.msra.mxu0 %v190_v60  ;;  %v2299_v30 = vadd.f32 %v5029_v55, %v2126_v23  ;;  %v1965_v23 = vadd.f32 %v6497_v47, %v1792_v35  ;;  %v2138_v47 = vadd.f32 %v6463_v57, %v6500_v24  ;;  %v202_v57 = vld [vmem:[%s7181_s5 + $0x170] sm:$0xff] }
 0x27e   :  { %v2464_v63 = vadd.f32 %v2401_v19, %v2300_v49  ;;  %5174 = vmatprep.subr.mxu0 %v189_v2  ;;  %v1787_v49 = vadd.f32 %v6308_v31, %v6439_v3  ;;  %v172_v31 = vld [vmem:[%s7181_s5 + $0x80] sm:$0xff] }
 0x27f   :  { %v2247_v17 = vpop.f32.mrf.mxu1  ;;  %5175 = vmatpush3.msra.mxu0 %v189_v2  ;;  %v2463_v26 = vadd.f32 %v6480_v40, %v2299_v30  ;;  %v201_v30 = vld [vmem:[%s7181_s5 + $0x168] sm:$0xff] }
 0x280   :  { %v6562_v38 = vadd.f32 %v6511_v45, %v2464_v63  ;;  %v2302_v56 = vadd.f32 %v2247_v17, %v2129_v18  ;;  %5176 = vmatprep.subr.mxu0 %v188_v37  ;;  %v2487_v18 = vadd.f32 %v6511_v45, %v2465_v22  ;;  %v2135_v17 = vadd.f32 %v6459_v6, %v1965_v23  ;;  %v7214_v6 = vld [vmem:[#allocation11_spill] sm:$0xff]  ;;  %v168_v22 = vld [vmem:[%s7181_s5 + $0x60] sm:$0xff]  ;;  %v7222_v23 = vld [vmem:[#allocation12_spill] sm:$0xff] }
 0x281   :  { %v5038_v19 = vpop.f32.mrf.mxu1  ;;  %5177 = vmatpush3.msra.mxu0 %v188_v37  ;;  %v2485_v2 = vadd.f32 %v6511_v45, %v2463_v26  ;;  %v1960_v37 = vadd.f32 %v6478_v8, %v1787_v49  ;;  %v7218_v26 = vld [vmem:[#allocation14_spill] sm:$0xff]  ;;  %v7220_v49 = vld [vmem:[#allocation3_spill] sm:$0xff] }
 0x282   :  { %v2502_v4 = vmax.f32 %v6562_v38, 0.0  ;;  %v2466_v25 = vadd.f32 %v2411_v13, %v2302_v56  ;;  %v2305_v55 = vadd.f32 %v5038_v19, %v2132_v50  ;;  %5178 = vmatprep.subr.mxu0 %v187_v16  ;;  %v6583_v13 = vpop.f32.mrf.mxu0  ;;  %v7215_v19 = vld [vmem:[#allocation10_spill] sm:$0xff]  ;;  %v198_v38 = vld [vmem:[%s7181_s5 + $0x150] sm:$0xff] }
 0x283   :  { %v6570_v60 = vpop.f32.mrf.mxu1  ;;  %5179 = vmatpush3.msra.mxu0 %v187_v16  ;;  %v2501_v3 = vmax.f32 %v2485_v2, 0.0  ;;  %v2130_v24 = vadd.f32 %v6427_v52, %v1960_v37  ;;  %v199_v2 = vld [vmem:[%s7181_s5 + $0x158] sm:$0xff] }
 0x284   :  { %v6578_v1 = vadd.f32 %v6511_v45, %v2466_v25  ;;  %v2469_v58 = vadd.f32 %v5070_v33, %v2305_v55  ;;  %5095 = vmatprep.mubr.msk.f32.mxu1 %vm2514_vm3, %v2502_v4  ;;  %5180 = vmatprep.subr.mxu0 %v186_v28  ;;  %v6587_v40 = vpop.f32.mrf.mxu0  ;;  %v7216_v55 = vld [vmem:[#allocation6_spill] sm:$0xff] }
 0x285   :  { %v5041_v15 = vpop.f32.mrf.mxu1  ;;  %5181 = vmatpush3.msra.mxu0 %v186_v28  ;;  %v2303_v56 = vadd.f32 %v6550_v43, %v2130_v24  ;;  %v169_v43 = vld [vmem:[%s7181_s5 + $0x68] sm:$0xff]  ;;  %v183_v24 = vld [vmem:[%s7181_s5 + $0xd8] sm:$0xff] }
 0x286   :  { %v2504_v32 = vmax.f32 %v6578_v1, 0.0  ;;  %v2491_v39 = vadd.f32 %v6511_v45, %v2469_v58  ;;  %v2307_v59 = vadd.f32 %v5041_v15, %v2134_v10  ;;  %5206 = vmatprep.subr.mxu0 %v203_v36  ;;  %v2441_v63 = vpop.f32.mrf.mxu0  ;;  %v1788_v10 = vadd.f32 %v7217_v29, %v7216_v55  ;;  %v181_v1 = vld [vmem:[%s7181_s5 + $0xc8] sm:$0xff]  ;;  %v195_v55 = vld [vmem:[%s7181_s5 + $0x138] sm:$0xff] }
 0x287   :  { %v6590_v33 = vpop.f32.mrf.mxu1  ;;  %v2467_v15 = vadd.f32 %v6506_v48, %v2303_v56  ;;  %v182_v56 = vld [vmem:[%s7181_s5 + $0xd0] sm:$0xff] }
 0x288   :  { %v2507_v7 = vmax.f32 %v2491_v39, 0.0  ;;  %5096 = vmatmul.mubr.msk.f32.gmra.mxu1 %vm2514_vm3, %v2504_v32  ;;  %v2471_v54 = vadd.f32 %v5073_v27, %v2307_v59  ;;  %v5079_v8 = vpop.f32.mrf.mxu0  ;;  %v2296_v27 = vadd.f32 %v6513_v0, %v7214_v6  ;;  %v200_v0 = vld [vmem:[%s7181_s5 + $0x160] sm:$0xff]  ;;  %v1961_v58 = vadd.f32 %v7218_v26, %v1788_v10  ;;  %v197_v6 = vld [vmem:[%s7181_s5 + $0x148] sm:$0xff] }
 0x289   :  { %v6600_v9 = vpop.f32.mrf.mxu1  ;;  %5110 = vmatprep.mubr.f32.mxu1 %v7213_v42  ;;  %v209_v26 = vld [vmem:[%s7181_s5 + $0x1a8] sm:$0xff] }
 0x28a   :  { %5150 = vmatmul.mubr.msk.f32.gmra.mxu0 %vm2514_vm3, %v2507_v7  ;;  %v2493_v12 = vadd.f32 %v6511_v45, %v2471_v54  ;;  %v2451_v59 = vpop.f32.mrf.mxu0  ;;  %v7221_v54 = vld [vmem:[#allocation13_spill] sm:$0xff] }
 0x28b   :  { %v2277_v46 = vpop.f32.mrf.mxu1  ;;  %5182 = vmatprep.mubr.msk.f32.mxu0 %vm2514_vm3, %v2499_v61  ;;  %v1967_v61 = vadd.f32 %v6502_v14, %v1794_v62  ;;  %v170_v14 = vld [vmem:[%s7181_s5 + $0x70] sm:$0xff]  ;;  %v2460_v37 = vadd.f32 %v7221_v54, %v2296_v27  ;;  %v7224_v62 = vld [vmem:[#allocation5_spill] sm:$0xff]  ;;  %v3492_v54 = vld [vmem:[%s7184_s9 + $0xe8] sm:$0xff] }
 0x28c   :  { %5111 = vmatmul.mubr.f32.vlgmr.msra.gmra.mxu1 %v7213_v42  ;;  %v2308_v50 = vadd.f32 %v2277_v46, %v2135_v17  ;;  %v2509_v34 = vmax.f32 %v2493_v12, 0.0  ;;  %v7226_v17 = vld [vmem:[#allocation15_spill] sm:$0xff] }
 0x28d   :  { %5117 = vmatpush3.msra.mxu1 %v6374_v21  ;;  %v5047_v20 = vpop.f32.mrf.mxu1  ;;  %5113 = vmatprep.mubr.f32.mxu1 %v7213_v42  ;;  %v6629_v21 = vmax.f32 %v2487_v18, 0.0  ;;  %v2137_v28 = vadd.f32 %v7215_v19, %v1967_v61  ;;  %v7225_v61 = vld [vmem:[#allocation7_spill] sm:$0xff]  ;;  %v196_v19 = vld [vmem:[%s7181_s5 + $0x140] sm:$0xff] }
 0x28e   :  { %v2311_v51 = vadd.f32 %v5047_v20, %v2138_v47  ;;  %5118 = vmatprep.subr.mxu1 %v172_v31  ;;  %5183 = vmatmul.mubr.msk.f32.vlgmr.msra.gmra.mxu0 %vm2514_vm3, %v2501_v3  ;;  %v2472_v39 = vadd.f32 %v2441_v63, %v2308_v50  ;;  %v7223_v63 = vld [vmem:[#allocation4_spill] sm:$0xff]  ;;  %v2131_v3 = vadd.f32 %v7224_v62, %v1961_v58  ;;  %v3487_v62 = vld [vmem:[%s7184_s9 + $0xc0] sm:$0xff] }
 0x28f   :  { %5119 = vmatpush3.msra.mxu1 %v172_v31  ;;  %5207 = vmatpush3.msra.mxu0 %v203_v36  ;;  %v2287_v52 = vpop.f32.mrf.mxu1  ;;  %v2125_v18 = vadd.f32 %v7223_v63, %v7222_v23  ;;  %v185_v31 = vld [vmem:[%s7181_s5 + $0xe8] sm:$0xff]  ;;  %v2482_v47 = vadd.f32 %v6511_v45, %v2460_v37  ;;  %v3478_v37 = vld [vmem:[%s7184_s9 + $0x78] sm:$0xff]  ;;  %v3477_v23 = vld [vmem:[%s7184_s9 + $0x70] sm:$0xff] }
 0x290   :  { %v2475_v16 = vadd.f32 %v5079_v8, %v2311_v51  ;;  %5120 = vmatprep.subr.mxu1 %v171_v41  ;;  %5185 = vmatprep.mubr.msk.f32.mxu0 %vm2514_vm3, %v2507_v7  ;;  %v2310_v36 = vadd.f32 %v2287_v52, %v2137_v28  ;;  %v7219_v7 = vld [vmem:[#allocation8_spill] sm:$0xff]  ;;  %v184_v8 = vld [vmem:[%s7181_s5 + $0xe0] sm:$0xff]  ;;  %v7227_v28 = vld [vmem:[#allocation9_spill] sm:$0xff] }
 0x291   :  { %5208 = vmatprep.subr.mxu0 %v202_v57  ;;  %5114 = vmatmul.mubr.msk.f32.gmra.mxu1 %vm2514_vm3, %v6629_v21  ;;  %v1790_v35 = vadd.f32 %v7220_v49, %v7219_v7  ;;  %v2298_v20 = vadd.f32 %v6523_v5, %v2125_v18  ;;  %v180_v52 = vld [vmem:[%s7181_s5 + $0xc0] sm:$0xff]  ;;  %v3494_v49 = vld [vmem:[%s7184_s9 + $0xf8] sm:$0xff]  ;;  %v3476_v18 = vld [vmem:[%s7184_s9 + $0x68] sm:$0xff] }
 0x292   :  { %v6647_v25 = vadd.f32 %v6511_v45, %v2475_v16  ;;  %5121 = vmatpush3.msra.mxu1 %v171_v41  ;;  %5209 = vmatpush3.msra.mxu0 %v202_v57  ;;  %v2474_v46 = vadd.f32 %v2451_v59, %v2310_v36  ;;  %v2304_v41 = vadd.f32 %v6570_v60, %v2131_v3  ;;  %v2498_v60 = vmax.f32 %v2482_v47, 0.0  ;;  %v205_v59 = vld [vmem:[%s7181_s5 + $0x188] sm:$0xff]  ;;  %v3490_v63 = vld [vmem:[%s7184_s9 + $0xd8] sm:$0xff]  ;;  %v3473_v3 = vld [vmem:[%s7184_s9 + $0x50] sm:$0xff] }
 0x293   :  { %5122 = vmatprep.subr.mxu1 %v170_v14  ;;  %5210 = vmatprep.subr.mxu0 %v201_v30  ;;  %v1963_v48 = vadd.f32 %v6489_v53, %v1790_v35  ;;  %v2494_v53 = vadd.f32 %v6511_v45, %v2472_v39  ;;  %v2462_v16 = vadd.f32 %v7226_v17, %v2298_v20  ;;  %v3493_v35 = vld [vmem:[%s7184_s9 + $0xf0] sm:$0xff]  ;;  %v3472_v47 = vld [vmem:[%s7184_s9 + $0x48] sm:$0xff] }
 0x294   :  { %5123 = vmatpush3.msra.mxu1 %v170_v14  ;;  %5186 = vmatmul.mubr.msk.f32.gmra.mxu0 %vm2514_vm3, %v2509_v34  ;;  %v2496_v51 = vadd.f32 %v6511_v45, %v2474_v46  ;;  %v3489_v46 = vld [vmem:[%s7184_s9 + $0xd0] sm:$0xff]  ;;  %v3480_v17 = vld [vmem:[%s7184_s9 + $0x88] sm:$0xff] }
 0x295   :  { %5211 = vmatpush3.msra.mxu0 %v201_v30  ;;  %5124 = vmatprep.subr.mxu1 %v169_v43  ;;  %v2133_v12 = vadd.f32 %v7225_v61, %v1963_v48  ;;  %v2510_v57 = vmax.f32 %v2494_v53, 0.0  ;;  %v2468_v30 = vadd.f32 %v6546_v11, %v2304_v41  ;;  %v2484_v11 = vadd.f32 %v6511_v45, %v2462_v16  ;;  %v3491_v48 = vld [vmem:[%s7184_s9 + $0xe0] sm:$0xff]  ;;  %v3486_v53 = vld [vmem:[%s7184_s9 + $0xb8] sm:$0xff]  ;;  %v3485_v20 = vld [vmem:[%s7184_s9 + $0xb0] sm:$0xff] }
 0x296   :  { %5212 = vmatprep.subr.mxu0 %v200_v0  ;;  %5218 = vmatprep.mubr.msk.f32.mxu0 %vm2514_vm3, %v2502_v4  ;;  %v6682_v4 = vadd.f32 %v6511_v45, %v2467_v15  ;;  %v2512_v50 = vmax.f32 %v2496_v51, 0.0  ;;  %v207_v15 = vld [vmem:[%s7181_s5 + $0x198] sm:$0xff]  ;;  %v3484_v41 = vld [vmem:[%s7184_s9 + $0xa8] sm:$0xff]  ;;  %v3469_v51 = vld [vmem:[%s7184_s9 + $0x30] sm:$0xff] }
 0x297   :  { %5125 = vmatpush3.msra.mxu1 %v169_v43  ;;  %5213 = vmatpush3.msra.mxu0 %v200_v0  ;;  %v2306_v14 = vadd.f32 %v6590_v33, %v2133_v12  ;;  %v2490_v33 = vadd.f32 %v6511_v45, %v2468_v30  ;;  %v2500_v27 = vmax.f32 %v2484_v11, 0.0  ;;  %v2136_v43 = vadd.f32 %v7227_v28, %v6495_v44  ;;  %v194_v0 = vld [vmem:[%s7181_s5 + $0x130] sm:$0xff]  ;;  %v193_v44 = vld [vmem:[%s7181_s5 + $0x128] sm:$0xff]  ;;  %v3470_v61 = vld [vmem:[%s7184_s9 + $0x38] sm:$0xff] }
 0x298   :  { %5126 = vmatprep.subr.mxu1 %v168_v22  ;;  %5214 = vmatprep.subr.mxu0 %v199_v2  ;;  %v2505_v5 = vmax.f32 %v6682_v4, 0.0  ;;  %v3474_v4 = vld [vmem:[%s7184_s9 + $0x58] sm:$0xff]  ;;  %v3483_v12 = vld [vmem:[%s7184_s9 + $0xa0] sm:$0xff]  ;;  %v3465_v30 = vld [vmem:[%s7184_s9 + $0x10] sm:$0xff] }
 0x299   :  { %5127 = vmatpush3.msra.mxu1 %v168_v22  ;;  %5128 = vmatprep.mubr.f32.mxu1 %v7213_v42  ;;  %v2506_v34 = vmax.f32 %v2490_v33, 0.0  ;;  %v2309_v10 = vadd.f32 %v6600_v9, %v2136_v43  ;;  %v192_v9 = vld [vmem:[%s7181_s5 + $0x120] sm:$0xff]  ;;  %v3466_v16 = vld [vmem:[%s7184_s9 + $0x18] sm:$0xff] }
 0x29a   :  { %5215 = vmatpush3.msra.mxu0 %v199_v2  ;;  %5129 = vmatmul.mubr.f32.vlgmr.msra.gmra.mxu1 %v7213_v42  ;;  %v204_v22 = vld [vmem:[%s7181_s5 + $0x180] sm:$0xff]  ;;  %v3526_v11 = vld [vmem:[%s7184_s9 + $0x1f8] sm:$0xff] }
 0x29b   :  { %5152 = vmatprep.subr.mxu1 %v185_v31  ;;  %5216 = vmatprep.subr.mxu0 %v198_v38  ;;  %v2473_v36 = vadd.f32 %v6587_v40, %v2309_v10  ;;  %v208_v40 = vld [vmem:[%s7181_s5 + $0x1a0] sm:$0xff] }
 0x29c   :  { %5131 = vmatprep.mubr.msk.f32.mxu1 %vm2514_vm3, %v6629_v21  ;;  %5153 = vmatpush3.msra.mxu1 %v185_v31  ;;  %v4288_v2 = vld.sshfl [vmem:[%s7183_s7] sm:$0x33 pattern:$0x76325410] }
 0x29d   :  { %5217 = vmatpush3.msra.mxu0 %v198_v38  ;;  %5154 = vmatprep.subr.mxu1 %v184_v8  ;;  %v2495_v58 = vadd.f32 %v6511_v45, %v2473_v36  ;;  %v3382_v7 = vcombine.high %v4288_v2, %v4288_v2  ;;  %v3475_v31 = vld [vmem:[%s7184_s9 + $0x60] sm:$0xff]  ;;  %v3488_v38 = vld [vmem:[%s7184_s9 + $0xc8] sm:$0xff] }
 0x29e   :  { %5219 = vmatmul.mubr.msk.f32.vlgmr.msra.gmra.mxu0 %vm2514_vm3, %v2504_v32  ;;  %5155 = vmatpush3.msra.mxu1 %v184_v8  ;;  %v2470_v32 = vadd.f32 %v6583_v13, %v2306_v14  ;;  %v3471_v8 = vld [vmem:[%s7184_s9 + $0x40] sm:$0xff] }
 0x29f   :  { %5221 = vmatprep.mubr.msk.f32.mxu0 %vm2514_vm3, %v2510_v57  ;;  %5132 = vmatmul.mubr.msk.f32.gmra.mxu1 %vm2514_vm3, %v2505_v5  ;;  %v2511_v39 = vmax.f32 %v2495_v58, 0.0  ;;  %v3468_v57 = vld [vmem:[%s7184_s9 + $0x28] sm:$0xff]  ;;  %v3479_v14 = vld [vmem:[%s7184_s9 + $0x80] sm:$0xff] }
 0x2a0   :  { %5156 = vmatprep.subr.mxu1 %v183_v24  ;;  %5164 = vmatprep.mubr.msk.f32.mxu1 %vm2514_vm3, %v2498_v60  ;;  %v2492_v13 = vadd.f32 %v6511_v45, %v2470_v32  ;;  %v206_v45 = vld [vmem:[%s7181_s5 + $0x190] sm:$0xff]  ;;  %v3467_v60 = vld [vmem:[%s7184_s9 + $0x20] sm:$0xff]  ;;  %v5094_v32 = vpop.f32.mrf.mxu1 }
 0x2a1   :  { %5157 = vmatpush3.msra.mxu1 %v183_v24  ;;  %4289 = vmatprep.subr.msk.mxu0 %vm3387_vm4, %v3382_v7  ;;  %v3481_v24 = vld [vmem:[%s7184_s9 + $0x90] sm:$0xff] }
 0x2a2   :  { %5158 = vmatprep.subr.mxu1 %v182_v56  ;;  %5222 = vmatmul.mubr.msk.f32.gmra.mxu0 %vm2514_vm3, %v2512_v50  ;;  %v2508_v29 = vmax.f32 %v2492_v13, 0.0  ;;  %v3510_v50 = vld [vmem:[%s7184_s9 + $0x178] sm:$0xff]  ;;  %v2589_v33 = vpop.f32.mrf.mxu1 }
 0x2a3   :  { %5159 = vmatpush3.msra.mxu1 %v182_v56  ;;  %3456 = vmatprep.mubr.f32.mxu0 %v7213_v42  ;;  %v3464_v56 = vld [vmem:[%s7184_s9 + $0x8] sm:$0xff] }
 0x2a4   :  { %5160 = vmatprep.subr.mxu1 %v181_v1  ;;  %4290 = vmatpush1.msk.msra.mxu0 %vm3387_vm4, %v4288_v2 }
 0x2a5   :  { %5161 = vmatpush3.msra.mxu1 %v181_v1  ;;  %3621 = vmatprep.subr.mxu0 %v3478_v37  ;;  %v3463_v1 = vld [vmem:[%s7184_s9] sm:$0xff] }
 0x2a6   :  { %5162 = vmatprep.subr.mxu1 %v180_v52 }
 0x2a7   :  { %5163 = vmatpush3.msra.mxu1 %v180_v52 }
 0x2a8   :  { %5165 = vmatmul.mubr.msk.f32.vlgmr.msra.gmra.mxu1 %vm2514_vm3, %v2500_v27  ;;  %5188 = vmatprep.subr.mxu1 %v197_v6 }
 0x2a9   :  { %5167 = vmatprep.mubr.msk.f32.mxu1 %vm2514_vm3, %v2506_v34  ;;  %5189 = vmatpush3.msra.mxu1 %v197_v6 }
 0x2aa   :  { %5190 = vmatprep.subr.mxu1 %v196_v19 }
 0x2ab   :  { %5191 = vmatpush3.msra.mxu1 %v196_v19 }
 0x2ac   :  { %5168 = vmatmul.mubr.msk.f32.gmra.mxu1 %vm2514_vm3, %v2508_v29  ;;  %5192 = vmatprep.subr.mxu1 %v195_v55 }
 0x2ad   :  { %5193 = vmatpush3.msra.mxu1 %v195_v55  ;;  %5200 = vmatprep.mubr.f32.mxu1 %v7213_v42 }
 0x2ae   :  { %5194 = vmatprep.subr.mxu1 %v194_v0 }
 0x2af   :  { %5195 = vmatpush3.msra.mxu1 %v194_v0 }
 0x2b0   :  { %5196 = vmatprep.subr.mxu1 %v193_v44 }
 0x2b1   :  { %5197 = vmatpush3.msra.mxu1 %v193_v44 }
 0x2b2   :  { %5198 = vmatprep.subr.mxu1 %v192_v9 }
 0x2b3   :  { %5199 = vmatpush3.msra.mxu1 %v192_v9 }
 0x2b4   :  { %5201 = vmatmul.mubr.msk.f32.vlgmr.msra.gmra.mxu1 %vm2514_vm3, %v6629_v21  ;;  %5224 = vmatprep.subr.mxu1 %v209_v26 }
 0x2b5   :  { %5225 = vmatpush3.msra.mxu1 %v209_v26  ;;  %5203 = vmatprep.mubr.f32.mxu1 %v7213_v42 }
 0x2b6   :  { %5226 = vmatprep.subr.mxu1 %v208_v40 }
 0x2b7   :  { %5227 = vmatpush3.msra.mxu1 %v208_v40 }
 0x2b8   :  { %5204 = vmatmul.mubr.msk.f32.gmra.mxu1 %vm2514_vm3, %v2511_v39  ;;  %5228 = vmatprep.subr.mxu1 %v207_v15 }
 0x2b9   :  { %5229 = vmatpush3.msra.mxu1 %v207_v15  ;;  %5236 = vmatprep.mubr.msk.f32.mxu1 %vm2514_vm3, %v6629_v21  ;;  %v2513_v21 = vmax.f32 %v6647_v25, 0.0  ;;  %v3372_v25 = vld [vmem:[%s7185_s8] sm:$0xff] }
 0x2ba   :  { %5230 = vmatprep.subr.mxu1 %v206_v45  ;;  %4291 = vmatmul.mubr.msk.f32.vlgmr.msra.gmra.mxu0 %vm3383_vm5, %v3372_v25 }
 0x2bb   :  { %5231 = vmatpush3.msra.mxu1 %v206_v45  ;;  %3622 = vmatpush1.msra.mxu0 %v3477_v23 }
 0x2bc   :  { %5232 = vmatprep.subr.mxu1 %v205_v59  ;;  %3623 = vmatprep.subr.mxu0 %v3476_v18 }
 0x2bd   :  { %5233 = vmatpush3.msra.mxu1 %v205_v59  ;;  %3624 = vmatpush1.msra.mxu0 %v3475_v31 }
 0x2be   :  { %5234 = vmatprep.subr.mxu1 %v204_v22  ;;  %3625 = vmatprep.subr.mxu0 %v3474_v4 }
 0x2bf   :  { %5235 = vmatpush3.msra.mxu1 %v204_v22  ;;  %3626 = vmatpush1.msra.mxu0 %v3473_v3 }
 0x2c0   :  { %5237 = vmatmul.mubr.msk.f32.vlgmr.msra.gmra.mxu1 %vm2514_vm3, %v2505_v5  ;;  %3547 = vmatprep.subr.mxu1 %v3494_v49  ;;  %v3482_v5 = vld [vmem:[%s7184_s9 + $0x98] sm:$0xff] }
 0x2c1   :  { %5239 = vmatprep.mubr.msk.f32.mxu1 %vm2514_vm3, %v2511_v39  ;;  %3548 = vmatpush1.msra.mxu1 %v3493_v35 }
 0x2c2   :  { %3549 = vmatprep.subr.mxu1 %v3492_v54  ;;  %3627 = vmatprep.subr.mxu0 %v3472_v47 }
 0x2c3   :  { %3550 = vmatpush1.msra.mxu1 %v3491_v48  ;;  %3628 = vmatpush1.msra.mxu0 %v3471_v8 }
 0x2c4   :  { %5240 = vmatmul.mubr.msk.f32.gmra.mxu1 %vm2514_vm3, %v2513_v21  ;;  %3551 = vmatprep.subr.mxu1 %v3490_v63 }
 0x2c5   :  { %3595 = vmatprep.mubr.f32.mxu1 %v7213_v42  ;;  %3552 = vmatpush1.msra.mxu1 %v3489_v46 }
 0x2c6   :  { %3553 = vmatprep.subr.mxu1 %v3488_v38  ;;  %3629 = vmatprep.subr.mxu0 %v3470_v61  ;;  %v6899_v61 = vld [vmem:[%s7186_s6] ss:$0 sm:$0xff] }
 0x2c7   :  { %3554 = vmatpush1.msra.mxu1 %v3487_v62  ;;  %3630 = vmatpush1.msra.mxu0 %v3469_v51 }
 0x2c8   :  { %3555 = vmatprep.subr.mxu1 %v3486_v53  ;;  %3631 = vmatprep.subr.mxu0 %v3468_v57 }
 0x2c9   :  { %3556 = vmatpush1.msra.mxu1 %v3485_v20  ;;  %3632 = vmatpush1.msra.mxu0 %v3467_v60 }
 0x2ca   :  { %3557 = vmatprep.subr.mxu1 %v3484_v41  ;;  %3633 = vmatprep.subr.mxu0 %v3466_v16 }
 0x2cb   :  { %3558 = vmatpush1.msra.mxu1 %v3483_v12  ;;  %3634 = vmatpush1.msra.mxu0 %v3465_v30 }
 0x2cc   :  { %3559 = vmatprep.subr.mxu1 %v3482_v5  ;;  %3635 = vmatprep.subr.mxu0 %v3464_v56 }
 0x2cd   :  { %3560 = vmatpush1.msra.mxu1 %v3481_v24  ;;  %3636 = vmatpush1.msra.mxu0 %v3463_v1  ;;  %v3509_v1 = vld [vmem:[%s7184_s9 + $0x170] sm:$0xff] }
 0x2ce   :  { %3561 = vmatprep.subr.mxu1 %v3480_v17  ;;  %3669 = vmatprep.mubr.f32.mxu0 %v7213_v42 }
 0x2cf   :  { %3562 = vmatpush1.msra.mxu1 %v3479_v14  ;;  %3771 = vmatprep.subr.mxu0 %v3526_v11 }
 0x2d0   :  { %3695 = vmatprep.subr.mxu1 %v3510_v50 }
 0x33a   :  { %v5148_v55 = vpop.f32.mrf.mxu0 }
 0x33c   :  { %v2860_v10 = vpop.f32.mrf.mxu0 }
 0x348   :  { %v5097_v52 = vpop.f32.mrf.mxu1 }
 0x34a   :  { %v2599_v6 = vpop.f32.mrf.mxu1  ;;  %v5151_v0 = vpop.f32.mrf.mxu0 }
 0x34c   :  { %v5112_v27 = vpop.f32.mrf.mxu1  ;;  %v2870_v9 = vpop.f32.mrf.mxu0 }
 0x34d   :  { %v2683_v58 = vadd.f32 %v5112_v27, %v5094_v32 }
 0x34e   :  { %v2677_v13 = vpop.f32.mrf.mxu1  ;;  %v5184_v40 = vpop.f32.mrf.mxu0 }
 0x34f   :  { %v2678_v39 = vadd.f32 %v2677_v13, %v2589_v33  ;;  %v3508_v33 = vld [vmem:[%s7184_s9 + $0x168] sm:$0xff]  ;;  %v3507_v13 = vld [vmem:[%s7184_s9 + $0x160] sm:$0xff] }
 0x350   :  { %v3056_v22 = vpop.f32.mrf.mxu0 }
 0x351   :  { %v5115_v34 = vpop.f32.mrf.mxu1 }
 0x352   :  { %v2693_v46 = vadd.f32 %v5115_v34, %v5097_v52  ;;  %v3525_v34 = vld [vmem:[%s7184_s9 + $0x1f0] sm:$0xff] }
 0x353   :  { %v2687_v19 = vpop.f32.mrf.mxu1 }
 0x354   :  { %v5187_v35 = vpop.f32.mrf.mxu0  ;;  %v2688_v48 = vadd.f32 %v2687_v19, %v2599_v6  ;;  %v3506_v19 = vld [vmem:[%s7184_s9 + $0x158] sm:$0xff] }
 0x356   :  { %v3066_v63 = vpop.f32.mrf.mxu0 }
 0x35a   :  { %v5130_v28 = vpop.f32.mrf.mxu1 }
 0x35b   :  { %v2785_v45 = vadd.f32 %v5130_v28, %v2683_v58  ;;  %v3524_v28 = vld [vmem:[%s7184_s9 + $0x1e8] sm:$0xff]  ;;  %v3521_v58 = vld [vmem:[%s7184_s9 + $0x1d0] sm:$0xff] }
 0x35c   :  { %v2765_v43 = vpop.f32.mrf.mxu1 }
 0x35d   :  { %v2784_v59 = vadd.f32 %v2765_v43, %v2678_v39  ;;  %v2880_v2 = vadd.f32 %v5148_v55, %v2785_v45  ;;  %v3505_v55 = vld [vmem:[%s7184_s9 + $0x150] sm:$0xff] }
 0x35e   :  { %v5220_v62 = vpop.f32.mrf.mxu0 }
 0x35f   :  { %v5133_v29 = vpop.f32.mrf.mxu1  ;;  %v2879_v25 = vadd.f32 %v2860_v10, %v2784_v59  ;;  %v3501_v59 = vld [vmem:[%s7184_s9 + $0x130] sm:$0xff] }
 0x360   :  { %v2787_v3 = vadd.f32 %v5133_v29, %v2693_v46  ;;  %v3243_v41 = vpop.f32.mrf.mxu0  ;;  %v3523_v29 = vld [vmem:[%s7184_s9 + $0x1e0] sm:$0xff] }
 0x361   :  { %v2775_v44 = vpop.f32.mrf.mxu1 }
 0x362   :  { %v2786_v31 = vadd.f32 %v2775_v44, %v2688_v48  ;;  %v2882_v51 = vadd.f32 %v5151_v0, %v2787_v3  ;;  %v5223_v11 = vpop.f32.mrf.mxu0  ;;  %v3504_v44 = vld [vmem:[%s7184_s9 + $0x148] sm:$0xff]  ;;  %v3497_v48 = vld [vmem:[%s7184_s9 + $0x110] sm:$0xff]  ;;  %v3511_v3 = vld [vmem:[%s7184_s9 + $0x180] sm:$0xff] }
 0x364   :  { %v2881_v20 = vadd.f32 %v2870_v9, %v2786_v31  ;;  %v3253_v10 = vpop.f32.mrf.mxu0  ;;  %v3495_v31 = vld [vmem:[%s7184_s9 + $0x100] sm:$0xff] }
 0x368   :  { %v5166_v36 = vpop.f32.mrf.mxu1 }
 0x369   :  { %v2981_v49 = vadd.f32 %v5166_v36, %v2880_v2  ;;  %v3522_v36 = vld [vmem:[%s7184_s9 + $0x1d8] sm:$0xff] }
 0x36a   :  { %v2961_v26 = vpop.f32.mrf.mxu1  ;;  %v3518_v2 = vld [vmem:[%s7184_s9 + $0x1b8] sm:$0xff] }
 0x36b   :  { %v2980_v37 = vadd.f32 %v2961_v26, %v2879_v25  ;;  %v3076_v23 = vadd.f32 %v5184_v40, %v2981_v49  ;;  %v3503_v26 = vld [vmem:[%s7184_s9 + $0x140] sm:$0xff]  ;;  %v3502_v40 = vld [vmem:[%s7184_s9 + $0x138] sm:$0xff]  ;;  %v3517_v25 = vld [vmem:[%s7184_s9 + $0x1b0] sm:$0xff] }
 0x36c   :  { %v5169_v15 = vpop.f32.mrf.mxu1  ;;  %v3499_v49 = vld [vmem:[%s7184_s9 + $0x120] sm:$0xff] }
 0x36d   :  { %v3075_v4 = vadd.f32 %v3056_v22, %v2980_v37  ;;  %v2983_v17 = vadd.f32 %v5169_v15, %v2882_v51  ;;  %v3520_v15 = vld [vmem:[%s7184_s9 + $0x1c8] sm:$0xff]  ;;  %v3519_v22 = vld [vmem:[%s7184_s9 + $0x1c0] sm:$0xff] }
 0x36e   :  { %v2971_v21 = vpop.f32.mrf.mxu1  ;;  %v3874_v51 = vld [vmem:[%s7187_s11 + $0xe0] sm:$0xff] }
 0x36f   :  { %v2982_v5 = vadd.f32 %v2971_v21, %v2881_v20  ;;  %v3078_v52 = vadd.f32 %v5187_v35, %v2983_v17  ;;  %v3500_v21 = vld [vmem:[%s7184_s9 + $0x128] sm:$0xff]  ;;  %v3498_v35 = vld [vmem:[%s7184_s9 + $0x118] sm:$0xff]  ;;  %v3856_v17 = vld [vmem:[%s7187_s11 + $0x50] sm:$0xff] }
 0x370   :  { %v3861_v20 = vld [vmem:[%s7187_s11 + $0x78] sm:$0xff] }
 0x371   :  { %v3077_v30 = vadd.f32 %v3066_v63, %v2982_v5  ;;  %v3496_v63 = vld [vmem:[%s7184_s9 + $0x108] sm:$0xff]  ;;  %v3858_v5 = vld [vmem:[%s7187_s11 + $0x60] sm:$0xff] }
 0x374   :  { %v5202_v7 = vpop.f32.mrf.mxu1 }
 0x375   :  { %v3168_v38 = vadd.f32 %v5202_v7, %v3076_v23  ;;  %v3515_v23 = vld [vmem:[%s7184_s9 + $0x1a0] sm:$0xff] }
 0x376   :  { %v3148_v54 = vpop.f32.mrf.mxu1 }
 0x377   :  { %v3167_v53 = vadd.f32 %v3148_v54, %v3075_v4  ;;  %v3263_v8 = vadd.f32 %v5220_v62, %v3168_v38  ;;  %v3516_v54 = vld [vmem:[%s7184_s9 + $0x1a8] sm:$0xff]  ;;  %v3513_v38 = vld [vmem:[%s7184_s9 + $0x190] sm:$0xff] }
 0x378   :  { %v5205_v18 = vpop.f32.mrf.mxu1  ;;  %v3512_v4 = vld [vmem:[%s7184_s9 + $0x188] sm:$0xff] }
 0x379   :  { %v3262_v24 = vadd.f32 %v3243_v41, %v3167_v53  ;;  %v3170_v43 = vadd.f32 %v5205_v18, %v3078_v52  ;;  %v3514_v18 = vld [vmem:[%s7184_s9 + $0x198] sm:$0xff]  ;;  %v3860_v41 = vld [vmem:[%s7187_s11 + $0x70] sm:$0xff]  ;;  %v3851_v52 = vld [vmem:[%s7187_s11 + $0x28] sm:$0xff] }
 0x37a   :  { %v3158_v47 = vpop.f32.mrf.mxu1  ;;  %v3877_v53 = vld [vmem:[%s7187_s11 + $0xf8] sm:$0xff] }
 0x37b   :  { %v3169_v6 = vadd.f32 %v3158_v47, %v3077_v30  ;;  %v3265_v39 = vadd.f32 %v5223_v11, %v3170_v43  ;;  %v3870_v30 = vld [vmem:[%s7187_s11 + $0xc0] sm:$0xff]  ;;  %v3868_v11 = vld [vmem:[%s7187_s11 + $0xb0] sm:$0xff]  ;;  %v3863_v43 = vld [vmem:[%s7187_s11 + $0x88] sm:$0xff] }
 0x37d   :  { %v3264_v9 = vadd.f32 %v3253_v10, %v3169_v6  ;;  %v3866_v6 = vld [vmem:[%s7187_s11 + $0xa0] sm:$0xff] }
 0x37e   :  { %v3846_v10 = vld [vmem:[%s7187_s11] sm:$0xff] }
 0x380   :  { %v5238_v12 = vpop.f32.mrf.mxu1 }
 0x381   :  { %v3355_v57 = vadd.f32 %v5238_v12, %v3263_v8  ;;  %v3876_v8 = vld [vmem:[%s7187_s11 + $0xf0] sm:$0xff]  ;;  %v3859_v12 = vld [vmem:[%s7187_s11 + $0x68] sm:$0xff] }
 0x382   :  { %v3335_v60 = vpop.f32.mrf.mxu1 }
 0x383   :  { %v3365_v16 = vadd.f32 %v6899_v61, %v3355_v57  ;;  %v3354_v14 = vadd.f32 %v3335_v60, %v3262_v24  ;;  %v3873_v57 = vld [vmem:[%s7187_s11 + $0xd8] sm:$0xff]  ;;  %v3872_v60 = vld [vmem:[%s7187_s11 + $0xd0] sm:$0xff] }
 0x384   :  { %v5241_v32 = vpop.f32.mrf.mxu1  ;;  %v3857_v24 = vld [vmem:[%s7187_s11 + $0x58] sm:$0xff] }
 0x385   :  { %v3369_v56 = vmax.f32 %v3365_v16, 0.0  ;;  %v3364_v50 = vadd.f32 %v6899_v61, %v3354_v14  ;;  %v3357_v7 = vadd.f32 %v5241_v32, %v3265_v39  ;;  %v3871_v16 = vld [vmem:[%s7187_s11 + $0xc8] sm:$0xff]  ;;  %v3852_v32 = vld [vmem:[%s7187_s11 + $0x30] sm:$0xff]  ;;  %v3963_v39 = vld [vmem:[%s7188_s13 + $0x38] sm:$0xff] }
 0x386   :  { %v3345_v0 = vpop.f32.mrf.mxu1  ;;  %v3855_v14 = vld [vmem:[%s7187_s11 + $0x48] sm:$0xff] }
 0x387   :  { %v3368_v27 = vmax.f32 %v3364_v50, 0.0  ;;  %4292 = vmatmul.mubr.msk.f32.vlgmr.msra.gmra.mxu1 %vm3527_vm6, %v3369_v56  ;;  %v3356_v45 = vadd.f32 %v3345_v0, %v3264_v9  ;;  %v3367_v46 = vadd.f32 %v6899_v61, %v3357_v7  ;;  %v3854_v56 = vld [vmem:[%s7187_s11 + $0x40] sm:$0xff]  ;;  %v3869_v50 = vld [vmem:[%s7187_s11 + $0xb8] sm:$0xff] }
 0x388   :  { %3696 = vmatpush1.msra.mxu1 %v3509_v1  ;;  %3743 = vmatprep.mubr.f32.mxu1 %v7213_v42  ;;  %v3853_v1 = vld [vmem:[%s7187_s11 + $0x38] sm:$0xff]  ;;  %v3968_v9 = vld [vmem:[%s7188_s13 + $0x60] sm:$0xff] }
 0x389   :  { %3697 = vmatprep.subr.mxu1 %v3508_v33  ;;  %4293 = vmatmul.mubr.msk.f32.vlgmr.msra.gmra.mxu0 %vm3527_vm6, %v3368_v27  ;;  %v3366_v37 = vadd.f32 %v6899_v61, %v3356_v45  ;;  %v3371_v47 = vmax.f32 %v3367_v46, 0.0  ;;  %v3875_v61 = vld [vmem:[%s7187_s11 + $0xe8] sm:$0xff]  ;;  %v3850_v27 = vld [vmem:[%s7187_s11 + $0x20] sm:$0xff]  ;;  %v3971_v0 = vld [vmem:[%s7188_s13 + $0x78] sm:$0xff] }
 0x38a   :  { %3698 = vmatpush1.msra.mxu1 %v3507_v13  ;;  %3772 = vmatpush1.msra.mxu0 %v3525_v34  ;;  %v3867_v33 = vld [vmem:[%s7187_s11 + $0xa8] sm:$0xff]  ;;  %v3865_v13 = vld [vmem:[%s7187_s11 + $0x98] sm:$0xff]  ;;  %v3962_v45 = vld [vmem:[%s7188_s13 + $0x30] sm:$0xff] }
 0x38b   :  { %3699 = vmatprep.subr.mxu1 %v3506_v19  ;;  %3773 = vmatprep.subr.mxu0 %v3524_v28  ;;  %v3370_v62 = vmax.f32 %v3366_v37, 0.0  ;;  %v3849_v34 = vld [vmem:[%s7187_s11 + $0x18] sm:$0xff]  ;;  %v3864_v19 = vld [vmem:[%s7187_s11 + $0x90] sm:$0xff]  ;;  %v3830_v46 = vld [vmem:[%s7189_s10] sm:$0x3] }
 0x38c   :  { %3700 = vmatpush1.msra.mxu1 %v3505_v55  ;;  %3774 = vmatpush1.msra.mxu0 %v3523_v29  ;;  %v3848_v28 = vld [vmem:[%s7187_s11 + $0x10] sm:$0xff]  ;;  %v3847_v55 = vld [vmem:[%s7187_s11 + $0x8] sm:$0xff]  ;;  %v3862_v29 = vld [vmem:[%s7187_s11 + $0x80] sm:$0xff] }
 0x38d   :  { %3701 = vmatprep.subr.mxu1 %v3504_v44  ;;  %3775 = vmatprep.subr.mxu0 %v3522_v36  ;;  %v3970_v44 = vld [vmem:[%s7188_s13 + $0x70] sm:$0xff]  ;;  %v3969_v36 = vld [vmem:[%s7188_s13 + $0x68] sm:$0xff] }
 0x38e   :  { %3702 = vmatpush1.msra.mxu1 %v3503_v26  ;;  %3776 = vmatpush1.msra.mxu0 %v3521_v58  ;;  %v3967_v26 = vld [vmem:[%s7188_s13 + $0x58] sm:$0xff]  ;;  %v3966_v58 = vld [vmem:[%s7188_s13 + $0x50] sm:$0xff] }
 0x38f   :  { %3703 = vmatprep.subr.mxu1 %v3502_v40  ;;  %3777 = vmatprep.subr.mxu0 %v3520_v15  ;;  %v3965_v40 = vld [vmem:[%s7188_s13 + $0x48] sm:$0xff]  ;;  %v3964_v15 = vld [vmem:[%s7188_s13 + $0x40] sm:$0xff] }
 0x390   :  { %3704 = vmatpush1.msra.mxu1 %v3501_v59  ;;  %3778 = vmatpush1.msra.mxu0 %v3519_v22  ;;  %v3961_v59 = vld [vmem:[%s7188_s13 + $0x28] sm:$0xff]  ;;  %v3458_v22 = vpop.f32.mrf.mxu0 }
 0x391   :  { %3705 = vmatprep.subr.mxu1 %v3500_v21  ;;  %3779 = vmatprep.subr.mxu0 %v3518_v2  ;;  %v3832_v2 = vlaneseq }
 0x392   :  { %3706 = vmatpush1.msra.mxu1 %v3499_v49  ;;  %3780 = vmatpush1.msra.mxu0 %v3517_v25  ;;  %v3460_v21 = vpop.f32.mrf.mxu0 }
 0x393   :  { %3707 = vmatprep.subr.mxu1 %v3498_v35  ;;  %3781 = vmatprep.subr.mxu0 %v3516_v54  ;;  %v3833_v25 = vshrl.u32 %v3832_v2, 7 }
 0x394   :  { %3708 = vmatpush1.msra.mxu1 %v3497_v48  ;;  %3782 = vmatpush1.msra.mxu0 %v3515_v23 }
 0x395   :  { %3709 = vmatprep.subr.mxu1 %v3496_v63  ;;  %3783 = vmatprep.subr.mxu0 %v3514_v18  ;;  %v3834_v23 = vsub.s32 0, %v3833_v25 }
 0x396   :  { %3710 = vmatpush1.msra.mxu1 %v3495_v31  ;;  %3784 = vmatpush1.msra.mxu0 %v3513_v38  ;;  %v3838_v31 = vsub.s32 1, %v3833_v25 }
 0x397   :  { %4294 = vmatmul.mubr.msk.f32.vlgmr.msra.gmra.mxu1 %vm3527_vm6, %v3370_v62  ;;  %3785 = vmatprep.subr.mxu0 %v3512_v4 }
 0x398   :  { %3786 = vmatpush1.msra.mxu0 %v3511_v3  ;;  %3819 = vmatprep.mubr.f32.mxu0 %v7213_v42 }
 0x399   :  { %4295 = vmatmul.mubr.msk.f32.vlgmr.msra.gmra.mxu0 %vm3527_vm6, %v3371_v47  ;;  %4636 = vmatprep.subr.mxu1 %v3877_v53  ;;  %v3835_v53 = vrot.slane %v3830_v46, %v3834_v23 }
 0x39a   :  { %4637 = vmatpush3.msra.mxu1 %v3861_v20  ;;  %5242 = vmatprep.subr.mxu0 %v7213_v42 }
 0x39b   :  { %4638 = vmatprep.subr.mxu1 %v3876_v8  ;;  %5243 = vmatpush3.msra.mxu0 %v3971_v0 }
 0x39c   :  { %4639 = vmatpush3.msra.mxu1 %v3860_v41  ;;  %5244 = vmatprep.subr.mxu0 %v7213_v42  ;;  %v3839_v41 = vrot.slane %v3830_v46, %v3838_v31 }
 0x39d   :  { %4640 = vmatprep.subr.mxu1 %v3875_v61  ;;  %5245 = vmatpush3.msra.mxu0 %v3970_v44 }
 0x39e   :  { %4641 = vmatpush3.msra.mxu1 %v3859_v12  ;;  %5246 = vmatprep.subr.mxu0 %v7213_v42 }
 0x39f   :  { %4642 = vmatprep.subr.mxu1 %v3874_v51  ;;  %5247 = vmatpush3.msra.mxu0 %v3969_v36  ;;  %v4065_v36 = vand.u32 127, %v3832_v2 }
 0x3a0   :  { %4643 = vmatpush3.msra.mxu1 %v3858_v5  ;;  %5248 = vmatprep.subr.mxu0 %v7213_v42 }
 0x3a1   :  { %4644 = vmatprep.subr.mxu1 %v3873_v57  ;;  %5249 = vmatpush3.msra.mxu0 %v3968_v9  ;;  %vm4066_vm9 = vcmp.ge.s32.totalorder %v4065_v36, 1 }
 0x3a2   :  { %4645 = vmatpush3.msra.mxu1 %v3857_v24  ;;  %5250 = vmatprep.subr.mxu0 %v7213_v42  ;;  %v3960_v24 = vld [vmem:[%s7188_s13 + $0x20] sm:$0xff] }
 0x3a3   :  { %4646 = vmatprep.subr.mxu1 %v3872_v60  ;;  %5251 = vmatpush3.msra.mxu0 %v3967_v26  ;;  %v3959_v60 = vld [vmem:[%s7188_s13 + $0x18] sm:$0xff] }
 0x3a4   :  { %4647 = vmatpush3.msra.mxu1 %v3856_v17  ;;  %5252 = vmatprep.subr.mxu0 %v7213_v42  ;;  %v3958_v17 = vld [vmem:[%s7188_s13 + $0x10] sm:$0xff] }
 0x3a5   :  { %4648 = vmatprep.subr.mxu1 %v3871_v16  ;;  %5253 = vmatpush3.msra.mxu0 %v3966_v58  ;;  %v3957_v16 = vld [vmem:[%s7188_s13 + $0x8] sm:$0xff] }
 0x3a6   :  { %4649 = vmatpush3.msra.mxu1 %v3855_v14  ;;  %5254 = vmatprep.subr.mxu0 %v7213_v42  ;;  %v3956_v14 = vld [vmem:[%s7188_s13] sm:$0xff] }
 0x3a7   :  { %4650 = vmatprep.subr.mxu1 %v3870_v30  ;;  %5255 = vmatpush3.msra.mxu0 %v3965_v40 }
 0x3a8   :  { %4651 = vmatpush3.msra.mxu1 %v3854_v56  ;;  %5256 = vmatprep.subr.mxu0 %v7213_v42  ;;  %v4296_v56 = vld [vmem:[%s7190_s12] ss:$0 sm:$0xff] }
 0x3a9   :  { %4652 = vmatprep.subr.mxu1 %v3869_v50  ;;  %5257 = vmatpush3.msra.mxu0 %v3964_v15 }
 0x3aa   :  { %4653 = vmatpush3.msra.mxu1 %v3853_v1  ;;  %5258 = vmatprep.subr.mxu0 %v7213_v42 }
 0x3ab   :  { %4654 = vmatprep.subr.mxu1 %v3868_v11  ;;  %5259 = vmatpush3.msra.mxu0 %v3963_v39 }
 0x3ac   :  { %4655 = vmatpush3.msra.mxu1 %v3852_v32  ;;  %5260 = vmatprep.subr.mxu0 %v7213_v42 }
 0x3ad   :  { %4656 = vmatprep.subr.mxu1 %v3867_v33  ;;  %5261 = vmatpush3.msra.mxu0 %v3962_v45  ;;  %v4297_v33 = vld [vmem:[%s7191_s14] ss:$0 sm:$0xff] }
 0x3ae   :  { %4657 = vmatpush3.msra.mxu1 %v3851_v52  ;;  %5262 = vmatprep.subr.mxu0 %v7213_v42 }
 0x3af   :  { %4658 = vmatprep.subr.mxu1 %v3866_v6  ;;  %5263 = vmatpush3.msra.mxu0 %v3961_v59 }
 0x3b0   :  { %4659 = vmatpush3.msra.mxu1 %v3850_v27  ;;  %5264 = vmatprep.subr.mxu0 %v7213_v42 }
 0x3b1   :  { %4660 = vmatprep.subr.mxu1 %v3865_v13  ;;  %5265 = vmatpush3.msra.mxu0 %v3960_v24 }
 0x3b2   :  { %4661 = vmatpush3.msra.mxu1 %v3849_v34  ;;  %5266 = vmatprep.subr.mxu0 %v7213_v42 }
 0x3b3   :  { %4662 = vmatprep.subr.mxu1 %v3864_v19  ;;  %5267 = vmatpush3.msra.mxu0 %v3959_v60 }
 0x3b4   :  { %4663 = vmatpush3.msra.mxu1 %v3848_v28  ;;  %5268 = vmatprep.subr.mxu0 %v7213_v42 }
 0x3b5   :  { %4664 = vmatprep.subr.mxu1 %v3863_v43  ;;  %5269 = vmatpush3.msra.mxu0 %v3958_v17 }
 0x3b6   :  { %4665 = vmatpush3.msra.mxu1 %v3847_v55  ;;  %5270 = vmatprep.subr.mxu0 %v7213_v42 }
 0x3b7   :  { %4666 = vmatprep.subr.mxu1 %v3862_v29  ;;  %5271 = vmatpush3.msra.mxu0 %v3957_v16 }
 0x3b8   :  { %4667 = vmatpush3.msra.mxu1 %v3846_v10  ;;  %5272 = vmatprep.subr.mxu0 %v7213_v42 }
 0x3b9   :  { %5273 = vmatpush3.msra.mxu0 %v3956_v14  ;;  %5274 = vmatprep.mubr.msk.f32.mxu0 %vm5284_vm7, %v7213_v42 }
 0x447   :  { %v3597_v7 = vpop.f32.mrf.mxu1 }
 0x449   :  { %v3671_v49 = vpop.f32.mrf.mxu0  ;;  %v3599_v35 = vpop.f32.mrf.mxu1 }
 0x44a   :  { %v3672_v37 = vadd.f32 %v3671_v49, %v3597_v7 }
 0x44b   :  { %v3673_v54 = vpop.f32.mrf.mxu0 }
 0x44c   :  { %v3674_v63 = vadd.f32 %v3673_v54, %v3599_v35 }
 0x457   :  { %v3745_v48 = vpop.f32.mrf.mxu1 }
 0x458   :  { %v3750_v18 = vadd.f32 %v3745_v48, %v3672_v37 }
 0x459   :  { %v3747_v38 = vpop.f32.mrf.mxu1  ;;  %v3821_v4 = vpop.f32.mrf.mxu0 }
 0x45a   :  { %v3751_v62 = vadd.f32 %v3747_v38, %v3674_v63  ;;  %v3826_v3 = vadd.f32 %v3821_v4, %v3750_v18 }
 0x45b   :  { %v3823_v47 = vpop.f32.mrf.mxu0 }
 0x45c   :  { %v3828_v20 = vadd.f32 %v3826_v3, %v3458_v22  ;;  %v3827_v8 = vadd.f32 %v3823_v47, %v3751_v62 }
 0x45e   :  { %v3829_v61 = vadd.f32 %v3827_v8, %v3460_v21  ;;  %v3842_v12 = vadd.f32 %v3835_v53, %v3828_v20 }
 0x460   :  { %v3843_v51 = vadd.f32 %v3839_v41, %v3829_v61  ;;  %v3844_v57 = vmax.f32 %v3842_v12, 0.0 }
 0x462   :  { %v3845_v5 = vmax.f32 %v3843_v51, 0.0 }
 0x464   :  { %3949 = vmatprep.mubr.f32.mxu1 %v3845_v5 }
 0x465   :  { %3950 = vmatmul.mubr.f32.vlgmr.msra.gmra.mxu1 %v3844_v57 }
 0x525   :  { %v4668_v30 = vpop.f32.mrf.mxu1 }
 0x527   :  { %v4669_v50 = vpop.f32.mrf.mxu1 }
 0x528   :  { %v4670_v1 = vadd.f32 %v4669_v50, %v4668_v30 }
 0x52a   :  { %v3952_v11 = vadd.f32 %v4670_v1, %v4296_v56 }
 0x52c   :  { %v3955_v32 = vmax.f32 %v3952_v11, 0.0 }
 0x52e   :  { %5275 = vmatmul.mubr.f32.vlgmr.msra.gmra.mxu0 %v3955_v32 }
 0x5ee   :  { %v4045_v52 = vpop.f32.mrf.mxu0 }
 0x5ef   :  { %v4046_v6 = vadd.f32 %v4297_v33, %v4045_v52 }
 0x5f0   :  { %v5276_v27 = vpop.f32.mrf.mxu0 }
 0x5f1   :  { %v4050_v13 = vand.u32 2147483647, %v4046_v6  ;;  %v4049_v9 = vmax.f32 %v4046_v6, 0.0 }
 0x5f3   :  { %v4051_v34 = vsub.f32 0.0, %v4050_v13 }
 0x5f5   :  { %v4052_v42 = vmul.f32 1.442695, %v4051_v34 }
 0x5f7   :  { %5279 = vpow2.f32 %v4052_v42 }
 0x604   :  { %v5280_v19 = vpop.eup %5279 }
 0x605   :  { %v4054_v28 = vadd.f32 1.0, %v5280_v19  ;;  %v4057_v43 = vmul.f32 -0.5, %v5280_v19  ;;  %v4060_v29 = vand.u32 2147483647, %v5280_v19 }
 0x607   :  { %5281 = vlog2.f32 %v4054_v28  ;;  %v4058_v55 = vadd.f32 1.0, %v4057_v43  ;;  %vm4061_vm8 = vcmp.lt.f32.partialorder %v4060_v29, 0.0004427343 }
 0x609   :  { %v4059_v44 = vmul.f32 %v5280_v19, %v4058_v55 }
 0x614   :  { %v5282_v10 = vpop.eup %5281 }
 0x615   :  { %v4056_v0 = vmul.f32 0.6931472, %v5282_v10 }
 0x617   :  { %v4062_v26 = vsel %vm4061_vm8, %v4059_v44, %v4056_v0 }
 0x618   :  { %v4063_v58 = vadd.f32 %v4062_v26, %v4049_v9 }
 0x61a   :  { %v4067_v40 = vadd.f32 1e-05, %v4063_v58 }
 0x61c   :  { %v4068_v15 = vsel %vm4066_vm9, %v4067_v40, %v4046_v6 }
 0x61d   :  { %4069 = vst.msk [vmem:[%s7192_s15] sm:$0xff] %vm3383_vm5, %v4068_v15 }

// kernel: cnp_distractor_forward.2
= control target key start
LH: loop header
LB: loop body
LE: loop exit
PB: predicated region body
PF: predicated region fallthrough
CT: control target
= control target key end

     0   :  { %vm428_vm0 = vcmask 1042432   ;;  %vm235_vm1 = vcmask 220160   ;;  %v8343_v57 = vmov 0.0   ;;  %vm881_vm2 = vcmask 261120   ;;  %s8315_s1 = inlined_call_operand.vmem [shape: f32[27,32], index: 1, kind: input, shape index: {}]   ;;  %s8316_s0 = inlined_call_operand.vmem [shape: f32[512,27], index: 0, kind: input, shape index: {}]   ;;  %s8317_s3 = inlined_call_operand.vmem [shape: f32[288,48], index: 3, kind: input, shape index: {}]   ;;  %s8318_s2 = inlined_call_operand.vmem [shape: f32[1,32], index: 2, kind: input, shape index: {}]   ;;  %s8319_s5 = inlined_call_operand.vmem [shape: f32[432,64], index: 5, kind: input, shape index: {}]   ;;  %s8320_s4 = inlined_call_operand.vmem [shape: f32[1,48], index: 4, kind: input, shape index: {}]   ;;  %s8321_s8 = inlined_call_operand.vmem [shape: f32[2,32], index: 8, kind: input, shape index: {}]   ;;  %s8322_s7 = inlined_call_operand.vmem [shape: f32[8,2], index: 7, kind: input, shape index: {}]   ;;  %s8323_s10 = inlined_call_operand.vmem [shape: f32[256,256], index: 10, kind: input, shape index: {}]   ;;  %s8324_s6 = inlined_call_operand.vmem [shape: f32[1,64], index: 6, kind: input, shape index: {}]   ;;  %s8325_s11 = inlined_call_operand.vmem [shape: f32[32,256], index: 11, kind: input, shape index: {}]   ;;  %s8326_s9 = inlined_call_operand.vmem [shape: f32[1,32], index: 9, kind: input, shape index: {}]   ;;  %s8327_s13 = inlined_call_operand.vmem [shape: f32[256,256], index: 13, kind: input, shape index: {}]   ;;  %s8328_s15 = inlined_call_operand.vmem [shape: f32[256,256], index: 15, kind: input, shape index: {}]   ;;  %s8329_s12 = inlined_call_operand.vmem [shape: f32[1,256], index: 12, kind: input, shape index: {}]   ;;  %s8330_s14 = inlined_call_operand.vmem [shape: f32[1,256], index: 14, kind: input, shape index: {}]   ;;  %s8331_s16 = inlined_call_operand.vmem [shape: f32[1,256], index: 16, kind: input, shape index: {}]   ;;  %s8332_s20 = inlined_call_operand.vmem [shape: f32[2,8], index: 20, kind: input, shape index: {}]   ;;  %s8333_s17 = inlined_call_operand.vmem [shape: f32[256,256], index: 17, kind: input, shape index: {}]   ;;  %s8334_s19 = inlined_call_operand.vmem [shape: f32[256,256], index: 19, kind: input, shape index: {}]   ;;  %s8335_s18 = inlined_call_operand.vmem [shape: f32[1,256], index: 18, kind: input, shape index: {}]   ;;  %s8336_s21 = inlined_call_operand.vmem [shape: f32[2,256], index: 21, kind: output, shape index: {}]  }
   0x1   :  { %8345 = sst [smem:[#allocation16_spill]] %s8315_s1  ;;  %5290 = vmatprep.mubr.f32.mxu1 %v8343_v57  ;;  %vm2532_vm3 = vcmask 392192   ;;  %vm3403_vm4 = vcmask 1041408   ;;  %vm3399_vm5 = vcmask 15360   ;;  %vm5740_vm6 = vmmov 0  }
   0x2   :  { %8346 = sst [smem:[#allocation17_spill]] %s8316_s0  ;;  %vm3541_vm7 = vcmask 523264   ;;  %vm4241_vm8 = vcmask 64512  }
   0x3   :  { %8347 = sst [smem:[#allocation18_spill]] %s8317_s3 }
   0x4   :  { %8348 = sst [smem:[#allocation19_spill]] %s8318_s2 }
   0x5   :  { %8349 = sst [smem:[#allocation20_spill]] %s8319_s5 }
   0x6   :  { %8350 = sst [smem:[#allocation21_spill]] %s8320_s4 }
   0x7   :  { %s8351_s26 = sld [smem:[#allocation16_spill]] }
   0x8   :  { %s8352_s1 = sld [smem:[#allocation17_spill]] }
   0x9   :  { %s8353_s25 = sld [smem:[#allocation18_spill]] }
   0xa   :  { %s8354_s28 = sld [smem:[#allocation19_spill]] }
   0xb   :  { %s8357_s4 = sld [smem:[#allocation20_spill]] }
   0xd   :  { %v135_v0 = vld [vmem:[%s8351_s26 + $0x18] sm:$0x7]  ;;  %v134_v1 = vld [vmem:[%s8351_s26 + $0x10] sm:$0xff]  ;;  %v133_v3 = vld [vmem:[%s8351_s26 + $0x8] sm:$0xff] }
   0xe   :  { %5178 = vmatprep.subr.msk.mxu0 %vm428_vm0, %v135_v0  ;;  %v68_v2 = vld [vmem:[%s8352_s1] sm:$0xff]  ;;  %v69_v5 = vld [vmem:[%s8352_s1 + $0x8] sm:$0xff]  ;;  %v70_v6 = vld [vmem:[%s8352_s1 + $0x10] sm:$0xff] }
   0xf   :  { %5179 = vmatpush3.msk.msra.mxu0 %vm428_vm0, %v135_v0  ;;  %5186 = vmatprep.mubr.msk.f32.mxu0 %vm235_vm1, %v68_v2  ;;  %v132_v4 = vld [vmem:[%s8351_s26] sm:$0xff]  ;;  %v71_v7 = vld [vmem:[%s8352_s1 + $0x18] sm:$0xff]  ;;  %v73_v9 = vld [vmem:[%s8352_s1 + $0x28] sm:$0xff] }
  0x10   :  { %5180 = vmatprep.subr.mxu0 %v134_v1  ;;  %v72_v8 = vld [vmem:[%s8352_s1 + $0x20] sm:$0xff]  ;;  %v74_v10 = vld [vmem:[%s8352_s1 + $0x30] sm:$0xff]  ;;  %v75_v11 = vld [vmem:[%s8352_s1 + $0x38] sm:$0xff] }
  0x11   :  { %5181 = vmatpush3.msra.mxu0 %v134_v1  ;;  %v76_v12 = vld [vmem:[%s8352_s1 + $0x40] sm:$0xff]  ;;  %v77_v13 = vld [vmem:[%s8352_s1 + $0x48] sm:$0xff]  ;;  %v78_v14 = vld [vmem:[%s8352_s1 + $0x50] sm:$0xff] }
  0x12   :  { %5182 = vmatprep.subr.mxu0 %v133_v3  ;;  %v79_v15 = vld [vmem:[%s8352_s1 + $0x58] sm:$0xff]  ;;  %v80_v16 = vld [vmem:[%s8352_s1 + $0x60] sm:$0xff]  ;;  %v81_v17 = vld [vmem:[%s8352_s1 + $0x68] sm:$0xff] }
  0x13   :  { %5183 = vmatpush3.msra.mxu0 %v133_v3  ;;  %v82_v18 = vld [vmem:[%s8352_s1 + $0x70] sm:$0xff]  ;;  %v83_v19 = vld [vmem:[%s8352_s1 + $0x78] sm:$0xff]  ;;  %v84_v20 = vld [vmem:[%s8352_s1 + $0x80] sm:$0xff] }
  0x14   :  { %5184 = vmatprep.subr.mxu0 %v132_v4  ;;  %v85_v21 = vld [vmem:[%s8352_s1 + $0x88] sm:$0xff]  ;;  %v86_v22 = vld [vmem:[%s8352_s1 + $0x90] sm:$0xff]  ;;  %v87_v23 = vld [vmem:[%s8352_s1 + $0x98] sm:$0xff] }
  0x15   :  { %5185 = vmatpush3.msra.mxu0 %v132_v4  ;;  %v88_v24 = vld [vmem:[%s8352_s1 + $0xa0] sm:$0xff]  ;;  %v89_v25 = vld [vmem:[%s8352_s1 + $0xa8] sm:$0xff]  ;;  %v90_v26 = vld [vmem:[%s8352_s1 + $0xb0] sm:$0xff] }
  0x16   :  { %5187 = vmatmul.mubr.msk.f32.vlgmr.msra.gmra.mxu0 %vm235_vm1, %v69_v5  ;;  %v91_v27 = vld [vmem:[%s8352_s1 + $0xb8] sm:$0xff]  ;;  %v92_v28 = vld [vmem:[%s8352_s1 + $0xc0] sm:$0xff]  ;;  %v93_v29 = vld [vmem:[%s8352_s1 + $0xc8] sm:$0xff] }
  0x17   :  { %5189 = vmatprep.mubr.msk.f32.mxu0 %vm235_vm1, %v70_v6  ;;  %v94_v30 = vld [vmem:[%s8352_s1 + $0xd0] sm:$0xff]  ;;  %v95_v31 = vld [vmem:[%s8352_s1 + $0xd8] sm:$0xff]  ;;  %v96_v32 = vld [vmem:[%s8352_s1 + $0xe0] sm:$0xff] }
  0x18   :  { %v97_v33 = vld [vmem:[%s8352_s1 + $0xe8] sm:$0xff]  ;;  %v98_v34 = vld [vmem:[%s8352_s1 + $0xf0] sm:$0xff]  ;;  %v99_v35 = vld [vmem:[%s8352_s1 + $0xf8] sm:$0xff] }
  0x19   :  { %v100_v36 = vld [vmem:[%s8352_s1 + $0x100] sm:$0xff]  ;;  %v101_v37 = vld [vmem:[%s8352_s1 + $0x108] sm:$0xff]  ;;  %v102_v38 = vld [vmem:[%s8352_s1 + $0x110] sm:$0xff] }
  0x1a   :  { %5190 = vmatmul.mubr.msk.f32.gmra.mxu0 %vm235_vm1, %v71_v7  ;;  %v103_v39 = vld [vmem:[%s8352_s1 + $0x118] sm:$0xff]  ;;  %v104_v40 = vld [vmem:[%s8352_s1 + $0x120] sm:$0xff]  ;;  %v155_v42 = vld [vmem:[%s8353_s25 + $0x90] sm:$0xff] }
  0x1b   :  { %5192 = vmatprep.mubr.msk.f32.mxu0 %vm235_vm1, %v72_v8  ;;  %v156_v41 = vld [vmem:[%s8353_s25 + $0x98] sm:$0xff]  ;;  %v105_v43 = vld [vmem:[%s8352_s1 + $0x128] sm:$0xff]  ;;  %v106_v44 = vld [vmem:[%s8352_s1 + $0x130] sm:$0xff] }
  0x1c   :  { %5410 = vmatprep.subr.mxu0 %v156_v41  ;;  %v154_v45 = vld [vmem:[%s8353_s25 + $0x88] sm:$0xff]  ;;  %v153_v46 = vld [vmem:[%s8353_s25 + $0x80] sm:$0xff]  ;;  %v107_v47 = vld [vmem:[%s8352_s1 + $0x138] sm:$0xff] }
  0x1d   :  { %5411 = vmatpush3.msra.mxu0 %v156_v41  ;;  %v144_v48 = vld [vmem:[%s8353_s25 + $0x38] sm:$0xff]  ;;  %v108_v49 = vld [vmem:[%s8352_s1 + $0x140] sm:$0xff]  ;;  %v143_v50 = vld [vmem:[%s8353_s25 + $0x30] sm:$0xff] }
  0x1e   :  { %5193 = vmatmul.mubr.msk.f32.gmra.mxu0 %vm235_vm1, %v73_v9  ;;  %5412 = vmatprep.subr.mxu0 %v155_v42  ;;  %v109_v51 = vld [vmem:[%s8352_s1 + $0x148] sm:$0xff]  ;;  %v110_v53 = vld [vmem:[%s8352_s1 + $0x150] sm:$0xff]  ;;  %v141_v54 = vld [vmem:[%s8353_s25 + $0x20] sm:$0xff] }
  0x1f   :  { %5195 = vmatprep.mubr.msk.f32.mxu0 %vm235_vm1, %v74_v10  ;;  %5413 = vmatpush3.msra.mxu0 %v155_v42  ;;  %v142_v52 = vld [vmem:[%s8353_s25 + $0x28] sm:$0xff]  ;;  %v111_v55 = vld [vmem:[%s8352_s1 + $0x158] sm:$0xff]  ;;  %v112_v56 = vld [vmem:[%s8352_s1 + $0x160] sm:$0xff] }
  0x20   :  { %5414 = vmatprep.subr.mxu0 %v154_v45  ;;  %5282 = vmatprep.subr.mxu1 %v144_v48  ;;  %v113_v58 = vld [vmem:[%s8352_s1 + $0x168] sm:$0xff]  ;;  %v114_v59 = vld [vmem:[%s8352_s1 + $0x170] sm:$0xff]  ;;  %v115_v60 = vld [vmem:[%s8352_s1 + $0x178] sm:$0xff] }
  0x21   :  { %5415 = vmatpush3.msra.mxu0 %v154_v45  ;;  %5283 = vmatpush3.msra.mxu1 %v144_v48  ;;  %v116_v61 = vld [vmem:[%s8352_s1 + $0x180] sm:$0xff]  ;;  %v117_v62 = vld [vmem:[%s8352_s1 + $0x188] sm:$0xff]  ;;  %v118_v63 = vld [vmem:[%s8352_s1 + $0x190] sm:$0xff] }
  0x22   :  { %5196 = vmatmul.mubr.msk.f32.gmra.mxu0 %vm235_vm1, %v75_v11  ;;  %5416 = vmatprep.subr.mxu0 %v153_v46  ;;  %v119_v0 = vld [vmem:[%s8352_s1 + $0x198] sm:$0xff]  ;;  %v120_v1 = vld [vmem:[%s8352_s1 + $0x1a0] sm:$0xff]  ;;  %v121_v2 = vld [vmem:[%s8352_s1 + $0x1a8] sm:$0xff] }
  0x23   :  { %5198 = vmatprep.mubr.msk.f32.mxu0 %vm235_vm1, %v76_v12  ;;  %5417 = vmatpush3.msra.mxu0 %v153_v46  ;;  %v122_v3 = vld [vmem:[%s8352_s1 + $0x1b0] sm:$0xff]  ;;  %v123_v4 = vld [vmem:[%s8352_s1 + $0x1b8] sm:$0xff]  ;;  %v124_v5 = vld [vmem:[%s8352_s1 + $0x1c0] sm:$0xff] }
  0x24   :  { %5284 = vmatprep.subr.mxu1 %v143_v50  ;;  %v125_v6 = vld [vmem:[%s8352_s1 + $0x1c8] sm:$0xff]  ;;  %v126_v7 = vld [vmem:[%s8352_s1 + $0x1d0] sm:$0xff]  ;;  %v127_v8 = vld [vmem:[%s8352_s1 + $0x1d8] sm:$0xff] }
  0x25   :  { %5285 = vmatpush3.msra.mxu1 %v143_v50  ;;  %v128_v9 = vld [vmem:[%s8352_s1 + $0x1e0] sm:$0xff]  ;;  %v129_v10 = vld [vmem:[%s8352_s1 + $0x1e8] sm:$0xff]  ;;  %v130_v11 = vld [vmem:[%s8352_s1 + $0x1f0] sm:$0xff] }
  0x26   :  { %5199 = vmatmul.mubr.msk.f32.gmra.mxu0 %vm235_vm1, %v77_v13  ;;  %5286 = vmatprep.subr.mxu1 %v142_v52  ;;  %v131_v12 = vld [vmem:[%s8352_s1 + $0x1f8] sm:$0xff] }
  0x27   :  { %5201 = vmatprep.mubr.msk.f32.mxu0 %vm235_vm1, %v78_v14  ;;  %5287 = vmatpush3.msra.mxu1 %v142_v52  ;;  %v140_v13 = vld [vmem:[%s8353_s25 + $0x18] sm:$0xff]  ;;  %v139_v14 = vld [vmem:[%s8353_s25 + $0x10] sm:$0xff] }
  0x28   :  { %5288 = vmatprep.subr.mxu1 %v141_v54 }
  0x29   :  { %5289 = vmatpush3.msra.mxu1 %v141_v54 }
  0x2a   :  { %5202 = vmatmul.mubr.msk.f32.gmra.mxu0 %vm235_vm1, %v79_v15  ;;  %5291 = vmatmul.mubr.f32.vlgmr.msra.gmra.mxu1 %v8343_v57  ;;  %v138_v15 = vld [vmem:[%s8353_s25 + $0x8] sm:$0xff] }
  0x2b   :  { %5204 = vmatprep.mubr.msk.f32.mxu0 %vm235_vm1, %v80_v16  ;;  %5293 = vmatprep.mubr.f32.mxu1 %v8343_v57  ;;  %v137_v16 = vld [vmem:[%s8353_s25] sm:$0xff] }
  0x2c   :  { %5314 = vmatprep.subr.mxu1 %v140_v13 }
  0x2d   :  { %5315 = vmatpush3.msra.mxu1 %v140_v13 }
  0x2e   :  { %5205 = vmatmul.mubr.msk.f32.gmra.mxu0 %vm235_vm1, %v81_v17  ;;  %5294 = vmatmul.mubr.f32.gmra.mxu1 %v8343_v57  ;;  %v6162_v17 = vld [vmem:[%s8353_s25 + $0x58] sm:$0xff] }
  0x2f   :  { %5207 = vmatprep.mubr.msk.f32.mxu0 %vm235_vm1, %v82_v18  ;;  %5316 = vmatprep.subr.mxu1 %v139_v14  ;;  %v164_v18 = vld [vmem:[%s8353_s25 + $0xd8] sm:$0xff] }
  0x30   :  { %5317 = vmatpush3.msra.mxu1 %v139_v14  ;;  %5474 = vmatprep.subr.mxu0 %v164_v18 }
  0x31   :  { %5318 = vmatprep.subr.mxu1 %v138_v15 }
  0x32   :  { %5208 = vmatmul.mubr.msk.f32.gmra.mxu0 %vm235_vm1, %v83_v19  ;;  %5319 = vmatpush3.msra.mxu1 %v138_v15 }
  0x33   :  { %5210 = vmatprep.mubr.msk.f32.mxu0 %vm235_vm1, %v84_v20  ;;  %5320 = vmatprep.subr.mxu1 %v137_v16  ;;  %v6173_v20 = vld [vmem:[%s8354_s28] ss:$0 sm:$0xff] }
  0x34   :  { %5321 = vmatpush3.msra.mxu1 %v137_v16 }
  0x35   :  { %5346 = vmatprep.subr.mxu1 %v6162_v17 }
  0x36   :  { %5211 = vmatmul.mubr.msk.f32.gmra.mxu0 %vm235_vm1, %v85_v21 }
  0x37   :  { %5213 = vmatprep.mubr.msk.f32.mxu0 %vm235_vm1, %v86_v22 }
  0x3a   :  { %5214 = vmatmul.mubr.msk.f32.gmra.mxu0 %vm235_vm1, %v87_v23 }
  0x3b   :  { %5216 = vmatprep.mubr.msk.f32.mxu0 %vm235_vm1, %v88_v24 }
  0x3e   :  { %5217 = vmatmul.mubr.msk.f32.gmra.mxu0 %vm235_vm1, %v89_v25 }
  0x3f   :  { %5219 = vmatprep.mubr.msk.f32.mxu0 %vm235_vm1, %v90_v26 }
  0x42   :  { %5220 = vmatmul.mubr.msk.f32.gmra.mxu0 %vm235_vm1, %v91_v27 }
  0x43   :  { %5222 = vmatprep.mubr.msk.f32.mxu0 %vm235_vm1, %v92_v28 }
  0x46   :  { %5223 = vmatmul.mubr.msk.f32.gmra.mxu0 %vm235_vm1, %v93_v29 }
  0x47   :  { %5225 = vmatprep.mubr.msk.f32.mxu0 %vm235_vm1, %v94_v30  ;;  %v163_v30 = vld [vmem:[%s8353_s25 + $0xd0] sm:$0xff] }
  0x4a   :  { %5226 = vmatmul.mubr.msk.f32.gmra.mxu0 %vm235_vm1, %v95_v31 }
  0x4b   :  { %5228 = vmatprep.mubr.msk.f32.mxu0 %vm235_vm1, %v96_v32 }
  0x4e   :  { %5229 = vmatmul.mubr.msk.f32.gmra.mxu0 %vm235_vm1, %v97_v33  ;;  %v162_v33 = vld [vmem:[%s8353_s25 + $0xc8] sm:$0xff] }
  0x4f   :  { %5231 = vmatprep.mubr.msk.f32.mxu0 %vm235_vm1, %v98_v34 }
  0x52   :  { %5232 = vmatmul.mubr.msk.f32.gmra.mxu0 %vm235_vm1, %v99_v35 }
  0x53   :  { %5234 = vmatprep.mubr.msk.f32.mxu0 %vm235_vm1, %v100_v36  ;;  %v161_v36 = vld [vmem:[%s8353_s25 + $0xc0] sm:$0xff] }
  0x56   :  { %5235 = vmatmul.mubr.msk.f32.gmra.mxu0 %vm235_vm1, %v101_v37 }
  0x57   :  { %5237 = vmatprep.mubr.msk.f32.mxu0 %vm235_vm1, %v102_v38 }
  0x5a   :  { %5238 = vmatmul.mubr.msk.f32.gmra.mxu0 %vm235_vm1, %v103_v39  ;;  %v6202_v39 = vld [vmem:[%s8353_s25 + $0x118] sm:$0xff] }
  0x5b   :  { %5240 = vmatprep.mubr.msk.f32.mxu0 %vm235_vm1, %v104_v40 }
  0x5e   :  { %5241 = vmatmul.mubr.msk.f32.gmra.mxu0 %vm235_vm1, %v105_v43 }
  0x5f   :  { %5243 = vmatprep.mubr.msk.f32.mxu0 %vm235_vm1, %v106_v44 }
  0x62   :  { %5244 = vmatmul.mubr.msk.f32.gmra.mxu0 %vm235_vm1, %v107_v47 }
  0x63   :  { %5246 = vmatprep.mubr.msk.f32.mxu0 %vm235_vm1, %v108_v49 }
  0x66   :  { %5247 = vmatmul.mubr.msk.f32.gmra.mxu0 %vm235_vm1, %v109_v51 }
  0x67   :  { %5249 = vmatprep.mubr.msk.f32.mxu0 %vm235_vm1, %v110_v53 }
  0x6a   :  { %5250 = vmatmul.mubr.msk.f32.gmra.mxu0 %vm235_vm1, %v111_v55 }
  0x6b   :  { %5252 = vmatprep.mubr.msk.f32.mxu0 %vm235_vm1, %v112_v56 }
  0x6e   :  { %5253 = vmatmul.mubr.msk.f32.gmra.mxu0 %vm235_vm1, %v113_v58 }
  0x6f   :  { %5255 = vmatprep.mubr.msk.f32.mxu0 %vm235_vm1, %v114_v59 }
  0x72   :  { %5256 = vmatmul.mubr.msk.f32.gmra.mxu0 %vm235_vm1, %v115_v60 }
  0x73   :  { %5258 = vmatprep.mubr.msk.f32.mxu0 %vm235_vm1, %v116_v61 }
  0x76   :  { %5259 = vmatmul.mubr.msk.f32.gmra.mxu0 %vm235_vm1, %v117_v62 }
  0x77   :  { %5261 = vmatprep.mubr.msk.f32.mxu0 %vm235_vm1, %v118_v63 }
  0x7a   :  { %5262 = vmatmul.mubr.msk.f32.gmra.mxu0 %vm235_vm1, %v119_v0 }
  0x7b   :  { %5264 = vmatprep.mubr.msk.f32.mxu0 %vm235_vm1, %v120_v1 }
  0x7e   :  { %5265 = vmatmul.mubr.msk.f32.gmra.mxu0 %vm235_vm1, %v121_v2 }
  0x7f   :  { %5267 = vmatprep.mubr.msk.f32.mxu0 %vm235_vm1, %v122_v3 }
  0x82   :  { %5268 = vmatmul.mubr.msk.f32.gmra.mxu0 %vm235_vm1, %v123_v4 }
  0x83   :  { %5270 = vmatprep.mubr.msk.f32.mxu0 %vm235_vm1, %v124_v5 }
  0x86   :  { %5271 = vmatmul.mubr.msk.f32.gmra.mxu0 %vm235_vm1, %v125_v6 }
  0x87   :  { %5273 = vmatprep.mubr.msk.f32.mxu0 %vm235_vm1, %v126_v7 }
  0x8a   :  { %5274 = vmatmul.mubr.msk.f32.gmra.mxu0 %vm235_vm1, %v127_v8 }
  0x8b   :  { %5276 = vmatprep.mubr.msk.f32.mxu0 %vm235_vm1, %v128_v9 }
  0x8e   :  { %5277 = vmatmul.mubr.msk.f32.gmra.mxu0 %vm235_vm1, %v129_v10 }
  0x8f   :  { %5279 = vmatprep.mubr.msk.f32.mxu0 %vm235_vm1, %v130_v11 }
  0x92   :  { %5280 = vmatmul.mubr.msk.f32.gmra.mxu0 %vm235_vm1, %v131_v12 }
  0xd6   :  { %v6168_v19 = vpop.f32.mrf.mxu0 }
  0xd8   :  { %v498_v21 = vpop.f32.mrf.mxu0 }
  0xd9   :  { %v499_v22 = vadd.f32 %v6173_v20, %v498_v21 }
  0xda   :  { %v6176_v23 = vpop.f32.mrf.mxu0 }
  0xdb   :  { %v817_v24 = vmax.f32 %v499_v22, 0.0 }
  0xdc   :  { %v508_v25 = vpop.f32.mrf.mxu0 }
  0xdd   :  { %v509_v26 = vadd.f32 %v6173_v20, %v508_v25  ;;  %5418 = vmatprep.mubr.msk.f32.mxu0 %vm881_vm2, %v817_v24 }
  0xde   :  { %v6180_v27 = vpop.f32.mrf.mxu0 }
  0xdf   :  { %v819_v28 = vmax.f32 %v509_v26, 0.0 }
  0xe0   :  { %v518_v29 = vpop.f32.mrf.mxu0 }
  0xe1   :  { %v519_v31 = vadd.f32 %v6173_v20, %v518_v29  ;;  %5419 = vmatmul.mubr.msk.f32.vlgmr.msra.gmra.mxu0 %vm881_vm2, %v819_v28 }
  0xe2   :  { %v6187_v32 = vpop.f32.mrf.mxu0  ;;  %5475 = vmatpush3.msra.mxu0 %v164_v18 }
  0xe3   :  { %v821_v34 = vmax.f32 %v519_v31, 0.0  ;;  %5476 = vmatprep.subr.mxu0 %v163_v30 }
  0xe4   :  { %v528_v35 = vpop.f32.mrf.mxu0  ;;  %5477 = vmatpush3.msra.mxu0 %v163_v30 }
  0xe5   :  { %v529_v37 = vadd.f32 %v6173_v20, %v528_v35  ;;  %5421 = vmatprep.mubr.msk.f32.mxu0 %vm881_vm2, %v821_v34  ;;  %5478 = vmatprep.subr.mxu0 %v162_v33 }
  0xe6   :  { %v6197_v38 = vpop.f32.mrf.mxu0  ;;  %5479 = vmatpush3.msra.mxu0 %v162_v33 }
  0xe7   :  { %v823_v40 = vmax.f32 %v529_v37, 0.0  ;;  %5480 = vmatprep.subr.mxu0 %v161_v36 }
  0xe8   :  { %v538_v41 = vpop.f32.mrf.mxu0  ;;  %5481 = vmatpush3.msra.mxu0 %v161_v36 }
  0xe9   :  { %v6205_v42 = vadd.f32 %v6173_v20, %v538_v41  ;;  %5422 = vmatmul.mubr.msk.f32.gmra.mxu0 %vm881_vm2, %v823_v40  ;;  %5538 = vmatprep.subr.mxu0 %v6202_v39 }
  0xea   :  { %v6209_v43 = vpop.f32.mrf.mxu0 }
  0xeb   :  { %v825_v44 = vmax.f32 %v6205_v42, 0.0  ;;  %v6696_v42 = vpop.f32.mrf.mxu1 }
  0xec   :  { %v548_v45 = vpop.f32.mrf.mxu0 }
  0xed   :  { %v6213_v46 = vadd.f32 %v6173_v20, %v548_v45  ;;  %5296 = vmatprep.mubr.msk.f32.mxu1 %vm881_vm2, %v825_v44 }
  0xee   :  { %v6218_v47 = vpop.f32.mrf.mxu0 }
  0xef   :  { %v827_v48 = vmax.f32 %v6213_v46, 0.0 }
  0xf0   :  { %v558_v49 = vpop.f32.mrf.mxu0 }
  0xf1   :  { %v6222_v50 = vadd.f32 %v6173_v20, %v558_v49  ;;  %5297 = vmatmul.mubr.msk.f32.gmra.mxu1 %vm881_vm2, %v827_v48 }
  0xf2   :  { %v6227_v51 = vpop.f32.mrf.mxu0 }
  0xf3   :  { %v829_v52 = vmax.f32 %v6222_v50, 0.0  ;;  %v6708_v50 = vpop.f32.mrf.mxu1 }
  0xf4   :  { %v568_v53 = vpop.f32.mrf.mxu0 }
  0xf5   :  { %v6231_v54 = vadd.f32 %v6173_v20, %v568_v53  ;;  %5299 = vmatprep.mubr.msk.f32.mxu1 %vm881_vm2, %v829_v52 }
  0xf6   :  { %v6236_v55 = vpop.f32.mrf.mxu0 }
  0xf7   :  { %v831_v56 = vmax.f32 %v6231_v54, 0.0 }
  0xf8   :  { %v578_v58 = vpop.f32.mrf.mxu0 }
  0xf9   :  { %v579_v59 = vadd.f32 %v6173_v20, %v578_v58  ;;  %5300 = vmatmul.mubr.msk.f32.gmra.mxu1 %vm881_vm2, %v831_v56 }
  0xfa   :  { %v6243_v60 = vpop.f32.mrf.mxu0 }
  0xfb   :  { %v833_v61 = vmax.f32 %v579_v59, 0.0 }
  0xfc   :  { %v588_v62 = vpop.f32.mrf.mxu0 }
  0xfd   :  { %v589_v63 = vadd.f32 %v6173_v20, %v588_v62  ;;  %5424 = vmatprep.mubr.msk.f32.mxu0 %vm881_vm2, %v833_v61 }
  0xfe   :  { %v6247_v0 = vpop.f32.mrf.mxu0 }
  0xff   :  { %v835_v1 = vmax.f32 %v589_v63, 0.0 }
 0x100   :  { %v598_v2 = vpop.f32.mrf.mxu0 }
 0x101   :  { %v599_v3 = vadd.f32 %v6173_v20, %v598_v2  ;;  %5425 = vmatmul.mubr.msk.f32.gmra.mxu0 %vm881_vm2, %v835_v1 }
 0x102   :  { %v6251_v4 = vpop.f32.mrf.mxu0 }
 0x103   :  { %v837_v5 = vmax.f32 %v599_v3, 0.0 }
 0x104   :  { %v608_v6 = vpop.f32.mrf.mxu0 }
 0x105   :  { %v609_v7 = vadd.f32 %v6173_v20, %v608_v6  ;;  %5427 = vmatprep.mubr.msk.f32.mxu0 %vm881_vm2, %v837_v5 }
 0x106   :  { %v6255_v8 = vpop.f32.mrf.mxu0 }
 0x107   :  { %v839_v9 = vmax.f32 %v609_v7, 0.0 }
 0x108   :  { %v618_v10 = vpop.f32.mrf.mxu0 }
 0x109   :  { %v6258_v11 = vadd.f32 %v6173_v20, %v618_v10  ;;  %5428 = vmatmul.mubr.msk.f32.gmra.mxu0 %vm881_vm2, %v839_v9 }
 0x10a   :  { %v6261_v12 = vpop.f32.mrf.mxu0 }
 0x10b   :  { %v841_v13 = vmax.f32 %v6258_v11, 0.0 }
 0x10c   :  { %v628_v14 = vpop.f32.mrf.mxu0 }
 0x10d   :  { %v6265_v15 = vadd.f32 %v6173_v20, %v628_v14  ;;  %5302 = vmatprep.mubr.msk.f32.mxu1 %vm881_vm2, %v841_v13 }
 0x10e   :  { %v6270_v16 = vpop.f32.mrf.mxu0 }
 0x10f   :  { %v843_v18 = vmax.f32 %v6265_v15, 0.0 }
 0x110   :  { %v638_v21 = vpop.f32.mrf.mxu0 }
 0x111   :  { %v6274_v22 = vadd.f32 %v6173_v20, %v638_v21  ;;  %5303 = vmatmul.mubr.msk.f32.gmra.mxu1 %vm881_vm2, %v843_v18 }
 0x112   :  { %v6279_v24 = vpop.f32.mrf.mxu0 }
 0x113   :  { %v845_v25 = vmax.f32 %v6274_v22, 0.0 }
 0x114   :  { %v648_v26 = vpop.f32.mrf.mxu0 }
 0x115   :  { %v6283_v28 = vadd.f32 %v6173_v20, %v648_v26  ;;  %5305 = vmatprep.mubr.msk.f32.mxu1 %vm881_vm2, %v845_v25 }
 0x116   :  { %v6288_v29 = vpop.f32.mrf.mxu0 }
 0x117   :  { %v847_v30 = vmax.f32 %v6283_v28, 0.0 }
 0x118   :  { %v658_v31 = vpop.f32.mrf.mxu0 }
 0x119   :  { %v659_v33 = vadd.f32 %v6173_v20, %v658_v31  ;;  %5306 = vmatmul.mubr.msk.f32.gmra.mxu1 %vm881_vm2, %v847_v30 }
 0x11a   :  { %v6295_v34 = vpop.f32.mrf.mxu0 }
 0x11b   :  { %v849_v35 = vmax.f32 %v659_v33, 0.0 }
 0x11c   :  { %v668_v36 = vpop.f32.mrf.mxu0 }
 0x11d   :  { %v669_v37 = vadd.f32 %v6173_v20, %v668_v36  ;;  %5430 = vmatprep.mubr.msk.f32.mxu0 %vm881_vm2, %v849_v35 }
 0x11e   :  { %v6299_v40 = vpop.f32.mrf.mxu0 }
 0x11f   :  { %v851_v41 = vmax.f32 %v669_v37, 0.0 }
 0x120   :  { %v678_v45 = vpop.f32.mrf.mxu0 }
 0x121   :  { %v679_v49 = vadd.f32 %v6173_v20, %v678_v45  ;;  %5431 = vmatmul.mubr.msk.f32.gmra.mxu0 %vm881_vm2, %v851_v41 }
 0x122   :  { %v6303_v53 = vpop.f32.mrf.mxu0 }
 0x123   :  { %v853_v58 = vmax.f32 %v679_v49, 0.0 }
 0x124   :  { %v688_v59 = vpop.f32.mrf.mxu0 }
 0x125   :  { %v689_v61 = vadd.f32 %v6173_v20, %v688_v59  ;;  %5433 = vmatprep.mubr.msk.f32.mxu0 %vm881_vm2, %v853_v58 }
 0x126   :  { %v6307_v62 = vpop.f32.mrf.mxu0 }
 0x127   :  { %v855_v63 = vmax.f32 %v689_v61, 0.0  ;;  %v147_v61 = vld [vmem:[%s8353_s25 + $0x50] sm:$0xff] }
 0x128   :  { %v698_v1 = vpop.f32.mrf.mxu0 }
 0x129   :  { %v6310_v2 = vadd.f32 %v6173_v20, %v698_v1  ;;  %5434 = vmatmul.mubr.msk.f32.gmra.mxu0 %vm881_vm2, %v855_v63 }
 0x12a   :  { %v6313_v3 = vpop.f32.mrf.mxu0 }
 0x12b   :  { %v857_v5 = vmax.f32 %v6310_v2, 0.0 }
 0x12c   :  { %v708_v6 = vpop.f32.mrf.mxu0 }
 0x12d   :  { %v6317_v7 = vadd.f32 %v6173_v20, %v708_v6  ;;  %5308 = vmatprep.mubr.msk.f32.mxu1 %vm881_vm2, %v857_v5  ;;  %v544_v6 = vadd.f32 %v6197_v38, %v6173_v20 }
 0x12e   :  { %v6322_v9 = vpop.f32.mrf.mxu0 }
 0x12f   :  { %v859_v10 = vmax.f32 %v6317_v7, 0.0 }
 0x130   :  { %v718_v14 = vpop.f32.mrf.mxu0 }
 0x131   :  { %v6326_v21 = vadd.f32 %v6173_v20, %v718_v14  ;;  %5309 = vmatmul.mubr.msk.f32.gmra.mxu1 %vm881_vm2, %v859_v10 }
 0x132   :  { %v6331_v26 = vpop.f32.mrf.mxu0 }
 0x133   :  { %v8342_v31 = vmax.f32 %v6326_v21, 0.0  ;;  %v8355_v46 = vmax.f32 %v6326_v21, 0.0  ;;  %v185_v21 = vld [vmem:[%s8357_s4 + $0x58] sm:$0xff] }
 0x134   :  { %v728_v33 = vpop.f32.mrf.mxu0 }
 0x135   :  { %v6335_v35 = vadd.f32 %v6173_v20, %v728_v33  ;;  %5311 = vmatprep.mubr.msk.f32.mxu1 %vm881_vm2, %v8342_v31  ;;  %v146_v33 = vld [vmem:[%s8353_s25 + $0x48] sm:$0xff] }
 0x136   :  { %v6340_v36 = vpop.f32.mrf.mxu0 }
 0x137   :  { %v8341_v37 = vmax.f32 %v6335_v35, 0.0 }
 0x138   :  { %v738_v41 = vpop.f32.mrf.mxu0 }
 0x139   :  { %v739_v45 = vadd.f32 %v6173_v20, %v738_v41  ;;  %5312 = vmatmul.mubr.msk.f32.gmra.mxu1 %vm881_vm2, %v8341_v37  ;;  %v554_v41 = vadd.f32 %v6209_v43, %v6173_v20  ;;  %v564_v43 = vadd.f32 %v6218_v47, %v6173_v20 }
 0x13a   :  { %v6347_v49 = vpop.f32.mrf.mxu0  ;;  %5322 = vmatprep.mubr.f32.mxu1 %v8343_v57 }
 0x13b   :  { %v865_v58 = vmax.f32 %v739_v45, 0.0  ;;  %v6391_v47 = vmax.f32 %v564_v43, 0.0  ;;  %v704_v43 = vadd.f32 %v6307_v62, %v6173_v20 }
 0x13c   :  { %v748_v59 = vpop.f32.mrf.mxu0 }
 0x13d   :  { %v749_v63 = vadd.f32 %v6173_v20, %v748_v59  ;;  %5323 = vmatmul.mubr.f32.vlgmr.msra.gmra.mxu1 %v8343_v57  ;;  %5436 = vmatprep.mubr.msk.f32.mxu0 %vm881_vm2, %v865_v58  ;;  %v6376_v59 = vmax.f32 %v544_v6, 0.0  ;;  %v624_v6 = vadd.f32 %v6255_v8, %v6173_v20 }
 0x13e   :  { %v6356_v1 = vpop.f32.mrf.mxu0  ;;  %5325 = vmatprep.mubr.f32.mxu1 %v8343_v57  ;;  %5347 = vmatpush3.msra.mxu1 %v6162_v17  ;;  %v145_v17 = vld [vmem:[%s8353_s25 + $0x40] sm:$0xff] }
 0x13f   :  { %v867_v14 = vmax.f32 %v749_v63, 0.0  ;;  %5348 = vmatprep.subr.mxu1 %v147_v61  ;;  %v6380_v63 = vmax.f32 %v554_v41, 0.0  ;;  %v634_v41 = vadd.f32 %v6261_v12, %v6173_v20  ;;  %v171_v12 = vld [vmem:[%s8353_s25 + $0x110] sm:$0xff] }
 0x140   :  { %v758_v45 = vpop.f32.mrf.mxu0  ;;  %5349 = vmatpush3.msra.mxu1 %v147_v61 }
 0x141   :  { %v759_v58 = vadd.f32 %v6173_v20, %v758_v45  ;;  %5326 = vmatmul.mubr.f32.gmra.mxu1 %v8343_v57  ;;  %5437 = vmatmul.mubr.msk.f32.gmra.mxu0 %vm881_vm2, %v867_v14  ;;  %v152_v14 = vld [vmem:[%s8353_s25 + $0x78] sm:$0xff]  ;;  %v6406_v8 = vmax.f32 %v634_v41, 0.0 }
 0x142   :  { %v6373_v38 = vpop.f32.mrf.mxu0  ;;  %5328 = vmatprep.mubr.f32.mxu1 %v8343_v57  ;;  %5350 = vmatprep.subr.mxu1 %v146_v33 }
 0x143   :  { %v869_v61 = vmax.f32 %v759_v58, 0.0  ;;  %5351 = vmatpush3.msra.mxu1 %v146_v33  ;;  %v6402_v58 = vmax.f32 %v624_v6, 0.0 }
 0x144   :  { %v768_v45 = vpop.f32.mrf.mxu0  ;;  %5352 = vmatprep.subr.mxu1 %v145_v17 }
 0x145   :  { %v769_v37 = vadd.f32 %v6173_v20, %v768_v45  ;;  %5329 = vmatmul.mubr.msk.f32.gmra.mxu1 %vm881_vm2, %v6376_v59  ;;  %5439 = vmatprep.mubr.msk.f32.mxu0 %vm881_vm2, %v869_v61  ;;  %v714_v61 = vadd.f32 %v6313_v3, %v6173_v20  ;;  %v170_v45 = vld [vmem:[%s8353_s25 + $0x108] sm:$0xff]  ;;  %v724_v3 = vadd.f32 %v6322_v9, %v6173_v20 }
 0x146   :  { %5331 = vmatprep.mubr.msk.f32.mxu1 %vm881_vm2, %v6380_v63  ;;  %5353 = vmatpush3.msra.mxu1 %v145_v17  ;;  %v644_v17 = vadd.f32 %v6270_v16, %v6173_v20 }
 0x147   :  { %v871_v33 = vmax.f32 %v769_v37, 0.0  ;;  %5378 = vmatprep.subr.mxu1 %v152_v14  ;;  %v5272_v37 = vpop.f32.mrf.mxu0  ;;  %v6441_v6 = vmax.f32 %v714_v61, 0.0  ;;  %v6454_v41 = vmax.f32 %v724_v3, 0.0 }
 0x148   :  { %v6419_v16 = vmax.f32 %v644_v17, 0.0 }
 0x149   :  { %5332 = vmatmul.mubr.msk.f32.gmra.mxu1 %vm881_vm2, %v6391_v47  ;;  %5440 = vmatmul.mubr.msk.f32.gmra.mxu0 %vm881_vm2, %v871_v33  ;;  %v6435_v62 = vpop.f32.mrf.mxu0  ;;  %v169_v33 = vld [vmem:[%s8353_s25 + $0x100] sm:$0xff] }
 0x14a   :  { %5334 = vmatprep.mubr.f32.mxu1 %v8343_v57  ;;  %5482 = vmatprep.mubr.f32.mxu0 %v8343_v57 }
 0x14b   :  { %v5275_v9 = vpop.f32.mrf.mxu0 }
 0x14c   :  { %v6476_v61 = vadd.f32 %v5275_v9, %v6173_v20 }
 0x14d   :  { %5335 = vmatmul.mubr.msk.f32.gmra.mxu1 %vm881_vm2, %v6402_v58  ;;  %5483 = vmatmul.mubr.msk.f32.vlgmr.msra.gmra.mxu0 %vm881_vm2, %v6376_v59  ;;  %v6462_v17 = vpop.f32.mrf.mxu0 }
 0x14e   :  { %5337 = vmatprep.mubr.msk.f32.mxu1 %vm881_vm2, %v6406_v8  ;;  %5485 = vmatprep.mubr.msk.f32.mxu0 %vm881_vm2, %v6380_v63  ;;  %v876_v9 = vmax.f32 %v6476_v61, 0.0 }
 0x14f   :  { %5539 = vmatpush3.msra.mxu0 %v6202_v39  ;;  %v6437_v39 = vmax.f32 %v704_v43, 0.0  ;;  %v151_v43 = vld [vmem:[%s8353_s25 + $0x70] sm:$0xff] }
 0x150   :  { %5540 = vmatprep.subr.mxu0 %v171_v12 }
 0x151   :  { %5338 = vmatmul.mubr.msk.f32.gmra.mxu1 %vm881_vm2, %v6419_v16  ;;  %5486 = vmatmul.mubr.msk.f32.gmra.mxu0 %vm881_vm2, %v6391_v47 }
 0x152   :  { %5340 = vmatprep.mubr.f32.mxu1 %v8343_v57  ;;  %5488 = vmatprep.mubr.f32.mxu0 %v8343_v57 }
 0x153   :  { %5541 = vmatpush3.msra.mxu0 %v171_v12  ;;  %v6465_v12 = vadd.f32 %v5272_v37, %v6173_v20 }
 0x154   :  { %5542 = vmatprep.subr.mxu0 %v170_v45 }
 0x155   :  { %5341 = vmatmul.mubr.msk.f32.gmra.mxu1 %vm881_vm2, %v6437_v39  ;;  %5489 = vmatmul.mubr.msk.f32.gmra.mxu0 %vm881_vm2, %v6402_v58  ;;  %v874_v37 = vmax.f32 %v6465_v12, 0.0 }
 0x156   :  { %5343 = vmatprep.mubr.msk.f32.mxu1 %vm881_vm2, %v6441_v6  ;;  %5491 = vmatprep.mubr.msk.f32.mxu0 %vm881_vm2, %v6406_v8 }
 0x157   :  { %5543 = vmatpush3.msra.mxu0 %v170_v45  ;;  %v5278_v45 = vpop.f32.mrf.mxu0 }
 0x158   :  { %5544 = vmatprep.subr.mxu0 %v169_v33  ;;  %v6484_v3 = vadd.f32 %v5278_v45, %v6173_v20  ;;  %v149_v45 = vld [vmem:[%s8353_s25 + $0x60] sm:$0xff] }
 0x159   :  { %5344 = vmatmul.mubr.msk.f32.gmra.mxu1 %vm881_vm2, %v6454_v41  ;;  %5492 = vmatmul.mubr.msk.f32.gmra.mxu0 %vm881_vm2, %v6419_v16 }
 0x15a   :  { %5354 = vmatprep.mubr.f32.mxu1 %v8343_v57  ;;  %5494 = vmatprep.mubr.f32.mxu0 %v8343_v57  ;;  %v878_v31 = vmax.f32 %v6484_v3, 0.0  ;;  %v754_v3 = vadd.f32 %v6347_v49, %v6173_v20  ;;  %v167_v49 = vld [vmem:[%s8353_s25 + $0xf0] sm:$0xff] }
 0x15b   :  { %5545 = vmatpush3.msra.mxu0 %v169_v33  ;;  %v150_v33 = vld [vmem:[%s8353_s25 + $0x68] sm:$0xff] }
 0x15d   :  { %5355 = vmatmul.mubr.f32.vlgmr.msra.gmra.mxu1 %v8343_v57  ;;  %5495 = vmatmul.mubr.msk.f32.gmra.mxu0 %vm881_vm2, %v6437_v39 }
 0x15e   :  { %5497 = vmatprep.mubr.msk.f32.mxu0 %vm881_vm2, %v6441_v6  ;;  %5357 = vmatprep.mubr.f32.mxu1 %v8343_v57 }
 0x15f   :  { %5379 = vmatpush3.msra.mxu1 %v152_v14  ;;  %v574_v14 = vadd.f32 %v6227_v51, %v6173_v20 }
 0x160   :  { %5380 = vmatprep.subr.mxu1 %v151_v43 }
 0x161   :  { %5358 = vmatmul.mubr.f32.gmra.mxu1 %v8343_v57  ;;  %5498 = vmatmul.mubr.msk.f32.gmra.mxu0 %vm881_vm2, %v6454_v41  ;;  %v832_v51 = vmax.f32 %v574_v14, 0.0 }
 0x162   :  { %5360 = vmatprep.mubr.msk.f32.mxu1 %vm881_vm2, %v6376_v59  ;;  %5500 = vmatprep.mubr.f32.mxu0 %v8343_v57 }
 0x163   :  { %5381 = vmatpush3.msra.mxu1 %v151_v43  ;;  %v160_v43 = vld [vmem:[%s8353_s25 + $0xb8] sm:$0xff] }
 0x164   :  { %5382 = vmatprep.subr.mxu1 %v150_v33 }
 0x165   :  { %5361 = vmatmul.mubr.msk.f32.gmra.mxu1 %vm881_vm2, %v6380_v63  ;;  %5501 = vmatmul.mubr.msk.f32.gmra.mxu0 %vm881_vm2, %v874_v37 }
 0x166   :  { %5363 = vmatprep.mubr.msk.f32.mxu1 %vm881_vm2, %v6391_v47  ;;  %5503 = vmatprep.mubr.msk.f32.mxu0 %vm881_vm2, %v876_v9 }
 0x167   :  { %5383 = vmatpush3.msra.mxu1 %v150_v33  ;;  %v654_v33 = vadd.f32 %v6279_v24, %v6173_v20  ;;  %v734_v24 = vadd.f32 %v6331_v26, %v6173_v20  ;;  %v6552_v26 = vadd.f32 %v6176_v23, %v6173_v20  ;;  %v159_v23 = vld [vmem:[%s8353_s25 + $0xb0] sm:$0xff] }
 0x168   :  { %5384 = vmatprep.subr.mxu1 %v149_v45 }
 0x169   :  { %5364 = vmatmul.mubr.msk.f32.gmra.mxu1 %vm881_vm2, %v832_v51  ;;  %5504 = vmatmul.mubr.msk.f32.gmra.mxu0 %vm881_vm2, %v878_v31  ;;  %v848_v14 = vmax.f32 %v654_v33, 0.0  ;;  %v168_v33 = vld [vmem:[%s8353_s25 + $0xf8] sm:$0xff] }
 0x16a   :  { %5366 = vmatprep.mubr.msk.f32.mxu1 %vm881_vm2, %v6402_v58  ;;  %5546 = vmatprep.mubr.msk.f32.mxu0 %vm881_vm2, %v6376_v59  ;;  %v6548_v59 = vadd.f32 %v6168_v19, %v6173_v20  ;;  %v6562_v19 = vadd.f32 %v6180_v27, %v6173_v20 }
 0x16b   :  { %5385 = vmatpush3.msra.mxu1 %v149_v45  ;;  %v604_v45 = vadd.f32 %v6247_v0, %v6173_v20 }
 0x16c   :  { %5442 = vmatprep.subr.mxu1 %v160_v43  ;;  %v822_v27 = vmax.f32 %v6562_v19, 0.0 }
 0x16d   :  { %5367 = vmatmul.mubr.msk.f32.gmra.mxu1 %vm881_vm2, %v6406_v8  ;;  %5547 = vmatmul.mubr.msk.f32.vlgmr.msra.gmra.mxu0 %vm881_vm2, %v6380_v63  ;;  %v864_v63 = vmax.f32 %v734_v24, 0.0  ;;  %v838_v0 = vmax.f32 %v604_v45, 0.0 }
 0x16e   :  { %5369 = vmatprep.mubr.msk.f32.mxu1 %vm881_vm2, %v6419_v16  ;;  %5549 = vmatprep.mubr.msk.f32.mxu0 %vm881_vm2, %v6391_v47  ;;  %v818_v47 = vmax.f32 %v6548_v59, 0.0  ;;  %v868_v59 = vmax.f32 %v754_v3, 0.0  ;;  %v192_v3 = vld [vmem:[%s8357_s4 + $0x90] sm:$0xff] }
 0x171   :  { %5370 = vmatmul.mubr.msk.f32.gmra.mxu1 %vm881_vm2, %v848_v14  ;;  %5550 = vmatmul.mubr.msk.f32.gmra.mxu0 %vm881_vm2, %v832_v51 }
 0x172   :  { %5372 = vmatprep.mubr.msk.f32.mxu1 %vm881_vm2, %v6437_v39  ;;  %5552 = vmatprep.mubr.msk.f32.mxu0 %vm881_vm2, %v6402_v58  ;;  %v820_v58 = vmax.f32 %v6552_v26, 0.0 }
 0x175   :  { %5373 = vmatmul.mubr.msk.f32.gmra.mxu1 %vm881_vm2, %v6441_v6  ;;  %5553 = vmatmul.mubr.msk.f32.gmra.mxu0 %vm881_vm2, %v6406_v8  ;;  %v6574_v8 = vpop.f32.mrf.mxu0 }
 0x176   :  { %5375 = vmatprep.mubr.msk.f32.mxu1 %vm881_vm2, %v6454_v41  ;;  %5555 = vmatprep.mubr.msk.f32.mxu0 %vm881_vm2, %v6419_v16  ;;  %v6579_v16 = vadd.f32 %v6236_v55, %v6173_v20  ;;  %v157_v55 = vld [vmem:[%s8353_s25 + $0xa0] sm:$0xff]  ;;  %v799_v54 = vadd.f32 %v6173_v20, %v6574_v8 }
 0x178   :  { %v877_v22 = vmax.f32 %v799_v54, 0.0 }
 0x179   :  { %5376 = vmatmul.mubr.msk.f32.gmra.mxu1 %vm881_vm2, %v864_v63  ;;  %5556 = vmatmul.mubr.msk.f32.gmra.mxu0 %vm881_vm2, %v848_v14  ;;  %v664_v14 = vadd.f32 %v6288_v29, %v6173_v20  ;;  %v684_v29 = vadd.f32 %v6299_v40, %v6173_v20 }
 0x17a   :  { %5558 = vmatprep.mubr.msk.f32.mxu0 %vm881_vm2, %v6437_v39  ;;  %5386 = vmatprep.mubr.f32.mxu1 %v8343_v57  ;;  %v6583_v39 = vadd.f32 %v6243_v60, %v6173_v20  ;;  %v834_v60 = vmax.f32 %v6579_v16, 0.0 }
 0x17b   :  { %v850_v24 = vmax.f32 %v664_v14, 0.0 }
 0x17d   :  { %5387 = vmatmul.mubr.msk.f32.vlgmr.msra.gmra.mxu1 %vm881_vm2, %v818_v47  ;;  %5559 = vmatmul.mubr.msk.f32.gmra.mxu0 %vm881_vm2, %v6441_v6  ;;  %v158_v6 = vld [vmem:[%s8353_s25 + $0xa8] sm:$0xff] }
 0x17e   :  { %5389 = vmatprep.mubr.msk.f32.mxu1 %vm881_vm2, %v820_v58  ;;  %5561 = vmatprep.mubr.msk.f32.mxu0 %vm881_vm2, %v6454_v41  ;;  %v5281_v41 = vpop.f32.mrf.mxu0 }
 0x17f   :  { %5443 = vmatpush3.msra.mxu1 %v160_v43  ;;  %v814_v51 = vadd.f32 %v5281_v41, %v6173_v20  ;;  %v836_v43 = vmax.f32 %v6583_v39, 0.0  ;;  %v183_v41 = vld [vmem:[%s8357_s4 + $0x48] sm:$0xff] }
 0x180   :  { %5444 = vmatprep.subr.mxu1 %v159_v23 }
 0x181   :  { %5390 = vmatmul.mubr.msk.f32.gmra.mxu1 %vm881_vm2, %v822_v27  ;;  %5562 = vmatmul.mubr.msk.f32.gmra.mxu0 %vm881_vm2, %v864_v63  ;;  %v880_v12 = vmax.f32 %v814_v51, 0.0  ;;  %v196_v51 = vld [vmem:[%s8357_s4 + $0xb0] sm:$0xff] }
 0x182   :  { %5392 = vmatprep.mubr.f32.mxu1 %v8343_v57  ;;  %5445 = vmatpush3.msra.mxu1 %v159_v23 }
 0x183   :  { %5446 = vmatprep.subr.mxu1 %v158_v6  ;;  %5564 = vmatprep.mubr.msk.f32.mxu0 %vm881_vm2, %v874_v37  ;;  %v674_v37 = vadd.f32 %v6295_v34, %v6173_v20  ;;  %v854_v34 = vmax.f32 %v684_v29, 0.0  ;;  %v193_v29 = vld [vmem:[%s8357_s4 + $0x98] sm:$0xff] }
 0x184   :  { %5447 = vmatpush3.msra.mxu1 %v158_v6 }
 0x185   :  { %5393 = vmatmul.mubr.msk.f32.gmra.mxu1 %vm881_vm2, %v834_v60  ;;  %5448 = vmatprep.subr.mxu1 %v157_v55  ;;  %v852_v61 = vmax.f32 %v674_v37, 0.0 }
 0x186   :  { %5395 = vmatprep.mubr.msk.f32.mxu1 %vm881_vm2, %v836_v43  ;;  %5449 = vmatpush3.msra.mxu1 %v157_v55  ;;  %v197_v55 = vld [vmem:[%s8357_s4 + $0xb8] sm:$0xff] }
 0x187   :  { %5506 = vmatprep.subr.mxu1 %v168_v33  ;;  %5565 = vmatmul.mubr.msk.f32.gmra.mxu0 %vm881_vm2, %v876_v9  ;;  %v764_v9 = vadd.f32 %v6356_v1, %v6173_v20  ;;  %v166_v1 = vld [vmem:[%s8353_s25 + $0xe8] sm:$0xff] }
 0x188   :  { %5567 = vmatprep.mubr.msk.f32.mxu0 %vm881_vm2, %v878_v31  ;;  %v744_v31 = vadd.f32 %v6340_v36, %v6173_v20  ;;  %v534_v36 = vadd.f32 %v6187_v32, %v6173_v20  ;;  %v165_v32 = vld [vmem:[%s8353_s25 + $0xe0] sm:$0xff]  ;;  %5624 = vmatprep.subr.mxu0 %v197_v55  ;;  %s8372_s25 = sld [smem:[#allocation21_spill]] }
 0x189   :  { %5396 = vmatmul.mubr.msk.f32.gmra.mxu1 %vm881_vm2, %v838_v0  ;;  %v870_v63 = vmax.f32 %v764_v9, 0.0  ;;  %5625 = vmatpush3.msra.mxu0 %v197_v55  ;;  %v181_v9 = vld [vmem:[%s8357_s4 + $0x38] sm:$0xff] }
 0x18a   :  { %5398 = vmatprep.mubr.f32.mxu1 %v8343_v57  ;;  %v866_v40 = vmax.f32 %v744_v31, 0.0  ;;  %v824_v26 = vmax.f32 %v534_v36, 0.0  ;;  %5626 = vmatprep.subr.mxu0 %v196_v51  ;;  %v182_v31 = vld [vmem:[%s8357_s4 + $0x40] sm:$0xff]  ;;  %v180_v36 = vld [vmem:[%s8357_s4 + $0x30] sm:$0xff] }
 0x18b   :  { %5568 = vmatmul.mubr.msk.f32.gmra.mxu0 %vm881_vm2, %v880_v12  ;;  %v194_v12 = vld [vmem:[%s8357_s4 + $0xa0] sm:$0xff] }
 0x18c   :  { %5636 = vmatprep.mubr.f32.mxu0 %v8343_v57  ;;  %5627 = vmatpush3.msra.mxu0 %v196_v51 }
 0x18d   :  { %5399 = vmatmul.mubr.msk.f32.gmra.mxu1 %vm881_vm2, %v850_v24 }
 0x18e   :  { %5401 = vmatprep.mubr.msk.f32.mxu1 %vm881_vm2, %v852_v61 }
 0x191   :  { %5402 = vmatmul.mubr.msk.f32.gmra.mxu1 %vm881_vm2, %v854_v34 }
 0x192   :  { %5404 = vmatprep.mubr.f32.mxu1 %v8343_v57 }
 0x195   :  { %5405 = vmatmul.mubr.msk.f32.gmra.mxu1 %vm881_vm2, %v866_v40 }
 0x196   :  { %5407 = vmatprep.mubr.msk.f32.mxu1 %vm881_vm2, %v868_v59 }
 0x199   :  { %5408 = vmatmul.mubr.msk.f32.gmra.mxu1 %vm881_vm2, %v870_v63 }
 0x19a   :  { %5450 = vmatprep.mubr.msk.f32.mxu1 %vm881_vm2, %v818_v47  ;;  %v614_v47 = vadd.f32 %v6251_v4, %v6173_v20  ;;  %v774_v4 = vadd.f32 %v6373_v38, %v6173_v20 }
 0x19c   :  { %v840_v19 = vmax.f32 %v614_v47, 0.0  ;;  %v178_v47 = vld [vmem:[%s8357_s4 + $0x20] sm:$0xff] }
 0x19d   :  { %5451 = vmatmul.mubr.msk.f32.vlgmr.msra.gmra.mxu1 %vm881_vm2, %v820_v58  ;;  %v694_v58 = vadd.f32 %v6303_v53, %v6173_v20 }
 0x19e   :  { %5453 = vmatprep.mubr.msk.f32.mxu1 %vm881_vm2, %v822_v27  ;;  %5507 = vmatpush3.msra.mxu1 %v168_v33  ;;  %v872_v27 = vmax.f32 %v774_v4, 0.0 }
 0x19f   :  { %5508 = vmatprep.subr.mxu1 %v167_v49  ;;  %v856_v23 = vmax.f32 %v694_v58, 0.0 }
 0x1a0   :  { %5509 = vmatpush3.msra.mxu1 %v167_v49 }
 0x1a1   :  { %5454 = vmatmul.mubr.msk.f32.gmra.mxu1 %vm881_vm2, %v824_v26  ;;  %5510 = vmatprep.subr.mxu1 %v166_v1  ;;  %v179_v26 = vld [vmem:[%s8357_s4 + $0x28] sm:$0xff] }
 0x1a2   :  { %5456 = vmatprep.mubr.msk.f32.mxu1 %vm881_vm2, %v834_v60  ;;  %5511 = vmatpush3.msra.mxu1 %v166_v1 }
 0x1a3   :  { %5512 = vmatprep.subr.mxu1 %v165_v32 }
 0x1a4   :  { %5513 = vmatpush3.msra.mxu1 %v165_v32 }
 0x1a5   :  { %5457 = vmatmul.mubr.msk.f32.gmra.mxu1 %vm881_vm2, %v836_v43  ;;  %5570 = vmatprep.subr.mxu1 %v185_v21 }
 0x1a6   :  { %5459 = vmatprep.mubr.msk.f32.mxu1 %vm881_vm2, %v838_v0  ;;  %v195_v0 = vld [vmem:[%s8357_s4 + $0xa8] sm:$0xff] }
 0x1a7   :  { %5628 = vmatprep.subr.mxu0 %v195_v0 }
 0x1a8   :  { %5629 = vmatpush3.msra.mxu0 %v195_v0 }
 0x1a9   :  { %5460 = vmatmul.mubr.msk.f32.gmra.mxu1 %vm881_vm2, %v840_v19  ;;  %5630 = vmatprep.subr.mxu0 %v194_v12  ;;  %v6825_v19 = vld [vmem:[%s8357_s4 + $0x118] sm:$0xff] }
 0x1aa   :  { %5462 = vmatprep.mubr.msk.f32.mxu1 %vm881_vm2, %v850_v24  ;;  %5631 = vmatpush3.msra.mxu0 %v194_v12 }
 0x1ab   :  { %5632 = vmatprep.subr.mxu0 %v193_v29 }
 0x1ac   :  { %5633 = vmatpush3.msra.mxu0 %v193_v29 }
 0x1ad   :  { %5463 = vmatmul.mubr.msk.f32.gmra.mxu1 %vm881_vm2, %v852_v61  ;;  %5634 = vmatprep.subr.mxu0 %v192_v3 }
 0x1ae   :  { %5465 = vmatprep.mubr.msk.f32.mxu1 %vm881_vm2, %v854_v34  ;;  %5635 = vmatpush3.msra.mxu0 %v192_v3 }
 0x1af   :  { %5660 = vmatprep.subr.mxu0 %v6825_v19 }
 0x1b1   :  { %5466 = vmatmul.mubr.msk.f32.gmra.mxu1 %vm881_vm2, %v856_v23 }
 0x1b2   :  { %5468 = vmatprep.mubr.msk.f32.mxu1 %vm881_vm2, %v866_v40 }
 0x1b5   :  { %5469 = vmatmul.mubr.msk.f32.gmra.mxu1 %vm881_vm2, %v868_v59 }
 0x1b6   :  { %5471 = vmatprep.mubr.msk.f32.mxu1 %vm881_vm2, %v870_v63 }
 0x1b9   :  { %5472 = vmatmul.mubr.msk.f32.gmra.mxu1 %vm881_vm2, %v872_v27  ;;  %v177_v27 = vld [vmem:[%s8357_s4 + $0x18] sm:$0xff] }
 0x1ba   :  { %5514 = vmatprep.mubr.msk.f32.mxu1 %vm881_vm2, %v825_v44  ;;  %v779_v44 = vadd.f32 %v6173_v20, %v6435_v62 }
 0x1bd   :  { %5515 = vmatmul.mubr.msk.f32.vlgmr.msra.gmra.mxu1 %vm881_vm2, %v827_v48  ;;  %v789_v48 = vadd.f32 %v6173_v20, %v6462_v17  ;;  %v184_v17 = vld [vmem:[%s8357_s4 + $0x50] sm:$0xff] }
 0x1be   :  { %5517 = vmatprep.mubr.msk.f32.mxu1 %vm881_vm2, %v829_v52  ;;  %v873_v52 = vmax.f32 %v779_v44, 0.0  ;;  %5571 = vmatpush3.msra.mxu1 %v185_v21 }
 0x1bf   :  { %v875_v15 = vmax.f32 %v789_v48, 0.0  ;;  %5572 = vmatprep.subr.mxu1 %v184_v17  ;;  %v176_v48 = vld [vmem:[%s8357_s4 + $0x10] sm:$0xff] }
 0x1c0   :  { %5573 = vmatpush3.msra.mxu1 %v184_v17 }
 0x1c1   :  { %5518 = vmatmul.mubr.msk.f32.gmra.mxu1 %vm881_vm2, %v831_v56  ;;  %v808_v56 = vpop.f32.mrf.mxu0  ;;  %5574 = vmatprep.subr.mxu1 %v183_v41 }
 0x1c2   :  { %5520 = vmatprep.mubr.msk.f32.mxu1 %vm881_vm2, %v841_v13  ;;  %v809_v11 = vadd.f32 %v6173_v20, %v808_v56  ;;  %v8356_v13 = vmax.f32 %v6335_v35, 0.0  ;;  %5575 = vmatpush3.msra.mxu1 %v183_v41  ;;  %v175_v56 = vld [vmem:[%s8357_s4 + $0x8] sm:$0xff] }
 0x1c3   :  { %v6742_v35 = vpop.f32.mrf.mxu0  ;;  %5576 = vmatprep.subr.mxu1 %v182_v31 }
 0x1c4   :  { %5577 = vmatpush3.msra.mxu1 %v182_v31 }
 0x1c5   :  { %5521 = vmatmul.mubr.msk.f32.gmra.mxu1 %vm881_vm2, %v843_v18  ;;  %v6717_v18 = vpop.f32.mrf.mxu1  ;;  %v6751_v8 = vpop.f32.mrf.mxu0  ;;  %5578 = vmatprep.subr.mxu1 %v181_v9 }
 0x1c6   :  { %5523 = vmatprep.mubr.msk.f32.mxu1 %vm881_vm2, %v845_v25  ;;  %v879_v25 = vmax.f32 %v809_v11, 0.0  ;;  %5579 = vmatpush3.msra.mxu1 %v181_v9 }
 0x1c7   :  { %v6721_v28 = vpop.f32.mrf.mxu1  ;;  %v6753_v16 = vpop.f32.mrf.mxu0  ;;  %5580 = vmatprep.subr.mxu1 %v180_v36 }
 0x1c8   :  { %5581 = vmatpush3.msra.mxu1 %v180_v36 }
 0x1c9   :  { %5524 = vmatmul.mubr.msk.f32.gmra.mxu1 %vm881_vm2, %v847_v30  ;;  %v6725_v20 = vpop.f32.mrf.mxu1  ;;  %v6765_v60 = vpop.f32.mrf.mxu0  ;;  %5588 = vmatprep.subr.mxu1 %v179_v26 }
 0x1ca   :  { %5526 = vmatprep.mubr.msk.f32.mxu1 %vm881_vm2, %v857_v5 }
 0x1cb   :  { %v6727_v30 = vpop.f32.mrf.mxu1  ;;  %v6772_v43 = vpop.f32.mrf.mxu0 }
 0x1cd   :  { %5527 = vmatmul.mubr.msk.f32.gmra.mxu1 %vm881_vm2, %v859_v10  ;;  %v6729_v53 = vpop.f32.mrf.mxu1  ;;  %v6784_v37 = vpop.f32.mrf.mxu0 }
 0x1ce   :  { %5529 = vmatprep.mubr.msk.f32.mxu1 %vm881_vm2, %v8355_v46 }
 0x1cf   :  { %v6731_v2 = vpop.f32.mrf.mxu1  ;;  %v6791_v61 = vpop.f32.mrf.mxu0 }
 0x1d1   :  { %5530 = vmatmul.mubr.msk.f32.gmra.mxu1 %vm881_vm2, %v8356_v13  ;;  %v6733_v5 = vpop.f32.mrf.mxu1  ;;  %v6806_v59 = vpop.f32.mrf.mxu0 }
 0x1d2   :  { %5532 = vmatprep.mubr.msk.f32.mxu1 %vm881_vm2, %v873_v52 }
 0x1d3   :  { %v6735_v7 = vpop.f32.mrf.mxu1 }
 0x1d5   :  { %5533 = vmatmul.mubr.msk.f32.gmra.mxu1 %vm881_vm2, %v875_v15  ;;  %v174_v15 = vld [vmem:[%s8357_s4] sm:$0xff] }
 0x1d6   :  { %5535 = vmatprep.mubr.msk.f32.mxu1 %vm881_vm2, %v877_v22 }
 0x1d9   :  { %5536 = vmatmul.mubr.msk.f32.gmra.mxu1 %vm881_vm2, %v879_v25  ;;  %v6737_v10 = vpop.f32.mrf.mxu1 }
 0x1da   :  { %5582 = vmatprep.mubr.f32.mxu1 %v8343_v57 }
 0x1db   :  { %v6744_v38 = vpop.f32.mrf.mxu1 }
 0x1dd   :  { %5583 = vmatmul.mubr.f32.vlgmr.msra.gmra.mxu1 %v8343_v57 }
 0x1de   :  { %5589 = vmatpush3.msra.mxu1 %v179_v26 }
 0x1df   :  { %5590 = vmatprep.subr.mxu1 %v178_v47 }
 0x1e0   :  { %5591 = vmatpush3.msra.mxu1 %v178_v47 }
 0x1e1   :  { %v6813_v49 = vpop.f32.mrf.mxu0  ;;  %5592 = vmatprep.subr.mxu1 %v177_v27 }
 0x1e2   :  { %5593 = vmatpush3.msra.mxu1 %v177_v27 }
 0x1e3   :  { %v6827_v58 = vpop.f32.mrf.mxu0  ;;  %5594 = vmatprep.subr.mxu1 %v176_v48 }
 0x1e4   :  { %8358 = vst [vmem:[#allocation2_spill] sm:$0xff] %v6827_v58  ;;  %5595 = vmatpush3.msra.mxu1 %v176_v48 }
 0x1e5   :  { %5596 = vmatprep.subr.mxu1 %v175_v56 }
 0x1e6   :  { %5597 = vmatpush3.msra.mxu1 %v175_v56 }
 0x1e7   :  { %5598 = vmatprep.subr.mxu1 %v174_v15 }
 0x1e8   :  { %5599 = vmatpush3.msra.mxu1 %v174_v15 }
 0x1e9   :  { %v6834_v44 = vpop.f32.mrf.mxu0 }
 0x1eb   :  { %v6843_v11 = vpop.f32.mrf.mxu0 }
 0x1ec   :  { %8359 = vst [vmem:[#allocation3_spill] sm:$0xff] %v6843_v11 }
 0x1f1   :  { %v6746_v62 = vpop.f32.mrf.mxu1 }
 0x1f3   :  { %v6755_v39 = vpop.f32.mrf.mxu1 }
 0x1f9   :  { %v6757_v6 = vpop.f32.mrf.mxu1 }
 0x1fb   :  { %v6767_v45 = vpop.f32.mrf.mxu1 }
 0x1fd   :  { %v6774_v33 = vpop.f32.mrf.mxu1 }
 0x1fe   :  { %v1165_v0 = vadd.f32 %v6774_v33, %v6696_v42 }
 0x1ff   :  { %v6779_v14 = vpop.f32.mrf.mxu1 }
 0x201   :  { %v6786_v24 = vpop.f32.mrf.mxu1  ;;  %v6848_v22 = vpop.f32.mrf.mxu0 }
 0x202   :  { %v1175_v3 = vadd.f32 %v6786_v24, %v6717_v18 }
 0x203   :  { %v6793_v34 = vpop.f32.mrf.mxu1  ;;  %v6857_v17 = vpop.f32.mrf.mxu0 }
 0x204   :  { %v1170_v26 = vadd.f32 %v6793_v34, %v6721_v28 }
 0x205   :  { %v6801_v40 = vpop.f32.mrf.mxu1 }
 0x206   :  { %v1185_v42 = vadd.f32 %v6801_v40, %v6725_v20 }
 0x207   :  { %v6808_v63 = vpop.f32.mrf.mxu1 }
 0x208   :  { %v1180_v48 = vadd.f32 %v6808_v63, %v6727_v30 }
 0x209   :  { %v5333_v1 = vpop.f32.mrf.mxu1  ;;  %v6862_v12 = vpop.f32.mrf.mxu0 }
 0x20a   :  { %v1195_v24 = vadd.f32 %v5333_v1, %v6729_v53 }
 0x20b   :  { %v1189_v32 = vpop.f32.mrf.mxu1  ;;  %v6868_v9 = vpop.f32.mrf.mxu0 }
 0x20c   :  { %v1190_v34 = vadd.f32 %v1189_v32, %v6731_v2 }
 0x20d   :  { %v5336_v23 = vpop.f32.mrf.mxu1 }
 0x20e   :  { %v1205_v4 = vadd.f32 %v5336_v23, %v6733_v5  ;;  %v6874_v23 = vpop.f32.mrf.mxu0 }
 0x20f   :  { %v1199_v46 = vpop.f32.mrf.mxu1 }
 0x210   :  { %v6881_v15 = vpop.f32.mrf.mxu0  ;;  %v1200_v30 = vadd.f32 %v1199_v46, %v6735_v7 }
 0x211   :  { %v5339_v52 = vpop.f32.mrf.mxu1 }
 0x212   :  { %v1215_v54 = vadd.f32 %v5339_v52, %v6737_v10  ;;  %v6854_v10 = vld [vmem:[%s8357_s4 + $0x88] sm:$0xff] }
 0x213   :  { %v1209_v13 = vpop.f32.mrf.mxu1  ;;  %5606 = vmatprep.subr.mxu1 %v6854_v10 }
 0x215   :  { %v5342_v25 = vpop.f32.mrf.mxu1 }
 0x216   :  { %v1225_v5 = vadd.f32 %v5342_v25, %v6746_v62 }
 0x217   :  { %v1219_v21 = vpop.f32.mrf.mxu1 }
 0x219   :  { %v5345_v55 = vpop.f32.mrf.mxu1 }
 0x21a   :  { %v1235_v41 = vadd.f32 %v5345_v55, %v6757_v6  ;;  %v6886_v55 = vpop.f32.mrf.mxu0 }
 0x21b   :  { %v1229_v51 = vpop.f32.mrf.mxu1 }
 0x21c   :  { %v6891_v1 = vpop.f32.mrf.mxu0 }
 0x21d   :  { %v5356_v62 = vpop.f32.mrf.mxu1  ;;  %8360 = vst [vmem:[#allocation4_spill] sm:$0xff] %v6891_v1 }
 0x21e   :  { %v6864_v29 = vadd.f32 %v5356_v62, %v1165_v0 }
 0x21f   :  { %v1313_v31 = vpop.f32.mrf.mxu1 }
 0x221   :  { %v5359_v36 = vpop.f32.mrf.mxu1 }
 0x222   :  { %v1395_v6 = vadd.f32 %v5359_v36, %v1175_v3  ;;  %v1210_v36 = vadd.f32 %v1209_v13, %v6744_v38  ;;  %v1160_v38 = vadd.f32 %v6779_v14, %v6708_v50 }
 0x223   :  { %v1323_v47 = vpop.f32.mrf.mxu1 }
 0x224   :  { %v1394_v33 = vadd.f32 %v1323_v47, %v1170_v26  ;;  %v6896_v47 = vpop.f32.mrf.mxu0 }
 0x225   :  { %v5362_v27 = vpop.f32.mrf.mxu1 }
 0x226   :  { %v1397_v52 = vadd.f32 %v5362_v27, %v1185_v42  ;;  %v1220_v27 = vadd.f32 %v1219_v21, %v6755_v39  ;;  %v6899_v46 = vpop.f32.mrf.mxu0 }
 0x227   :  { %v1333_v18 = vpop.f32.mrf.mxu1 }
 0x228   :  { %v6879_v56 = vadd.f32 %v1333_v18, %v1180_v48  ;;  %v6904_v13 = vpop.f32.mrf.mxu0 }
 0x229   :  { %v5365_v28 = vpop.f32.mrf.mxu1 }
 0x22a   :  { %v1399_v25 = vadd.f32 %v5365_v28, %v1195_v24  ;;  %v1230_v24 = vadd.f32 %v1229_v51, %v6767_v45 }
 0x22b   :  { %v1343_v20 = vpop.f32.mrf.mxu1 }
 0x22c   :  { %v6884_v40 = vadd.f32 %v1343_v20, %v1190_v34 }
 0x22d   :  { %v5368_v0 = vpop.f32.mrf.mxu1 }
 0x22e   :  { %v6889_v63 = vadd.f32 %v5368_v0, %v1205_v4  ;;  %v1392_v0 = vadd.f32 %v1313_v31, %v1160_v38 }
 0x22f   :  { %v1353_v62 = vpop.f32.mrf.mxu1 }
 0x230   :  { %v1400_v53 = vadd.f32 %v1353_v62, %v1200_v30 }
 0x231   :  { %v5371_v3 = vpop.f32.mrf.mxu1 }
 0x232   :  { %v6894_v26 = vadd.f32 %v5371_v3, %v1215_v54 }
 0x233   :  { %v1363_v2 = vpop.f32.mrf.mxu1 }
 0x234   :  { %v1402_v32 = vadd.f32 %v1363_v2, %v1210_v36 }
 0x235   :  { %v5374_v42 = vpop.f32.mrf.mxu1 }
 0x236   :  { %v1405_v48 = vadd.f32 %v5374_v42, %v1225_v5  ;;  %v6906_v5 = vpop.f32.mrf.mxu0 }
 0x237   :  { %v1373_v7 = vpop.f32.mrf.mxu1 }
 0x238   :  { %v1404_v4 = vadd.f32 %v1373_v7, %v1220_v27  ;;  %v6910_v45 = vpop.f32.mrf.mxu0 }
 0x239   :  { %v5377_v18 = vpop.f32.mrf.mxu1 }
 0x23a   :  { %v1407_v28 = vadd.f32 %v5377_v18, %v1235_v41  ;;  %v6914_v14 = vpop.f32.mrf.mxu0 }
 0x23b   :  { %v1383_v34 = vpop.f32.mrf.mxu1  ;;  %8361 = vst [vmem:[#allocation5_spill] sm:$0xff] %v6914_v14 }
 0x23c   :  { %v1406_v54 = vadd.f32 %v1383_v34, %v1230_v24  ;;  %v6920_v27 = vpop.f32.mrf.mxu0 }
 0x23d   :  { %v5388_v20 = vpop.f32.mrf.mxu1 }
 0x23f   :  { %v1510_v30 = vpop.f32.mrf.mxu1 }
 0x240   :  { %v1589_v39 = vadd.f32 %v1510_v30, %v1392_v0 }
 0x241   :  { %v5391_v21 = vpop.f32.mrf.mxu1 }
 0x242   :  { %v6908_v62 = vadd.f32 %v5391_v21, %v1395_v6 }
 0x243   :  { %v1520_v3 = vpop.f32.mrf.mxu1 }
 0x244   :  { %v1591_v36 = vadd.f32 %v1520_v3, %v1394_v33  ;;  %v6926_v33 = vpop.f32.mrf.mxu0 }
 0x245   :  { %v5394_v41 = vpop.f32.mrf.mxu1  ;;  %8363 = vst [vmem:[#allocation7_spill] sm:$0xff] %v6926_v33 }
 0x246   :  { %v6912_v51 = vadd.f32 %v5394_v41, %v1397_v52  ;;  %v6932_v38 = vpop.f32.mrf.mxu0 }
 0x247   :  { %v1530_v50 = vpop.f32.mrf.mxu1  ;;  %8365 = vst [vmem:[#allocation9_spill] sm:$0xff] %v6932_v38 }
 0x248   :  { %v6936_v3 = vpop.f32.mrf.mxu0 }
 0x249   :  { %v5397_v2 = vpop.f32.mrf.mxu1 }
 0x24a   :  { %v6916_v42 = vadd.f32 %v5397_v2, %v1399_v25  ;;  %v6940_v57 = vpop.f32.mrf.mxu0 }
 0x24b   :  { %v6918_v31 = vpop.f32.mrf.mxu1 }
 0x24c   :  { %v6943_v38 = vpop.f32.mrf.mxu0 }
 0x24d   :  { %v6922_v7 = vpop.f32.mrf.mxu1  ;;  %8366 = vst [vmem:[#allocation10_spill] sm:$0xff] %v6943_v38 }
 0x24f   :  { %v1550_v6 = vpop.f32.mrf.mxu1 }
 0x250   :  { %v6924_v18 = vadd.f32 %v1550_v6, %v1400_v53 }
 0x251   :  { %v6928_v24 = vpop.f32.mrf.mxu1 }
 0x252   :  { %8362 = vst [vmem:[#allocation6_spill] sm:$0xff] %v6924_v18 }
 0x253   :  { %v1560_v52 = vpop.f32.mrf.mxu1 }
 0x254   :  { %v6930_v34 = vadd.f32 %v1560_v52, %v1402_v32  ;;  %v1798_v32 = vadd.f32 %v6751_v8, %v1589_v39 }
 0x255   :  { %v5406_v25 = vpop.f32.mrf.mxu1 }
 0x256   :  { %8364 = vst [vmem:[#allocation8_spill] sm:$0xff] %v6930_v34  ;;  %v1602_v0 = vadd.f32 %v5406_v25, %v1405_v48 }
 0x257   :  { %v1570_v30 = vpop.f32.mrf.mxu1 }
 0x258   :  { %v6934_v21 = vadd.f32 %v1570_v30, %v1404_v4  ;;  %v1800_v4 = vadd.f32 %v6765_v60, %v1591_v36  ;;  %v1590_v36 = vadd.f32 %v5388_v20, %v6864_v29 }
 0x259   :  { %v5409_v41 = vpop.f32.mrf.mxu1 }
 0x25a   :  { %v1604_v2 = vadd.f32 %v5409_v41, %v1407_v28 }
 0x25b   :  { %v1580_v53 = vpop.f32.mrf.mxu1 }
 0x25c   :  { %v6938_v6 = vadd.f32 %v1580_v53, %v1406_v54  ;;  %v5548_v54 = vpop.f32.mrf.mxu0 }
 0x25d   :  { %v5452_v33 = vpop.f32.mrf.mxu1 }
 0x25e   :  { %v6953_v1 = vpop.f32.mrf.mxu0 }
 0x25f   :  { %v1892_v52 = vpop.f32.mrf.mxu1  ;;  %8369 = vst [vmem:[#allocation13_spill] sm:$0xff] %v6953_v1  ;;  %v1799_v1 = vadd.f32 %v6742_v35, %v1590_v36 }
 0x260   :  { %v1971_v14 = vadd.f32 %v1892_v52, %v1798_v32  ;;  %v6957_v32 = vpop.f32.mrf.mxu0 }
 0x261   :  { %v5455_v48 = vpop.f32.mrf.mxu1 }
 0x262   :  { %v6947_v25 = vadd.f32 %v6881_v15, %v1971_v14  ;;  %v6961_v60 = vpop.f32.mrf.mxu0 }
 0x263   :  { %v1902_v30 = vpop.f32.mrf.mxu1  ;;  %8371 = vst [vmem:[#allocation15_spill] sm:$0xff] %v6961_v60  ;;  %v1813_v60 = vadd.f32 %v6862_v12, %v1604_v2 }
 0x264   :  { %8367 = vst [vmem:[#allocation11_spill] sm:$0xff] %v6947_v25  ;;  %v6949_v28 = vadd.f32 %v1902_v30, %v1800_v4  ;;  %v1811_v4 = vadd.f32 %v6848_v22, %v1602_v0  ;;  %v6969_v30 = vpop.f32.mrf.mxu0  ;;  %v1593_v22 = vadd.f32 %v1530_v50, %v6879_v56 }
 0x265   :  { %v6951_v41 = vpop.f32.mrf.mxu1 }
 0x266   :  { %8368 = vst [vmem:[#allocation12_spill] sm:$0xff] %v6949_v28  ;;  %v2419_v18 = vpop.f32.mrf.mxu0 }
 0x267   :  { %v1912_v53 = vpop.f32.mrf.mxu1 }
 0x268   :  { %v6983_v0 = vpop.f32.mrf.mxu0 }
 0x269   :  { %v6955_v8 = vpop.f32.mrf.mxu1 }
 0x26a   :  { %v2429_v56 = vpop.f32.mrf.mxu0 }
 0x26b   :  { %v1922_v39 = vpop.f32.mrf.mxu1 }
 0x26d   :  { %v5464_v52 = vpop.f32.mrf.mxu1 }
 0x26f   :  { %v6959_v11 = vpop.f32.mrf.mxu1 }
 0x270   :  { %8370 = vst [vmem:[#allocation14_spill] sm:$0xff] %v6959_v11  ;;  %v1972_v11 = vadd.f32 %v5452_v33, %v1799_v1  ;;  %v6988_v1 = vld [vmem:[%s8372_s25] ss:$0 sm:$0xff]  ;;  %v1595_v33 = vadd.f32 %v6918_v31, %v6884_v40  ;;  %v5560_v31 = vpop.f32.mrf.mxu0 }
 0x271   :  { %v6963_v15 = vpop.f32.mrf.mxu1 }
 0x272   :  { %v2142_v20 = vadd.f32 %v6874_v23, %v1972_v11  ;;  %v1598_v11 = vadd.f32 %v6922_v7, %v6889_v63  ;;  %v1804_v40 = vadd.f32 %v6806_v59, %v1595_v33  ;;  %v208_v63 = vld [vmem:[%s8357_s4 + $0x110] sm:$0xff]  ;;  %v1803_v59 = vadd.f32 %v6772_v43, %v6912_v51  ;;  %v206_v43 = vld [vmem:[%s8357_s4 + $0x100] sm:$0xff] }
 0x273   :  { %v6966_v14 = vpop.f32.mrf.mxu1 }
 0x275   :  { %v5470_v28 = vpop.f32.mrf.mxu1 }
 0x276   :  { %v6972_v34 = vadd.f32 %v5470_v28, %v1811_v4  ;;  %v1801_v4 = vadd.f32 %v6753_v16, %v6908_v62 }
 0x277   :  { %v6974_v58 = vpop.f32.mrf.mxu1 }
 0x278   :  { %v1974_v7 = vadd.f32 %v5455_v48, %v1801_v4 }
 0x279   :  { %v5473_v38 = vpop.f32.mrf.mxu1 }
 0x27a   :  { %v6977_v25 = vadd.f32 %v5473_v38, %v1813_v60  ;;  %v1802_v38 = vadd.f32 %v6784_v37, %v1593_v22 }
 0x27b   :  { %v6979_v29 = vpop.f32.mrf.mxu1 }
 0x27c   :  { %v1975_v23 = vadd.f32 %v1912_v53, %v1802_v38  ;;  %v1977_v53 = vadd.f32 %v1922_v39, %v1804_v40  ;;  %v7023_v39 = vpop.f32.mrf.mxu0 }
 0x27d   :  { %v5516_v35 = vpop.f32.mrf.mxu1 }
 0x27e   :  { %v2315_v28 = vadd.f32 %v5516_v35, %v2142_v20  ;;  %v1807_v20 = vadd.f32 %v6813_v49, %v1598_v11  ;;  %v2145_v16 = vadd.f32 %v6899_v46, %v1975_v23  ;;  %v1976_v35 = vadd.f32 %v6951_v41, %v1803_v59 }
 0x27f   :  { %v6990_v12 = vpop.f32.mrf.mxu1 }
 0x280   :  { %v2479_v2 = vadd.f32 %v5548_v54, %v2315_v28  ;;  %v1600_v54 = vadd.f32 %v6928_v24, %v6894_v26  ;;  %v207_v26 = vld [vmem:[%s8357_s4 + $0x108] sm:$0xff]  ;;  %v8373_v24 = vmov 0.0   ;;  %v1980_v48 = vadd.f32 %v5464_v52, %v1807_v20 }
 0x281   :  { %v5519_v50 = vpop.f32.mrf.mxu1  ;;  %v2147_v52 = vadd.f32 %v6906_v5, %v1977_v53  ;;  %v2146_v5 = vadd.f32 %v6896_v47, %v1976_v35  ;;  %v221_v47 = vld [vmem:[%s8357_s4 + $0x178] sm:$0xff]  ;;  %v1810_v35 = vadd.f32 %v6857_v17, %v6934_v21  ;;  %v1812_v17 = vadd.f32 %v6868_v9, %v6938_v6 }
 0x282   :  { %v6998_v60 = vadd.f32 %v6988_v1, %v2479_v2  ;;  %v1809_v46 = vadd.f32 %v6834_v44, %v1600_v54  ;;  %v205_v44 = vld [vmem:[%s8357_s4 + $0xf8] sm:$0xff]  ;;  %v2150_v23 = vadd.f32 %v6910_v45, %v1980_v48 }
 0x283   :  { %v7000_v36 = vpop.f32.mrf.mxu1 }
 0x284   :  { %v2517_v37 = vmax.f32 %v6998_v60, 0.0  ;;  %v1982_v33 = vadd.f32 %v6963_v15, %v1809_v46  ;;  %v204_v15 = vld [vmem:[%s8357_s4 + $0xf0] sm:$0xff]  ;;  %v189_v60 = vld [vmem:[%s8357_s4 + $0x78] sm:$0xff] }
 0x285   :  { %v5522_v22 = vpop.f32.mrf.mxu1 }
 0x286   :  { %5637 = vmatmul.mubr.msk.f32.vlgmr.msra.gmra.mxu0 %vm2532_vm3, %v2517_v37  ;;  %v2319_v54 = vadd.f32 %v5522_v22, %v2146_v5  ;;  %v2152_v45 = vadd.f32 %v6920_v27, %v1982_v33 }
 0x287   :  { %v2255_v62 = vpop.f32.mrf.mxu1  ;;  %5661 = vmatpush3.msra.mxu0 %v6825_v19  ;;  %5639 = vmatprep.mubr.f32.mxu0 %v8373_v24  ;;  %v2144_v19 = vadd.f32 %v6886_v55, %v1974_v7  ;;  %v5563_v55 = vpop.f32.mrf.mxu0 }
 0x288   :  { %v2318_v49 = vadd.f32 %v2255_v62, %v2145_v16  ;;  %5662 = vmatprep.subr.mxu0 %v208_v63  ;;  %v2483_v62 = vadd.f32 %v6969_v30, %v2319_v54  ;;  %v8377_v54 = vld [vmem:[#allocation2_spill] sm:$0xff] }
 0x289   :  { %v7027_v28 = vpop.f32.mrf.mxu1  ;;  %5663 = vmatpush3.msra.mxu0 %v208_v63  ;;  %v2317_v41 = vadd.f32 %v5519_v50, %v2144_v19  ;;  %v1983_v19 = vadd.f32 %v6974_v58, %v1810_v35  ;;  %v2156_v58 = vadd.f32 %v6940_v57, %v6977_v25  ;;  %v220_v57 = vld [vmem:[%s8357_s4 + $0x170] sm:$0xff] }
 0x28a   :  { %v2482_v51 = vadd.f32 %v2419_v18, %v2318_v49  ;;  %5664 = vmatprep.subr.mxu0 %v207_v26  ;;  %v1805_v49 = vadd.f32 %v6791_v61, %v6916_v42  ;;  %v190_v61 = vld [vmem:[%s8357_s4 + $0x80] sm:$0xff] }
 0x28b   :  { %v2265_v38 = vpop.f32.mrf.mxu1  ;;  %5665 = vmatpush3.msra.mxu0 %v207_v26  ;;  %v2481_v7 = vadd.f32 %v6957_v32, %v2317_v41  ;;  %v219_v41 = vld [vmem:[%s8357_s4 + $0x168] sm:$0xff] }
 0x28c   :  { %v7039_v2 = vadd.f32 %v6988_v1, %v2482_v51  ;;  %v2320_v11 = vadd.f32 %v2265_v38, %v2147_v52  ;;  %5666 = vmatprep.subr.mxu0 %v206_v43  ;;  %v2505_v52 = vadd.f32 %v6988_v1, %v2483_v62  ;;  %v2153_v38 = vadd.f32 %v6936_v3, %v1983_v19  ;;  %v8374_v3 = vld [vmem:[#allocation11_spill] sm:$0xff]  ;;  %v186_v62 = vld [vmem:[%s8357_s4 + $0x60] sm:$0xff]  ;;  %v8382_v19 = vld [vmem:[#allocation12_spill] sm:$0xff] }
 0x28d   :  { %v5528_v18 = vpop.f32.mrf.mxu1  ;;  %5667 = vmatpush3.msra.mxu0 %v206_v43  ;;  %v2503_v26 = vadd.f32 %v6988_v1, %v2481_v7  ;;  %v1978_v43 = vadd.f32 %v6955_v8, %v1805_v49  ;;  %v8378_v7 = vld [vmem:[#allocation14_spill] sm:$0xff]  ;;  %v8380_v49 = vld [vmem:[#allocation3_spill] sm:$0xff] }
 0x28e   :  { %v2520_v4 = vmax.f32 %v7039_v2, 0.0  ;;  %v2484_v40 = vadd.f32 %v2429_v56, %v2320_v11  ;;  %v2323_v50 = vadd.f32 %v5528_v18, %v2150_v23  ;;  %5668 = vmatprep.subr.mxu0 %v205_v44  ;;  %v7060_v56 = vpop.f32.mrf.mxu0  ;;  %v8375_v18 = vld [vmem:[#allocation10_spill] sm:$0xff]  ;;  %v216_v2 = vld [vmem:[%s8357_s4 + $0x150] sm:$0xff] }
 0x28f   :  { %v7047_v63 = vpop.f32.mrf.mxu1  ;;  %5669 = vmatpush3.msra.mxu0 %v205_v44  ;;  %v2519_v42 = vmax.f32 %v2503_v26, 0.0  ;;  %v2148_v25 = vadd.f32 %v6904_v13, %v1978_v43  ;;  %v217_v26 = vld [vmem:[%s8357_s4 + $0x158] sm:$0xff] }
 0x290   :  { %v7055_v53 = vadd.f32 %v6988_v1, %v2484_v40  ;;  %v2487_v20 = vadd.f32 %v5560_v31, %v2323_v50  ;;  %5585 = vmatprep.mubr.msk.f32.mxu1 %vm2532_vm3, %v2520_v4  ;;  %5670 = vmatprep.subr.mxu0 %v204_v15  ;;  %v7064_v32 = vpop.f32.mrf.mxu0  ;;  %v8376_v50 = vld [vmem:[#allocation6_spill] sm:$0xff] }
 0x291   :  { %v5531_v22 = vpop.f32.mrf.mxu1  ;;  %5671 = vmatpush3.msra.mxu0 %v204_v15  ;;  %v2321_v11 = vadd.f32 %v7027_v28, %v2148_v25  ;;  %v187_v28 = vld [vmem:[%s8357_s4 + $0x68] sm:$0xff]  ;;  %v201_v25 = vld [vmem:[%s8357_s4 + $0xd8] sm:$0xff] }
 0x292   :  { %v2522_v27 = vmax.f32 %v7055_v53, 0.0  ;;  %v2509_v16 = vadd.f32 %v6988_v1, %v2487_v20  ;;  %v2325_v59 = vadd.f32 %v5531_v22, %v2152_v45  ;;  %5696 = vmatprep.subr.mxu0 %v221_v47  ;;  %v2459_v51 = vpop.f32.mrf.mxu0  ;;  %v1806_v45 = vadd.f32 %v8377_v54, %v8376_v50  ;;  %v3391_v53 = vld [vmem:[%s8321_s8] sm:$0x3]  ;;  %v8387_v50 = vld [vmem:[#allocation9_spill] sm:$0xff] }
 0x293   :  { %v7067_v31 = vpop.f32.mrf.mxu1  ;;  %v2485_v22 = vadd.f32 %v6983_v0, %v2321_v11  ;;  %v200_v11 = vld [vmem:[%s8357_s4 + $0xd0] sm:$0xff]  ;;  %v2154_v54 = vadd.f32 %v8387_v50, %v6972_v34  ;;  %v211_v34 = vld [vmem:[%s8357_s4 + $0x128] sm:$0xff] }
 0x294   :  { %v2525_v48 = vmax.f32 %v2509_v16, 0.0  ;;  %5586 = vmatmul.mubr.msk.f32.gmra.mxu1 %vm2532_vm3, %v2522_v27  ;;  %v2489_v30 = vadd.f32 %v5563_v55, %v2325_v59  ;;  %v5569_v8 = vpop.f32.mrf.mxu0  ;;  %v2314_v55 = vadd.f32 %v6990_v12, %v8374_v3  ;;  %v218_v12 = vld [vmem:[%s8357_s4 + $0x160] sm:$0xff]  ;;  %v1979_v20 = vadd.f32 %v8378_v7, %v1806_v45  ;;  %v213_v45 = vld [vmem:[%s8357_s4 + $0x138] sm:$0xff]  ;;  %v212_v7 = vld [vmem:[%s8357_s4 + $0x130] sm:$0xff] }
 0x295   :  { %v7077_v46 = vpop.f32.mrf.mxu1  ;;  %5600 = vmatprep.mubr.f32.mxu1 %v8373_v24  ;;  %v198_v3 = vld [vmem:[%s8357_s4 + $0xc0] sm:$0xff] }
 0x296   :  { %5640 = vmatmul.mubr.msk.f32.gmra.mxu0 %vm2532_vm3, %v2525_v48  ;;  %v2511_v9 = vadd.f32 %v6988_v1, %v2489_v30  ;;  %v2469_v59 = vpop.f32.mrf.mxu0  ;;  %v8381_v30 = vld [vmem:[#allocation13_spill] sm:$0xff] }
 0x297   :  { %v2295_v33 = vpop.f32.mrf.mxu1  ;;  %5672 = vmatprep.mubr.msk.f32.mxu0 %vm2532_vm3, %v2517_v37  ;;  %v1985_v37 = vadd.f32 %v6979_v29, %v1812_v17  ;;  %v188_v29 = vld [vmem:[%s8357_s4 + $0x70] sm:$0xff]  ;;  %v2478_v43 = vadd.f32 %v8381_v30, %v2314_v55  ;;  %v8384_v17 = vld [vmem:[#allocation5_spill] sm:$0xff]  ;;  %v3390_v55 = vld [vmem:[%s8322_s7] sm:$0xff] }
 0x298   :  { %5601 = vmatmul.mubr.f32.vlgmr.msra.gmra.mxu1 %v8373_v24  ;;  %v2326_v23 = vadd.f32 %v2295_v33, %v2153_v38  ;;  %v2527_v5 = vmax.f32 %v2511_v9, 0.0  ;;  %v8386_v38 = vld [vmem:[#allocation15_spill] sm:$0xff] }
 0x299   :  { %5607 = vmatpush3.msra.mxu1 %v6854_v10  ;;  %v5537_v21 = vpop.f32.mrf.mxu1  ;;  %5603 = vmatprep.mubr.f32.mxu1 %v8373_v24  ;;  %v7106_v10 = vmax.f32 %v2505_v52, 0.0  ;;  %v2155_v15 = vadd.f32 %v8375_v18, %v1985_v37  ;;  %v8385_v37 = vld [vmem:[#allocation7_spill] sm:$0xff] }
 0x29a   :  { %v2329_v6 = vadd.f32 %v5537_v21, %v2156_v58  ;;  %5608 = vmatprep.subr.mxu1 %v190_v61  ;;  %5673 = vmatmul.mubr.msk.f32.vlgmr.msra.gmra.mxu0 %vm2532_vm3, %v2519_v42  ;;  %v2490_v16 = vadd.f32 %v2459_v51, %v2326_v23  ;;  %v8383_v51 = vld [vmem:[#allocation4_spill] sm:$0xff]  ;;  %v2149_v42 = vadd.f32 %v8384_v17, %v1979_v20  ;;  %v3506_v30 = vld [vmem:[%s8323_s10 + $0xe8] sm:$0xff] }
 0x29b   :  { %5609 = vmatpush3.msra.mxu1 %v190_v61  ;;  %5697 = vmatpush3.msra.mxu0 %v221_v47  ;;  %v2305_v13 = vpop.f32.mrf.mxu1  ;;  %v2143_v52 = vadd.f32 %v8383_v51, %v8382_v19  ;;  %v203_v61 = vld [vmem:[%s8357_s4 + $0xe8] sm:$0xff]  ;;  %v2500_v58 = vadd.f32 %v6988_v1, %v2478_v43  ;;  %v3505_v43 = vld [vmem:[%s8323_s10 + $0xe0] sm:$0xff]  ;;  %v3504_v19 = vld [vmem:[%s8323_s10 + $0xd8] sm:$0xff] }
 0x29c   :  { %v2493_v44 = vadd.f32 %v5569_v8, %v2329_v6  ;;  %5610 = vmatprep.subr.mxu1 %v189_v60  ;;  %5675 = vmatprep.mubr.msk.f32.mxu0 %vm2532_vm3, %v2525_v48  ;;  %v2328_v47 = vadd.f32 %v2305_v13, %v2155_v15  ;;  %v8379_v48 = vld [vmem:[#allocation8_spill] sm:$0xff]  ;;  %v202_v8 = vld [vmem:[%s8357_s4 + $0xe0] sm:$0xff]  ;;  %v3490_v51 = vld [vmem:[%s8323_s10 + $0x68] sm:$0xff] }
 0x29d   :  { %5698 = vmatprep.subr.mxu0 %v220_v57  ;;  %5604 = vmatmul.mubr.msk.f32.gmra.mxu1 %vm2532_vm3, %v7106_v10  ;;  %v1808_v35 = vadd.f32 %v8380_v49, %v8379_v48  ;;  %v2316_v21 = vadd.f32 %v7000_v36, %v2143_v52  ;;  %v222_v48 = vld [vmem:[%s8357_s4 + $0x180] sm:$0xff]  ;;  %v3508_v49 = vld [vmem:[%s8323_s10 + $0xf8] sm:$0xff]  ;;  %v3503_v52 = vld [vmem:[%s8323_s10 + $0xd0] sm:$0xff] }
 0x29e   :  { %v7124_v40 = vadd.f32 %v6988_v1, %v2493_v44  ;;  %5611 = vmatpush3.msra.mxu1 %v189_v60  ;;  %5699 = vmatpush3.msra.mxu0 %v220_v57  ;;  %v2492_v33 = vadd.f32 %v2469_v59, %v2328_v47  ;;  %v2322_v60 = vadd.f32 %v7047_v63, %v2149_v42  ;;  %v2516_v63 = vmax.f32 %v2500_v58, 0.0  ;;  %v225_v59 = vld [vmem:[%s8357_s4 + $0x198] sm:$0xff]  ;;  %v3487_v17 = vld [vmem:[%s8323_s10 + $0x50] sm:$0xff] }
 0x29f   :  { %5612 = vmatprep.subr.mxu1 %v188_v29  ;;  %5700 = vmatprep.subr.mxu0 %v219_v41  ;;  %v1981_v0 = vadd.f32 %v6966_v14, %v1808_v35  ;;  %v2512_v14 = vadd.f32 %v6988_v1, %v2490_v16  ;;  %v2480_v44 = vadd.f32 %v8386_v38, %v2316_v21  ;;  %v3507_v35 = vld [vmem:[%s8323_s10 + $0xf0] sm:$0xff]  ;;  %v3500_v42 = vld [vmem:[%s8323_s10 + $0xb8] sm:$0xff]  ;;  %v3485_v21 = vld [vmem:[%s8323_s10 + $0x40] sm:$0xff] }
 0x2a0   :  { %5613 = vmatpush3.msra.mxu1 %v188_v29  ;;  %5676 = vmatmul.mubr.msk.f32.gmra.mxu0 %vm2532_vm3, %v2527_v5  ;;  %v2514_v6 = vadd.f32 %v6988_v1, %v2492_v33  ;;  %v2327_v47 = vadd.f32 %v7077_v46, %v2154_v54  ;;  %v210_v46 = vld [vmem:[%s8357_s4 + $0x120] sm:$0xff]  ;;  %v3499_v58 = vld [vmem:[%s8323_s10 + $0xb0] sm:$0xff]  ;;  %v3480_v38 = vld [vmem:[%s8323_s10 + $0x18] sm:$0xff] }
 0x2a1   :  { %5701 = vmatpush3.msra.mxu0 %v219_v41  ;;  %5614 = vmatprep.subr.mxu1 %v187_v28  ;;  %v2151_v9 = vadd.f32 %v8385_v37, %v1981_v0  ;;  %v2528_v57 = vmax.f32 %v2512_v14, 0.0  ;;  %v2486_v41 = vadd.f32 %v7023_v39, %v2322_v60  ;;  %v199_v39 = vld [vmem:[%s8357_s4 + $0xc8] sm:$0xff]  ;;  %v3491_v0 = vld [vmem:[%s8323_s10 + $0x70] sm:$0xff]  ;;  %v3489_v33 = vld [vmem:[%s8323_s10 + $0x60] sm:$0xff] }
 0x2a2   :  { %5702 = vmatprep.subr.mxu0 %v218_v12  ;;  %5708 = vmatprep.mubr.msk.f32.mxu0 %vm2532_vm3, %v2520_v4  ;;  %v7159_v4 = vadd.f32 %v6988_v1, %v2485_v22  ;;  %v2530_v23 = vmax.f32 %v2514_v6, 0.0  ;;  %v2491_v20 = vadd.f32 %v7064_v32, %v2327_v47  ;;  %v227_v22 = vld [vmem:[%s8357_s4 + $0x1a8] sm:$0xff]  ;;  %v226_v32 = vld [vmem:[%s8357_s4 + $0x1a0] sm:$0xff]  ;;  %v3484_v60 = vld [vmem:[%s8323_s10 + $0x38] sm:$0xff] }
 0x2a3   :  { %5615 = vmatpush3.msra.mxu1 %v187_v28  ;;  %5703 = vmatpush3.msra.mxu0 %v218_v12  ;;  %v2324_v29 = vadd.f32 %v7067_v31, %v2151_v9  ;;  %v2508_v13 = vadd.f32 %v6988_v1, %v2486_v41  ;;  %v214_v28 = vld [vmem:[%s8357_s4 + $0x140] sm:$0xff]  ;;  %v3486_v14 = vld [vmem:[%s8323_s10 + $0x48] sm:$0xff]  ;;  %v3483_v9 = vld [vmem:[%s8323_s10 + $0x30] sm:$0xff] }
 0x2a4   :  { %5616 = vmatprep.subr.mxu1 %v186_v62  ;;  %5704 = vmatprep.subr.mxu0 %v217_v26  ;;  %v2523_v36 = vmax.f32 %v7159_v4, 0.0  ;;  %v2513_v16 = vadd.f32 %v6988_v1, %v2491_v20  ;;  %v3501_v4 = vld [vmem:[%s8323_s10 + $0xc0] sm:$0xff]  ;;  %v3496_v6 = vld [vmem:[%s8323_s10 + $0x98] sm:$0xff]  ;;  %v3478_v41 = vld [vmem:[%s8323_s10 + $0x8] sm:$0xff] }
 0x2a5   :  { %5617 = vmatpush3.msra.mxu1 %v186_v62  ;;  %5618 = vmatprep.mubr.f32.mxu1 %v8373_v24  ;;  %v2488_v31 = vadd.f32 %v7060_v56, %v2324_v29  ;;  %v215_v56 = vld [vmem:[%s8357_s4 + $0x148] sm:$0xff]  ;;  %v2524_v15 = vmax.f32 %v2508_v13, 0.0  ;;  %v3497_v37 = vld [vmem:[%s8323_s10 + $0xa0] sm:$0xff]  ;;  %v3479_v29 = vld [vmem:[%s8323_s10 + $0x10] sm:$0xff] }
 0x2a6   :  { %5705 = vmatpush3.msra.mxu0 %v217_v26  ;;  %5619 = vmatmul.mubr.f32.vlgmr.msra.gmra.mxu1 %v8373_v24  ;;  %v2529_v62 = vmax.f32 %v2513_v16, 0.0  ;;  %v223_v26 = vld [vmem:[%s8357_s4 + $0x188] sm:$0xff] }
 0x2a7   :  { %5642 = vmatprep.subr.mxu1 %v203_v61  ;;  %5706 = vmatprep.subr.mxu0 %v216_v2  ;;  %v2510_v18 = vadd.f32 %v6988_v1, %v2488_v31 }
 0x2a8   :  { %5621 = vmatprep.mubr.msk.f32.mxu1 %vm2532_vm3, %v7106_v10  ;;  %5643 = vmatpush3.msra.mxu1 %v203_v61  ;;  %v3502_v61 = vld [vmem:[%s8323_s10 + $0xc8] sm:$0xff] }
 0x2a9   :  { %5707 = vmatpush3.msra.mxu0 %v216_v2  ;;  %5644 = vmatprep.subr.mxu1 %v202_v8  ;;  %v2526_v12 = vmax.f32 %v2510_v18, 0.0  ;;  %v3488_v2 = vld [vmem:[%s8323_s10 + $0x58] sm:$0xff] }
 0x2aa   :  { %5709 = vmatmul.mubr.msk.f32.vlgmr.msra.gmra.mxu0 %vm2532_vm3, %v2522_v27  ;;  %5645 = vmatpush3.msra.mxu1 %v202_v8  ;;  %v2502_v27 = vadd.f32 %v6988_v1, %v2480_v44  ;;  %v224_v1 = vld [vmem:[%s8357_s4 + $0x190] sm:$0xff]  ;;  %v3498_v8 = vld [vmem:[%s8323_s10 + $0xa8] sm:$0xff]  ;;  %v3493_v44 = vld [vmem:[%s8323_s10 + $0x80] sm:$0xff] }
 0x2ab   :  { %5711 = vmatprep.mubr.msk.f32.mxu0 %vm2532_vm3, %v2528_v57  ;;  %5622 = vmatmul.mubr.msk.f32.gmra.mxu1 %vm2532_vm3, %v2523_v36  ;;  %v3495_v57 = vld [vmem:[%s8323_s10 + $0x90] sm:$0xff] }
 0x2ac   :  { %5646 = vmatprep.subr.mxu1 %v201_v25  ;;  %5654 = vmatprep.mubr.msk.f32.mxu1 %vm2532_vm3, %v2516_v63  ;;  %v2518_v5 = vmax.f32 %v2502_v27, 0.0  ;;  %v3494_v63 = vld [vmem:[%s8323_s10 + $0x88] sm:$0xff] }
 0x2ad   :  { %5647 = vmatpush3.msra.mxu1 %v201_v25  ;;  %5732 = vmatprep.subr.mxu0 %v8373_v24  ;;  %v3481_v25 = vld [vmem:[%s8323_s10 + $0x20] sm:$0xff] }
 0x2ae   :  { %5648 = vmatprep.subr.mxu1 %v200_v11  ;;  %5712 = vmatmul.mubr.msk.f32.gmra.mxu0 %vm2532_vm3, %v2530_v23  ;;  %v3477_v23 = vld [vmem:[%s8323_s10] sm:$0xff] }
 0x2af   :  { %5649 = vmatpush3.msra.mxu1 %v200_v11  ;;  %5733 = vmatpush3.msk.msra.mxu0 %vm3403_vm4, %v3391_v53  ;;  %v3524_v11 = vld [vmem:[%s8323_s10 + $0x178] sm:$0xff] }
 0x2b0   :  { %5650 = vmatprep.subr.mxu1 %v199_v39  ;;  %5734 = vmatprep.mubr.msk.f32.mxu0 %vm5740_vm6, %v8373_v24  ;;  %v3540_v53 = vld [vmem:[%s8323_s10 + $0x1f8] sm:$0xff] }
 0x2b1   :  { %5651 = vmatpush3.msra.mxu1 %v199_v39  ;;  %v5584_v39 = vpop.f32.mrf.mxu1 }
 0x2b2   :  { %5652 = vmatprep.subr.mxu1 %v198_v3  ;;  %5735 = vmatmul.mubr.msk.f32.vlgmr.msra.gmra.mxu0 %vm3399_vm5, %v3390_v55 }
 0x2b3   :  { %5653 = vmatpush3.msra.mxu1 %v198_v3  ;;  %3683 = vmatprep.mubr.f32.mxu0 %v8373_v24  ;;  %v2607_v31 = vpop.f32.mrf.mxu1 }
 0x2b4   :  { %5655 = vmatmul.mubr.msk.f32.vlgmr.msra.gmra.mxu1 %vm2532_vm3, %v2518_v5  ;;  %5678 = vmatprep.subr.mxu1 %v215_v56 }
 0x2b5   :  { %5657 = vmatprep.mubr.msk.f32.mxu1 %vm2532_vm3, %v2524_v15  ;;  %5679 = vmatpush3.msra.mxu1 %v215_v56 }
 0x2b6   :  { %5680 = vmatprep.subr.mxu1 %v214_v28 }
 0x2b7   :  { %5681 = vmatpush3.msra.mxu1 %v214_v28 }
 0x2b8   :  { %5658 = vmatmul.mubr.msk.f32.gmra.mxu1 %vm2532_vm3, %v2526_v12  ;;  %5682 = vmatprep.subr.mxu1 %v213_v45 }
 0x2b9   :  { %5683 = vmatpush3.msra.mxu1 %v213_v45  ;;  %5690 = vmatprep.mubr.f32.mxu1 %v8373_v24 }
 0x2ba   :  { %5684 = vmatprep.subr.mxu1 %v212_v7 }
 0x2bb   :  { %5685 = vmatpush3.msra.mxu1 %v212_v7 }
 0x2bc   :  { %5686 = vmatprep.subr.mxu1 %v211_v34 }
 0x2bd   :  { %5687 = vmatpush3.msra.mxu1 %v211_v34 }
 0x2be   :  { %5688 = vmatprep.subr.mxu1 %v210_v46 }
 0x2bf   :  { %5689 = vmatpush3.msra.mxu1 %v210_v46 }
 0x2c0   :  { %5691 = vmatmul.mubr.msk.f32.vlgmr.msra.gmra.mxu1 %vm2532_vm3, %v7106_v10  ;;  %5714 = vmatprep.subr.mxu1 %v227_v22 }
 0x2c1   :  { %5715 = vmatpush3.msra.mxu1 %v227_v22  ;;  %5693 = vmatprep.mubr.f32.mxu1 %v8373_v24 }
 0x2c2   :  { %5716 = vmatprep.subr.mxu1 %v226_v32 }
 0x2c3   :  { %5717 = vmatpush3.msra.mxu1 %v226_v32 }
 0x2c4   :  { %5694 = vmatmul.mubr.msk.f32.gmra.mxu1 %vm2532_vm3, %v2529_v62  ;;  %5718 = vmatprep.subr.mxu1 %v225_v59 }
 0x2c5   :  { %5719 = vmatpush3.msra.mxu1 %v225_v59  ;;  %5726 = vmatprep.mubr.msk.f32.mxu1 %vm2532_vm3, %v7106_v10  ;;  %v2531_v10 = vmax.f32 %v7124_v40, 0.0  ;;  %v3492_v40 = vld [vmem:[%s8323_s10 + $0x78] sm:$0xff] }
 0x2c6   :  { %5720 = vmatprep.subr.mxu1 %v224_v1  ;;  %3635 = vmatprep.subr.mxu0 %v3492_v40 }
 0x2c7   :  { %5721 = vmatpush3.msra.mxu1 %v224_v1  ;;  %3636 = vmatpush1.msra.mxu0 %v3491_v0 }
 0x2c8   :  { %5722 = vmatprep.subr.mxu1 %v223_v26  ;;  %3637 = vmatprep.subr.mxu0 %v3490_v51 }
 0x2c9   :  { %5723 = vmatpush3.msra.mxu1 %v223_v26  ;;  %3638 = vmatpush1.msra.mxu0 %v3489_v33 }
 0x2ca   :  { %5724 = vmatprep.subr.mxu1 %v222_v48  ;;  %3639 = vmatprep.subr.mxu0 %v3488_v2 }
 0x2cb   :  { %5725 = vmatpush3.msra.mxu1 %v222_v48  ;;  %3640 = vmatpush1.msra.mxu0 %v3487_v17 }
 0x2cc   :  { %5727 = vmatmul.mubr.msk.f32.vlgmr.msra.gmra.mxu1 %vm2532_vm3, %v2523_v36  ;;  %3561 = vmatprep.subr.mxu1 %v3508_v49  ;;  %v3482_v36 = vld [vmem:[%s8323_s10 + $0x28] sm:$0xff] }
 0x2cd   :  { %5729 = vmatprep.mubr.msk.f32.mxu1 %vm2532_vm3, %v2529_v62  ;;  %3562 = vmatpush1.msra.mxu1 %v3507_v35 }
 0x2ce   :  { %3563 = vmatprep.subr.mxu1 %v3506_v30  ;;  %3641 = vmatprep.subr.mxu0 %v3486_v14 }
 0x2cf   :  { %3564 = vmatpush1.msra.mxu1 %v3505_v43  ;;  %3642 = vmatpush1.msra.mxu0 %v3485_v21 }
 0x2d0   :  { %5730 = vmatmul.mubr.msk.f32.gmra.mxu1 %vm2532_vm3, %v2531_v10  ;;  %3565 = vmatprep.subr.mxu1 %v3504_v19 }
 0x2d1   :  { %3609 = vmatprep.mubr.f32.mxu1 %v8373_v24  ;;  %3566 = vmatpush1.msra.mxu1 %v3503_v52 }
 0x2d2   :  { %3567 = vmatprep.subr.mxu1 %v3502_v61  ;;  %3643 = vmatprep.subr.mxu0 %v3484_v60 }
 0x2d3   :  { %3568 = vmatpush1.msra.mxu1 %v3501_v4  ;;  %3644 = vmatpush1.msra.mxu0 %v3483_v9 }
 0x2d4   :  { %3569 = vmatprep.subr.mxu1 %v3500_v42  ;;  %3645 = vmatprep.subr.mxu0 %v3482_v36  ;;  %v7382_v36 = vld [vmem:[%s8324_s6] ss:$0 sm:$0xff] }
 0x2d5   :  { %3570 = vmatpush1.msra.mxu1 %v3499_v58  ;;  %3646 = vmatpush1.msra.mxu0 %v3481_v25 }
 0x2d6   :  { %3571 = vmatprep.subr.mxu1 %v3498_v8  ;;  %3647 = vmatprep.subr.mxu0 %v3480_v38 }
 0x2d7   :  { %3572 = vmatpush1.msra.mxu1 %v3497_v37  ;;  %3648 = vmatpush1.msra.mxu0 %v3479_v29 }
 0x2d8   :  { %3573 = vmatprep.subr.mxu1 %v3496_v6  ;;  %3649 = vmatprep.subr.mxu0 %v3478_v41 }
 0x2d9   :  { %3574 = vmatpush1.msra.mxu1 %v3495_v57  ;;  %3650 = vmatpush1.msra.mxu0 %v3477_v23 }
 0x2da   :  { %3575 = vmatprep.subr.mxu1 %v3494_v63  ;;  %3785 = vmatprep.subr.mxu0 %v3540_v53 }
 0x2db   :  { %3576 = vmatpush1.msra.mxu1 %v3493_v44 }
 0x2dc   :  { %3709 = vmatprep.subr.mxu1 %v3524_v11 }
 0x346   :  { %v5638_v27 = vpop.f32.mrf.mxu0 }
 0x348   :  { %v2878_v13 = vpop.f32.mrf.mxu0 }
 0x354   :  { %v5587_v3 = vpop.f32.mrf.mxu1 }
 0x356   :  { %v2617_v55 = vpop.f32.mrf.mxu1  ;;  %v5641_v56 = vpop.f32.mrf.mxu0 }
 0x358   :  { %v5602_v5 = vpop.f32.mrf.mxu1  ;;  %v2888_v18 = vpop.f32.mrf.mxu0 }
 0x359   :  { %v2701_v10 = vadd.f32 %v5602_v5, %v5584_v39  ;;  %v3521_v5 = vld [vmem:[%s8323_s10 + $0x160] sm:$0xff] }
 0x35a   :  { %v2695_v15 = vpop.f32.mrf.mxu1  ;;  %v5674_v28 = vpop.f32.mrf.mxu0 }
 0x35b   :  { %v2696_v35 = vadd.f32 %v2695_v15, %v2607_v31  ;;  %v3523_v31 = vld [vmem:[%s8323_s10 + $0x170] sm:$0xff] }
 0x35c   :  { %v3074_v54 = vpop.f32.mrf.mxu0 }
 0x35d   :  { %v5605_v50 = vpop.f32.mrf.mxu1 }
 0x35e   :  { %v2711_v21 = vadd.f32 %v5605_v50, %v5587_v3  ;;  %v3522_v3 = vld [vmem:[%s8323_s10 + $0x168] sm:$0xff] }
 0x35f   :  { %v2705_v45 = vpop.f32.mrf.mxu1  ;;  %v3538_v50 = vld [vmem:[%s8323_s10 + $0x1e8] sm:$0xff] }
 0x360   :  { %v5677_v12 = vpop.f32.mrf.mxu0  ;;  %v2706_v2 = vadd.f32 %v2705_v45, %v2617_v55  ;;  %v3537_v45 = vld [vmem:[%s8323_s10 + $0x1e0] sm:$0xff] }
 0x362   :  { %v3084_v7 = vpop.f32.mrf.mxu0 }
 0x366   :  { %v5620_v47 = vpop.f32.mrf.mxu1 }
 0x367   :  { %v2803_v30 = vadd.f32 %v5620_v47, %v2701_v10 }
 0x368   :  { %v2783_v34 = vpop.f32.mrf.mxu1 }
 0x369   :  { %v2802_v40 = vadd.f32 %v2783_v34, %v2696_v35  ;;  %v2898_v0 = vadd.f32 %v5638_v27, %v2803_v30  ;;  %v3536_v34 = vld [vmem:[%s8323_s10 + $0x1d8] sm:$0xff]  ;;  %v3513_v30 = vld [vmem:[%s8323_s10 + $0x120] sm:$0xff] }
 0x36a   :  { %v5710_v20 = vpop.f32.mrf.mxu0  ;;  %v3532_v35 = vld [vmem:[%s8323_s10 + $0x1b8] sm:$0xff] }
 0x36b   :  { %v5623_v22 = vpop.f32.mrf.mxu1  ;;  %v2897_v52 = vadd.f32 %v2878_v13, %v2802_v40 }
 0x36c   :  { %v3261_v46 = vpop.f32.mrf.mxu0  ;;  %v2805_v60 = vadd.f32 %v5623_v22, %v2711_v21  ;;  %v3535_v22 = vld [vmem:[%s8323_s10 + $0x1d0] sm:$0xff]  ;;  %v3525_v21 = vld [vmem:[%s8323_s10 + $0x180] sm:$0xff] }
 0x36d   :  { %v2793_v59 = vpop.f32.mrf.mxu1 }
 0x36e   :  { %v7373_v16 = vpop.f32.mrf.mxu0  ;;  %v2804_v42 = vadd.f32 %v2793_v59, %v2706_v2  ;;  %v2900_v44 = vadd.f32 %v5641_v56, %v2805_v60  ;;  %v3516_v59 = vld [vmem:[%s8323_s10 + $0x138] sm:$0xff]  ;;  %v3509_v2 = vld [vmem:[%s8323_s10 + $0x100] sm:$0xff]  ;;  %v3847_v60 = vld [vmem:[%s8325_s11 + $0x28] sm:$0xff] }
 0x370   :  { %v7375_v32 = vpop.f32.mrf.mxu0  ;;  %v2899_v9 = vadd.f32 %v2888_v18, %v2804_v42  ;;  %v3539_v18 = vld [vmem:[%s8323_s10 + $0x1f0] sm:$0xff]  ;;  %v3526_v42 = vld [vmem:[%s8323_s10 + $0x188] sm:$0xff] }
 0x372   :  { %v7377_v62 = vpop.f32.mrf.mxu0 }
 0x374   :  { %v5656_v1 = vpop.f32.mrf.mxu1  ;;  %v5736_v26 = vpop.f32.mrf.mxu0 }
 0x375   :  { %v2999_v51 = vadd.f32 %v5656_v1, %v2898_v0  ;;  %v3515_v26 = vld [vmem:[%s8323_s10 + $0x130] sm:$0xff]  ;;  %v3530_v0 = vld [vmem:[%s8323_s10 + $0x1a8] sm:$0xff] }
 0x376   :  { %v2979_v48 = vpop.f32.mrf.mxu1 }
 0x377   :  { %v2998_v61 = vadd.f32 %v2979_v48, %v2897_v52  ;;  %v3094_v4 = vadd.f32 %v5674_v28, %v2999_v51  ;;  %v3520_v28 = vld [vmem:[%s8323_s10 + $0x158] sm:$0xff]  ;;  %v3533_v48 = vld [vmem:[%s8323_s10 + $0x1c0] sm:$0xff]  ;;  %v3511_v51 = vld [vmem:[%s8323_s10 + $0x110] sm:$0xff] }
 0x378   :  { %v5659_v49 = vpop.f32.mrf.mxu1  ;;  %v3529_v52 = vld [vmem:[%s8323_s10 + $0x1a0] sm:$0xff] }
 0x379   :  { %v3093_v58 = vadd.f32 %v3074_v54, %v2998_v61  ;;  %v3001_v23 = vadd.f32 %v5659_v49, %v2900_v44  ;;  %v3519_v54 = vld [vmem:[%s8323_s10 + $0x150] sm:$0xff]  ;;  %v3514_v49 = vld [vmem:[%s8323_s10 + $0x128] sm:$0xff]  ;;  %v3528_v61 = vld [vmem:[%s8323_s10 + $0x198] sm:$0xff] }
 0x37a   :  { %v2989_v43 = vpop.f32.mrf.mxu1  ;;  %v3971_v44 = vld [vmem:[%s8327_s13 + $0xe8] sm:$0xff] }
 0x37b   :  { %v3000_v25 = vadd.f32 %v2989_v43, %v2899_v9  ;;  %v3096_v15 = vadd.f32 %v5677_v12, %v3001_v23  ;;  %v3512_v43 = vld [vmem:[%s8323_s10 + $0x118] sm:$0xff]  ;;  %v3846_v9 = vld [vmem:[%s8325_s11 + $0x20] sm:$0xff] }
 0x37c   :  { %v3969_v23 = vld [vmem:[%s8327_s13 + $0xd8] sm:$0xff] }
 0x37d   :  { %v3095_v53 = vadd.f32 %v3084_v7, %v3000_v25  ;;  %v3518_v7 = vld [vmem:[%s8323_s10 + $0x148] sm:$0xff]  ;;  %v3844_v25 = vld [vmem:[%s8325_s11 + $0x10] sm:$0xff] }
 0x380   :  { %v5692_v19 = vpop.f32.mrf.mxu1 }
 0x381   :  { %v3186_v14 = vadd.f32 %v5692_v19, %v3094_v4  ;;  %v3527_v4 = vld [vmem:[%s8323_s10 + $0x190] sm:$0xff] }
 0x382   :  { %v3166_v33 = vpop.f32.mrf.mxu1 }
 0x383   :  { %v3185_v8 = vadd.f32 %v3166_v33, %v3093_v58  ;;  %v3281_v6 = vadd.f32 %v5710_v20, %v3186_v14  ;;  %v3510_v33 = vld [vmem:[%s8323_s10 + $0x108] sm:$0xff]  ;;  %v3849_v58 = vld [vmem:[%s8325_s11 + $0x38] sm:$0xff] }
 0x384   :  { %v5695_v17 = vpop.f32.mrf.mxu1 }
 0x385   :  { %v3280_v38 = vadd.f32 %v3261_v46, %v3185_v8  ;;  %v3188_v12 = vadd.f32 %v5695_v17, %v3096_v15  ;;  %v3517_v46 = vld [vmem:[%s8323_s10 + $0x140] sm:$0xff]  ;;  %v3848_v8 = vld [vmem:[%s8325_s11 + $0x30] sm:$0xff]  ;;  %v3957_v15 = vld [vmem:[%s8327_s13 + $0x78] sm:$0xff] }
 0x386   :  { %v3176_v37 = vpop.f32.mrf.mxu1 }
 0x387   :  { %v3187_v55 = vadd.f32 %v3176_v37, %v3095_v53  ;;  %v3283_v10 = vadd.f32 %v7373_v16, %v3188_v12  ;;  %v3531_v16 = vld [vmem:[%s8323_s10 + $0x1b0] sm:$0xff]  ;;  %v3967_v53 = vld [vmem:[%s8327_s13 + $0xc8] sm:$0xff] }
 0x388   :  { %v3952_v12 = vld [vmem:[%s8327_s13 + $0x50] sm:$0xff] }
 0x389   :  { %v3282_v20 = vadd.f32 %v7375_v32, %v3187_v55  ;;  %v3534_v32 = vld [vmem:[%s8323_s10 + $0x1c8] sm:$0xff]  ;;  %v3961_v55 = vld [vmem:[%s8327_s13 + $0x98] sm:$0xff] }
 0x38c   :  { %v5728_v57 = vpop.f32.mrf.mxu1 }
 0x38d   :  { %v3373_v63 = vadd.f32 %v5728_v57, %v3281_v6  ;;  %v4828_v6 = vld [vmem:[%s8326_s9] ss:$0 sm:$0xff]  ;;  %v3973_v57 = vld [vmem:[%s8327_s13 + $0xf8] sm:$0xff] }
 0x38e   :  { %v3353_v29 = vpop.f32.mrf.mxu1 }
 0x38f   :  { %v3383_v41 = vadd.f32 %v7382_v36, %v3373_v63  ;;  %v3372_v11 = vadd.f32 %v3353_v29, %v3280_v38  ;;  %v3972_v63 = vld [vmem:[%s8327_s13 + $0xf0] sm:$0xff]  ;;  %v3843_v38 = vld [vmem:[%s8325_s11 + $0x8] sm:$0xff]  ;;  %v3474_v29 = vadd.f32 %v4828_v6, %v7377_v62 }
 0x390   :  { %v5731_v13 = vpop.f32.mrf.mxu1  ;;  %v3968_v62 = vld [vmem:[%s8327_s13 + $0xd0] sm:$0xff] }
 0x391   :  { %v3387_v39 = vmax.f32 %v3383_v41, 0.0  ;;  %v3382_v27 = vadd.f32 %v7382_v36, %v3372_v11  ;;  %v3375_v40 = vadd.f32 %v5731_v13, %v3283_v10  ;;  %v3842_v41 = vld [vmem:[%s8325_s11] sm:$0xff]  ;;  %v3963_v13 = vld [vmem:[%s8327_s13 + $0xa8] sm:$0xff]  ;;  %v4004_v10 = vld [vmem:[%s8327_s13 + $0x1f0] sm:$0xff] }
 0x392   :  { %v3363_v47 = vpop.f32.mrf.mxu1  ;;  %v3970_v11 = vld [vmem:[%s8327_s13 + $0xe0] sm:$0xff]  ;;  %v3980_v6 = vld [vmem:[%s8327_s13 + $0x130] sm:$0xff] }
 0x393   :  { %v3386_v56 = vmax.f32 %v3382_v27, 0.0  ;;  %4831 = vmatmul.mubr.msk.f32.vlgmr.msra.gmra.mxu1 %vm3541_vm7, %v3387_v39  ;;  %v3374_v1 = vadd.f32 %v3363_v47, %v3282_v20  ;;  %v3385_v17 = vadd.f32 %v7382_v36, %v3375_v40  ;;  %v3966_v39 = vld [vmem:[%s8327_s13 + $0xc0] sm:$0xff]  ;;  %v3965_v27 = vld [vmem:[%s8327_s13 + $0xb8] sm:$0xff]  ;;  %v3951_v47 = vld [vmem:[%s8327_s13 + $0x48] sm:$0xff] }
 0x394   :  { %3710 = vmatpush1.msra.mxu1 %v3523_v31  ;;  %3757 = vmatprep.mubr.f32.mxu1 %v8373_v24  ;;  %v3964_v31 = vld [vmem:[%s8327_s13 + $0xb0] sm:$0xff]  ;;  %v3999_v40 = vld [vmem:[%s8327_s13 + $0x1c8] sm:$0xff] }
 0x395   :  { %3711 = vmatprep.subr.mxu1 %v3522_v3  ;;  %4832 = vmatmul.mubr.msk.f32.vlgmr.msra.gmra.mxu0 %vm3541_vm7, %v3386_v56  ;;  %v3384_v19 = vadd.f32 %v7382_v36, %v3374_v1  ;;  %v3389_v37 = vmax.f32 %v3385_v17, 0.0  ;;  %v3845_v36 = vld [vmem:[%s8325_s11 + $0x18] sm:$0xff]  ;;  %v3962_v3 = vld [vmem:[%s8327_s13 + $0xa0] sm:$0xff]  ;;  %v3960_v56 = vld [vmem:[%s8327_s13 + $0x90] sm:$0xff] }
 0x396   :  { %3712 = vmatpush1.msra.mxu1 %v3521_v5  ;;  %3786 = vmatpush1.msra.mxu0 %v3539_v18  ;;  %v3959_v5 = vld [vmem:[%s8327_s13 + $0x88] sm:$0xff]  ;;  %v3958_v18 = vld [vmem:[%s8327_s13 + $0x80] sm:$0xff]  ;;  %v3948_v20 = vld [vmem:[%s8327_s13 + $0x30] sm:$0xff] }
 0x397   :  { %3713 = vmatprep.subr.mxu1 %v3520_v28  ;;  %3787 = vmatprep.subr.mxu0 %v3538_v50  ;;  %v3388_v14 = vmax.f32 %v3384_v19, 0.0  ;;  %v3956_v28 = vld [vmem:[%s8327_s13 + $0x70] sm:$0xff]  ;;  %v3955_v50 = vld [vmem:[%s8327_s13 + $0x68] sm:$0xff]  ;;  %v3989_v17 = vld [vmem:[%s8327_s13 + $0x178] sm:$0xff] }
 0x398   :  { %3714 = vmatpush1.msra.mxu1 %v3519_v54  ;;  %3788 = vmatpush1.msra.mxu0 %v3537_v45  ;;  %v3954_v54 = vld [vmem:[%s8327_s13 + $0x60] sm:$0xff]  ;;  %v3953_v45 = vld [vmem:[%s8327_s13 + $0x58] sm:$0xff]  ;;  %v3943_v1 = vld [vmem:[%s8327_s13 + $0x8] sm:$0xff] }
 0x399   :  { %3715 = vmatprep.subr.mxu1 %v3518_v7  ;;  %3789 = vmatprep.subr.mxu0 %v3536_v34  ;;  %v3950_v7 = vld [vmem:[%s8327_s13 + $0x40] sm:$0xff]  ;;  %v3949_v34 = vld [vmem:[%s8327_s13 + $0x38] sm:$0xff]  ;;  %v3996_v19 = vld [vmem:[%s8327_s13 + $0x1b0] sm:$0xff] }
 0x39a   :  { %3716 = vmatpush1.msra.mxu1 %v3517_v46  ;;  %3790 = vmatpush1.msra.mxu0 %v3535_v22  ;;  %v3947_v46 = vld [vmem:[%s8327_s13 + $0x28] sm:$0xff]  ;;  %v3946_v22 = vld [vmem:[%s8327_s13 + $0x20] sm:$0xff] }
 0x39b   :  { %3717 = vmatprep.subr.mxu1 %v3516_v59  ;;  %3791 = vmatprep.subr.mxu0 %v3534_v32  ;;  %v3945_v59 = vld [vmem:[%s8327_s13 + $0x18] sm:$0xff]  ;;  %v3944_v32 = vld [vmem:[%s8327_s13 + $0x10] sm:$0xff] }
 0x39c   :  { %3718 = vmatpush1.msra.mxu1 %v3515_v26  ;;  %3792 = vmatpush1.msra.mxu0 %v3533_v48  ;;  %v3942_v26 = vld [vmem:[%s8327_s13] sm:$0xff]  ;;  %v4005_v48 = vld [vmem:[%s8327_s13 + $0x1f8] sm:$0xff] }
 0x39d   :  { %3719 = vmatprep.subr.mxu1 %v3514_v49  ;;  %3793 = vmatprep.subr.mxu0 %v3532_v35  ;;  %v4003_v49 = vld [vmem:[%s8327_s13 + $0x1e8] sm:$0xff]  ;;  %v4002_v35 = vld [vmem:[%s8327_s13 + $0x1e0] sm:$0xff] }
 0x39e   :  { %3720 = vmatpush1.msra.mxu1 %v3513_v30  ;;  %3794 = vmatpush1.msra.mxu0 %v3531_v16  ;;  %v4001_v30 = vld [vmem:[%s8327_s13 + $0x1d8] sm:$0xff]  ;;  %v4000_v16 = vld [vmem:[%s8327_s13 + $0x1d0] sm:$0xff] }
 0x39f   :  { %3721 = vmatprep.subr.mxu1 %v3512_v43  ;;  %3795 = vmatprep.subr.mxu0 %v3530_v0  ;;  %v3998_v43 = vld [vmem:[%s8327_s13 + $0x1c0] sm:$0xff]  ;;  %v3997_v0 = vld [vmem:[%s8327_s13 + $0x1b8] sm:$0xff] }
 0x3a0   :  { %3722 = vmatpush1.msra.mxu1 %v3511_v51  ;;  %3796 = vmatpush1.msra.mxu0 %v3529_v52  ;;  %v3995_v51 = vld [vmem:[%s8327_s13 + $0x1a8] sm:$0xff]  ;;  %v3994_v52 = vld [vmem:[%s8327_s13 + $0x1a0] sm:$0xff] }
 0x3a1   :  { %3723 = vmatprep.subr.mxu1 %v3510_v33  ;;  %3797 = vmatprep.subr.mxu0 %v3528_v61  ;;  %v3993_v33 = vld [vmem:[%s8327_s13 + $0x198] sm:$0xff]  ;;  %v3992_v61 = vld [vmem:[%s8327_s13 + $0x190] sm:$0xff] }
 0x3a2   :  { %3724 = vmatpush1.msra.mxu1 %v3509_v2  ;;  %3798 = vmatpush1.msra.mxu0 %v3527_v4  ;;  %v3991_v2 = vld [vmem:[%s8327_s13 + $0x188] sm:$0xff]  ;;  %v3990_v4 = vld [vmem:[%s8327_s13 + $0x180] sm:$0xff] }
 0x3a3   :  { %4833 = vmatmul.mubr.msk.f32.vlgmr.msra.gmra.mxu1 %vm3541_vm7, %v3388_v14  ;;  %3799 = vmatprep.subr.mxu0 %v3526_v42  ;;  %v3988_v42 = vld [vmem:[%s8327_s13 + $0x170] sm:$0xff]  ;;  %v3987_v14 = vld [vmem:[%s8327_s13 + $0x168] sm:$0xff] }
 0x3a4   :  { %3877 = vmatprep.subr.mxu1 %v3849_v58  ;;  %3800 = vmatpush1.msra.mxu0 %v3525_v21  ;;  %v3986_v58 = vld [vmem:[%s8327_s13 + $0x160] sm:$0xff]  ;;  %v3985_v21 = vld [vmem:[%s8327_s13 + $0x158] sm:$0xff] }
 0x3a5   :  { %3833 = vmatprep.mubr.f32.mxu0 %v8373_v24  ;;  %3878 = vmatpush1.msra.mxu1 %v3848_v8  ;;  %v3984_v8 = vld [vmem:[%s8327_s13 + $0x150] sm:$0xff] }
 0x3a6   :  { %4834 = vmatmul.mubr.msk.f32.vlgmr.msra.gmra.mxu0 %vm3541_vm7, %v3389_v37  ;;  %3879 = vmatprep.subr.mxu1 %v3847_v60  ;;  %v3983_v60 = vld [vmem:[%s8327_s13 + $0x148] sm:$0xff]  ;;  %v3982_v37 = vld [vmem:[%s8327_s13 + $0x140] sm:$0xff] }
 0x3a7   :  { %3880 = vmatpush1.msra.mxu1 %v3846_v9  ;;  %3917 = vmatprep.mubr.f32.mxu1 %v8373_v24  ;;  %v3981_v9 = vld [vmem:[%s8327_s13 + $0x138] sm:$0xff] }
 0x3a8   :  { %3881 = vmatprep.subr.mxu1 %v3845_v36  ;;  %4018 = vmatprep.subr.mxu0 %v3973_v57  ;;  %v3979_v36 = vld [vmem:[%s8327_s13 + $0x128] sm:$0xff]  ;;  %v3978_v57 = vld [vmem:[%s8327_s13 + $0x120] sm:$0xff] }
 0x3a9   :  { %3882 = vmatpush1.msra.mxu1 %v3844_v25  ;;  %4019 = vmatpush1.msra.mxu0 %v3972_v63  ;;  %v3977_v25 = vld [vmem:[%s8327_s13 + $0x118] sm:$0xff]  ;;  %v3976_v63 = vld [vmem:[%s8327_s13 + $0x110] sm:$0xff] }
 0x3aa   :  { %3883 = vmatprep.subr.mxu1 %v3843_v38  ;;  %4020 = vmatprep.subr.mxu0 %v3971_v44  ;;  %v3975_v38 = vld [vmem:[%s8327_s13 + $0x108] sm:$0xff]  ;;  %v3974_v44 = vld [vmem:[%s8327_s13 + $0x100] sm:$0xff] }
 0x3ab   :  { %3884 = vmatpush1.msra.mxu1 %v3842_v41  ;;  %4021 = vmatpush1.msra.mxu0 %v3970_v11  ;;  %v4121_v41 = vld [vmem:[%s8328_s15 + $0xf0] sm:$0xff]  ;;  %v4120_v11 = vld [vmem:[%s8328_s15 + $0xe8] sm:$0xff] }
 0x3ac   :  { %4835 = vmatmul.mubr.msk.f32.vlgmr.msra.gmra.mxu1 %vm881_vm2, %v3474_v29  ;;  %4022 = vmatprep.subr.mxu0 %v3969_v23  ;;  %v4122_v29 = vld [vmem:[%s8328_s15 + $0xf8] sm:$0xff]  ;;  %v4119_v23 = vld [vmem:[%s8328_s15 + $0xe0] sm:$0xff] }
 0x3ad   :  { %4023 = vmatpush1.msra.mxu0 %v3968_v62  ;;  %4167 = vmatprep.subr.mxu1 %v4122_v29  ;;  %v4118_v62 = vld [vmem:[%s8328_s15 + $0xd8] sm:$0xff] }
 0x3ae   :  { %4024 = vmatprep.subr.mxu0 %v3967_v53  ;;  %4168 = vmatpush1.msra.mxu1 %v4121_v41  ;;  %v4117_v53 = vld [vmem:[%s8328_s15 + $0xd0] sm:$0xff] }
 0x3af   :  { %4025 = vmatpush1.msra.mxu0 %v3966_v39  ;;  %4169 = vmatprep.subr.mxu1 %v4120_v11  ;;  %v4116_v39 = vld [vmem:[%s8328_s15 + $0xc8] sm:$0xff] }
 0x3b0   :  { %4026 = vmatprep.subr.mxu0 %v3965_v27  ;;  %4170 = vmatpush1.msra.mxu1 %v4119_v23  ;;  %v4115_v27 = vld [vmem:[%s8328_s15 + $0xc0] sm:$0xff] }
 0x3b1   :  { %4027 = vmatpush1.msra.mxu0 %v3964_v31  ;;  %4171 = vmatprep.subr.mxu1 %v4118_v62  ;;  %v4114_v31 = vld [vmem:[%s8328_s15 + $0xb8] sm:$0xff] }
 0x3b2   :  { %4028 = vmatprep.subr.mxu0 %v3963_v13  ;;  %4172 = vmatpush1.msra.mxu1 %v4117_v53  ;;  %v4113_v13 = vld [vmem:[%s8328_s15 + $0xb0] sm:$0xff] }
 0x3b3   :  { %4029 = vmatpush1.msra.mxu0 %v3962_v3  ;;  %4173 = vmatprep.subr.mxu1 %v4116_v39  ;;  %v4112_v3 = vld [vmem:[%s8328_s15 + $0xa8] sm:$0xff] }
 0x3b4   :  { %4030 = vmatprep.subr.mxu0 %v3961_v55  ;;  %4174 = vmatpush1.msra.mxu1 %v4115_v27  ;;  %v4111_v55 = vld [vmem:[%s8328_s15 + $0xa0] sm:$0xff] }
 0x3b5   :  { %4031 = vmatpush1.msra.mxu0 %v3960_v56  ;;  %4175 = vmatprep.subr.mxu1 %v4114_v31  ;;  %v4110_v56 = vld [vmem:[%s8328_s15 + $0x98] sm:$0xff]  ;;  %v3926_v27 = vld [vmem:[%s8329_s12] sm:$0x3] }
 0x3b6   :  { %4032 = vmatprep.subr.mxu0 %v3959_v5  ;;  %4176 = vmatpush1.msra.mxu1 %v4113_v13  ;;  %v4109_v5 = vld [vmem:[%s8328_s15 + $0x90] sm:$0xff] }
 0x3b7   :  { %4033 = vmatpush1.msra.mxu0 %v3958_v18  ;;  %4177 = vmatprep.subr.mxu1 %v4112_v3  ;;  %v4108_v18 = vld [vmem:[%s8328_s15 + $0x88] sm:$0xff] }
 0x3b8   :  { %4034 = vmatprep.subr.mxu0 %v3957_v15  ;;  %4178 = vmatpush1.msra.mxu1 %v4111_v55  ;;  %v4107_v15 = vld [vmem:[%s8328_s15 + $0x80] sm:$0xff] }
 0x3b9   :  { %4035 = vmatpush1.msra.mxu0 %v3956_v28  ;;  %4179 = vmatprep.subr.mxu1 %v4110_v56  ;;  %v4106_v28 = vld [vmem:[%s8328_s15 + $0x78] sm:$0xff] }
 0x3ba   :  { %4036 = vmatprep.subr.mxu0 %v3955_v50  ;;  %4180 = vmatpush1.msra.mxu1 %v4109_v5  ;;  %v4105_v50 = vld [vmem:[%s8328_s15 + $0x70] sm:$0xff] }
 0x3bb   :  { %4037 = vmatpush1.msra.mxu0 %v3954_v54  ;;  %4181 = vmatprep.subr.mxu1 %v4108_v18  ;;  %v4104_v54 = vld [vmem:[%s8328_s15 + $0x68] sm:$0xff] }
 0x3bc   :  { %4038 = vmatprep.subr.mxu0 %v3953_v45  ;;  %4182 = vmatpush1.msra.mxu1 %v4107_v15  ;;  %v4103_v45 = vld [vmem:[%s8328_s15 + $0x60] sm:$0xff] }
 0x3bd   :  { %4039 = vmatpush1.msra.mxu0 %v3952_v12  ;;  %4183 = vmatprep.subr.mxu1 %v4106_v28  ;;  %v4102_v12 = vld [vmem:[%s8328_s15 + $0x58] sm:$0xff] }
 0x3be   :  { %4040 = vmatprep.subr.mxu0 %v3951_v47  ;;  %4184 = vmatpush1.msra.mxu1 %v4105_v50  ;;  %v4101_v47 = vld [vmem:[%s8328_s15 + $0x50] sm:$0xff] }
 0x3bf   :  { %4041 = vmatpush1.msra.mxu0 %v3950_v7  ;;  %4185 = vmatprep.subr.mxu1 %v4104_v54  ;;  %v4100_v7 = vld [vmem:[%s8328_s15 + $0x48] sm:$0xff] }
 0x3c0   :  { %4042 = vmatprep.subr.mxu0 %v3949_v34  ;;  %4186 = vmatpush1.msra.mxu1 %v4103_v45  ;;  %v4099_v34 = vld [vmem:[%s8328_s15 + $0x40] sm:$0xff] }
 0x3c1   :  { %4043 = vmatpush1.msra.mxu0 %v3948_v20  ;;  %4187 = vmatprep.subr.mxu1 %v4102_v12  ;;  %v4098_v20 = vld [vmem:[%s8328_s15 + $0x38] sm:$0xff] }
 0x3c2   :  { %4044 = vmatprep.subr.mxu0 %v3947_v46  ;;  %4188 = vmatpush1.msra.mxu1 %v4101_v47  ;;  %v4097_v46 = vld [vmem:[%s8328_s15 + $0x30] sm:$0xff] }
 0x3c3   :  { %4045 = vmatpush1.msra.mxu0 %v3946_v22  ;;  %4189 = vmatprep.subr.mxu1 %v4100_v7  ;;  %v4096_v22 = vld [vmem:[%s8328_s15 + $0x28] sm:$0xff]  ;;  %v4130_v7 = vld [vmem:[%s8328_s15 + $0x138] sm:$0xff] }
 0x3c4   :  { %4046 = vmatprep.subr.mxu0 %v3945_v59  ;;  %4190 = vmatpush1.msra.mxu1 %v4099_v34  ;;  %v4095_v59 = vld [vmem:[%s8328_s15 + $0x20] sm:$0xff]  ;;  %v4129_v34 = vld [vmem:[%s8328_s15 + $0x130] sm:$0xff] }
 0x3c5   :  { %4047 = vmatpush1.msra.mxu0 %v3944_v32  ;;  %4191 = vmatprep.subr.mxu1 %v4098_v20  ;;  %v4094_v32 = vld [vmem:[%s8328_s15 + $0x18] sm:$0xff]  ;;  %v4128_v20 = vld [vmem:[%s8328_s15 + $0x128] sm:$0xff] }
 0x3c6   :  { %4048 = vmatprep.subr.mxu0 %v3943_v1  ;;  %4192 = vmatpush1.msra.mxu1 %v4097_v46  ;;  %v4093_v1 = vld [vmem:[%s8328_s15 + $0x10] sm:$0xff]  ;;  %v4127_v46 = vld [vmem:[%s8328_s15 + $0x120] sm:$0xff] }
 0x3c7   :  { %4049 = vmatpush1.msra.mxu0 %v3942_v26  ;;  %4193 = vmatprep.subr.mxu1 %v4096_v22  ;;  %v4092_v26 = vld [vmem:[%s8328_s15 + $0x8] sm:$0xff]  ;;  %v4125_v22 = vld [vmem:[%s8328_s15 + $0x110] sm:$0xff] }
 0x3c8   :  { %4050 = vmatprep.subr.mxu0 %v4005_v48  ;;  %4194 = vmatpush1.msra.mxu1 %v4095_v59  ;;  %v4091_v48 = vld [vmem:[%s8328_s15] sm:$0xff]  ;;  %v4124_v59 = vld [vmem:[%s8328_s15 + $0x108] sm:$0xff] }
 0x3c9   :  { %4051 = vmatpush2.msra.mxu0 %v4004_v10  ;;  %4195 = vmatprep.subr.mxu1 %v4094_v32  ;;  %v4154_v10 = vld [vmem:[%s8328_s15 + $0x1f8] sm:$0xff]  ;;  %v4123_v32 = vld [vmem:[%s8328_s15 + $0x100] sm:$0xff] }
 0x3ca   :  { %4052 = vmatprep.subr.mxu0 %v4003_v49  ;;  %4196 = vmatpush1.msra.mxu1 %v4093_v1  ;;  %v4153_v49 = vld [vmem:[%s8328_s15 + $0x1f0] sm:$0xff]  ;;  %v4006_v1 = vld [vmem:[%s8330_s14] sm:$0x3] }
 0x3cb   :  { %4053 = vmatpush2.msra.mxu0 %v4002_v35  ;;  %4197 = vmatprep.subr.mxu1 %v4092_v26  ;;  %v4152_v35 = vld [vmem:[%s8328_s15 + $0x1e8] sm:$0xff] }
 0x3cc   :  { %4054 = vmatprep.subr.mxu0 %v4001_v30  ;;  %4198 = vmatpush1.msra.mxu1 %v4091_v48  ;;  %v4151_v30 = vld [vmem:[%s8328_s15 + $0x1e0] sm:$0xff] }
 0x3cd   :  { %4055 = vmatpush2.msra.mxu0 %v4000_v16  ;;  %4199 = vmatprep.subr.mxu1 %v4154_v10  ;;  %v4150_v16 = vld [vmem:[%s8328_s15 + $0x1d8] sm:$0xff] }
 0x3ce   :  { %4056 = vmatprep.subr.mxu0 %v3999_v40  ;;  %4200 = vmatpush2.msra.mxu1 %v4153_v49  ;;  %v4149_v40 = vld [vmem:[%s8328_s15 + $0x1d0] sm:$0xff] }
 0x3cf   :  { %4057 = vmatpush2.msra.mxu0 %v3998_v43  ;;  %4201 = vmatprep.subr.mxu1 %v4152_v35  ;;  %v4148_v43 = vld [vmem:[%s8328_s15 + $0x1c8] sm:$0xff] }
 0x3d0   :  { %4058 = vmatprep.subr.mxu0 %v3997_v0  ;;  %4202 = vmatpush2.msra.mxu1 %v4151_v30  ;;  %v4147_v0 = vld [vmem:[%s8328_s15 + $0x1c0] sm:$0xff] }
 0x3d1   :  { %4059 = vmatpush2.msra.mxu0 %v3996_v19  ;;  %4203 = vmatprep.subr.mxu1 %v4150_v16  ;;  %v4146_v19 = vld [vmem:[%s8328_s15 + $0x1b8] sm:$0xff] }
 0x3d2   :  { %4060 = vmatprep.subr.mxu0 %v3995_v51  ;;  %4204 = vmatpush2.msra.mxu1 %v4149_v40  ;;  %v4145_v51 = vld [vmem:[%s8328_s15 + $0x1b0] sm:$0xff] }
 0x3d3   :  { %4061 = vmatpush2.msra.mxu0 %v3994_v52  ;;  %4205 = vmatprep.subr.mxu1 %v4148_v43  ;;  %v4144_v52 = vld [vmem:[%s8328_s15 + $0x1a8] sm:$0xff]  ;;  %v4155_v43 = vld [vmem:[%s8331_s16] sm:$0x3] }
 0x3d4   :  { %4062 = vmatprep.subr.mxu0 %v3993_v33  ;;  %4206 = vmatpush2.msra.mxu1 %v4147_v0  ;;  %v4143_v33 = vld [vmem:[%s8328_s15 + $0x1a0] sm:$0xff] }
 0x3d5   :  { %4063 = vmatpush2.msra.mxu0 %v3992_v61  ;;  %4207 = vmatprep.subr.mxu1 %v4146_v19  ;;  %v4142_v61 = vld [vmem:[%s8328_s15 + $0x198] sm:$0xff] }
 0x3d6   :  { %4064 = vmatprep.subr.mxu0 %v3991_v2  ;;  %4208 = vmatpush2.msra.mxu1 %v4145_v51  ;;  %v4141_v2 = vld [vmem:[%s8328_s15 + $0x190] sm:$0xff] }
 0x3d7   :  { %4065 = vmatpush2.msra.mxu0 %v3990_v4  ;;  %4209 = vmatprep.subr.mxu1 %v4144_v52  ;;  %v4140_v4 = vld [vmem:[%s8328_s15 + $0x188] sm:$0xff] }
 0x3d8   :  { %4066 = vmatprep.subr.mxu0 %v3989_v17  ;;  %4210 = vmatpush2.msra.mxu1 %v4143_v33  ;;  %v4139_v17 = vld [vmem:[%s8328_s15 + $0x180] sm:$0xff] }
 0x3d9   :  { %4067 = vmatpush2.msra.mxu0 %v3988_v42  ;;  %4211 = vmatprep.subr.mxu1 %v4142_v61  ;;  %v4138_v42 = vld [vmem:[%s8328_s15 + $0x178] sm:$0xff] }
 0x3da   :  { %4068 = vmatprep.subr.mxu0 %v3987_v14  ;;  %4212 = vmatpush2.msra.mxu1 %v4141_v2  ;;  %v4137_v14 = vld [vmem:[%s8328_s15 + $0x170] sm:$0xff] }
 0x3db   :  { %4069 = vmatpush2.msra.mxu0 %v3986_v58  ;;  %4213 = vmatprep.subr.mxu1 %v4140_v4  ;;  %v4136_v58 = vld [vmem:[%s8328_s15 + $0x168] sm:$0xff] }
 0x3dc   :  { %4070 = vmatprep.subr.mxu0 %v3985_v21  ;;  %4214 = vmatpush2.msra.mxu1 %v4139_v17  ;;  %v4135_v21 = vld [vmem:[%s8328_s15 + $0x160] sm:$0xff] }
 0x3dd   :  { %4071 = vmatpush2.msra.mxu0 %v3984_v8  ;;  %4215 = vmatprep.subr.mxu1 %v4138_v42  ;;  %v4134_v8 = vld [vmem:[%s8328_s15 + $0x158] sm:$0xff]  ;;  %v4240_v17 = vld [vmem:[%s8332_s20] sm:$0x3] }
 0x3de   :  { %4072 = vmatprep.subr.mxu0 %v3983_v60  ;;  %4216 = vmatpush2.msra.mxu1 %v4137_v14  ;;  %v4133_v60 = vld [vmem:[%s8328_s15 + $0x150] sm:$0xff]  ;;  %v4347_v42 = vld [vmem:[%s8333_s17 + $0xf8] sm:$0xff] }
 0x3df   :  { %4073 = vmatpush2.msra.mxu0 %v3982_v37  ;;  %4217 = vmatprep.subr.mxu1 %v4136_v58  ;;  %v4132_v37 = vld [vmem:[%s8328_s15 + $0x148] sm:$0xff]  ;;  %v4346_v14 = vld [vmem:[%s8333_s17 + $0xf0] sm:$0xff] }
 0x3e0   :  { %4074 = vmatprep.subr.mxu0 %v3981_v9  ;;  %4218 = vmatpush2.msra.mxu1 %v4135_v21  ;;  %v4131_v9 = vld [vmem:[%s8328_s15 + $0x140] sm:$0xff]  ;;  %v4345_v58 = vld [vmem:[%s8333_s17 + $0xe8] sm:$0xff] }
 0x3e1   :  { %4075 = vmatpush2.msra.mxu0 %v3980_v6  ;;  %4219 = vmatprep.subr.mxu1 %v4134_v8  ;;  %v4344_v21 = vld [vmem:[%s8333_s17 + $0xe0] sm:$0xff]  ;;  %v4343_v8 = vld [vmem:[%s8333_s17 + $0xd8] sm:$0xff] }
 0x3e2   :  { %4076 = vmatprep.subr.mxu0 %v3979_v36  ;;  %4220 = vmatpush2.msra.mxu1 %v4133_v60  ;;  %v4342_v60 = vld [vmem:[%s8333_s17 + $0xd0] sm:$0xff] }
 0x3e3   :  { %4077 = vmatpush2.msra.mxu0 %v3978_v57  ;;  %4221 = vmatprep.subr.mxu1 %v4132_v37  ;;  %v3928_v57 = vlaneseq  ;;  %v4341_v37 = vld [vmem:[%s8333_s17 + $0xc8] sm:$0xff] }
 0x3e4   :  { %4078 = vmatprep.subr.mxu0 %v3977_v25  ;;  %4222 = vmatpush2.msra.mxu1 %v4131_v9  ;;  %v4340_v9 = vld [vmem:[%s8333_s17 + $0xc0] sm:$0xff] }
 0x3e5   :  { %4079 = vmatpush2.msra.mxu0 %v3976_v63  ;;  %4223 = vmatprep.subr.mxu1 %v4130_v7  ;;  %v4376_v7 = vld [vmem:[%s8333_s17 + $0x1e0] sm:$0xff] }
 0x3e6   :  { %4080 = vmatprep.subr.mxu0 %v3975_v38  ;;  %4224 = vmatpush2.msra.mxu1 %v4129_v34  ;;  %v4375_v34 = vld [vmem:[%s8333_s17 + $0x1d8] sm:$0xff] }
 0x3e7   :  { %4081 = vmatpush2.msra.mxu0 %v3974_v44  ;;  %v3929_v44 = vshrl.u32 %v3928_v57, 7  ;;  %4225 = vmatprep.subr.mxu1 %v4128_v20  ;;  %v4337_v57 = vld [vmem:[%s8333_s17 + $0xa8] sm:$0xff]  ;;  %v4374_v20 = vld [vmem:[%s8333_s17 + $0x1d0] sm:$0xff] }
 0x3e8   :  { %4226 = vmatpush2.msra.mxu1 %v4127_v46  ;;  %v4373_v46 = vld [vmem:[%s8333_s17 + $0x1c8] sm:$0xff] }
 0x3e9   :  { %v7876_v53 = vsub.s32 0, %v3929_v44  ;;  %v7881_v31 = vsub.s32 1, %v3929_v44  ;;  %v4333_v44 = vld [vmem:[%s8333_s17 + $0x88] sm:$0xff] }
 0x3eb   :  { %v3931_v56 = vrot.slane %v3926_v27, %v7876_v53  ;;  %v3935_v15 = vrot.slane %v3926_v27, %v7881_v31  ;;  %v4011_v26 = vrot.slane %v4006_v1, %v7876_v53  ;;  %v4015_v48 = vrot.slane %v4006_v1, %v7881_v31  ;;  %v4326_v27 = vld [vmem:[%s8333_s17 + $0x50] sm:$0xff]  ;;  %v4368_v1 = vld [vmem:[%s8333_s17 + $0x1a0] sm:$0xff] }
 0x3ec   :  { %v4160_v0 = vrot.slane %v4155_v43, %v7876_v53  ;;  %v4164_v19 = vrot.slane %v4155_v43, %v7881_v31  ;;  %v4359_v43 = vld [vmem:[%s8333_s17 + $0x158] sm:$0xff] }
 0x453   :  { %v3611_v6 = vpop.f32.mrf.mxu1 }
 0x455   :  { %v3685_v36 = vpop.f32.mrf.mxu0  ;;  %v3613_v25 = vpop.f32.mrf.mxu1 }
 0x456   :  { %v3686_v29 = vadd.f32 %v3685_v36, %v3611_v6  ;;  %v4339_v6 = vld [vmem:[%s8333_s17 + $0xb8] sm:$0xff]  ;;  %v4338_v36 = vld [vmem:[%s8333_s17 + $0xb0] sm:$0xff] }
 0x457   :  { %v3687_v38 = vpop.f32.mrf.mxu0 }
 0x458   :  { %v3688_v23 = vadd.f32 %v3687_v38, %v3613_v25  ;;  %v4336_v25 = vld [vmem:[%s8333_s17 + $0xa0] sm:$0xff]  ;;  %v4334_v38 = vld [vmem:[%s8333_s17 + $0x90] sm:$0xff] }
 0x463   :  { %v3759_v63 = vpop.f32.mrf.mxu1 }
 0x464   :  { %v3764_v62 = vadd.f32 %v3759_v63, %v3686_v29  ;;  %v4335_v63 = vld [vmem:[%s8333_s17 + $0x98] sm:$0xff]  ;;  %v4332_v29 = vld [vmem:[%s8333_s17 + $0x80] sm:$0xff] }
 0x465   :  { %v3761_v41 = vpop.f32.mrf.mxu1 }
 0x466   :  { %v3835_v11 = vpop.f32.mrf.mxu0  ;;  %v3765_v39 = vadd.f32 %v3761_v41, %v3688_v23  ;;  %v4331_v41 = vld [vmem:[%s8333_s17 + $0x78] sm:$0xff]  ;;  %v4329_v23 = vld [vmem:[%s8333_s17 + $0x68] sm:$0xff] }
 0x467   :  { %v3840_v3 = vadd.f32 %v3835_v11, %v3764_v62  ;;  %v4330_v11 = vld [vmem:[%s8333_s17 + $0x70] sm:$0xff]  ;;  %v4328_v62 = vld [vmem:[%s8333_s17 + $0x60] sm:$0xff] }
 0x468   :  { %v3837_v13 = vpop.f32.mrf.mxu0 }
 0x469   :  { %v3841_v5 = vadd.f32 %v3837_v13, %v3765_v39  ;;  %v4327_v39 = vld [vmem:[%s8333_s17 + $0x58] sm:$0xff]  ;;  %v4325_v13 = vld [vmem:[%s8333_s17 + $0x48] sm:$0xff] }
 0x46c   :  { %v3919_v55 = vpop.f32.mrf.mxu1 }
 0x46d   :  { %v3924_v18 = vadd.f32 %v3919_v55, %v3840_v3  ;;  %v4324_v3 = vld [vmem:[%s8333_s17 + $0x40] sm:$0xff]  ;;  %v4323_v55 = vld [vmem:[%s8333_s17 + $0x38] sm:$0xff] }
 0x46e   :  { %v3921_v28 = vpop.f32.mrf.mxu1 }
 0x46f   :  { %v3925_v50 = vadd.f32 %v3921_v28, %v3841_v5  ;;  %v3938_v54 = vadd.f32 %v3931_v56, %v3924_v18  ;;  %v4322_v56 = vld [vmem:[%s8333_s17 + $0x30] sm:$0xff]  ;;  %v4321_v5 = vld [vmem:[%s8333_s17 + $0x28] sm:$0xff]  ;;  %v4320_v18 = vld [vmem:[%s8333_s17 + $0x20] sm:$0xff] }
 0x470   :  { %v4318_v28 = vld [vmem:[%s8333_s17 + $0x10] sm:$0xff] }
 0x471   :  { %v3939_v45 = vadd.f32 %v3935_v15, %v3925_v50  ;;  %v3940_v47 = vmax.f32 %v3938_v54, 0.0  ;;  %v4319_v15 = vld [vmem:[%s8333_s17 + $0x18] sm:$0xff]  ;;  %v4317_v50 = vld [vmem:[%s8333_s17 + $0x8] sm:$0xff]  ;;  %v4316_v54 = vld [vmem:[%s8333_s17] sm:$0xff] }
 0x473   :  { %v3941_v12 = vmax.f32 %v3939_v45, 0.0  ;;  %v4379_v45 = vld [vmem:[%s8333_s17 + $0x1f8] sm:$0xff] }
 0x475   :  { %4082 = vmatprep.mubr.f32.mxu0 %v3941_v12  ;;  %v4378_v12 = vld [vmem:[%s8333_s17 + $0x1f0] sm:$0xff] }
 0x476   :  { %4083 = vmatmul.mubr.f32.vlgmr.msra.gmra.mxu0 %v3940_v47  ;;  %v4377_v47 = vld [vmem:[%s8333_s17 + $0x1e8] sm:$0xff] }
 0x477   :  { %4309 = vmatprep.mubr.f32.mxu0 %v8373_v24  ;;  %v4126_v24 = vld [vmem:[%s8328_s15 + $0x118] sm:$0xff] }
 0x478   :  { %4227 = vmatprep.subr.mxu1 %v4126_v24  ;;  %v4372_v24 = vld [vmem:[%s8333_s17 + $0x1c0] sm:$0xff] }
 0x479   :  { %4228 = vmatpush2.msra.mxu1 %v4125_v22  ;;  %v4371_v22 = vld [vmem:[%s8333_s17 + $0x1b8] sm:$0xff] }
 0x47a   :  { %4229 = vmatprep.subr.mxu1 %v4124_v59  ;;  %v4370_v59 = vld [vmem:[%s8333_s17 + $0x1b0] sm:$0xff] }
 0x47b   :  { %4230 = vmatpush2.msra.mxu1 %v4123_v32  ;;  %v4369_v32 = vld [vmem:[%s8333_s17 + $0x1a8] sm:$0xff] }
 0x536   :  { %v4084_v10 = vpop.f32.mrf.mxu0 }
 0x537   :  { %v4085_v49 = vadd.f32 %v4084_v10, %v4011_v26  ;;  %v4367_v26 = vld [vmem:[%s8333_s17 + $0x198] sm:$0xff]  ;;  %v4365_v10 = vld [vmem:[%s8333_s17 + $0x188] sm:$0xff] }
 0x538   :  { %v4086_v35 = vpop.f32.mrf.mxu0 }
 0x539   :  { %v4087_v30 = vadd.f32 %v4086_v35, %v4015_v48  ;;  %v4089_v40 = vmax.f32 %v4085_v49, 0.0  ;;  %v4366_v48 = vld [vmem:[%s8333_s17 + $0x190] sm:$0xff]  ;;  %v4364_v49 = vld [vmem:[%s8333_s17 + $0x180] sm:$0xff]  ;;  %v4363_v35 = vld [vmem:[%s8333_s17 + $0x178] sm:$0xff] }
 0x53b   :  { %v4090_v16 = vmax.f32 %v4087_v30, 0.0  ;;  %v4362_v30 = vld [vmem:[%s8333_s17 + $0x170] sm:$0xff] }
 0x53d   :  { %4231 = vmatprep.mubr.f32.mxu1 %v4090_v16  ;;  %v4361_v16 = vld [vmem:[%s8333_s17 + $0x168] sm:$0xff] }
 0x53e   :  { %4232 = vmatmul.mubr.f32.vlgmr.msra.gmra.mxu1 %v4089_v40  ;;  %v4360_v40 = vld [vmem:[%s8333_s17 + $0x160] sm:$0xff] }
 0x5fe   :  { %v4233_v51 = vpop.f32.mrf.mxu1 }
 0x5ff   :  { %v4234_v52 = vadd.f32 %v4233_v51, %v4160_v0  ;;  %v4358_v0 = vld [vmem:[%s8333_s17 + $0x150] sm:$0xff]  ;;  %v4356_v51 = vld [vmem:[%s8333_s17 + $0x140] sm:$0xff] }
 0x600   :  { %v4235_v33 = vpop.f32.mrf.mxu1 }
 0x601   :  { %v4236_v61 = vadd.f32 %v4235_v33, %v4164_v19  ;;  %v4238_v4 = vmax.f32 %v4234_v52, 0.0  ;;  %v4357_v19 = vld [vmem:[%s8333_s17 + $0x148] sm:$0xff]  ;;  %v4355_v52 = vld [vmem:[%s8333_s17 + $0x138] sm:$0xff]  ;;  %v4354_v33 = vld [vmem:[%s8333_s17 + $0x130] sm:$0xff] }
 0x603   :  { %v4239_v2 = vmax.f32 %v4236_v61, 0.0  ;;  %v4353_v61 = vld [vmem:[%s8333_s17 + $0x128] sm:$0xff] }
 0x605   :  { %4275 = vmatprep.subr.mxu0 %v4239_v2  ;;  %v4352_v2 = vld [vmem:[%s8333_s17 + $0x120] sm:$0xff] }
 0x606   :  { %4276 = vmatpush1.msra.mxu0 %v4238_v4  ;;  %v4351_v4 = vld [vmem:[%s8333_s17 + $0x118] sm:$0xff] }
 0x607   :  { %4836 = vmatmul.mubr.msk.f32.vlgmr.msra.gmra.mxu0 %vm4241_vm8, %v4240_v17  ;;  %4392 = vmatprep.subr.mxu0 %v4347_v42  ;;  %v4350_v17 = vld [vmem:[%s8333_s17 + $0x110] sm:$0xff]  ;;  %v4349_v42 = vld [vmem:[%s8333_s17 + $0x108] sm:$0xff] }
 0x608   :  { %4393 = vmatpush1.msra.mxu0 %v4346_v14  ;;  %v4348_v14 = vld [vmem:[%s8333_s17 + $0x100] sm:$0xff] }
 0x609   :  { %4394 = vmatprep.subr.mxu0 %v4345_v58  ;;  %v4494_v58 = vld [vmem:[%s8334_s19 + $0xf8] sm:$0xff] }
 0x60a   :  { %4395 = vmatpush1.msra.mxu0 %v4344_v21  ;;  %v4493_v21 = vld [vmem:[%s8334_s19 + $0xf0] sm:$0xff]  ;;  %4527 = vmatprep.subr.mxu1 %v4494_v58  ;;  %v4498_v58 = vld [vmem:[%s8334_s19 + $0x118] sm:$0xff] }
 0x60b   :  { %4396 = vmatprep.subr.mxu0 %v4343_v8  ;;  %v4492_v8 = vld [vmem:[%s8334_s19 + $0xe8] sm:$0xff]  ;;  %4528 = vmatpush1.msra.mxu1 %v4493_v21  ;;  %v4497_v21 = vld [vmem:[%s8334_s19 + $0x110] sm:$0xff] }
 0x60c   :  { %4397 = vmatpush1.msra.mxu0 %v4342_v60  ;;  %v4491_v60 = vld [vmem:[%s8334_s19 + $0xe0] sm:$0xff]  ;;  %4529 = vmatprep.subr.mxu1 %v4492_v8  ;;  %v4496_v8 = vld [vmem:[%s8334_s19 + $0x108] sm:$0xff] }
 0x60d   :  { %4398 = vmatprep.subr.mxu0 %v4341_v37  ;;  %v4490_v37 = vld [vmem:[%s8334_s19 + $0xd8] sm:$0xff]  ;;  %4530 = vmatpush1.msra.mxu1 %v4491_v60  ;;  %v4495_v60 = vld [vmem:[%s8334_s19 + $0x100] sm:$0xff] }
 0x60e   :  { %4399 = vmatpush1.msra.mxu0 %v4340_v9  ;;  %v4489_v9 = vld [vmem:[%s8334_s19 + $0xd0] sm:$0xff]  ;;  %4531 = vmatprep.subr.mxu1 %v4490_v37  ;;  %v4380_v37 = vld [vmem:[%s8335_s18] sm:$0x3] }
 0x60f   :  { %4400 = vmatprep.subr.mxu0 %v4339_v6  ;;  %v4488_v6 = vld [vmem:[%s8334_s19 + $0xc8] sm:$0xff]  ;;  %4532 = vmatpush1.msra.mxu1 %v4489_v9  ;;  %v4389_v9 = vrot.slane %v4380_v37, %v7881_v31 }
 0x610   :  { %4401 = vmatpush1.msra.mxu0 %v4338_v36  ;;  %v4487_v36 = vld [vmem:[%s8334_s19 + $0xc0] sm:$0xff]  ;;  %4533 = vmatprep.subr.mxu1 %v4488_v6  ;;  %v4385_v6 = vrot.slane %v4380_v37, %v7876_v53 }
 0x611   :  { %4402 = vmatprep.subr.mxu0 %v4337_v57  ;;  %v4486_v57 = vld [vmem:[%s8334_s19 + $0xb8] sm:$0xff]  ;;  %4534 = vmatpush1.msra.mxu1 %v4487_v36 }
 0x612   :  { %4403 = vmatpush1.msra.mxu0 %v4336_v25  ;;  %v4485_v25 = vld [vmem:[%s8334_s19 + $0xb0] sm:$0xff]  ;;  %4535 = vmatprep.subr.mxu1 %v4486_v57 }
 0x613   :  { %4404 = vmatprep.subr.mxu0 %v4335_v63  ;;  %v4484_v63 = vld [vmem:[%s8334_s19 + $0xa8] sm:$0xff]  ;;  %4536 = vmatpush1.msra.mxu1 %v4485_v25 }
 0x614   :  { %4405 = vmatpush1.msra.mxu0 %v4334_v38  ;;  %v4483_v38 = vld [vmem:[%s8334_s19 + $0xa0] sm:$0xff]  ;;  %4537 = vmatprep.subr.mxu1 %v4484_v63 }
 0x615   :  { %4406 = vmatprep.subr.mxu0 %v4333_v44  ;;  %v4482_v44 = vld [vmem:[%s8334_s19 + $0x98] sm:$0xff]  ;;  %4538 = vmatpush1.msra.mxu1 %v4483_v38 }
 0x616   :  { %4407 = vmatpush1.msra.mxu0 %v4332_v29  ;;  %v4481_v29 = vld [vmem:[%s8334_s19 + $0x90] sm:$0xff]  ;;  %4539 = vmatprep.subr.mxu1 %v4482_v44 }
 0x617   :  { %4408 = vmatprep.subr.mxu0 %v4331_v41  ;;  %v4480_v41 = vld [vmem:[%s8334_s19 + $0x88] sm:$0xff]  ;;  %4540 = vmatpush1.msra.mxu1 %v4481_v29 }
 0x618   :  { %4409 = vmatpush1.msra.mxu0 %v4330_v11  ;;  %v4479_v11 = vld [vmem:[%s8334_s19 + $0x80] sm:$0xff]  ;;  %4541 = vmatprep.subr.mxu1 %v4480_v41 }
 0x619   :  { %4410 = vmatprep.subr.mxu0 %v4329_v23  ;;  %v4478_v23 = vld [vmem:[%s8334_s19 + $0x78] sm:$0xff]  ;;  %4542 = vmatpush1.msra.mxu1 %v4479_v11 }
 0x61a   :  { %4411 = vmatpush1.msra.mxu0 %v4328_v62  ;;  %v4477_v62 = vld [vmem:[%s8334_s19 + $0x70] sm:$0xff]  ;;  %4543 = vmatprep.subr.mxu1 %v4478_v23 }
 0x61b   :  { %4412 = vmatprep.subr.mxu0 %v4327_v39  ;;  %v4476_v39 = vld [vmem:[%s8334_s19 + $0x68] sm:$0xff]  ;;  %4544 = vmatpush1.msra.mxu1 %v4477_v62 }
 0x61c   :  { %4413 = vmatpush1.msra.mxu0 %v4326_v27  ;;  %v4475_v27 = vld [vmem:[%s8334_s19 + $0x60] sm:$0xff]  ;;  %4545 = vmatprep.subr.mxu1 %v4476_v39 }
 0x61d   :  { %4414 = vmatprep.subr.mxu0 %v4325_v13  ;;  %v4474_v13 = vld [vmem:[%s8334_s19 + $0x58] sm:$0xff]  ;;  %4546 = vmatpush1.msra.mxu1 %v4475_v27 }
 0x61e   :  { %4415 = vmatpush1.msra.mxu0 %v4324_v3  ;;  %v4473_v3 = vld [vmem:[%s8334_s19 + $0x50] sm:$0xff]  ;;  %4547 = vmatprep.subr.mxu1 %v4474_v13 }
 0x61f   :  { %4416 = vmatprep.subr.mxu0 %v4323_v55  ;;  %v4472_v55 = vld [vmem:[%s8334_s19 + $0x48] sm:$0xff]  ;;  %4548 = vmatpush1.msra.mxu1 %v4473_v3 }
 0x620   :  { %4417 = vmatpush1.msra.mxu0 %v4322_v56  ;;  %v4471_v56 = vld [vmem:[%s8334_s19 + $0x40] sm:$0xff]  ;;  %4549 = vmatprep.subr.mxu1 %v4472_v55 }
 0x621   :  { %4418 = vmatprep.subr.mxu0 %v4321_v5  ;;  %v4470_v5 = vld [vmem:[%s8334_s19 + $0x38] sm:$0xff]  ;;  %4550 = vmatpush1.msra.mxu1 %v4471_v56 }
 0x622   :  { %4419 = vmatpush1.msra.mxu0 %v4320_v18  ;;  %v4469_v18 = vld [vmem:[%s8334_s19 + $0x30] sm:$0xff]  ;;  %4551 = vmatprep.subr.mxu1 %v4470_v5 }
 0x623   :  { %4420 = vmatprep.subr.mxu0 %v4319_v15  ;;  %v4468_v15 = vld [vmem:[%s8334_s19 + $0x28] sm:$0xff]  ;;  %4552 = vmatpush1.msra.mxu1 %v4469_v18 }
 0x624   :  { %4421 = vmatpush1.msra.mxu0 %v4318_v28  ;;  %v4467_v28 = vld [vmem:[%s8334_s19 + $0x20] sm:$0xff]  ;;  %4553 = vmatprep.subr.mxu1 %v4468_v15 }
 0x625   :  { %4422 = vmatprep.subr.mxu0 %v4317_v50  ;;  %v4466_v50 = vld [vmem:[%s8334_s19 + $0x18] sm:$0xff]  ;;  %4554 = vmatpush1.msra.mxu1 %v4467_v28 }
 0x626   :  { %4423 = vmatpush1.msra.mxu0 %v4316_v54  ;;  %v4465_v54 = vld [vmem:[%s8334_s19 + $0x10] sm:$0xff]  ;;  %4555 = vmatprep.subr.mxu1 %v4466_v50 }
 0x627   :  { %4424 = vmatprep.subr.mxu0 %v4379_v45  ;;  %v4464_v45 = vld [vmem:[%s8334_s19 + $0x8] sm:$0xff]  ;;  %4556 = vmatpush1.msra.mxu1 %v4465_v54 }
 0x628   :  { %4425 = vmatpush2.msra.mxu0 %v4378_v12  ;;  %v4463_v12 = vld [vmem:[%s8334_s19] sm:$0xff]  ;;  %4557 = vmatprep.subr.mxu1 %v4464_v45 }
 0x629   :  { %4426 = vmatprep.subr.mxu0 %v4377_v47  ;;  %v4526_v47 = vld [vmem:[%s8334_s19 + $0x1f8] sm:$0xff]  ;;  %4558 = vmatpush1.msra.mxu1 %v4463_v12 }
 0x62a   :  { %4427 = vmatpush2.msra.mxu0 %v4376_v7  ;;  %v4525_v7 = vld [vmem:[%s8334_s19 + $0x1f0] sm:$0xff]  ;;  %4559 = vmatprep.subr.mxu1 %v4526_v47 }
 0x62b   :  { %4428 = vmatprep.subr.mxu0 %v4375_v34  ;;  %v4524_v34 = vld [vmem:[%s8334_s19 + $0x1e8] sm:$0xff]  ;;  %4560 = vmatpush2.msra.mxu1 %v4525_v7 }
 0x62c   :  { %4429 = vmatpush2.msra.mxu0 %v4374_v20  ;;  %v4523_v20 = vld [vmem:[%s8334_s19 + $0x1e0] sm:$0xff]  ;;  %4561 = vmatprep.subr.mxu1 %v4524_v34 }
 0x62d   :  { %4430 = vmatprep.subr.mxu0 %v4373_v46  ;;  %v4522_v46 = vld [vmem:[%s8334_s19 + $0x1d8] sm:$0xff]  ;;  %4562 = vmatpush2.msra.mxu1 %v4523_v20 }
 0x62e   :  { %4431 = vmatpush2.msra.mxu0 %v4372_v24  ;;  %v4521_v24 = vld [vmem:[%s8334_s19 + $0x1d0] sm:$0xff]  ;;  %4563 = vmatprep.subr.mxu1 %v4522_v46 }
 0x62f   :  { %4432 = vmatprep.subr.mxu0 %v4371_v22  ;;  %v4520_v22 = vld [vmem:[%s8334_s19 + $0x1c8] sm:$0xff]  ;;  %4564 = vmatpush2.msra.mxu1 %v4521_v24 }
 0x630   :  { %4433 = vmatpush2.msra.mxu0 %v4370_v59  ;;  %v4519_v59 = vld [vmem:[%s8334_s19 + $0x1c0] sm:$0xff]  ;;  %4565 = vmatprep.subr.mxu1 %v4520_v22 }
 0x631   :  { %4434 = vmatprep.subr.mxu0 %v4369_v32  ;;  %v4518_v32 = vld [vmem:[%s8334_s19 + $0x1b8] sm:$0xff]  ;;  %4566 = vmatpush2.msra.mxu1 %v4519_v59 }
 0x632   :  { %4435 = vmatpush2.msra.mxu0 %v4368_v1  ;;  %v4517_v1 = vld [vmem:[%s8334_s19 + $0x1b0] sm:$0xff]  ;;  %4567 = vmatprep.subr.mxu1 %v4518_v32 }
 0x633   :  { %4436 = vmatprep.subr.mxu0 %v4367_v26  ;;  %v4516_v26 = vld [vmem:[%s8334_s19 + $0x1a8] sm:$0xff]  ;;  %4568 = vmatpush2.msra.mxu1 %v4517_v1 }
 0x634   :  { %4437 = vmatpush2.msra.mxu0 %v4366_v48  ;;  %v4515_v48 = vld [vmem:[%s8334_s19 + $0x1a0] sm:$0xff]  ;;  %4569 = vmatprep.subr.mxu1 %v4516_v26 }
 0x635   :  { %4438 = vmatprep.subr.mxu0 %v4365_v10  ;;  %v4514_v10 = vld [vmem:[%s8334_s19 + $0x198] sm:$0xff]  ;;  %4570 = vmatpush2.msra.mxu1 %v4515_v48 }
 0x636   :  { %4439 = vmatpush2.msra.mxu0 %v4364_v49  ;;  %v4513_v49 = vld [vmem:[%s8334_s19 + $0x190] sm:$0xff]  ;;  %4571 = vmatprep.subr.mxu1 %v4514_v10 }
 0x637   :  { %4440 = vmatprep.subr.mxu0 %v4363_v35  ;;  %v4512_v35 = vld [vmem:[%s8334_s19 + $0x188] sm:$0xff]  ;;  %4572 = vmatpush2.msra.mxu1 %v4513_v49 }
 0x638   :  { %4441 = vmatpush2.msra.mxu0 %v4362_v30  ;;  %v4511_v30 = vld [vmem:[%s8334_s19 + $0x180] sm:$0xff]  ;;  %4573 = vmatprep.subr.mxu1 %v4512_v35 }
 0x639   :  { %4442 = vmatprep.subr.mxu0 %v4361_v16  ;;  %v4510_v16 = vld [vmem:[%s8334_s19 + $0x178] sm:$0xff]  ;;  %4574 = vmatpush2.msra.mxu1 %v4511_v30 }
 0x63a   :  { %4443 = vmatpush2.msra.mxu0 %v4360_v40  ;;  %v4509_v40 = vld [vmem:[%s8334_s19 + $0x170] sm:$0xff]  ;;  %4575 = vmatprep.subr.mxu1 %v4510_v16 }
 0x63b   :  { %4444 = vmatprep.subr.mxu0 %v4359_v43  ;;  %v4508_v43 = vld [vmem:[%s8334_s19 + $0x168] sm:$0xff]  ;;  %4576 = vmatpush2.msra.mxu1 %v4509_v40 }
 0x63c   :  { %4445 = vmatpush2.msra.mxu0 %v4358_v0  ;;  %v4507_v0 = vld [vmem:[%s8334_s19 + $0x160] sm:$0xff]  ;;  %4577 = vmatprep.subr.mxu1 %v4508_v43 }
 0x63d   :  { %4446 = vmatprep.subr.mxu0 %v4357_v19  ;;  %v4506_v19 = vld [vmem:[%s8334_s19 + $0x158] sm:$0xff]  ;;  %4578 = vmatpush2.msra.mxu1 %v4507_v0 }
 0x63e   :  { %4447 = vmatpush2.msra.mxu0 %v4356_v51  ;;  %v4505_v51 = vld [vmem:[%s8334_s19 + $0x150] sm:$0xff]  ;;  %4579 = vmatprep.subr.mxu1 %v4506_v19 }
 0x63f   :  { %4448 = vmatprep.subr.mxu0 %v4355_v52  ;;  %v4504_v52 = vld [vmem:[%s8334_s19 + $0x148] sm:$0xff]  ;;  %4580 = vmatpush2.msra.mxu1 %v4505_v51 }
 0x640   :  { %4449 = vmatpush2.msra.mxu0 %v4354_v33  ;;  %v4503_v33 = vld [vmem:[%s8334_s19 + $0x140] sm:$0xff]  ;;  %4581 = vmatprep.subr.mxu1 %v4504_v52 }
 0x641   :  { %4450 = vmatprep.subr.mxu0 %v4353_v61  ;;  %v4502_v61 = vld [vmem:[%s8334_s19 + $0x138] sm:$0xff]  ;;  %4582 = vmatpush2.msra.mxu1 %v4503_v33 }
 0x642   :  { %4451 = vmatpush2.msra.mxu0 %v4352_v2  ;;  %v4501_v2 = vld [vmem:[%s8334_s19 + $0x130] sm:$0xff]  ;;  %4583 = vmatprep.subr.mxu1 %v4502_v61 }
 0x643   :  { %4452 = vmatprep.subr.mxu0 %v4351_v4  ;;  %4584 = vmatpush2.msra.mxu1 %v4501_v2 }
 0x644   :  { %4453 = vmatpush2.msra.mxu0 %v4350_v17 }
 0x645   :  { %4454 = vmatprep.subr.mxu0 %v4349_v42  ;;  %v4500_v42 = vld [vmem:[%s8334_s19 + $0x128] sm:$0xff] }
 0x646   :  { %4455 = vmatpush2.msra.mxu0 %v4348_v14  ;;  %4585 = vmatprep.subr.mxu1 %v4500_v42  ;;  %v4499_v14 = vld [vmem:[%s8334_s19 + $0x120] sm:$0xff] }
 0x647   :  { %4586 = vmatpush2.msra.mxu1 %v4499_v14 }
 0x648   :  { %4587 = vmatprep.subr.mxu1 %v4498_v58 }
 0x649   :  { %4588 = vmatpush2.msra.mxu1 %v4497_v21 }
 0x64a   :  { %4589 = vmatprep.subr.mxu1 %v4496_v8 }
 0x64b   :  { %4590 = vmatpush2.msra.mxu1 %v4495_v60 }
 0x6c7   :  { %v4311_v4 = vpop.f32.mrf.mxu0 }
 0x6c9   :  { %v4313_v17 = vpop.f32.mrf.mxu0 }
 0x6ca   :  { %4456 = vmatprep.mubr.f32.mxu0 %v4313_v17 }
 0x6cb   :  { %4457 = vmatmul.mubr.f32.vlgmr.msra.gmra.mxu0 %v4311_v4 }
 0x78b   :  { %v4458_v36 = vpop.f32.mrf.mxu0 }
 0x78c   :  { %v4459_v63 = vadd.f32 %v4458_v36, %v4385_v6 }
 0x78d   :  { %v4460_v57 = vpop.f32.mrf.mxu0 }
 0x78e   :  { %v4461_v25 = vadd.f32 %v4460_v57, %v4389_v9 }
 0x790   :  { %4591 = vmatprep.mubr.f32.mxu1 %v4461_v25 }
 0x791   :  { %4592 = vmatmul.mubr.f32.vlgmr.msra.gmra.mxu1 %v4459_v63 }
 0x851   :  { %v4593_v38 = vpop.f32.mrf.mxu1 }
 0x853   :  { %v4595_v44 = vpop.f32.mrf.mxu1 }
 0x854   :  { %v4600_v29 = vcombine.low %v4593_v38, %v4595_v44 }
 0x856   :  { %4837 = vst.sshfl [vmem:[%s8336_s21] sm:$0x33 pattern:$0x76325410] %v4600_v29 }

</bundles_post_ra>
